<compile_context>
chip_gen: v5e
topology: v5e:2x2
jax: 0.10.0
libtpu: 0.0.40
codegen_flags: <defaults>
</compile_context>

<pallas_src>
import functools
import math

import jax
import jax.numpy as jnp
from jax import lax
from jax.experimental import pallas as pl
from jax.experimental.pallas import tpu as pltpu


LN_EPS = 1e-5
N_HEAD = 256                       # MaskedConv1d(d_model, 256, 1) for p and q
HEAD_SCALE = 1.0 / 256.0           # hard-coded `/ 256` in the PyTorch forward
VMEM_SOFT_CAP = 40 * 1024 * 1024   # headroom under v7x's 64 MiB physical VMEM


def _round_up(x, m):
    return ((x + m - 1) // m) * m


def _vmem_limit(est_bytes):
    # >= 32 MiB (covers v5e's 16 MiB default scoped limit), <= 56 MiB (v7x).
    return int(min(max(est_bytes, 32 << 20), 56 << 20))


def _row_plan(rows, per_row_bytes, static_bytes):
    """Row tile for the flattened (B*L, C) kernels.

    Largest of (512, 256, 128, 64) that divides `rows`, gives >= 2 grid steps
    (keeps both v7x TensorCores busy) and fits the soft VMEM cap with double
    buffering; falls back to the smallest divisor otherwise.
    """
    divisors = [t for t in (512, 256, 128, 64) if rows % t == 0]
    if not divisors:
        divisors = [rows]
    tile = divisors[-1]
    for t in divisors:
        if rows // t >= 2 and 2 * t * per_row_bytes + static_bytes <= VMEM_SOFT_CAP:
            tile = t
            break
    est = 2 * tile * per_row_bytes + static_bytes + (2 << 20)
    return tile, rows // tile, _vmem_limit(est)


# ---------------------------------------------------------------------------
# Pallas kernels
# ---------------------------------------------------------------------------
def _matmul_bias_kernel(x_ref, w_ref, b_ref, o_ref):
    # x: (R, Cin), w: (Cin, Cout), b: (1, Cout) -> o: (R, Cout)
    y = jnp.dot(x_ref[...], w_ref[...], preferred_element_type=jnp.float32)
    o_ref[...] = (y + b_ref[...]).astype(o_ref.dtype)


def _ln_stats(x, c_true, c_pad):
    # LayerNorm statistics over the TRUE channel count.  Padded channels are
    # exactly zero, so they are corrected out of the reductions analytically.
    inv_c = 1.0 / float(c_true)
    n_pad = float(c_pad - c_true)
    mu = jnp.sum(x, axis=-1, keepdims=True) * inv_c
    d = x - mu
    var = (jnp.sum(d * d, axis=-1, keepdims=True) - n_pad * (mu * mu)) * inv_c
    return d, var


def _make_ln_relu_ff_kernel(c_true, c_pad):
    # relu(LayerNorm(x)) @ w + b; LN stats and MXU accumulation in f32.
    def kernel(x_ref, g_ref, bt_ref, w_ref, b_ref, o_ref):
        x = x_ref[...].astype(jnp.float32)
        d, var = _ln_stats(x, c_true, c_pad)
        h = d * lax.rsqrt(var + LN_EPS) * g_ref[...] + bt_ref[...]
        h = jnp.maximum(h, 0.0)
        y = jnp.dot(h.astype(w_ref.dtype), w_ref[...],
                    preferred_element_type=jnp.float32)
        o_ref[...] = (y + b_ref[...]).astype(o_ref.dtype)
    return kernel


def _make_ln_relu_ff_res_kernel(c_true, c_pad):
    # residual + relu(LayerNorm(x)) @ w + b
    def kernel(x_ref, r_ref, g_ref, bt_ref, w_ref, b_ref, o_ref):
        x = x_ref[...].astype(jnp.float32)
        d, var = _ln_stats(x, c_true, c_pad)
        h = d * lax.rsqrt(var + LN_EPS) * g_ref[...] + bt_ref[...]
        h = jnp.maximum(h, 0.0)
        y = jnp.dot(h.astype(w_ref.dtype), w_ref[...],
                    preferred_element_type=jnp.float32)
        o_ref[...] = (r_ref[...].astype(jnp.float32) + y
                      + b_ref[...]).astype(o_ref.dtype)
    return kernel


def _make_dconv_kernel(k, dilation, halo, c_true, c_pad):
    # Fused LN2 -> ReLU -> mask -> dilated conv as K shifted MXU matmuls over a
    # halo-extended (zero-padded) VMEM scratch buffer.  One batch per grid step.
    def kernel(x_ref, m_ref, g_ref, bt_ref, w_ref, b_ref, o_ref, buf_ref):
        l_blk = x_ref.shape[1]
        x = x_ref[0].astype(jnp.float32)
        d, var = _ln_stats(x, c_true, c_pad)
        h = d * lax.rsqrt(var + LN_EPS) * g_ref[...] + bt_ref[...]
        h = jnp.maximum(h, 0.0) * m_ref[0]            # zero pad/user-masked rows
        buf_ref[...] = jnp.zeros_like(buf_ref)        # implicit 'same' zero pad
        buf_ref[pl.ds(halo, l_blk), :] = h
        acc = jnp.zeros((l_blk, c_pad), jnp.float32)
        for j in range(k):                            # K shifted MXU matmuls
            seg = buf_ref[pl.ds(j * dilation, l_blk), :].astype(w_ref.dtype)
            acc = acc + jnp.dot(seg, w_ref[j], preferred_element_type=jnp.float32)
        o_ref[0] = (acc + b_ref[...]).astype(o_ref.dtype)
    return kernel


def _pq_tile_kernel(p_ref, q_ref, o_ref):
    # p: (1, TM, Dh), q: (1, TN, Dh) -> o: (1, TM, TN).  Contract the shared
    # last (lane) dim directly on the MXU (same pattern as flash-attn q.k^T);
    # if profiling ever shows a per-tile vxpose, materialize q^T once instead.
    o = lax.dot_general(p_ref[0], q_ref[0],
                        dimension_numbers=(((1,), (1,)), ((), ())),
                        preferred_element_type=jnp.float32)
    o_ref[0] = o.astype(o_ref.dtype)


# ---------------------------------------------------------------------------
# Pallas wrappers (row-flattened, tiled, VMEM-budgeted)
# ---------------------------------------------------------------------------
def pointwise_linear(x, w, b):
    """1x1 (Masked)Conv1d == per-position linear; row-tiled over B*L."""
    bsz, ell, cin = x.shape
    cout = w.shape[1]
    rows = bsz * ell
    xi = jnp.dtype(x.dtype).itemsize
    per_row = cin * (xi + 4) + cout * (xi + 4)
    static = 2 * cin * cout * jnp.dtype(w.dtype).itemsize + 16 * cout
    tile, n_tiles, limit = _row_plan(rows, per_row, static)
    out = pl.pallas_call(
        _matmul_bias_kernel,
        out_shape=jax.ShapeDtypeStruct((rows, cout), x.dtype),
        grid=(n_tiles,),
        in_specs=[
            pl.BlockSpec((tile, cin), lambda i: (i, 0)),
            pl.BlockSpec((cin, cout), lambda i: (0, 0)),
            pl.BlockSpec((1, cout), lambda i: (0, 0)),
        ],
        out_specs=pl.BlockSpec((tile, cout), lambda i: (i, 0)),
        compiler_params=pltpu.CompilerParams(
            dimension_semantics=("parallel",), vmem_limit_bytes=limit),
    )(x.reshape(rows, cin), w, b.astype(jnp.float32).reshape(1, cout))
    return out.reshape(bsz, ell, cout)


def ln_relu_ff(x, gamma, beta, w, b, c_true):
    """Fused LayerNorm -> ReLU -> 1x1 conv (PositionFeedForward)."""
    bsz, ell, cin = x.shape
    cout = w.shape[1]
    rows = bsz * ell
    xi = jnp.dtype(x.dtype).itemsize
    per_row = cin * (xi + 8) + cout * (xi + 4)
    static = 2 * cin * cout * jnp.dtype(w.dtype).itemsize + 16 * (cin + cout)
    tile, n_tiles, limit = _row_plan(rows, per_row, static)
    kernel = _make_ln_relu_ff_kernel(c_true, cin)
    out = pl.pallas_call(
        kernel,
        out_shape=jax.ShapeDtypeStruct((rows, cout), x.dtype),
        grid=(n_tiles,),
        in_specs=[
            pl.BlockSpec((tile, cin), lambda i: (i, 0)),
            pl.BlockSpec((1, cin), lambda i: (0, 0)),
            pl.BlockSpec((1, cin), lambda i: (0, 0)),
            pl.BlockSpec((cin, cout), lambda i: (0, 0)),
            pl.BlockSpec((1, cout), lambda i: (0, 0)),
        ],
        out_specs=pl.BlockSpec((tile, cout), lambda i: (i, 0)),
        compiler_params=pltpu.CompilerParams(
            dimension_semantics=("parallel",), vmem_limit_bytes=limit),
    )(x.reshape(rows, cin), gamma.reshape(1, cin), beta.reshape(1, cin),
      w, b.astype(jnp.float32).reshape(1, cout))
    return out.reshape(bsz, ell, cout)


def ln_relu_ff_residual(h, residual, gamma, beta, w, b, c_true):
    """Fused LayerNorm -> ReLU -> 1x1 conv -> + residual (aliased output)."""
    bsz, ell, cin = h.shape
    cout = w.shape[1]
    rows = bsz * ell
    hi = jnp.dtype(h.dtype).itemsize
    ri = jnp.dtype(residual.dtype).itemsize
    per_row = cin * (hi + 8) + cout * (ri + 4) + cout * ri
    static = 2 * cin * cout * jnp.dtype(w.dtype).itemsize + 16 * (cin + cout)
    tile, n_tiles, limit = _row_plan(rows, per_row, static)
    kernel = _make_ln_relu_ff_res_kernel(c_true, cin)
    out = pl.pallas_call(
        kernel,
        out_shape=jax.ShapeDtypeStruct((rows, cout), residual.dtype),
        grid=(n_tiles,),
        in_specs=[
            pl.BlockSpec((tile, cin), lambda i: (i, 0)),
            pl.BlockSpec((tile, cout), lambda i: (i, 0)),
            pl.BlockSpec((1, cin), lambda i: (0, 0)),
            pl.BlockSpec((1, cin), lambda i: (0, 0)),
            pl.BlockSpec((cin, cout), lambda i: (0, 0)),
            pl.BlockSpec((1, cout), lambda i: (0, 0)),
        ],
        out_specs=pl.BlockSpec((tile, cout), lambda i: (i, 0)),
        input_output_aliases={1: 0},          # residual buffer reused for output
        compiler_params=pltpu.CompilerParams(
            dimension_semantics=("parallel",), vmem_limit_bytes=limit),
    )(h.reshape(rows, cin), residual.reshape(rows, cout),
      gamma.reshape(1, cin), beta.reshape(1, cin),
      w, b.astype(jnp.float32).reshape(1, cout))
    return out.reshape(bsz, ell, cout)


def ln_relu_mask_dconv(h, mask, gamma, beta, conv_w, conv_b, dilation, c_true):
    """Fused LN -> ReLU -> mask -> dilated conv (K shifted MXU matmuls)."""
    bsz, l_pad, c_pad = h.shape
    k = conv_w.shape[0]
    halo = dilation * (k - 1) // 2       # PyTorch padding = dilation*(k-1)//2
    buf_rows = _round_up(l_pad + 2 * halo, 8)
    hi = jnp.dtype(h.dtype).itemsize
    est = (2 * l_pad * c_pad * 2 * hi                         # in+out, double buf
           + 2 * k * c_pad * c_pad * jnp.dtype(conv_w.dtype).itemsize
           + buf_rows * c_pad * 4                             # f32 halo scratch
           + 3 * l_pad * c_pad * 4                            # f32 LN/acc temps
           + (2 << 20))
    if est > VMEM_SOFT_CAP:
        # TODO(synk): tile L with in-kernel halo loads for very long sequences.
        hf = jnp.maximum(layer_norm(h, gamma, beta, c_true=c_true), 0.0) * mask
        return dilated_conv1d(hf, conv_w, conv_b, dilation).astype(h.dtype)

    kernel = _make_dconv_kernel(k, dilation, halo, c_true, c_pad)
    return pl.pallas_call(
        kernel,
        out_shape=jax.ShapeDtypeStruct((bsz, l_pad, c_pad), h.dtype),
        grid=(bsz,),
        in_specs=[
            pl.BlockSpec((1, l_pad, c_pad), lambda b: (b, 0, 0)),
            pl.BlockSpec((1, l_pad, 1), lambda b: (b, 0, 0)),
            pl.BlockSpec((1, c_pad), lambda b: (0, 0)),
            pl.BlockSpec((1, c_pad), lambda b: (0, 0)),
            pl.BlockSpec((k, c_pad, c_pad), lambda b: (0, 0, 0)),
            pl.BlockSpec((1, c_pad), lambda b: (0, 0)),
        ],
        out_specs=pl.BlockSpec((1, l_pad, c_pad), lambda b: (b, 0, 0)),
        scratch_shapes=[pltpu.VMEM((buf_rows, c_pad), jnp.float32)],
        compiler_params=pltpu.CompilerParams(
            dimension_semantics=("parallel",), vmem_limit_bytes=_vmem_limit(est)),
    )(h, mask, gamma.reshape(1, c_pad), beta.reshape(1, c_pad),
      conv_w, conv_b.reshape(1, c_pad))


def structure_head(pq, d_head, out_dtype):
    """(p @ q^T) tiles from the fused pq projection output (B, L, 2*d_head)."""
    bsz, l_pad, _ = pq.shape
    pq_item = jnp.dtype(pq.dtype).itemsize
    out_item = jnp.dtype(out_dtype).itemsize
    tm = next((t for t in (1024, 512, 256, 128) if l_pad % t == 0), 128)
    tn = next((t for t in (512, 256, 128) if l_pad % t == 0), 128)

    def est(tm_, tn_):
        return (2 * (tm_ + tn_) * d_head * pq_item
                + 2 * tm_ * tn_ * out_item + tm_ * tn_ * 4 + (2 << 20))

    while est(tm, tn) > VMEM_SOFT_CAP and tm > 128:
        tm //= 2
    while est(tm, tn) > VMEM_SOFT_CAP and tn > 128:
        tn //= 2

    return pl.pallas_call(
        _pq_tile_kernel,
        out_shape=jax.ShapeDtypeStruct((bsz, l_pad, l_pad), out_dtype),
        grid=(bsz, l_pad // tm, l_pad // tn),
        in_specs=[
            pl.BlockSpec((1, tm, d_head), lambda b, i, j: (b, i, 0)),   # p rows
            pl.BlockSpec((1, tn, d_head), lambda b, i, j: (b, j, 1)),   # q rows
        ],
        out_specs=pl.BlockSpec((1, tm, tn), lambda b, i, j: (b, i, j)),
        compiler_params=pltpu.CompilerParams(
            dimension_semantics=("parallel", "parallel", "parallel"),
            vmem_limit_bytes=_vmem_limit(est(tm, tn))),
    )(pq, pq)


# ---------------------------------------------------------------------------
# Plain-JAX helpers (reference + fallback path)
# ---------------------------------------------------------------------------
def layer_norm(x, gamma, beta, c_true=None, eps=LN_EPS):
    xf = x.astype(jnp.float32)
    c_pad = xf.shape[-1]
    c = c_pad if c_true is None else c_true
    mu = jnp.sum(xf, axis=-1, keepdims=True) / c
    d = xf - mu
    var = (jnp.sum(d * d, axis=-1, keepdims=True) - (c_pad - c) * mu * mu) / c
    return d * lax.rsqrt(var + eps) * gamma + beta


def dilated_conv1d(x, w, b, dilation):
    # x: (B, L, Cin), w: (K, Cin, Cout).  NOTE: padding matches PyTorch
    # MaskedConv1d (dilation*(k-1)//2); 'same' length only for odd k.
    k = w.shape[0]
    pad = dilation * (k - 1) // 2
    y = lax.conv_general_dilated(
        x.astype(jnp.float32), w.astype(jnp.float32),
        window_strides=(1,), padding=[(pad, pad)], rhs_dilation=(dilation,),
        dimension_numbers=("NWC", "WIO", "NWC"))
    return y + b.astype(jnp.float32)


# ---------------------------------------------------------------------------
# ByteNet embedder + structure model forward
# ---------------------------------------------------------------------------
def bytenet_block(x, prm, dilation, mask, dims):
    h = ln_relu_ff(x, prm["ln1_g"], prm["ln1_b"], prm["ff1_w"], prm["ff1_b"],
                   c_true=dims["d_model"])
    h = ln_relu_mask_dconv(h, mask, prm["ln2_g"], prm["ln2_b"],
                           prm["conv_w"], prm["conv_b"], dilation,
                           c_true=dims["d_h"])
    return ln_relu_ff_residual(h, x, prm["ln3_g"], prm["ln3_b"],
                               prm["ff2_w"], prm["ff2_b"], c_true=dims["d_h"])


def bytenet_structure_model(tokens, params, *, dilations, dims, input_mask=None,
                            head_out_dtype=jnp.float32):
    """Matches ByteNetStructureModel.forward: returns (n, ell, ell)."""
    n, ell = tokens.shape
    l_pad = _round_up(max(ell, 128), 128)      # pad L once, lane-dense everywhere
    if l_pad != ell:
        tokens = jnp.pad(tokens, ((0, 0), (0, l_pad - ell)))
    valid = (jnp.arange(l_pad) < ell).astype(jnp.float32)
    mask = jnp.broadcast_to(valid[None, :], (n, l_pad))
    if input_mask is not None:
        im = input_mask.astype(jnp.float32)
        if l_pad != ell:
            im = jnp.pad(im, ((0, 0), (0, l_pad - ell)))
        mask = mask * im
    mask = mask[..., None]                                        # (n, l_pad, 1)

    e = params["embed"][tokens]                                   # (n, l_pad, d_emb_p)
    e = pointwise_linear(e, params["up_w"], params["up_b"])       # (n, l_pad, d_model_p)
    for prm, dil in zip(params["blocks"], dilations):
        e = bytenet_block(e, prm, dil, mask, dims)
    # Fused p/q projection: [Wp/256 | Wq] in a single MXU pass over e.
    pq = pointwise_linear(e, params["pq_w"], params["pq_b"])      # (n, l_pad, 512)
    out = structure_head(pq, dims["d_head"], head_out_dtype)      # (n, l_pad, l_pad)
    return out[:, :ell, :ell]


# ---------------------------------------------------------------------------
# Deterministic parameter construction + TPU-friendly preparation
# ---------------------------------------------------------------------------
def make_params(key, n_tokens, d_embedding, d_model, n_layers, kernel_size):
    d_h = d_model // 2
    scale = 0.05
    ks = list(jax.random.split(key, 6 + 4 * n_layers))
    nxt = iter(ks).__next__

    def rnd(shape):
        return (scale * jax.random.normal(nxt(), shape)).astype(jnp.float32)

    params = {
        "embed": rnd((n_tokens, d_embedding)),
        "up_w": rnd((d_embedding, d_model)),
        "up_b": jnp.zeros((d_model,), jnp.float32),
        "p_w": rnd((d_model, N_HEAD)),
        "p_b": rnd((N_HEAD,)),
        "q_w": rnd((d_model, N_HEAD)),
        "q_b": rnd((N_HEAD,)),
        "blocks": [],
    }
    for _ in range(n_layers):
        params["blocks"].append({
            "ln1_g": jnp.ones((d_model,), jnp.float32),
            "ln1_b": jnp.zeros((d_model,), jnp.float32),
            "ff1_w": rnd((d_model, d_h)),
            "ff1_b": jnp.zeros((d_h,), jnp.float32),
            "ln2_g": jnp.ones((d_h,), jnp.float32),
            "ln2_b": jnp.zeros((d_h,), jnp.float32),
            "conv_w": rnd((kernel_size, d_h, d_h)),
            "conv_b": jnp.zeros((d_h,), jnp.float32),
            "ln3_g": jnp.ones((d_h,), jnp.float32),
            "ln3_b": jnp.zeros((d_h,), jnp.float32),
            "ff2_w": rnd((d_h, d_model)),
            "ff2_b": jnp.zeros((d_model,), jnp.float32),
        })
    return params


def prepare_params(params, dtype=jnp.float32):
    """Zero-pad channel dims to multiples of 128 (lane-dense stores), fold the
    /256 and the p/q concat into one head weight, and cast MXU weights.

    Returns (padded_params, dims) where dims holds the TRUE channel widths
    (static Python ints) for in-kernel LayerNorm statistic correction.
    """
    d_emb = params["embed"].shape[1]
    d_model = params["up_w"].shape[1]
    d_h = params["blocks"][0]["ff1_w"].shape[1] if params["blocks"] else d_model
    d_emb_p = _round_up(d_emb, 128)
    d_model_p = _round_up(d_model, 128)
    d_h_p = _round_up(d_h, 128)

    def pw(w, r, c):
        return jnp.pad(w, ((0, r - w.shape[0]), (0, c - w.shape[1]))).astype(dtype)

    def pv(v, c):
        return jnp.pad(v.astype(jnp.float32), (0, c - v.shape[0]))

    pq_w = jnp.concatenate([params["p_w"] * jnp.float32(HEAD_SCALE),
                            params["q_w"]], axis=1)               # (d_model, 512)
    pq_b = jnp.concatenate([params["p_b"] * jnp.float32(HEAD_SCALE),
                            params["q_b"]], axis=0)               # (512,)

    out = {
        "embed": jnp.pad(params["embed"],
                         ((0, 0), (0, d_emb_p - d_emb))).astype(dtype),
        "up_w": pw(params["up_w"], d_emb_p, d_model_p),
        "up_b": pv(params["up_b"], d_model_p),
        "pq_w": pw(pq_w, d_model_p, 2 * N_HEAD),
        "pq_b": pq_b.astype(jnp.float32),
        "blocks": [],
    }
    for blk in params["blocks"]:
        out["blocks"].append({
            "ln1_g": pv(blk["ln1_g"], d_model_p),
            "ln1_b": pv(blk["ln1_b"], d_model_p),
            "ff1_w": pw(blk["ff1_w"], d_model_p, d_h_p),
            "ff1_b": pv(blk["ff1_b"], d_h_p),
            "ln2_g": pv(blk["ln2_g"], d_h_p),
            "ln2_b": pv(blk["ln2_b"], d_h_p),
            "conv_w": jnp.pad(blk["conv_w"],
                              ((0, 0), (0, d_h_p - d_h),
                               (0, d_h_p - d_h))).astype(dtype),
            "conv_b": pv(blk["conv_b"], d_h_p),
            "ln3_g": pv(blk["ln3_g"], d_h_p),
            "ln3_b": pv(blk["ln3_b"], d_h_p),
            "ff2_w": pw(blk["ff2_w"], d_h_p, d_model_p),
            "ff2_b": pv(blk["ff2_b"], d_model_p),
        })
    dims = {"d_model": d_model, "d_h": d_h, "d_head": N_HEAD}
    return out, dims


# ---------------------------------------------------------------------------
# Pure-jnp reference (unpadded f32 params) for a sanity check of the Pallas path
# ---------------------------------------------------------------------------
def reference_forward(tokens, params, dilations, input_mask=None):
    def pw(x, w, b):
        return jnp.einsum("blc,cd->bld", x, w) + b

    e = params["embed"][tokens]
    e = pw(e, params["up_w"], params["up_b"])
    for prm, d in zip(params["blocks"], dilations):
        h = layer_norm(e, prm["ln1_g"], prm["ln1_b"])
        h = jax.nn.relu(h)
        h = pw(h, prm["ff1_w"], prm["ff1_b"])
        h = layer_norm(h, prm["ln2_g"], prm["ln2_b"])
        h = jax.nn.relu(h)
        if input_mask is not None:
            h = h * input_mask[..., None]
        h = dilated_conv1d(h, prm["conv_w"], prm["conv_b"], d)
        h = layer_norm(h, prm["ln3_g"], prm["ln3_b"])
        h = jax.nn.relu(h)
        h = pw(h, prm["ff2_w"], prm["ff2_b"])
        e = e + h
    p = pw(e, params["p_w"], params["p_b"])
    q = pw(e, params["q_w"], params["q_b"])
    return jnp.einsum("bik,bjk->bij", p, q) / 256.0


# ---------------------------------------------------------------------------
if __name__ == "__main__":
    # Small shapes consistent with the module: x is (n, ell) integer tokens.
    n, ell = 2, 16
    n_tokens, d_embedding, d_model = 20, 8, 32
    n_layers, kernel_size, r = 2, 5, 2

    log2 = int(math.log2(r)) + 1
    dilations = [2 ** (i % log2) for i in range(n_layers)]

    key = jax.random.PRNGKey(0)
    k_tok, k_prm = jax.random.split(key)
    tokens = jax.random.randint(k_tok, (n, ell), 0, n_tokens, dtype=jnp.int32)
    params = make_params(k_prm, n_tokens, d_embedding, d_model, n_layers,
                         kernel_size)

    ref = jax.block_until_ready(reference_forward(tokens, params, dilations))

    def run(dtype, head_dtype):
        pp, dims = prepare_params(params, dtype)
        fwd = jax.jit(functools.partial(bytenet_structure_model,
                                        dilations=dilations, dims=dims,
                                        head_out_dtype=head_dtype))
        return jax.block_until_ready(fwd(tokens, pp))

    # f32 path: tight check against the pure-jnp reference.
    out_f32 = run(jnp.float32, jnp.float32)
    assert out_f32.shape == (n, ell, ell), out_f32.shape
    assert jnp.all(jnp.isfinite(out_f32))
    assert jnp.allclose(out_f32, ref, rtol=1e-2, atol=1e-3), (
        float(jnp.max(jnp.abs(out_f32 - ref))))

    # bf16 matmul/conv weights + activations (f32 LN stats, f32 MXU accumulation),
    # bf16 head output (the head is HBM-write bound).
    out_bf16 = run(jnp.bfloat16, jnp.bfloat16)
    assert out_bf16.shape == (n, ell, ell), out_bf16.shape
    out_bf16 = out_bf16.astype(jnp.float32)
    assert jnp.all(jnp.isfinite(out_bf16))
    assert jnp.allclose(out_bf16, ref, rtol=1e-1, atol=2e-2), (
        float(jnp.max(jnp.abs(out_bf16 - ref))))

    print("KERNEL_OK")
</pallas_src>

<mosaic_0001>
module attributes {stable_mosaic.version = 11 : i64} {
  func.func @kernel(%arg0: i32, %arg1: memref<128x128xf32, #tpu.memory_space<vmem>>, %arg2: memref<1x128xf32, #tpu.memory_space<vmem>>, %arg3: memref<1x128xf32, #tpu.memory_space<vmem>>, %arg4: memref<128x128xf32, #tpu.memory_space<vmem>>, %arg5: memref<1x128xf32, #tpu.memory_space<vmem>>, %arg6: memref<128x128xf32, #tpu.memory_space<vmem>>) attributes {dimension_semantics = [#tpu.dimension_semantics<parallel>], iteration_bounds = array<i64: 2>, scalar_prefetch = 0 : i64, scratch_operands = 0 : i64, tpu.core_type = #tpu.core_type<tc>, window_params = [{transform_indices = @transform_0, window_bounds = array<i64: 128, 128>}, {pipeline_mode = #tpu.pipeline_mode<synchronous>, transform_indices = @transform_1, window_bounds = array<i64: 1, 128>}, {pipeline_mode = #tpu.pipeline_mode<synchronous>, transform_indices = @transform_2, window_bounds = array<i64: 1, 128>}, {pipeline_mode = #tpu.pipeline_mode<synchronous>, transform_indices = @transform_3, window_bounds = array<i64: 128, 128>}, {pipeline_mode = #tpu.pipeline_mode<synchronous>, transform_indices = @transform_4, window_bounds = array<i64: 1, 128>}, {transform_indices = @transform_5, window_bounds = array<i64: 128, 128>}]} {
    %c0 = arith.constant 0 : index
    %c0_0 = arith.constant 0 : index
    %0 = vector.load %arg1[%c0, %c0_0] : memref<128x128xf32, #tpu.memory_space<vmem>>, vector<128x128xf32>
    %cst = arith.constant dense<0.000000e+00> : vector<128xf32>
    %1 = vector.multi_reduction <add>, %0, %cst [1] : vector<128x128xf32> to vector<128xf32>
    %2 = vector.shape_cast %1 : vector<128xf32> to vector<128x1xf32>
    %cst_1 = arith.constant 3.125000e-02 : f32
    %3 = vector.broadcast %cst_1 : f32 to vector<128x1xf32>
    %4 = arith.mulf %2, %3 : vector<128x1xf32>
    %5 = vector.broadcast %4 : vector<128x1xf32> to vector<128x128xf32>
    %6 = arith.subf %0, %5 : vector<128x128xf32>
    %7 = arith.mulf %6, %6 : vector<128x128xf32>
    %cst_2 = arith.constant dense<0.000000e+00> : vector<128xf32>
    %8 = vector.multi_reduction <add>, %7, %cst_2 [1] : vector<128x128xf32> to vector<128xf32>
    %9 = vector.shape_cast %8 : vector<128xf32> to vector<128x1xf32>
    %10 = arith.mulf %4, %4 : vector<128x1xf32>
    %cst_3 = arith.constant 9.600000e+01 : f32
    %11 = vector.broadcast %cst_3 : f32 to vector<128x1xf32>
    %12 = arith.mulf %11, %10 : vector<128x1xf32>
    %13 = arith.subf %9, %12 : vector<128x1xf32>
    %cst_4 = arith.constant 3.125000e-02 : f32
    %14 = vector.broadcast %cst_4 : f32 to vector<128x1xf32>
    %15 = arith.mulf %13, %14 : vector<128x1xf32>
    %cst_5 = arith.constant 9.99999974E-6 : f32
    %16 = vector.broadcast %cst_5 : f32 to vector<128x1xf32>
    %17 = arith.addf %15, %16 : vector<128x1xf32>
    %18 = math.rsqrt %17 : vector<128x1xf32>
    %19 = vector.broadcast %18 : vector<128x1xf32> to vector<128x128xf32>
    %20 = arith.mulf %6, %19 : vector<128x128xf32>
    %c0_6 = arith.constant 0 : index
    %c0_7 = arith.constant 0 : index
    %21 = vector.load %arg2[%c0_6, %c0_7] : memref<1x128xf32, #tpu.memory_space<vmem>>, vector<1x128xf32>
    %22 = vector.broadcast %21 : vector<1x128xf32> to vector<128x128xf32>
    %23 = arith.mulf %20, %22 : vector<128x128xf32>
    %c0_8 = arith.constant 0 : index
    %c0_9 = arith.constant 0 : index
    %24 = vector.load %arg3[%c0_8, %c0_9] : memref<1x128xf32, #tpu.memory_space<vmem>>, vector<1x128xf32>
    %25 = vector.broadcast %24 : vector<1x128xf32> to vector<128x128xf32>
    %26 = arith.addf %23, %25 : vector<128x128xf32>
    %cst_10 = arith.constant 0.000000e+00 : f32
    %27 = vector.broadcast %cst_10 : f32 to vector<128x128xf32>
    %28 = arith.maximumf %26, %27 : vector<128x128xf32>
    %c0_11 = arith.constant 0 : index
    %c0_12 = arith.constant 0 : index
    %29 = vector.load %arg4[%c0_11, %c0_12] : memref<128x128xf32, #tpu.memory_space<vmem>>, vector<128x128xf32>
    %cst_13 = arith.constant dense<0.000000e+00> : vector<128x128xf32>
    %30 = tpu.matmul %28, %29, %cst_13 {dimension_numbers = #tpu.dot_dimension_numbers<[1], [0], [0], [1], [0, 0, 1, 1], [], []>} : vector<128x128xf32>, vector<128x128xf32>, vector<128x128xf32> -> vector<128x128xf32>
    %c0_14 = arith.constant 0 : index
    %c0_15 = arith.constant 0 : index
    %31 = vector.load %arg5[%c0_14, %c0_15] : memref<1x128xf32, #tpu.memory_space<vmem>>, vector<1x128xf32>
    %32 = vector.broadcast %31 : vector<1x128xf32> to vector<128x128xf32>
    %33 = arith.addf %30, %32 : vector<128x128xf32>
    %c0_16 = arith.constant 0 : index
    %c0_17 = arith.constant 0 : index
    %34 = vector.load %arg6[%c0_16, %c0_17] : memref<128x128xf32, #tpu.memory_space<vmem>>, vector<128x128xf32>
    tpu.vector_store %arg6[%c0_16, %c0_17], %33 {strides = array<i32>} : memref<128x128xf32, #tpu.memory_space<vmem>>, vector<128x128xf32>,
    return
  }
  func.func @transform_0(%arg0: i32) -> (i32, i32) {
    %c0_i32 = arith.constant 0 : i32
    %c0_i32_0 = arith.constant 0 : i32
    return %arg0, %c0_i32 : i32, i32
  }
  func.func @transform_1(%arg0: i32) -> (i32, i32) {
    %c0_i32 = arith.constant 0 : i32
    %c0_i32_0 = arith.constant 0 : i32
    %c0_i32_1 = arith.constant 0 : i32
    return %c0_i32, %c0_i32_0 : i32, i32
  }
  func.func @transform_2(%arg0: i32) -> (i32, i32) {
    %c0_i32 = arith.constant 0 : i32
    %c0_i32_0 = arith.constant 0 : i32
    %c0_i32_1 = arith.constant 0 : i32
    return %c0_i32, %c0_i32_0 : i32, i32
  }
  func.func @transform_3(%arg0: i32) -> (i32, i32) {
    %c0_i32 = arith.constant 0 : i32
    %c0_i32_0 = arith.constant 0 : i32
    %c0_i32_1 = arith.constant 0 : i32
    return %c0_i32, %c0_i32_0 : i32, i32
  }
  func.func @transform_4(%arg0: i32) -> (i32, i32) {
    %c0_i32 = arith.constant 0 : i32
    %c0_i32_0 = arith.constant 0 : i32
    %c0_i32_1 = arith.constant 0 : i32
    return %c0_i32, %c0_i32_0 : i32, i32
  }
  func.func @transform_5(%arg0: i32) -> (i32, i32) {
    %c0_i32 = arith.constant 0 : i32
    %c0_i32_0 = arith.constant 0 : i32
    return %arg0, %c0_i32 : i32, i32
  }
}

module attributes {stable_mosaic.version = 11 : i64} {
  func.func @kernel(%arg0: i32, %arg1: memref<1x128x128xf32, #tpu.memory_space<vmem>>, %arg2: memref<1x128x1xf32, #tpu.memory_space<vmem>>, %arg3: memref<1x128xf32, #tpu.memory_space<vmem>>, %arg4: memref<1x128xf32, #tpu.memory_space<vmem>>, %arg5: memref<5x128x128xf32, #tpu.memory_space<vmem>>, %arg6: memref<1x128xf32, #tpu.memory_space<vmem>>, %arg7: memref<1x128x128xf32, #tpu.memory_space<vmem>>, %arg8: memref<136x128xf32, #tpu.memory_space<vmem>>) attributes {dimension_semantics = [#tpu.dimension_semantics<parallel>], iteration_bounds = array<i64: 2>, scalar_prefetch = 0 : i64, scratch_operands = 1 : i64, tpu.core_type = #tpu.core_type<tc>, window_params = [{transform_indices = @transform_0, window_bounds = array<i64: 1, 128, 128>}, {transform_indices = @transform_1, window_bounds = array<i64: 1, 128, 1>}, {pipeline_mode = #tpu.pipeline_mode<synchronous>, transform_indices = @transform_2, window_bounds = array<i64: 1, 128>}, {pipeline_mode = #tpu.pipeline_mode<synchronous>, transform_indices = @transform_3, window_bounds = array<i64: 1, 128>}, {pipeline_mode = #tpu.pipeline_mode<synchronous>, transform_indices = @transform_4, window_bounds = array<i64: 5, 128, 128>}, {pipeline_mode = #tpu.pipeline_mode<synchronous>, transform_indices = @transform_5, window_bounds = array<i64: 1, 128>}, {transform_indices = @transform_6, window_bounds = array<i64: 1, 128, 128>}]} {
    %c0 = arith.constant 0 : index
    %c0_0 = arith.constant 0 : index
    %c0_1 = arith.constant 0 : index
    %0 = vector.load %arg1[%c0, %c0_0, %c0_1] : memref<1x128x128xf32, #tpu.memory_space<vmem>>, vector<1x128x128xf32>
    %1 = vector.shape_cast %0 : vector<1x128x128xf32> to vector<128x128xf32>
    %cst = arith.constant dense<0.000000e+00> : vector<128xf32>
    %2 = vector.multi_reduction <add>, %1, %cst [1] : vector<128x128xf32> to vector<128xf32>
    %3 = vector.shape_cast %2 : vector<128xf32> to vector<128x1xf32>
    %cst_2 = arith.constant 6.250000e-02 : f32
    %4 = vector.broadcast %cst_2 : f32 to vector<128x1xf32>
    %5 = arith.mulf %3, %4 : vector<128x1xf32>
    %6 = vector.broadcast %5 : vector<128x1xf32> to vector<128x128xf32>
    %7 = arith.subf %1, %6 : vector<128x128xf32>
    %8 = arith.mulf %7, %7 : vector<128x128xf32>
    %cst_3 = arith.constant dense<0.000000e+00> : vector<128xf32>
    %9 = vector.multi_reduction <add>, %8, %cst_3 [1] : vector<128x128xf32> to vector<128xf32>
    %10 = vector.shape_cast %9 : vector<128xf32> to vector<128x1xf32>
    %11 = arith.mulf %5, %5 : vector<128x1xf32>
    %cst_4 = arith.constant 1.120000e+02 : f32
    %12 = vector.broadcast %cst_4 : f32 to vector<128x1xf32>
    %13 = arith.mulf %12, %11 : vector<128x1xf32>
    %14 = arith.subf %10, %13 : vector<128x1xf32>
    %cst_5 = arith.constant 6.250000e-02 : f32
    %15 = vector.broadcast %cst_5 : f32 to vector<128x1xf32>
    %16 = arith.mulf %14, %15 : vector<128x1xf32>
    %cst_6 = arith.constant 9.99999974E-6 : f32
    %17 = vector.broadcast %cst_6 : f32 to vector<128x1xf32>
    %18 = arith.addf %16, %17 : vector<128x1xf32>
    %19 = math.rsqrt %18 : vector<128x1xf32>
    %20 = vector.broadcast %19 : vector<128x1xf32> to vector<128x128xf32>
    %21 = arith.mulf %7, %20 : vector<128x128xf32>
    %c0_7 = arith.constant 0 : index
    %c0_8 = arith.constant 0 : index
    %22 = vector.load %arg3[%c0_7, %c0_8] : memref<1x128xf32, #tpu.memory_space<vmem>>, vector<1x128xf32>
    %23 = vector.broadcast %22 : vector<1x128xf32> to vector<128x128xf32>
    %24 = arith.mulf %21, %23 : vector<128x128xf32>
    %c0_9 = arith.constant 0 : index
    %c0_10 = arith.constant 0 : index
    %25 = vector.load %arg4[%c0_9, %c0_10] : memref<1x128xf32, #tpu.memory_space<vmem>>, vector<1x128xf32>
    %26 = vector.broadcast %25 : vector<1x128xf32> to vector<128x128xf32>
    %27 = arith.addf %24, %26 : vector<128x128xf32>
    %cst_11 = arith.constant 0.000000e+00 : f32
    %28 = vector.broadcast %cst_11 : f32 to vector<128x128xf32>
    %29 = arith.maximumf %27, %28 : vector<128x128xf32>
    %c0_12 = arith.constant 0 : index
    %c0_13 = arith.constant 0 : index
    %c0_14 = arith.constant 0 : index
    %30 = vector.load %arg2[%c0_12, %c0_13, %c0_14] : memref<1x128x1xf32, #tpu.memory_space<vmem>>, vector<1x128x1xf32>
    %31 = vector.shape_cast %30 : vector<1x128x1xf32> to vector<128x1xf32>
    %32 = vector.broadcast %31 : vector<128x1xf32> to vector<128x128xf32>
    %33 = arith.mulf %29, %32 : vector<128x128xf32>
    %cst_15 = arith.constant 0.000000e+00 : f32
    %34 = vector.broadcast %cst_15 : f32 to vector<136x128xf32>
    %c0_16 = arith.constant 0 : index
    %c0_17 = arith.constant 0 : index
    %35 = vector.load %arg8[%c0_16, %c0_17] : memref<136x128xf32, #tpu.memory_space<vmem>>, vector<136x128xf32>
    tpu.vector_store %arg8[%c0_16, %c0_17], %34 {strides = array<i32>} : memref<136x128xf32, #tpu.memory_space<vmem>>, vector<136x128xf32>,
    %c2 = arith.constant 2 : index
    %c0_18 = arith.constant 0 : index
    %36 = vector.load %arg8[%c2, %c0_18] : memref<136x128xf32, #tpu.memory_space<vmem>>, vector<128x128xf32>
    tpu.vector_store %arg8[%c2, %c0_18], %33 {strides = array<i32>} : memref<136x128xf32, #tpu.memory_space<vmem>>, vector<128x128xf32>,
    %cst_19 = arith.constant 0.000000e+00 : f32
    %37 = vector.broadcast %cst_19 : f32 to vector<128x128xf32>
    %c0_20 = arith.constant 0 : index
    %c0_21 = arith.constant 0 : index
    %38 = vector.load %arg8[%c0_20, %c0_21] : memref<136x128xf32, #tpu.memory_space<vmem>>, vector<128x128xf32>
    %c0_22 = arith.constant 0 : index
    %c0_23 = arith.constant 0 : index
    %c0_24 = arith.constant 0 : index
    %39 = vector.load %arg5[%c0_22, %c0_23, %c0_24] : memref<5x128x128xf32, #tpu.memory_space<vmem>>, vector<1x128x128xf32>
    %40 = vector.shape_cast %39 : vector<1x128x128xf32> to vector<128x128xf32>
    %cst_25 = arith.constant dense<0.000000e+00> : vector<128x128xf32>
    %41 = tpu.matmul %38, %40, %cst_25 {dimension_numbers = #tpu.dot_dimension_numbers<[1], [0], [0], [1], [0, 0, 1, 1], [], []>} : vector<128x128xf32>, vector<128x128xf32>, vector<128x128xf32> -> vector<128x128xf32>
    %42 = arith.addf %37, %41 : vector<128x128xf32>
    %c1 = arith.constant 1 : index
    %c0_26 = arith.constant 0 : index
    %43 = vector.load %arg8[%c1, %c0_26] : memref<136x128xf32, #tpu.memory_space<vmem>>, vector<128x128xf32>
    %c1_27 = arith.constant 1 : index
    %c0_28 = arith.constant 0 : index
    %c0_29 = arith.constant 0 : index
    %44 = vector.load %arg5[%c1_27, %c0_28, %c0_29] : memref<5x128x128xf32, #tpu.memory_space<vmem>>, vector<1x128x128xf32>
    %45 = vector.shape_cast %44 : vector<1x128x128xf32> to vector<128x128xf32>
    %cst_30 = arith.constant dense<0.000000e+00> : vector<128x128xf32>
    %46 = tpu.matmul %43, %45, %cst_30 {dimension_numbers = #tpu.dot_dimension_numbers<[1], [0], [0], [1], [0, 0, 1, 1], [], []>} : vector<128x128xf32>, vector<128x128xf32>, vector<128x128xf32> -> vector<128x128xf32>
    %47 = arith.addf %42, %46 : vector<128x128xf32>
    %c2_31 = arith.constant 2 : index
    %c0_32 = arith.constant 0 : index
    %48 = vector.load %arg8[%c2_31, %c0_32] : memref<136x128xf32, #tpu.memory_space<vmem>>, vector<128x128xf32>
    %c2_33 = arith.constant 2 : index
    %c0_34 = arith.constant 0 : index
    %c0_35 = arith.constant 0 : index
    %49 = vector.load %arg5[%c2_33, %c0_34, %c0_35] : memref<5x128x128xf32, #tpu.memory_space<vmem>>, vector<1x128x128xf32>
    %50 = vector.shape_cast %49 : vector<1x128x128xf32> to vector<128x128xf32>
    %cst_36 = arith.constant dense<0.000000e+00> : vector<128x128xf32>
    %51 = tpu.matmul %48, %50, %cst_36 {dimension_numbers = #tpu.dot_dimension_numbers<[1], [0], [0], [1], [0, 0, 1, 1], [], []>} : vector<128x128xf32>, vector<128x128xf32>, vector<128x128xf32> -> vector<128x128xf32>
    %52 = arith.addf %47, %51 : vector<128x128xf32>
    %c3 = arith.constant 3 : index
    %c0_37 = arith.constant 0 : index
    %53 = vector.load %arg8[%c3, %c0_37] : memref<136x128xf32, #tpu.memory_space<vmem>>, vector<128x128xf32>
    %c3_38 = arith.constant 3 : index
    %c0_39 = arith.constant 0 : index
    %c0_40 = arith.constant 0 : index
    %54 = vector.load %arg5[%c3_38, %c0_39, %c0_40] : memref<5x128x128xf32, #tpu.memory_space<vmem>>, vector<1x128x128xf32>
    %55 = vector.shape_cast %54 : vector<1x128x128xf32> to vector<128x128xf32>
    %cst_41 = arith.constant dense<0.000000e+00> : vector<128x128xf32>
    %56 = tpu.matmul %53, %55, %cst_41 {dimension_numbers = #tpu.dot_dimension_numbers<[1], [0], [0], [1], [0, 0, 1, 1], [], []>} : vector<128x128xf32>, vector<128x128xf32>, vector<128x128xf32> -> vector<128x128xf32>
    %57 = arith.addf %52, %56 : vector<128x128xf32>
    %c4 = arith.constant 4 : index
    %c0_42 = arith.constant 0 : index
    %58 = vector.load %arg8[%c4, %c0_42] : memref<136x128xf32, #tpu.memory_space<vmem>>, vector<128x128xf32>
    %c4_43 = arith.constant 4 : index
    %c0_44 = arith.constant 0 : index
    %c0_45 = arith.constant 0 : index
    %59 = vector.load %arg5[%c4_43, %c0_44, %c0_45] : memref<5x128x128xf32, #tpu.memory_space<vmem>>, vector<1x128x128xf32>
    %60 = vector.shape_cast %59 : vector<1x128x128xf32> to vector<128x128xf32>
    %cst_46 = arith.constant dense<0.000000e+00> : vector<128x128xf32>
    %61 = tpu.matmul %58, %60, %cst_46 {dimension_numbers = #tpu.dot_dimension_numbers<[1], [0], [0], [1], [0, 0, 1, 1], [], []>} : vector<128x128xf32>, vector<128x128xf32>, vector<128x128xf32> -> vector<128x128xf32>
    %62 = arith.addf %57, %61 : vector<128x128xf32>
    %c0_47 = arith.constant 0 : index
    %c0_48 = arith.constant 0 : index
    %63 = vector.load %arg6[%c0_47, %c0_48] : memref<1x128xf32, #tpu.memory_space<vmem>>, vector<1x128xf32>
    %64 = vector.broadcast %63 : vector<1x128xf32> to vector<128x128xf32>
    %65 = arith.addf %62, %64 : vector<128x128xf32>
    %c0_49 = arith.constant 0 : index
    %c0_50 = arith.constant 0 : index
    %c0_51 = arith.constant 0 : index
    %66 = vector.load %arg7[%c0_49, %c0_50, %c0_51] : memref<1x128x128xf32, #tpu.memory_space<vmem>>, vector<1x128x128xf32>
    %67 = vector.shape_cast %66 : vector<1x128x128xf32> to vector<128x128xf32>
    %68 = vector.shape_cast %65 : vector<128x128xf32> to vector<1x128x128xf32>
    tpu.vector_store %arg7[%c0_49, %c0_50, %c0_51], %68 {strides = array<i32>} : memref<1x128x128xf32, #tpu.memory_space<vmem>>, vector<1x128x128xf32>,
    return
  }
  func.func @transform_0(%arg0: i32) -> (i32, i32, i32) {
    %c0_i32 = arith.constant 0 : i32
    %c0_i32_0 = arith.constant 0 : i32
    %c0_i32_1 = arith.constant 0 : i32
    return %arg0, %c0_i32, %c0_i32_0 : i32, i32, i32
  }
  func.func @transform_1(%arg0: i32) -> (i32, i32, i32) {
    %c0_i32 = arith.constant 0 : i32
    %c0_i32_0 = arith.constant 0 : i32
    %c0_i32_1 = arith.constant 0 : i32
    return %arg0, %c0_i32, %c0_i32_0 : i32, i32, i32
  }
  func.func @transform_2(%arg0: i32) -> (i32, i32) {
    %c0_i32 = arith.constant 0 : i32
    %c0_i32_0 = arith.constant 0 : i32
    %c0_i32_1 = arith.constant 0 : i32
    return %c0_i32, %c0_i32_0 : i32, i32
  }
  func.func @transform_3(%arg0: i32) -> (i32, i32) {
    %c0_i32 = arith.constant 0 : i32
    %c0_i32_0 = arith.constant 0 : i32
    %c0_i32_1 = arith.constant 0 : i32
    return %c0_i32, %c0_i32_0 : i32, i32
  }
  func.func @transform_4(%arg0: i32) -> (i32, i32, i32) {
    %c0_i32 = arith.constant 0 : i32
    %c0_i32_0 = arith.constant 0 : i32
    %c0_i32_1 = arith.constant 0 : i32
    %c0_i32_2 = arith.constant 0 : i32
    return %c0_i32, %c0_i32_0, %c0_i32_1 : i32, i32, i32
  }
  func.func @transform_5(%arg0: i32) -> (i32, i32) {
    %c0_i32 = arith.constant 0 : i32
    %c0_i32_0 = arith.constant 0 : i32
    %c0_i32_1 = arith.constant 0 : i32
    return %c0_i32, %c0_i32_0 : i32, i32
  }
  func.func @transform_6(%arg0: i32) -> (i32, i32, i32) {
    %c0_i32 = arith.constant 0 : i32
    %c0_i32_0 = arith.constant 0 : i32
    %c0_i32_1 = arith.constant 0 : i32
    return %arg0, %c0_i32, %c0_i32_0 : i32, i32, i32
  }
}

module attributes {stable_mosaic.version = 11 : i64} {
  func.func @_matmul_bias_kernel(%arg0: i32, %arg1: memref<128x128xf32, #tpu.memory_space<vmem>>, %arg2: memref<128x128xf32, #tpu.memory_space<vmem>>, %arg3: memref<1x128xf32, #tpu.memory_space<vmem>>, %arg4: memref<128x128xf32, #tpu.memory_space<vmem>>) attributes {dimension_semantics = [#tpu.dimension_semantics<parallel>], iteration_bounds = array<i64: 2>, scalar_prefetch = 0 : i64, scratch_operands = 0 : i64, tpu.core_type = #tpu.core_type<tc>, window_params = [{transform_indices = @transform_0, window_bounds = array<i64: 128, 128>}, {pipeline_mode = #tpu.pipeline_mode<synchronous>, transform_indices = @transform_1, window_bounds = array<i64: 128, 128>}, {pipeline_mode = #tpu.pipeline_mode<synchronous>, transform_indices = @transform_2, window_bounds = array<i64: 1, 128>}, {transform_indices = @transform_3, window_bounds = array<i64: 128, 128>}]} {
    %c0 = arith.constant 0 : index
    %c0_0 = arith.constant 0 : index
    %0 = vector.load %arg1[%c0, %c0_0] : memref<128x128xf32, #tpu.memory_space<vmem>>, vector<128x128xf32>
    %c0_1 = arith.constant 0 : index
    %c0_2 = arith.constant 0 : index
    %1 = vector.load %arg2[%c0_1, %c0_2] : memref<128x128xf32, #tpu.memory_space<vmem>>, vector<128x128xf32>
    %cst = arith.constant dense<0.000000e+00> : vector<128x128xf32>
    %2 = tpu.matmul %0, %1, %cst {dimension_numbers = #tpu.dot_dimension_numbers<[1], [0], [0], [1], [0, 0, 1, 1], [], []>} : vector<128x128xf32>, vector<128x128xf32>, vector<128x128xf32> -> vector<128x128xf32>
    %c0_3 = arith.constant 0 : index
    %c0_4 = arith.constant 0 : index
    %3 = vector.load %arg3[%c0_3, %c0_4] : memref<1x128xf32, #tpu.memory_space<vmem>>, vector<1x128xf32>
    %4 = vector.broadcast %3 : vector<1x128xf32> to vector<128x128xf32>
    %5 = arith.addf %2, %4 : vector<128x128xf32>
    %c0_5 = arith.constant 0 : index
    %c0_6 = arith.constant 0 : index
    %6 = vector.load %arg4[%c0_5, %c0_6] : memref<128x128xf32, #tpu.memory_space<vmem>>, vector<128x128xf32>
    tpu.vector_store %arg4[%c0_5, %c0_6], %5 {strides = array<i32>} : memref<128x128xf32, #tpu.memory_space<vmem>>, vector<128x128xf32>,
    return
  }
  func.func @transform_0(%arg0: i32) -> (i32, i32) {
    %c0_i32 = arith.constant 0 : i32
    %c0_i32_0 = arith.constant 0 : i32
    return %arg0, %c0_i32 : i32, i32
  }
  func.func @transform_1(%arg0: i32) -> (i32, i32) {
    %c0_i32 = arith.constant 0 : i32
    %c0_i32_0 = arith.constant 0 : i32
    %c0_i32_1 = arith.constant 0 : i32
    return %c0_i32, %c0_i32_0 : i32, i32
  }
  func.func @transform_2(%arg0: i32) -> (i32, i32) {
    %c0_i32 = arith.constant 0 : i32
    %c0_i32_0 = arith.constant 0 : i32
    %c0_i32_1 = arith.constant 0 : i32
    return %c0_i32, %c0_i32_0 : i32, i32
  }
  func.func @transform_3(%arg0: i32) -> (i32, i32) {
    %c0_i32 = arith.constant 0 : i32
    %c0_i32_0 = arith.constant 0 : i32
    return %arg0, %c0_i32 : i32, i32
  }
}

module attributes {stable_mosaic.version = 11 : i64} {
  func.func @kernel(%arg0: i32, %arg1: memref<128x128xf32, #tpu.memory_space<vmem>>, %arg2: memref<128x128xf32, #tpu.memory_space<vmem>>, %arg3: memref<1x128xf32, #tpu.memory_space<vmem>>, %arg4: memref<1x128xf32, #tpu.memory_space<vmem>>, %arg5: memref<128x128xf32, #tpu.memory_space<vmem>>, %arg6: memref<1x128xf32, #tpu.memory_space<vmem>>, %arg7: memref<128x128xf32, #tpu.memory_space<vmem>>) attributes {dimension_semantics = [#tpu.dimension_semantics<parallel>], iteration_bounds = array<i64: 2>, scalar_prefetch = 0 : i64, scratch_operands = 0 : i64, tpu.core_type = #tpu.core_type<tc>, window_params = [{transform_indices = @transform_0, window_bounds = array<i64: 128, 128>}, {transform_indices = @transform_1, window_bounds = array<i64: 128, 128>}, {pipeline_mode = #tpu.pipeline_mode<synchronous>, transform_indices = @transform_2, window_bounds = array<i64: 1, 128>}, {pipeline_mode = #tpu.pipeline_mode<synchronous>, transform_indices = @transform_3, window_bounds = array<i64: 1, 128>}, {pipeline_mode = #tpu.pipeline_mode<synchronous>, transform_indices = @transform_4, window_bounds = array<i64: 128, 128>}, {pipeline_mode = #tpu.pipeline_mode<synchronous>, transform_indices = @transform_5, window_bounds = array<i64: 1, 128>}, {transform_indices = @transform_6, window_bounds = array<i64: 128, 128>}]} {
    %c0 = arith.constant 0 : index
    %c0_0 = arith.constant 0 : index
    %0 = vector.load %arg1[%c0, %c0_0] : memref<128x128xf32, #tpu.memory_space<vmem>>, vector<128x128xf32>
    %cst = arith.constant dense<0.000000e+00> : vector<128xf32>
    %1 = vector.multi_reduction <add>, %0, %cst [1] : vector<128x128xf32> to vector<128xf32>
    %2 = vector.shape_cast %1 : vector<128xf32> to vector<128x1xf32>
    %cst_1 = arith.constant 6.250000e-02 : f32
    %3 = vector.broadcast %cst_1 : f32 to vector<128x1xf32>
    %4 = arith.mulf %2, %3 : vector<128x1xf32>
    %5 = vector.broadcast %4 : vector<128x1xf32> to vector<128x128xf32>
    %6 = arith.subf %0, %5 : vector<128x128xf32>
    %7 = arith.mulf %6, %6 : vector<128x128xf32>
    %cst_2 = arith.constant dense<0.000000e+00> : vector<128xf32>
    %8 = vector.multi_reduction <add>, %7, %cst_2 [1] : vector<128x128xf32> to vector<128xf32>
    %9 = vector.shape_cast %8 : vector<128xf32> to vector<128x1xf32>
    %10 = arith.mulf %4, %4 : vector<128x1xf32>
    %cst_3 = arith.constant 1.120000e+02 : f32
    %11 = vector.broadcast %cst_3 : f32 to vector<128x1xf32>
    %12 = arith.mulf %11, %10 : vector<128x1xf32>
    %13 = arith.subf %9, %12 : vector<128x1xf32>
    %cst_4 = arith.constant 6.250000e-02 : f32
    %14 = vector.broadcast %cst_4 : f32 to vector<128x1xf32>
    %15 = arith.mulf %13, %14 : vector<128x1xf32>
    %cst_5 = arith.constant 9.99999974E-6 : f32
    %16 = vector.broadcast %cst_5 : f32 to vector<128x1xf32>
    %17 = arith.addf %15, %16 : vector<128x1xf32>
    %18 = math.rsqrt %17 : vector<128x1xf32>
    %19 = vector.broadcast %18 : vector<128x1xf32> to vector<128x128xf32>
    %20 = arith.mulf %6, %19 : vector<128x128xf32>
    %c0_6 = arith.constant 0 : index
    %c0_7 = arith.constant 0 : index
    %21 = vector.load %arg3[%c0_6, %c0_7] : memref<1x128xf32, #tpu.memory_space<vmem>>, vector<1x128xf32>
    %22 = vector.broadcast %21 : vector<1x128xf32> to vector<128x128xf32>
    %23 = arith.mulf %20, %22 : vector<128x128xf32>
    %c0_8 = arith.constant 0 : index
    %c0_9 = arith.constant 0 : index
    %24 = vector.load %arg4[%c0_8, %c0_9] : memref<1x128xf32, #tpu.memory_space<vmem>>, vector<1x128xf32>
    %25 = vector.broadcast %24 : vector<1x128xf32> to vector<128x128xf32>
    %26 = arith.addf %23, %25 : vector<128x128xf32>
    %cst_10 = arith.constant 0.000000e+00 : f32
    %27 = vector.broadcast %cst_10 : f32 to vector<128x128xf32>
    %28 = arith.maximumf %26, %27 : vector<128x128xf32>
    %c0_11 = arith.constant 0 : index
    %c0_12 = arith.constant 0 : index
    %29 = vector.load %arg5[%c0_11, %c0_12] : memref<128x128xf32, #tpu.memory_space<vmem>>, vector<128x128xf32>
    %cst_13 = arith.constant dense<0.000000e+00> : vector<128x128xf32>
    %30 = tpu.matmul %28, %29, %cst_13 {dimension_numbers = #tpu.dot_dimension_numbers<[1], [0], [0], [1], [0, 0, 1, 1], [], []>} : vector<128x128xf32>, vector<128x128xf32>, vector<128x128xf32> -> vector<128x128xf32>
    %c0_14 = arith.constant 0 : index
    %c0_15 = arith.constant 0 : index
    %31 = vector.load %arg2[%c0_14, %c0_15] : memref<128x128xf32, #tpu.memory_space<vmem>>, vector<128x128xf32>
    %32 = arith.addf %31, %30 : vector<128x128xf32>
    %c0_16 = arith.constant 0 : index
    %c0_17 = arith.constant 0 : index
    %33 = vector.load %arg6[%c0_16, %c0_17] : memref<1x128xf32, #tpu.memory_space<vmem>>, vector<1x128xf32>
    %34 = vector.broadcast %33 : vector<1x128xf32> to vector<128x128xf32>
    %35 = arith.addf %32, %34 : vector<128x128xf32>
    %c0_18 = arith.constant 0 : index
    %c0_19 = arith.constant 0 : index
    %36 = vector.load %arg7[%c0_18, %c0_19] : memref<128x128xf32, #tpu.memory_space<vmem>>, vector<128x128xf32>
    tpu.vector_store %arg7[%c0_18, %c0_19], %35 {strides = array<i32>} : memref<128x128xf32, #tpu.memory_space<vmem>>, vector<128x128xf32>,
    return
  }
  func.func @transform_0(%arg0: i32) -> (i32, i32) {
    %c0_i32 = arith.constant 0 : i32
    %c0_i32_0 = arith.constant 0 : i32
    return %arg0, %c0_i32 : i32, i32
  }
  func.func @transform_1(%arg0: i32) -> (i32, i32) {
    %c0_i32 = arith.constant 0 : i32
    %c0_i32_0 = arith.constant 0 : i32
    return %arg0, %c0_i32 : i32, i32
  }
  func.func @transform_2(%arg0: i32) -> (i32, i32) {
    %c0_i32 = arith.constant 0 : i32
    %c0_i32_0 = arith.constant 0 : i32
    %c0_i32_1 = arith.constant 0 : i32
    return %c0_i32, %c0_i32_0 : i32, i32
  }
  func.func @transform_3(%arg0: i32) -> (i32, i32) {
    %c0_i32 = arith.constant 0 : i32
    %c0_i32_0 = arith.constant 0 : i32
    %c0_i32_1 = arith.constant 0 : i32
    return %c0_i32, %c0_i32_0 : i32, i32
  }
  func.func @transform_4(%arg0: i32) -> (i32, i32) {
    %c0_i32 = arith.constant 0 : i32
    %c0_i32_0 = arith.constant 0 : i32
    %c0_i32_1 = arith.constant 0 : i32
    return %c0_i32, %c0_i32_0 : i32, i32
  }
  func.func @transform_5(%arg0: i32) -> (i32, i32) {
    %c0_i32 = arith.constant 0 : i32
    %c0_i32_0 = arith.constant 0 : i32
    %c0_i32_1 = arith.constant 0 : i32
    return %c0_i32, %c0_i32_0 : i32, i32
  }
  func.func @transform_6(%arg0: i32) -> (i32, i32) {
    %c0_i32 = arith.constant 0 : i32
    %c0_i32_0 = arith.constant 0 : i32
    return %arg0, %c0_i32 : i32, i32
  }
}

module attributes {stable_mosaic.version = 11 : i64} {
  func.func @_matmul_bias_kernel(%arg0: i32, %arg1: memref<128x128xf32, #tpu.memory_space<vmem>>, %arg2: memref<128x512xf32, #tpu.memory_space<vmem>>, %arg3: memref<1x512xf32, #tpu.memory_space<vmem>>, %arg4: memref<128x512xf32, #tpu.memory_space<vmem>>) attributes {dimension_semantics = [#tpu.dimension_semantics<parallel>], iteration_bounds = array<i64: 2>, scalar_prefetch = 0 : i64, scratch_operands = 0 : i64, tpu.core_type = #tpu.core_type<tc>, window_params = [{transform_indices = @transform_0, window_bounds = array<i64: 128, 128>}, {pipeline_mode = #tpu.pipeline_mode<synchronous>, transform_indices = @transform_1, window_bounds = array<i64: 128, 512>}, {pipeline_mode = #tpu.pipeline_mode<synchronous>, transform_indices = @transform_2, window_bounds = array<i64: 1, 512>}, {transform_indices = @transform_3, window_bounds = array<i64: 128, 512>}]} {
    %c0 = arith.constant 0 : index
    %c0_0 = arith.constant 0 : index
    %0 = vector.load %arg1[%c0, %c0_0] : memref<128x128xf32, #tpu.memory_space<vmem>>, vector<128x128xf32>
    %c0_1 = arith.constant 0 : index
    %c0_2 = arith.constant 0 : index
    %1 = vector.load %arg2[%c0_1, %c0_2] : memref<128x512xf32, #tpu.memory_space<vmem>>, vector<128x512xf32>
    %cst = arith.constant dense<0.000000e+00> : vector<128x512xf32>
    %2 = tpu.matmul %0, %1, %cst {dimension_numbers = #tpu.dot_dimension_numbers<[1], [0], [0], [1], [0, 0, 1, 1], [], []>} : vector<128x128xf32>, vector<128x512xf32>, vector<128x512xf32> -> vector<128x512xf32>
    %c0_3 = arith.constant 0 : index
    %c0_4 = arith.constant 0 : index
    %3 = vector.load %arg3[%c0_3, %c0_4] : memref<1x512xf32, #tpu.memory_space<vmem>>, vector<1x512xf32>
    %4 = vector.broadcast %3 : vector<1x512xf32> to vector<128x512xf32>
    %5 = arith.addf %2, %4 : vector<128x512xf32>
    %c0_5 = arith.constant 0 : index
    %c0_6 = arith.constant 0 : index
    %6 = vector.load %arg4[%c0_5, %c0_6] : memref<128x512xf32, #tpu.memory_space<vmem>>, vector<128x512xf32>
    tpu.vector_store %arg4[%c0_5, %c0_6], %5 {strides = array<i32>} : memref<128x512xf32, #tpu.memory_space<vmem>>, vector<128x512xf32>,
    return
  }
  func.func @transform_0(%arg0: i32) -> (i32, i32) {
    %c0_i32 = arith.constant 0 : i32
    %c0_i32_0 = arith.constant 0 : i32
    return %arg0, %c0_i32 : i32, i32
  }
  func.func @transform_1(%arg0: i32) -> (i32, i32) {
    %c0_i32 = arith.constant 0 : i32
    %c0_i32_0 = arith.constant 0 : i32
    %c0_i32_1 = arith.constant 0 : i32
    return %c0_i32, %c0_i32_0 : i32, i32
  }
  func.func @transform_2(%arg0: i32) -> (i32, i32) {
    %c0_i32 = arith.constant 0 : i32
    %c0_i32_0 = arith.constant 0 : i32
    %c0_i32_1 = arith.constant 0 : i32
    return %c0_i32, %c0_i32_0 : i32, i32
  }
  func.func @transform_3(%arg0: i32) -> (i32, i32) {
    %c0_i32 = arith.constant 0 : i32
    %c0_i32_0 = arith.constant 0 : i32
    return %arg0, %c0_i32 : i32, i32
  }
}

module attributes {stable_mosaic.version = 11 : i64} {
  func.func @kernel(%arg0: i32, %arg1: memref<1x128x128xf32, #tpu.memory_space<vmem>>, %arg2: memref<1x128x1xf32, #tpu.memory_space<vmem>>, %arg3: memref<1x128xf32, #tpu.memory_space<vmem>>, %arg4: memref<1x128xf32, #tpu.memory_space<vmem>>, %arg5: memref<5x128x128xf32, #tpu.memory_space<vmem>>, %arg6: memref<1x128xf32, #tpu.memory_space<vmem>>, %arg7: memref<1x128x128xf32, #tpu.memory_space<vmem>>, %arg8: memref<136x128xf32, #tpu.memory_space<vmem>>) attributes {dimension_semantics = [#tpu.dimension_semantics<parallel>], iteration_bounds = array<i64: 2>, scalar_prefetch = 0 : i64, scratch_operands = 1 : i64, tpu.core_type = #tpu.core_type<tc>, window_params = [{transform_indices = @transform_0, window_bounds = array<i64: 1, 128, 128>}, {transform_indices = @transform_1, window_bounds = array<i64: 1, 128, 1>}, {pipeline_mode = #tpu.pipeline_mode<synchronous>, transform_indices = @transform_2, window_bounds = array<i64: 1, 128>}, {pipeline_mode = #tpu.pipeline_mode<synchronous>, transform_indices = @transform_3, window_bounds = array<i64: 1, 128>}, {pipeline_mode = #tpu.pipeline_mode<synchronous>, transform_indices = @transform_4, window_bounds = array<i64: 5, 128, 128>}, {pipeline_mode = #tpu.pipeline_mode<synchronous>, transform_indices = @transform_5, window_bounds = array<i64: 1, 128>}, {transform_indices = @transform_6, window_bounds = array<i64: 1, 128, 128>}]} {
    %c0 = arith.constant 0 : index
    %c0_0 = arith.constant 0 : index
    %c0_1 = arith.constant 0 : index
    %0 = vector.load %arg1[%c0, %c0_0, %c0_1] : memref<1x128x128xf32, #tpu.memory_space<vmem>>, vector<1x128x128xf32>
    %1 = vector.shape_cast %0 : vector<1x128x128xf32> to vector<128x128xf32>
    %cst = arith.constant dense<0.000000e+00> : vector<128xf32>
    %2 = vector.multi_reduction <add>, %1, %cst [1] : vector<128x128xf32> to vector<128xf32>
    %3 = vector.shape_cast %2 : vector<128xf32> to vector<128x1xf32>
    %cst_2 = arith.constant 6.250000e-02 : f32
    %4 = vector.broadcast %cst_2 : f32 to vector<128x1xf32>
    %5 = arith.mulf %3, %4 : vector<128x1xf32>
    %6 = vector.broadcast %5 : vector<128x1xf32> to vector<128x128xf32>
    %7 = arith.subf %1, %6 : vector<128x128xf32>
    %8 = arith.mulf %7, %7 : vector<128x128xf32>
    %cst_3 = arith.constant dense<0.000000e+00> : vector<128xf32>
    %9 = vector.multi_reduction <add>, %8, %cst_3 [1] : vector<128x128xf32> to vector<128xf32>
    %10 = vector.shape_cast %9 : vector<128xf32> to vector<128x1xf32>
    %11 = arith.mulf %5, %5 : vector<128x1xf32>
    %cst_4 = arith.constant 1.120000e+02 : f32
    %12 = vector.broadcast %cst_4 : f32 to vector<128x1xf32>
    %13 = arith.mulf %12, %11 : vector<128x1xf32>
    %14 = arith.subf %10, %13 : vector<128x1xf32>
    %cst_5 = arith.constant 6.250000e-02 : f32
    %15 = vector.broadcast %cst_5 : f32 to vector<128x1xf32>
    %16 = arith.mulf %14, %15 : vector<128x1xf32>
    %cst_6 = arith.constant 9.99999974E-6 : f32
    %17 = vector.broadcast %cst_6 : f32 to vector<128x1xf32>
    %18 = arith.addf %16, %17 : vector<128x1xf32>
    %19 = math.rsqrt %18 : vector<128x1xf32>
    %20 = vector.broadcast %19 : vector<128x1xf32> to vector<128x128xf32>
    %21 = arith.mulf %7, %20 : vector<128x128xf32>
    %c0_7 = arith.constant 0 : index
    %c0_8 = arith.constant 0 : index
    %22 = vector.load %arg3[%c0_7, %c0_8] : memref<1x128xf32, #tpu.memory_space<vmem>>, vector<1x128xf32>
    %23 = vector.broadcast %22 : vector<1x128xf32> to vector<128x128xf32>
    %24 = arith.mulf %21, %23 : vector<128x128xf32>
    %c0_9 = arith.constant 0 : index
    %c0_10 = arith.constant 0 : index
    %25 = vector.load %arg4[%c0_9, %c0_10] : memref<1x128xf32, #tpu.memory_space<vmem>>, vector<1x128xf32>
    %26 = vector.broadcast %25 : vector<1x128xf32> to vector<128x128xf32>
    %27 = arith.addf %24, %26 : vector<128x128xf32>
    %cst_11 = arith.constant 0.000000e+00 : f32
    %28 = vector.broadcast %cst_11 : f32 to vector<128x128xf32>
    %29 = arith.maximumf %27, %28 : vector<128x128xf32>
    %c0_12 = arith.constant 0 : index
    %c0_13 = arith.constant 0 : index
    %c0_14 = arith.constant 0 : index
    %30 = vector.load %arg2[%c0_12, %c0_13, %c0_14] : memref<1x128x1xf32, #tpu.memory_space<vmem>>, vector<1x128x1xf32>
    %31 = vector.shape_cast %30 : vector<1x128x1xf32> to vector<128x1xf32>
    %32 = vector.broadcast %31 : vector<128x1xf32> to vector<128x128xf32>
    %33 = arith.mulf %29, %32 : vector<128x128xf32>
    %cst_15 = arith.constant 0.000000e+00 : f32
    %34 = vector.broadcast %cst_15 : f32 to vector<136x128xf32>
    %c0_16 = arith.constant 0 : index
    %c0_17 = arith.constant 0 : index
    %35 = vector.load %arg8[%c0_16, %c0_17] : memref<136x128xf32, #tpu.memory_space<vmem>>, vector<136x128xf32>
    tpu.vector_store %arg8[%c0_16, %c0_17], %34 {strides = array<i32>} : memref<136x128xf32, #tpu.memory_space<vmem>>, vector<136x128xf32>,
    %c4 = arith.constant 4 : index
    %c0_18 = arith.constant 0 : index
    %36 = vector.load %arg8[%c4, %c0_18] : memref<136x128xf32, #tpu.memory_space<vmem>>, vector<128x128xf32>
    tpu.vector_store %arg8[%c4, %c0_18], %33 {strides = array<i32>} : memref<136x128xf32, #tpu.memory_space<vmem>>, vector<128x128xf32>,
    %cst_19 = arith.constant 0.000000e+00 : f32
    %37 = vector.broadcast %cst_19 : f32 to vector<128x128xf32>
    %c0_20 = arith.constant 0 : index
    %c0_21 = arith.constant 0 : index
    %38 = vector.load %arg8[%c0_20, %c0_21] : memref<136x128xf32, #tpu.memory_space<vmem>>, vector<128x128xf32>
    %c0_22 = arith.constant 0 : index
    %c0_23 = arith.constant 0 : index
    %c0_24 = arith.constant 0 : index
    %39 = vector.load %arg5[%c0_22, %c0_23, %c0_24] : memref<5x128x128xf32, #tpu.memory_space<vmem>>, vector<1x128x128xf32>
    %40 = vector.shape_cast %39 : vector<1x128x128xf32> to vector<128x128xf32>
    %cst_25 = arith.constant dense<0.000000e+00> : vector<128x128xf32>
    %41 = tpu.matmul %38, %40, %cst_25 {dimension_numbers = #tpu.dot_dimension_numbers<[1], [0], [0], [1], [0, 0, 1, 1], [], []>} : vector<128x128xf32>, vector<128x128xf32>, vector<128x128xf32> -> vector<128x128xf32>
    %42 = arith.addf %37, %41 : vector<128x128xf32>
    %c2 = arith.constant 2 : index
    %c0_26 = arith.constant 0 : index
    %43 = vector.load %arg8[%c2, %c0_26] : memref<136x128xf32, #tpu.memory_space<vmem>>, vector<128x128xf32>
    %c1 = arith.constant 1 : index
    %c0_27 = arith.constant 0 : index
    %c0_28 = arith.constant 0 : index
    %44 = vector.load %arg5[%c1, %c0_27, %c0_28] : memref<5x128x128xf32, #tpu.memory_space<vmem>>, vector<1x128x128xf32>
    %45 = vector.shape_cast %44 : vector<1x128x128xf32> to vector<128x128xf32>
    %cst_29 = arith.constant dense<0.000000e+00> : vector<128x128xf32>
    %46 = tpu.matmul %43, %45, %cst_29 {dimension_numbers = #tpu.dot_dimension_numbers<[1], [0], [0], [1], [0, 0, 1, 1], [], []>} : vector<128x128xf32>, vector<128x128xf32>, vector<128x128xf32> -> vector<128x128xf32>
    %47 = arith.addf %42, %46 : vector<128x128xf32>
    %c4_30 = arith.constant 4 : index
    %c0_31 = arith.constant 0 : index
    %48 = vector.load %arg8[%c4_30, %c0_31] : memref<136x128xf32, #tpu.memory_space<vmem>>, vector<128x128xf32>
    %c2_32 = arith.constant 2 : index
    %c0_33 = arith.constant 0 : index
    %c0_34 = arith.constant 0 : index
    %49 = vector.load %arg5[%c2_32, %c0_33, %c0_34] : memref<5x128x128xf32, #tpu.memory_space<vmem>>, vector<1x128x128xf32>
    %50 = vector.shape_cast %49 : vector<1x128x128xf32> to vector<128x128xf32>
    %cst_35 = arith.constant dense<0.000000e+00> : vector<128x128xf32>
    %51 = tpu.matmul %48, %50, %cst_35 {dimension_numbers = #tpu.dot_dimension_numbers<[1], [0], [0], [1], [0, 0, 1, 1], [], []>} : vector<128x128xf32>, vector<128x128xf32>, vector<128x128xf32> -> vector<128x128xf32>
    %52 = arith.addf %47, %51 : vector<128x128xf32>
    %c6 = arith.constant 6 : index
    %c0_36 = arith.constant 0 : index
    %53 = vector.load %arg8[%c6, %c0_36] : memref<136x128xf32, #tpu.memory_space<vmem>>, vector<128x128xf32>
    %c3 = arith.constant 3 : index
    %c0_37 = arith.constant 0 : index
    %c0_38 = arith.constant 0 : index
    %54 = vector.load %arg5[%c3, %c0_37, %c0_38] : memref<5x128x128xf32, #tpu.memory_space<vmem>>, vector<1x128x128xf32>
    %55 = vector.shape_cast %54 : vector<1x128x128xf32> to vector<128x128xf32>
    %cst_39 = arith.constant dense<0.000000e+00> : vector<128x128xf32>
    %56 = tpu.matmul %53, %55, %cst_39 {dimension_numbers = #tpu.dot_dimension_numbers<[1], [0], [0], [1], [0, 0, 1, 1], [], []>} : vector<128x128xf32>, vector<128x128xf32>, vector<128x128xf32> -> vector<128x128xf32>
    %57 = arith.addf %52, %56 : vector<128x128xf32>
    %c8 = arith.constant 8 : index
    %c0_40 = arith.constant 0 : index
    %58 = vector.load %arg8[%c8, %c0_40] : memref<136x128xf32, #tpu.memory_space<vmem>>, vector<128x128xf32>
    %c4_41 = arith.constant 4 : index
    %c0_42 = arith.constant 0 : index
    %c0_43 = arith.constant 0 : index
    %59 = vector.load %arg5[%c4_41, %c0_42, %c0_43] : memref<5x128x128xf32, #tpu.memory_space<vmem>>, vector<1x128x128xf32>
    %60 = vector.shape_cast %59 : vector<1x128x128xf32> to vector<128x128xf32>
    %cst_44 = arith.constant dense<0.000000e+00> : vector<128x128xf32>
    %61 = tpu.matmul %58, %60, %cst_44 {dimension_numbers = #tpu.dot_dimension_numbers<[1], [0], [0], [1], [0, 0, 1, 1], [], []>} : vector<128x128xf32>, vector<128x128xf32>, vector<128x128xf32> -> vector<128x128xf32>
    %62 = arith.addf %57, %61 : vector<128x128xf32>
    %c0_45 = arith.constant 0 : index
    %c0_46 = arith.constant 0 : index
    %63 = vector.load %arg6[%c0_45, %c0_46] : memref<1x128xf32, #tpu.memory_space<vmem>>, vector<1x128xf32>
    %64 = vector.broadcast %63 : vector<1x128xf32> to vector<128x128xf32>
    %65 = arith.addf %62, %64 : vector<128x128xf32>
    %c0_47 = arith.constant 0 : index
    %c0_48 = arith.constant 0 : index
    %c0_49 = arith.constant 0 : index
    %66 = vector.load %arg7[%c0_47, %c0_48, %c0_49] : memref<1x128x128xf32, #tpu.memory_space<vmem>>, vector<1x128x128xf32>
    %67 = vector.shape_cast %66 : vector<1x128x128xf32> to vector<128x128xf32>
    %68 = vector.shape_cast %65 : vector<128x128xf32> to vector<1x128x128xf32>
    tpu.vector_store %arg7[%c0_47, %c0_48, %c0_49], %68 {strides = array<i32>} : memref<1x128x128xf32, #tpu.memory_space<vmem>>, vector<1x128x128xf32>,
    return
  }
  func.func @transform_0(%arg0: i32) -> (i32, i32, i32) {
    %c0_i32 = arith.constant 0 : i32
    %c0_i32_0 = arith.constant 0 : i32
    %c0_i32_1 = arith.constant 0 : i32
    return %arg0, %c0_i32, %c0_i32_0 : i32, i32, i32
  }
  func.func @transform_1(%arg0: i32) -> (i32, i32, i32) {
    %c0_i32 = arith.constant 0 : i32
    %c0_i32_0 = arith.constant 0 : i32
    %c0_i32_1 = arith.constant 0 : i32
    return %arg0, %c0_i32, %c0_i32_0 : i32, i32, i32
  }
  func.func @transform_2(%arg0: i32) -> (i32, i32) {
    %c0_i32 = arith.constant 0 : i32
    %c0_i32_0 = arith.constant 0 : i32
    %c0_i32_1 = arith.constant 0 : i32
    return %c0_i32, %c0_i32_0 : i32, i32
  }
  func.func @transform_3(%arg0: i32) -> (i32, i32) {
    %c0_i32 = arith.constant 0 : i32
    %c0_i32_0 = arith.constant 0 : i32
    %c0_i32_1 = arith.constant 0 : i32
    return %c0_i32, %c0_i32_0 : i32, i32
  }
  func.func @transform_4(%arg0: i32) -> (i32, i32, i32) {
    %c0_i32 = arith.constant 0 : i32
    %c0_i32_0 = arith.constant 0 : i32
    %c0_i32_1 = arith.constant 0 : i32
    %c0_i32_2 = arith.constant 0 : i32
    return %c0_i32, %c0_i32_0, %c0_i32_1 : i32, i32, i32
  }
  func.func @transform_5(%arg0: i32) -> (i32, i32) {
    %c0_i32 = arith.constant 0 : i32
    %c0_i32_0 = arith.constant 0 : i32
    %c0_i32_1 = arith.constant 0 : i32
    return %c0_i32, %c0_i32_0 : i32, i32
  }
  func.func @transform_6(%arg0: i32) -> (i32, i32, i32) {
    %c0_i32 = arith.constant 0 : i32
    %c0_i32_0 = arith.constant 0 : i32
    %c0_i32_1 = arith.constant 0 : i32
    return %arg0, %c0_i32, %c0_i32_0 : i32, i32, i32
  }
}

module attributes {stable_mosaic.version = 11 : i64} {
  func.func @_pq_tile_kernel(%arg0: i32, %arg1: i32, %arg2: i32, %arg3: memref<1x128x256xf32, #tpu.memory_space<vmem>>, %arg4: memref<1x128x256xf32, #tpu.memory_space<vmem>>, %arg5: memref<1x128x128xf32, #tpu.memory_space<vmem>>) attributes {dimension_semantics = [#tpu.dimension_semantics<parallel>, #tpu.dimension_semantics<parallel>, #tpu.dimension_semantics<parallel>], iteration_bounds = array<i64: 2, 1, 1>, scalar_prefetch = 0 : i64, scratch_operands = 0 : i64, tpu.core_type = #tpu.core_type<tc>, window_params = [{transform_indices = @transform_0, window_bounds = array<i64: 1, 128, 256>}, {transform_indices = @transform_1, window_bounds = array<i64: 1, 128, 256>}, {transform_indices = @transform_2, window_bounds = array<i64: 1, 128, 128>}]} {
    %c0 = arith.constant 0 : index
    %c0_0 = arith.constant 0 : index
    %c0_1 = arith.constant 0 : index
    %0 = vector.load %arg3[%c0, %c0_0, %c0_1] : memref<1x128x256xf32, #tpu.memory_space<vmem>>, vector<1x128x256xf32>
    %1 = vector.shape_cast %0 : vector<1x128x256xf32> to vector<128x256xf32>
    %c0_2 = arith.constant 0 : index
    %c0_3 = arith.constant 0 : index
    %c0_4 = arith.constant 0 : index
    %2 = vector.load %arg4[%c0_2, %c0_3, %c0_4] : memref<1x128x256xf32, #tpu.memory_space<vmem>>, vector<1x128x256xf32>
    %3 = vector.shape_cast %2 : vector<1x128x256xf32> to vector<128x256xf32>
    %cst = arith.constant dense<0.000000e+00> : vector<128x128xf32>
    %4 = tpu.matmul %1, %3, %cst {dimension_numbers = #tpu.dot_dimension_numbers<[1], [1], [0], [0], [0, 0, 1, 0], [], []>} : vector<128x256xf32>, vector<128x256xf32>, vector<128x128xf32> -> vector<128x128xf32>
    %c0_5 = arith.constant 0 : index
    %c0_6 = arith.constant 0 : index
    %c0_7 = arith.constant 0 : index
    %5 = vector.load %arg5[%c0_5, %c0_6, %c0_7] : memref<1x128x128xf32, #tpu.memory_space<vmem>>, vector<1x128x128xf32>
    %6 = vector.shape_cast %5 : vector<1x128x128xf32> to vector<128x128xf32>
    %7 = vector.shape_cast %4 : vector<128x128xf32> to vector<1x128x128xf32>
    tpu.vector_store %arg5[%c0_5, %c0_6, %c0_7], %7 {strides = array<i32>} : memref<1x128x128xf32, #tpu.memory_space<vmem>>, vector<1x128x128xf32>,
    return
  }
  func.func @transform_0(%arg0: i32, %arg1: i32, %arg2: i32) -> (i32, i32, i32) {
    %c0_i32 = arith.constant 0 : i32
    %c0_i32_0 = arith.constant 0 : i32
    return %arg0, %arg1, %c0_i32 : i32, i32, i32
  }
  func.func @transform_1(%arg0: i32, %arg1: i32, %arg2: i32) -> (i32, i32, i32) {
    %c1_i32 = arith.constant 1 : i32
    %c0_i32 = arith.constant 0 : i32
    return %arg0, %arg2, %c1_i32 : i32, i32, i32
  }
  func.func @transform_2(%arg0: i32, %arg1: i32, %arg2: i32) -> (i32, i32, i32) {
    %c0_i32 = arith.constant 0 : i32
    return %arg0, %arg1, %arg2 : i32, i32, i32
  }
}

</mosaic_0001>

<bundles_post_ra>
// kernel: bytenet_structure_model.10
= control target key start
LH: loop header
LB: loop body
LE: loop exit
PB: predicated region body
PF: predicated region fallthrough
CT: control target
= control target key end

     0   :  { %s965_s18 = smov 0   ;;  %s1645_s0 = inlined_call_operand.vmem [shape: f32[256,128], index: 0, kind: input, shape index: {}]   ;;  %s1646_s1 = inlined_call_operand.vmem [shape: f32[1,128], index: 1, kind: input, shape index: {}]   ;;  %s1647_s2 = inlined_call_operand.vmem [shape: f32[1,128], index: 2, kind: input, shape index: {}]   ;;  %s1648_s3 = inlined_call_operand.vmem [shape: f32[128,128], index: 3, kind: input, shape index: {}]   ;;  %s1649_s4 = inlined_call_operand.vmem [shape: f32[1,128], index: 4, kind: input, shape index: {}]   ;;  %s1650_s5 = inlined_call_operand.vmem [shape: f32[256,128], index: 5, kind: output, shape index: {}]  }
   0x1 LB: > { %s825_s19 = sadd.s32 4294967295, %s933_s18   ;;  %p829_p0 = scmp.ge.s32.totalorder %s933_s18, 1  ;;  %s933_s18 = sphi %s965_s18, %s15_s18  }
   0x2   : > { %p188_p1 = scmp.lt.s32.totalorder %s933_s18, 3 }
   0x4   : > { %p189_p2 = pnand %p829_p0, %p188_p1 }
   0x5   : > { %s830_s20 = sshll.u32 (!%p189_p2), %s825_s19, 4 }
   0x6   : > { %192 = sbr.rel (%p189_p2) target bundleno = 472 (0x1d8), region = 40  ;;  %p217_p3 = scmp.lt.s32.totalorder (!%p189_p2), %s830_s20, 31 }
   0xb   : > { %s1679_s20 = smov (!%p217_p3, %s830_s20), 31 }
   0xc   : > { %s831_s21 = sshll.u32 %s1679_s20, 3 }
   0xd   : > { %s981_s24 = scalar_lea.vmem %s1645_s0, %s831_s21  ;;  %s1624_s19 = scalar_lea.vmem %s1650_s5, %s831_s21 }
   0xe   : > { %v237_v0 = vld [vmem:[%s981_s24 + $0x48] sm:$0xff]  ;;  %v236_v1 = vld [vmem:[%s981_s24 + $0x40] sm:$0xff]  ;;  %v238_v6 = vld [vmem:[%s981_s24 + $0x50] sm:$0xff] }
   0xf   : > { %v228_v2 = vld [vmem:[%s981_s24] sm:$0xff]  ;;  %262 = vadd.xlane.f32.xlu2 %v237_v0  ;;  %260 = vadd.xlane.f32.xlu0 %v236_v1  ;;  %v241_v3 = vld [vmem:[%s981_s24 + $0x68] sm:$0xff]  ;;  %v234_v9 = vld [vmem:[%s981_s24 + $0x30] sm:$0xff] }
  0x10   : > { %244 = vadd.xlane.f32.xlu1 %v228_v2  ;;  %v240_v4 = vld [vmem:[%s981_s24 + $0x60] sm:$0xff]  ;;  %v229_v7 = vld [vmem:[%s981_s24 + $0x8] sm:$0xff]  ;;  %v242_v10 = vld [vmem:[%s981_s24 + $0x70] sm:$0xff] }
  0x11   : > { %v232_v5 = vld [vmem:[%s981_s24 + $0x20] sm:$0xff]  ;;  %v233_v8 = vld [vmem:[%s981_s24 + $0x28] sm:$0xff]  ;;  %v995_v11 = vld [vmem:[%s981_s24 + $0x10] sm:$0xff] }
  0x12   : > { %v999_v12 = vld [vmem:[%s981_s24 + $0x18] sm:$0xff] }
  0x13   : > { %v1002_v13 = vld [vmem:[%s981_s24 + $0x58] sm:$0xff] }
  0x14   : > { %v1005_v14 = vld [vmem:[%s981_s24 + $0x78] sm:$0xff] }
  0x15   : > { %v1011_v15 = vld [vmem:[%s981_s24 + $0x38] sm:$0xff] }
  0x17   : > { %270 = vadd.xlane.f32.xlu2 %v241_v3  ;;  %268 = vadd.xlane.f32.xlu0 %v240_v4 }
  0x18   : > { %252 = vadd.xlane.f32.xlu1 %v232_v5 }
  0x1f   : > { %264 = vadd.xlane.f32.xlu2 %v238_v6  ;;  %246 = vadd.xlane.f32.xlu0 %v229_v7 }
  0x20   : > { %254 = vadd.xlane.f32.xlu1 %v233_v8 }
  0x27   : > { %256 = vadd.xlane.f32.xlu2 %v234_v9  ;;  %272 = vadd.xlane.f32.xlu0 %v242_v10 }
  0x28   : > { %248 = vadd.xlane.f32.xlu1 %v995_v11 }
  0x2f   : > { %250 = vadd.xlane.f32.xlu2 %v999_v12  ;;  %266 = vadd.xlane.f32.xlu0 %v1002_v13 }
  0x30   : > { %274 = vadd.xlane.f32.xlu1 %v1005_v14 }
  0x37   : > { %258 = vadd.xlane.f32.xlu0 %v1011_v15 }
  0x82   : > { %v263_v16 = vpop.xlane.xlu2 %262  ;;  %v261_v17 = vpop.xlane.xlu0 %260 }
  0x83   : > { %v1014_v18 = vmul.f32 0.03125, %v261_v17  ;;  %v245_v19 = vpop.xlane.xlu1 %244  ;;  %v1043_v34 = vmul.f32 0.03125, %v263_v16 }
  0x84   : > { %v1016_v20 = vmul.f32 0.03125, %v245_v19  ;;  %v682_v19 = vld [vmem:[%s1648_s3 + $0x70] sm:$0xff] }
  0x85   : > { %v1019_v21 = vsub.f32 %v236_v1, %v1014_v18  ;;  %v1052_v40 = vsub.f32 %v237_v0, %v1043_v34 }
  0x86   : > { %v1022_v22 = vsub.f32 %v228_v2, %v1016_v20 }
  0x87   : > { %v316_v23 = vmul.f32 %v1019_v21, %v1019_v21  ;;  %v317_v47 = vmul.f32 %v1052_v40, %v1052_v40 }
  0x88   : > { %v308_v24 = vmul.f32 %v1022_v22, %v1022_v22 }
  0x89   : > { %340 = vadd.xlane.f32.xlu1 %v316_v23  ;;  %v680_v23 = vld [vmem:[%s1648_s3 + $0x60] sm:$0xff] }
  0x8a   : > { %324 = vadd.xlane.f32.xlu0 %v308_v24  ;;  %v271_v25 = vpop.xlane.xlu2 %270  ;;  %v269_v26 = vpop.xlane.xlu0 %268  ;;  %v679_v24 = vld [vmem:[%s1648_s3 + $0x58] sm:$0xff] }
  0x8b   : > { %v1028_v27 = vmul.f32 0.03125, %v271_v25  ;;  %v1030_v28 = vmul.f32 0.03125, %v269_v26  ;;  %v253_v29 = vpop.xlane.xlu1 %252  ;;  %v678_v25 = vld [vmem:[%s1648_s3 + $0x50] sm:$0xff]  ;;  %v677_v26 = vld [vmem:[%s1648_s3 + $0x48] sm:$0xff] }
  0x8c   : > { %v1032_v30 = vmul.f32 0.03125, %v253_v29  ;;  %v676_v29 = vld [vmem:[%s1648_s3 + $0x40] sm:$0xff] }
  0x8d   : > { %v1035_v31 = vsub.f32 %v241_v3, %v1028_v27  ;;  %v1038_v32 = vsub.f32 %v240_v4, %v1030_v28 }
  0x8e   : > { %v1041_v33 = vsub.f32 %v232_v5, %v1032_v30 }
  0x8f   : > { %v320_v35 = vmul.f32 %v1038_v32, %v1038_v32  ;;  %v321_v36 = vmul.f32 %v1035_v31, %v1035_v31 }
  0x90   : > { %v312_v37 = vmul.f32 %v1041_v33, %v1041_v33 }
  0x91   : > { %348 = vadd.xlane.f32.xlu2 %v320_v35  ;;  %v675_v35 = vld [vmem:[%s1648_s3 + $0x38] sm:$0xff] }
  0x92   : > { %350 = vadd.xlane.f32.xlu0 %v321_v36  ;;  %332 = vadd.xlane.f32.xlu1 %v312_v37  ;;  %v265_v38 = vpop.xlane.xlu2 %264  ;;  %v247_v39 = vpop.xlane.xlu0 %246  ;;  %v674_v36 = vld [vmem:[%s1648_s3 + $0x30] sm:$0xff]  ;;  %v673_v37 = vld [vmem:[%s1648_s3 + $0x28] sm:$0xff] }
  0x93   : > { %v1054_v41 = vmul.f32 0.03125, %v265_v38  ;;  %v1056_v42 = vmul.f32 0.03125, %v247_v39  ;;  %v255_v43 = vpop.xlane.xlu1 %254  ;;  %v364_v38 = vmul.f32 %v1014_v18, %v1014_v18  ;;  %v672_v39 = vld [vmem:[%s1648_s3 + $0x20] sm:$0xff] }
  0x94   : > { %v1064_v46 = vmul.f32 0.03125, %v255_v43  ;;  %v356_v43 = vmul.f32 %v1016_v20, %v1016_v20 }
  0x95   : > { %v1059_v44 = vsub.f32 %v238_v6, %v1054_v41  ;;  %v1062_v45 = vsub.f32 %v229_v7, %v1056_v42 }
  0x96   : > { %v1073_v50 = vsub.f32 %v233_v8, %v1064_v46  ;;  %v372_v18 = vmul.f32 96.0, %v356_v43 }
  0x97   : > { %v318_v48 = vmul.f32 %v1059_v44, %v1059_v44  ;;  %v309_v49 = vmul.f32 %v1062_v45, %v1062_v45 }
  0x98   : > { %v313_v58 = vmul.f32 %v1073_v50, %v1073_v50 }
  0x99   : > { %342 = vadd.xlane.f32.xlu2 %v317_v47  ;;  %v671_v47 = vld [vmem:[%s1648_s3 + $0x18] sm:$0xff] }
  0x9a   : > { %344 = vadd.xlane.f32.xlu0 %v318_v48  ;;  %326 = vadd.xlane.f32.xlu1 %v309_v49  ;;  %v257_v51 = vpop.xlane.xlu2 %256  ;;  %v273_v52 = vpop.xlane.xlu0 %272  ;;  %v380_v48 = vmul.f32 96.0, %v364_v38 }
  0x9b   : > { %v1075_v53 = vmul.f32 0.03125, %v257_v51  ;;  %v1077_v54 = vmul.f32 0.03125, %v273_v52  ;;  %v249_v55 = vpop.xlane.xlu1 %248  ;;  %v670_v51 = vld [vmem:[%s1648_s3 + $0x10] sm:$0xff] }
  0x9c   : > { %v1087_v59 = vmul.f32 0.03125, %v249_v55 }
  0x9d   : > { %v1080_v56 = vsub.f32 %v234_v9, %v1075_v53  ;;  %v1083_v57 = vsub.f32 %v242_v10, %v1077_v54 }
  0x9e   : > { %v1095_v62 = vsub.f32 %v995_v11, %v1087_v59 }
  0x9f   : > { %v314_v60 = vmul.f32 %v1080_v56, %v1080_v56  ;;  %v322_v61 = vmul.f32 %v1083_v57, %v1083_v57 }
  0xa0   : > { %v310_v6 = vmul.f32 %v1095_v62, %v1095_v62 }
  0xa1   : > { %334 = vadd.xlane.f32.xlu2 %v313_v58  ;;  %v669_v58 = vld [vmem:[%s1648_s3 + $0x8] sm:$0xff] }
  0xa2   : > { %336 = vadd.xlane.f32.xlu0 %v314_v60  ;;  %352 = vadd.xlane.f32.xlu1 %v322_v61  ;;  %v251_v63 = vpop.xlane.xlu2 %250  ;;  %v267_v0 = vpop.xlane.xlu0 %266  ;;  %v368_v60 = vmul.f32 %v1030_v28, %v1030_v28 }
  0xa3   : > { %v1097_v1 = vmul.f32 0.03125, %v251_v63  ;;  %v1099_v2 = vmul.f32 0.03125, %v267_v0  ;;  %v275_v3 = vpop.xlane.xlu1 %274  ;;  %v369_v63 = vmul.f32 %v1028_v27, %v1028_v27  ;;  %v360_v0 = vmul.f32 %v1032_v30, %v1032_v30 }
  0xa4   : > { %v1111_v7 = vmul.f32 0.03125, %v275_v3  ;;  %v384_v27 = vmul.f32 96.0, %v368_v60 }
  0xa5   : > { %v1103_v4 = vsub.f32 %v999_v12, %v1097_v1  ;;  %v1107_v5 = vsub.f32 %v1002_v13, %v1099_v2 }
  0xa6   : > { %v1119_v10 = vsub.f32 %v1005_v14, %v1111_v7  ;;  %v683_v14 = vld [vmem:[%s1648_s3 + $0x78] sm:$0xff] }
  0xa7   : > { %v311_v8 = vmul.f32 %v1103_v4, %v1103_v4  ;;  %v319_v9 = vmul.f32 %v1107_v5, %v1107_v5  ;;  %688 = vmatpush.msra.mxu0 %v683_v14  ;;  %837 = vmatpush.msra.mxu2 %v683_v14 }
  0xa8   : > { %v323_v16 = vmul.f32 %v1119_v10, %v1119_v10  ;;  %836 = vmatpush.msra.mxu1 %v683_v14  ;;  %838 = vmatpush.msra.mxu3 %v683_v14 }
  0xa9   : > { %328 = vadd.xlane.f32.xlu2 %v310_v6  ;;  %689 = vmatpush.msra.mxu0 %v682_v19  ;;  %v668_v6 = vld [vmem:[%s1648_s3] sm:$0xff] }
  0xaa   : > { %330 = vadd.xlane.f32.xlu0 %v311_v8  ;;  %346 = vadd.xlane.f32.xlu1 %v319_v9  ;;  %v259_v11 = vpop.xlane.xlu0 %258  ;;  %v385_v9 = vmul.f32 96.0, %v369_v63 }
  0xab   : > { %v1121_v12 = vmul.f32 0.03125, %v259_v11  ;;  %840 = vmatpush.msra.mxu2 %v682_v19  ;;  %839 = vmatpush.msra.mxu1 %v682_v19  ;;  %v376_v11 = vmul.f32 96.0, %v360_v0 }
  0xac   : > { %841 = vmatpush.msra.mxu3 %v682_v19 }
  0xad   : > { %v1125_v13 = vsub.f32 %v1011_v15, %v1121_v12  ;;  %v681_v15 = vld [vmem:[%s1648_s3 + $0x68] sm:$0xff] }
  0xae   : > { %690 = vmatpush.msra.mxu0 %v681_v15  ;;  %843 = vmatpush.msra.mxu2 %v681_v15 }
  0xaf   : > { %v315_v17 = vmul.f32 %v1125_v13, %v1125_v13  ;;  %842 = vmatpush.msra.mxu1 %v681_v15  ;;  %844 = vmatpush.msra.mxu3 %v681_v15 }
  0xb0   : > { %691 = vmatpush.msra.mxu0 %v680_v23  ;;  %846 = vmatpush.msra.mxu2 %v680_v23 }
  0xb1   : > { %354 = vadd.xlane.f32.xlu2 %v323_v16  ;;  %845 = vmatpush.msra.mxu1 %v680_v23 }
  0xb2   : > { %338 = vadd.xlane.f32.xlu1 %v315_v17  ;;  %847 = vmatpush.msra.mxu3 %v680_v23  ;;  %v365_v23 = vmul.f32 %v1043_v34, %v1043_v34 }
  0xb3   : > { %692 = vmatpush.msra.mxu0 %v679_v24  ;;  %849 = vmatpush.msra.mxu2 %v679_v24 }
  0xb4   : > { %848 = vmatpush.msra.mxu1 %v679_v24  ;;  %850 = vmatpush.msra.mxu3 %v679_v24 }
  0xb5   : > { %693 = vmatpush.msra.mxu0 %v678_v25  ;;  %852 = vmatpush.msra.mxu2 %v678_v25 }
  0xb6   : > { %851 = vmatpush.msra.mxu1 %v678_v25  ;;  %853 = vmatpush.msra.mxu3 %v678_v25  ;;  %v366_v25 = vmul.f32 %v1054_v41, %v1054_v41 }
  0xb7   : > { %694 = vmatpush.msra.mxu0 %v677_v26  ;;  %855 = vmatpush.msra.mxu2 %v677_v26 }
  0xb8   : > { %854 = vmatpush.msra.mxu1 %v677_v26  ;;  %856 = vmatpush.msra.mxu3 %v677_v26  ;;  %v357_v26 = vmul.f32 %v1056_v42, %v1056_v42  ;;  %v381_v42 = vmul.f32 96.0, %v365_v23 }
  0xb9   : > { %695 = vmatpush.msra.mxu0 %v676_v29  ;;  %858 = vmatpush.msra.mxu2 %v676_v29 }
  0xba   : > { %857 = vmatpush.msra.mxu1 %v676_v29  ;;  %859 = vmatpush.msra.mxu3 %v676_v29 }
  0xbb   : > { %696 = vmatpush.msra.mxu0 %v675_v35  ;;  %861 = vmatpush.msra.mxu2 %v675_v35 }
  0xbc   : > { %860 = vmatpush.msra.mxu1 %v675_v35  ;;  %862 = vmatpush.msra.mxu3 %v675_v35 }
  0xbd   : > { %697 = vmatpush.msra.mxu0 %v674_v36  ;;  %864 = vmatpush.msra.mxu2 %v674_v36 }
  0xbe   : > { %863 = vmatpush.msra.mxu1 %v674_v36  ;;  %865 = vmatpush.msra.mxu3 %v674_v36 }
  0xbf   : > { %698 = vmatpush.msra.mxu0 %v673_v37  ;;  %867 = vmatpush.msra.mxu2 %v673_v37 }
  0xc0   : > { %866 = vmatpush.msra.mxu1 %v673_v37  ;;  %868 = vmatpush.msra.mxu3 %v673_v37 }
  0xc1   : > { %699 = vmatpush.msra.mxu0 %v672_v39  ;;  %870 = vmatpush.msra.mxu2 %v672_v39 }
  0xc2   : > { %869 = vmatpush.msra.mxu1 %v672_v39  ;;  %871 = vmatpush.msra.mxu3 %v672_v39 }
  0xc3   : > { %700 = vmatpush.msra.mxu0 %v671_v47  ;;  %873 = vmatpush.msra.mxu2 %v671_v47 }
  0xc4   : > { %872 = vmatpush.msra.mxu1 %v671_v47  ;;  %874 = vmatpush.msra.mxu3 %v671_v47 }
  0xc5   : > { %701 = vmatpush.msra.mxu0 %v670_v51  ;;  %876 = vmatpush.msra.mxu2 %v670_v51 }
  0xc6   : > { %875 = vmatpush.msra.mxu1 %v670_v51  ;;  %877 = vmatpush.msra.mxu3 %v670_v51  ;;  %v361_v51 = vmul.f32 %v1064_v46, %v1064_v46 }
  0xc7   : > { %702 = vmatpush.msra.mxu0 %v669_v58  ;;  %879 = vmatpush.msra.mxu2 %v669_v58 }
  0xc8   : > { %878 = vmatpush.msra.mxu1 %v669_v58  ;;  %880 = vmatpush.msra.mxu3 %v669_v58 }
  0xc9   : > { %703 = vmatpush.msra.mxu0 %v668_v6  ;;  %882 = vmatpush.msra.mxu2 %v668_v6 }
  0xca   : > { %881 = vmatpush.msra.mxu1 %v668_v6  ;;  %883 = vmatpush.msra.mxu3 %v668_v6 }
  0xfc   : > { %v341_v49 = vpop.xlane.xlu1 %340 }
  0xfd   : > { %v325_v20 = vpop.xlane.xlu0 %324  ;;  %v396_v52 = vsub.f32 %v341_v49, %v380_v48  ;;  %v382_v48 = vmul.f32 96.0, %v366_v25  ;;  %v362_v49 = vmul.f32 %v1075_v53, %v1075_v53  ;;  %v358_v53 = vmul.f32 %v1087_v59, %v1087_v59 }
  0xfe   : > { %v388_v55 = vsub.f32 %v325_v20, %v372_v18  ;;  %v373_v18 = vmul.f32 96.0, %v357_v26 }
  0xff   : > { %v412_v61 = vmul.f32 0.03125, %v396_v52 }
 0x100   : > { %v404_v3 = vmul.f32 0.03125, %v388_v55 }
 0x101   : > { %v1189_v8 = vadd.f32 1e-05, %v412_v61 }
 0x102   : > { %v1191_v28 = vadd.f32 1e-05, %v404_v3  ;;  %v370_v3 = vmul.f32 %v1077_v54, %v1077_v54 }
 0x103   : > { %895 = vrsqrt.f32 %v1189_v8  ;;  %vm522_vm4 = vweird.f32 %v1189_v8 }
 0x104   : > { %897 = vrsqrt.f32 %v1191_v28  ;;  %v349_v30 = vpop.xlane.xlu2 %348  ;;  %vm442_vm0 = vweird.f32 %v1191_v28 }
 0x105   : > { %v400_v16 = vsub.f32 %v349_v30, %v384_v27  ;;  %v351_v17 = vpop.xlane.xlu0 %350  ;;  %v333_v14 = vpop.xlane.xlu1 %332 }
 0x106   : > { %v401_v19 = vsub.f32 %v351_v17, %v385_v9  ;;  %v392_v15 = vsub.f32 %v333_v14, %v376_v11  ;;  %v378_v9 = vmul.f32 96.0, %v362_v49  ;;  %v377_v11 = vmul.f32 96.0, %v361_v51 }
 0x107   : > { %v416_v24 = vmul.f32 0.03125, %v400_v16  ;;  %v359_v17 = vmul.f32 %v1097_v1, %v1097_v1  ;;  %v371_v1 = vmul.f32 %v1111_v7, %v1111_v7 }
 0x108   : > { %v417_v29 = vmul.f32 0.03125, %v401_v19  ;;  %v408_v35 = vmul.f32 0.03125, %v392_v15  ;;  %v367_v15 = vmul.f32 %v1099_v2, %v1099_v2 }
 0x109   : > { %v1201_v36 = vpop.eup %895  ;;  %v1203_v37 = vadd.f32 1e-05, %v416_v24  ;;  %v375_v7 = vmul.f32 96.0, %v359_v17 }
 0x10a   : > { %v1205_v38 = vpop.eup %897  ;;  %v1207_v39 = vadd.f32 1e-05, %v417_v29  ;;  %v1209_v43 = vadd.f32 1e-05, %v408_v35  ;;  %v517_v41 = vmul.f32 %v1201_v36, %v1189_v8  ;;  %v386_v29 = vmul.f32 96.0, %v370_v3 }
 0x10b   : > { %v437_v34 = vmul.f32 %v1205_v38, %v1191_v28  ;;  %899 = vrsqrt.f32 %v1203_v37  ;;  %v374_v35 = vmul.f32 96.0, %v358_v53  ;;  %vm443_vm1 = vweird.f32 %v1205_v38 }
 0x10c   : > { %901 = vrsqrt.f32 %v1207_v39  ;;  %v343_v47 = vpop.xlane.xlu2 %342  ;;  %v518_v63 = vmul.f32 %v1201_v36, %v517_v41  ;;  %vm523_vm2 = vweird.f32 %v1201_v36  ;;  %vm1284_vm3 = vmor %vm442_vm0, %vm443_vm1  ;;  %vm482_vm6 = vweird.f32 %v1209_v43 }
 0x10d   : > { %903 = vrsqrt.f32 %v1209_v43  ;;  %v397_v20 = vsub.f32 %v343_v47, %v381_v42  ;;  %v345_v52 = vpop.xlane.xlu0 %344  ;;  %v327_v55 = vpop.xlane.xlu1 %326  ;;  %v438_v58 = vmul.f32 %v1205_v38, %v437_v34  ;;  %vm1298_vm5 = vmor %vm522_vm4, %vm523_vm2  ;;  %vm562_vm10 = vweird.f32 %v1203_v37 }
 0x10e   : > { %v398_v60 = vsub.f32 %v345_v52, %v382_v48  ;;  %v389_v61 = vsub.f32 %v327_v55, %v373_v18  ;;  %v519_v23 = vmul.f32 0.5, %v518_v63  ;;  %v383_v52 = vmul.f32 96.0, %v367_v15 }
 0x10f   : > { %v413_v0 = vmul.f32 0.03125, %v397_v20  ;;  %v439_v14 = vmul.f32 0.5, %v438_v58  ;;  %vm572_vm0 = vweird.f32 %v1207_v39 }
 0x110   : > { %v414_v6 = vmul.f32 0.03125, %v398_v60  ;;  %v405_v30 = vmul.f32 0.03125, %v389_v61  ;;  %v520_v51 = vsub.f32 1.5, %v519_v23  ;;  %v1258_v61 = vmul.f32 96.0, %v371_v1 }
 0x111   : > { %v1228_v46 = vpop.eup %899  ;;  %v1230_v27 = vadd.f32 1e-05, %v413_v0  ;;  %v440_v48 = vsub.f32 1.5, %v439_v14  ;;  %v363_v0 = vmul.f32 %v1121_v12, %v1121_v12 }
 0x112   : > { %v1232_v16 = vpop.eup %901  ;;  %v557_v54 = vmul.f32 %v1228_v46, %v1203_v37  ;;  %v1238_v19 = vadd.f32 1e-05, %v414_v6  ;;  %v1254_v2 = vadd.f32 1e-05, %v405_v30  ;;  %v521_v17 = vmul.f32 %v1201_v36, %v520_v51 }
 0x113   : > { %v1240_v59 = vpop.eup %903  ;;  %v567_v24 = vmul.f32 %v1232_v16, %v1207_v39  ;;  %905 = vrsqrt.f32 %v1230_v27  ;;  %v441_v30 = vmul.f32 %v1205_v38, %v440_v48  ;;  %vm563_vm8 = vweird.f32 %v1228_v46 }
 0x114   : > { %v477_v25 = vmul.f32 %v1240_v59, %v1209_v43  ;;  %v335_v26 = vpop.xlane.xlu2 %334  ;;  %v558_v34 = vmul.f32 %v1228_v46, %v557_v54  ;;  %907 = vrsqrt.f32 %v1238_v19  ;;  %vm483_vm7 = vweird.f32 %v1240_v59 }
 0x115   : > { %v568_v41 = vmul.f32 %v1232_v16, %v567_v24  ;;  %v337_v42 = vpop.xlane.xlu0 %336  ;;  %v353_v47 = vpop.xlane.xlu1 %352  ;;  %v393_v49 = vsub.f32 %v335_v26, %v377_v11  ;;  %909 = vrsqrt.f32 %v1254_v2  ;;  %vm452_vm12 = vweird.f32 %v1254_v2  ;;  %vm1368_vm14 = vmor %vm482_vm6, %vm483_vm7 }
 0x116   : > { %v394_v18 = vsub.f32 %v337_v42, %v378_v9  ;;  %v402_v20 = vsub.f32 %v353_v47, %v386_v29  ;;  %v478_v55 = vmul.f32 %v1240_v59, %v477_v25  ;;  %v559_v3 = vmul.f32 0.5, %v558_v34  ;;  %vm1418_vm6 = vmor %vm562_vm10, %vm563_vm8 }
 0x117   : > { %v409_v60 = vmul.f32 0.03125, %v393_v49  ;;  %v569_v53 = vmul.f32 0.5, %v568_v41  ;;  %vm573_vm13 = vweird.f32 %v1232_v16  ;;  %vm532_vm15 = vweird.f32 %v1230_v27 }
 0x118   : > { %v410_v58 = vmul.f32 0.03125, %v394_v18  ;;  %v418_v6 = vmul.f32 0.03125, %v402_v20  ;;  %v479_v54 = vmul.f32 0.5, %v478_v55  ;;  %v560_v26 = vsub.f32 1.5, %v559_v3  ;;  %v1306_v55 = vld [vmem:[%s1646_s1] ss:$0 sm:$0xff] }
 0x119   : > { %v1260_v63 = vpop.eup %905  ;;  %v1275_v12 = vadd.f32 1e-05, %v409_v60  ;;  %v570_v29 = vsub.f32 1.5, %v569_v53  ;;  %v445_v18 = vsel %vm1284_vm3, %v1205_v38, %v441_v30  ;;  %v525_v38 = vsel %vm1298_vm5, %v1201_v36, %v521_v17  ;;  %v1318_v30 = vld [vmem:[%s1647_s2] ss:$0 sm:$0xff] }
 0x11a   : > { %v527_v9 = vmul.f32 %v1260_v63, %v1230_v27  ;;  %v1269_v11 = vpop.eup %907  ;;  %v1273_v14 = vadd.f32 1e-05, %v410_v58  ;;  %v1280_v23 = vadd.f32 1e-05, %v418_v6  ;;  %v480_v58 = vsub.f32 1.5, %v479_v54 }
 0x11b   : > { %v537_v28 = vmul.f32 %v1269_v11, %v1238_v19  ;;  %v1282_v1 = vpop.eup %909  ;;  %v604_v25 = vmul.f32 %v525_v38, %v1019_v21  ;;  %vm533_vm11 = vweird.f32 %v1260_v63  ;;  %vm543_vm1 = vweird.f32 %v1269_v11 }
 0x11c   : > { %v528_v15 = vmul.f32 %v1260_v63, %v527_v9  ;;  %v329_v24 = vpop.xlane.xlu2 %328  ;;  %911 = vrsqrt.f32 %v1273_v14  ;;  %v447_v48 = vmul.f32 %v1282_v1, %v1254_v2  ;;  %v379_v9 = vmul.f32 96.0, %v363_v0  ;;  %vm1444_vm10 = vmor %vm532_vm15, %vm533_vm11 }
 0x11d   : > { %v331_v34 = vpop.xlane.xlu0 %330  ;;  %v347_v41 = vpop.xlane.xlu1 %346  ;;  %v538_v47 = vmul.f32 %v1269_v11, %v537_v28  ;;  %913 = vrsqrt.f32 %v1275_v12  ;;  %v390_v51 = vsub.f32 %v329_v24, %v374_v35  ;;  %v596_v35 = vmul.f32 %v445_v18, %v1022_v22  ;;  %vm1462_vm11 = vmor %vm572_vm0, %vm573_vm13 }
 0x11e   : > { %v529_v42 = vmul.f32 0.5, %v528_v15  ;;  %v391_v49 = vsub.f32 %v331_v34, %v375_v7  ;;  %v399_v20 = vsub.f32 %v347_v41, %v383_v52  ;;  %v448_v60 = vmul.f32 %v1282_v1, %v447_v48 }
 0x11f   : > { %915 = vrsqrt.f32 %v1280_v23  ;;  %v406_v53 = vmul.f32 0.03125, %v390_v51  ;;  %v539_v52 = vmul.f32 0.5, %v538_v47  ;;  %v616_v17 = vmul.f32 %v1306_v55, %v596_v35 }
 0x120   : > { %v407_v3 = vmul.f32 0.03125, %v391_v49  ;;  %v415_v6 = vmul.f32 0.03125, %v399_v20  ;;  %v530_v7 = vsub.f32 1.5, %v529_v42  ;;  %v449_v15 = vmul.f32 0.5, %v448_v60 }
 0x121   : > { %v1324_v36 = vadd.f32 1e-05, %v406_v53  ;;  %v1336_v0 = vmul.f32 %v1228_v46, %v560_v26  ;;  %v1340_v41 = vmul.f32 %v1232_v16, %v570_v29  ;;  %v481_v42 = vmul.f32 %v1240_v59, %v480_v58 }
 0x122   : > { %v1320_v54 = vpop.eup %911  ;;  %v1322_v28 = vadd.f32 1e-05, %v407_v3  ;;  %v1330_v24 = vadd.f32 1e-05, %v415_v6  ;;  %v1347_v48 = vmul.f32 %v1260_v63, %v530_v7  ;;  %v540_v21 = vsub.f32 1.5, %v539_v52 }
 0x123   : > { %v497_v22 = vmul.f32 %v1320_v54, %v1273_v14  ;;  %v1333_v34 = vpop.eup %913  ;;  %vm453_vm9 = vweird.f32 %v1282_v1  ;;  %v450_v49 = vsub.f32 1.5, %v449_v15  ;;  %v636_v20 = vadd.f32 %v1318_v30, %v616_v17 }
 0x124   : > { %917 = vrsqrt.f32 %v1322_v28  ;;  %v487_v18 = vmul.f32 %v1333_v34, %v1275_v12  ;;  %v355_v8 = vpop.xlane.xlu2 %354  ;;  %v624_v38 = vmul.f32 %v1306_v55, %v604_v25  ;;  %v1376_v52 = vmul.f32 %v1269_v11, %v540_v21  ;;  %vm454_vm4 = vmor %vm452_vm12, %vm453_vm9 }
 0x125   : > { %v1344_v47 = vpop.eup %915  ;;  %v498_v26 = vmul.f32 %v1320_v54, %v497_v22  ;;  %v339_v29 = vpop.xlane.xlu1 %338  ;;  %919 = vrsqrt.f32 %v1324_v36  ;;  %v652_v6 = vmax.f32 %v636_v20, 0.0  ;;  %v403_v35 = vsub.f32 %v355_v8, %v1258_v61 }
 0x126   : > { %v577_v51 = vmul.f32 %v1344_v47, %v1280_v23  ;;  %v488_v60 = vmul.f32 %v1333_v34, %v487_v18  ;;  %921 = vrsqrt.f32 %v1330_v24  ;;  %v395_v7 = vsub.f32 %v339_v29, %v379_v9 }
 0x127   : > { %v499_v58 = vmul.f32 0.5, %v498_v26  ;;  %v644_v17 = vadd.f32 %v1318_v30, %v624_v38  ;;  %v485_v43 = vsel %vm1368_vm14, %v1240_v59, %v481_v42  ;;  %704 = vmatmul.f32.vlgmr.msra.gmra.mxu0 %v652_v6  ;;  %v419_v18 = vmul.f32 0.03125, %v403_v35 }
 0x128   : > { %v578_v53 = vmul.f32 %v1344_v47, %v577_v51  ;;  %v489_v15 = vmul.f32 0.5, %v488_v60  ;;  %v411_v61 = vmul.f32 0.03125, %v395_v7  ;;  %v451_v9 = vmul.f32 %v1282_v1, %v450_v49 }
 0x129   : > { %v500_v25 = vsub.f32 1.5, %v499_v58  ;;  %v600_v29 = vmul.f32 %v485_v43, %v1041_v33  ;;  %v660_v51 = vmax.f32 %v644_v17, 0.0  ;;  %v1392_v20 = vadd.f32 1e-05, %v419_v18 }
 0x12a   : > { %v1382_v22 = vpop.eup %917  ;;  %v579_v26 = vmul.f32 0.5, %v578_v53  ;;  %v490_v21 = vsub.f32 1.5, %v489_v15  ;;  %v1394_v58 = vadd.f32 1e-05, %v411_v61  ;;  %vm542_vm2 = vweird.f32 %v1238_v19 }
 0x12b   : > { %v467_v8 = vmul.f32 %v1382_v22, %v1322_v28  ;;  %v1390_v59 = vpop.eup %919  ;;  %vm493_vm3 = vweird.f32 %v1333_v34  ;;  %v1405_v38 = vmul.f32 %v1320_v54, %v500_v25  ;;  %vm492_vm5 = vweird.f32 %v1275_v12  ;;  %728 = vmatmul.f32.vlgmr.msra.gmra.mxu2 %v660_v51  ;;  %vm1492_vm0 = vmor %vm542_vm2, %vm543_vm1  ;;  %v894_v12 = vld [vmem:[%s1649_s4] ss:$0 sm:$0xff] }
 0x12c   : > { %v580_v42 = vsub.f32 1.5, %v579_v26  ;;  %v1396_v60 = vpop.eup %921  ;;  %v457_v33 = vmul.f32 %v1390_v59, %v1324_v36  ;;  %v1408_v3 = vmul.f32 %v1333_v34, %v490_v21  ;;  %923 = vrsqrt.f32 %v1392_v20 }
 0x12d   : > { %v468_v49 = vmul.f32 %v1382_v22, %v467_v8  ;;  %v547_v53 = vmul.f32 %v1396_v60, %v1330_v24  ;;  %vm582_vm7 = vweird.f32 %v1280_v23  ;;  %vm463_vm14 = vweird.f32 %v1390_v59 }
 0x12e   : > { %v458_v7 = vmul.f32 %v1390_v59, %v457_v33  ;;  %925 = vrsqrt.f32 %v1394_v58  ;;  %v1431_v37 = vmul.f32 %v1344_v47, %v580_v42  ;;  %vm462_vm8 = vweird.f32 %v1324_v36 }
 0x12f   : > { %v469_v35 = vmul.f32 0.5, %v468_v49  ;;  %v548_v15 = vmul.f32 %v1396_v60, %v547_v53  ;;  %v620_v17 = vmul.f32 %v1306_v55, %v600_v29  ;;  %v565_v43 = vsel %vm1418_vm6, %v1228_v46, %v1336_v0 }
 0x130   : > { %vm503_vm9 = vweird.f32 %v1320_v54  ;;  %v459_v26 = vmul.f32 0.5, %v458_v7  ;;  %v608_v18 = vmul.f32 %v565_v43, %v1038_v32  ;;  %v455_v61 = vsel %vm454_vm4, %v1282_v1, %v451_v9 }
 0x131   : > { %v470_v25 = vsub.f32 1.5, %v469_v35  ;;  %vm473_vm12 = vweird.f32 %v1382_v22  ;;  %v549_v21 = vmul.f32 0.5, %v548_v15  ;;  %v640_v46 = vadd.f32 %v1318_v30, %v620_v17 }
 0x132   : > { %v597_v0 = vmul.f32 %v455_v61, %v1062_v45  ;;  %v535_v27 = vsel %vm1444_vm10, %v1260_v63, %v1347_v48  ;;  %vm502_vm15 = vweird.f32 %v1273_v14  ;;  %v460_v1 = vsub.f32 1.5, %v459_v26  ;;  %v1470_v8 = vpop.eup %923 }
 0x133   : > { %vm553_vm4 = vweird.f32 %v1396_v60  ;;  %v628_v45 = vmul.f32 %v1306_v55, %v608_v18  ;;  %v605_v9 = vmul.f32 %v535_v27, %v1052_v40  ;;  %vm472_vm6 = vweird.f32 %v1322_v28 }
 0x134   : > { %v550_v63 = vsub.f32 1.5, %v549_v21  ;;  %v656_v48 = vmax.f32 %v640_v46, 0.0  ;;  %v617_v39 = vmul.f32 %v1306_v55, %v597_v0  ;;  %v575_v29 = vsel %vm1462_vm11, %v1232_v16, %v1340_v41  ;;  %v1478_v42 = vpop.eup %925  ;;  %vm1505_vm11 = vmor %vm492_vm5, %vm493_vm3 }
 0x135   : > { %v1481_v51 = vmul.f32 %v1382_v22, %v470_v25  ;;  %v461_v40 = vmul.f32 %v1390_v59, %v460_v1  ;;  %v587_v49 = vmul.f32 %v1470_v8, %v1392_v20  ;;  %v648_v33 = vadd.f32 %v1318_v30, %v628_v45  ;;  %vm1535_vm3 = vmor %vm462_vm8, %vm463_vm14 }
 0x136   : > { %v551_v41 = vmul.f32 %v1396_v60, %v550_v63  ;;  %v507_v53 = vmul.f32 %v1478_v42, %v1394_v58  ;;  %716 = vmatmul.f32.vlgmr.msra.gmra.mxu1 %v656_v48  ;;  %v637_v6 = vadd.f32 %v1318_v30, %v617_v39  ;;  %vm593_vm1 = vweird.f32 %v1470_v8  ;;  %vm1556_vm5 = vmor %vm502_vm15, %vm503_vm9 }
 0x137   : > { %v588_v35 = vmul.f32 %v1470_v8, %v587_v49  ;;  %vm512_vm2 = vweird.f32 %v1394_v58  ;;  %v664_v7 = vmax.f32 %v648_v33, 0.0  ;;  %v625_v15 = vmul.f32 %v1306_v55, %v605_v9 }
 0x138   : > { %v609_v17 = vmul.f32 %v575_v29, %v1035_v31  ;;  %vm1667_vm10 = vweird.f32 %v1344_v47  ;;  %v508_v43 = vmul.f32 %v1478_v42, %v507_v53  ;;  %v653_v2 = vmax.f32 %v637_v6, 0.0 }
 0x139   : > { %vm1518_vm13 = vmor %vm582_vm7, %vm1667_vm10  ;;  %v495_v25 = vsel %vm1505_vm11, %v1333_v34, %v1408_v3  ;;  %v545_v31 = vsel %vm1492_vm0, %v1269_v11, %v1376_v52  ;;  %v589_v26 = vmul.f32 0.5, %v588_v35  ;;  %740 = vmatmul.f32.vlgmr.msra.gmra.mxu3 %v664_v7  ;;  %v645_v18 = vadd.f32 %v1318_v30, %v625_v15 }
 0x13a   : > { %v629_v61 = vmul.f32 %v1306_v55, %v609_v17  ;;  %v601_v34 = vmul.f32 %v495_v25, %v1073_v50  ;;  %v509_v3 = vmul.f32 0.5, %v508_v43  ;;  %707 = vmatmul.f32.gmra.mxu0 %v653_v2  ;;  %v606_v11 = vmul.f32 %v545_v31, %v1059_v44  ;;  %vm1567_vm7 = vmor %vm472_vm6, %vm473_vm12 }
 0x13b   : > { %v585_v36 = vsel %vm1518_vm13, %v1344_v47, %v1431_v37  ;;  %v465_v52 = vsel %vm1535_vm3, %v1390_v59, %v461_v40  ;;  %v590_v21 = vsub.f32 1.5, %v589_v26  ;;  %v661_v46 = vmax.f32 %v645_v18, 0.0 }
 0x13c   : > { %v649_v0 = vadd.f32 %v1318_v30, %v629_v61  ;;  %v621_v27 = vmul.f32 %v1306_v55, %v601_v34  ;;  %v510_v50 = vsub.f32 1.5, %v509_v3  ;;  %v626_v47 = vmul.f32 %v1306_v55, %v606_v11 }
 0x13d   : > { %v610_v37 = vmul.f32 %v585_v36, %v1083_v57  ;;  %v598_v59 = vmul.f32 %v465_v52, %v1095_v62  ;;  %v591_v14 = vmul.f32 %v1470_v8, %v590_v21  ;;  %731 = vmatmul.f32.gmra.mxu2 %v661_v46  ;;  %v505_v57 = vsel %vm1556_vm5, %v1320_v54, %v1405_v38 }
 0x13e   : > { %v665_v1 = vmax.f32 %v649_v0, 0.0  ;;  %v641_v45 = vadd.f32 %v1318_v30, %v621_v27  ;;  %vm1676_vm14 = vweird.f32 %v1330_v24  ;;  %v511_v62 = vmul.f32 %v1478_v42, %v510_v50 }
 0x13f   : > { %vm554_vm8 = vmor %vm1676_vm14, %vm553_vm4  ;;  %v646_v28 = vadd.f32 %v1318_v30, %v626_v47  ;;  %v630_v9 = vmul.f32 %v1306_v55, %v610_v37  ;;  %v618_v63 = vmul.f32 %v1306_v55, %v598_v59  ;;  %v602_v39 = vmul.f32 %v505_v57, %v1080_v56 }
 0x140   : > { %v657_v48 = vmax.f32 %v641_v45, 0.0  ;;  %v555_v29 = vsel %vm554_vm8, %v1396_v60, %v551_v41  ;;  %v475_v54 = vsel %vm1567_vm7, %v1382_v22, %v1481_v51  ;;  %vm1677_vm9 = vweird.f32 %v1478_v42 }
 0x141   : > { %vm514_vm12 = vmor %vm512_vm2, %vm1677_vm9  ;;  %v650_v24 = vadd.f32 %v1318_v30, %v630_v9  ;;  %v638_v38 = vadd.f32 %v1318_v30, %v618_v63  ;;  %v607_v40 = vmul.f32 %v555_v29, %v1107_v5  ;;  %vm592_vm15 = vweird.f32 %v1392_v20  ;;  %743 = vmatmul.f32.gmra.mxu3 %v665_v1 }
 0x142   : > { %719 = vmatmul.f32.gmra.mxu1 %v657_v48  ;;  %v622_v56 = vmul.f32 %v1306_v55, %v602_v39  ;;  %v599_v60 = vmul.f32 %v475_v54, %v1103_v4  ;;  %v515_v22 = vsel %vm514_vm12, %v1478_v42, %v511_v62  ;;  %vm594_vm4 = vmor %vm592_vm15, %vm593_vm1  ;;  %v662_v33 = vmax.f32 %v646_v28, 0.0 }
 0x143   : > { %v654_v58 = vmax.f32 %v638_v38, 0.0  ;;  %v627_v51 = vmul.f32 %v1306_v55, %v607_v40  ;;  %v603_v49 = vmul.f32 %v515_v22, %v1125_v13  ;;  %v595_v16 = vsel %vm594_vm4, %v1470_v8, %v591_v14 }
 0x144   : > { %v642_v5 = vadd.f32 %v1318_v30, %v622_v56  ;;  %v619_v20 = vmul.f32 %v1306_v55, %v599_v60  ;;  %v611_v4 = vmul.f32 %v595_v16, %v1119_v10  ;;  %v666_v42 = vmax.f32 %v650_v24, 0.0 }
 0x145   : > { %710 = vmatmul.f32.gmra.mxu0 %v654_v58  ;;  %734 = vmatmul.f32.gmra.mxu2 %v662_v33  ;;  %v647_v41 = vadd.f32 %v1318_v30, %v627_v51  ;;  %v623_v53 = vmul.f32 %v1306_v55, %v603_v49 }
 0x146   : > { %v639_v6 = vadd.f32 %v1318_v30, %v619_v20  ;;  %v631_v13 = vmul.f32 %v1306_v55, %v611_v4  ;;  %v658_v19 = vmax.f32 %v642_v5, 0.0 }
 0x147   : > { %v663_v35 = vmax.f32 %v647_v41, 0.0  ;;  %v643_v8 = vadd.f32 %v1318_v30, %v623_v53 }
 0x148   : > { %v651_v7 = vadd.f32 %v1318_v30, %v631_v13  ;;  %v655_v10 = vmax.f32 %v639_v6, 0.0 }
 0x149   : > { %746 = vmatmul.f32.gmra.mxu3 %v666_v42  ;;  %v659_v15 = vmax.f32 %v643_v8, 0.0 }
 0x14a   : > { %722 = vmatmul.f32.gmra.mxu1 %v658_v19  ;;  %v667_v17 = vmax.f32 %v651_v7, 0.0 }
 0x14d   : > { %713 = vmatmul.f32.gmra.mxu0 %v655_v10  ;;  %737 = vmatmul.f32.gmra.mxu2 %v663_v35 }
 0x151   : > { %749 = vmatmul.f32.gmra.mxu3 %v667_v17 }
 0x152   : > { %725 = vmatmul.f32.gmra.mxu1 %v659_v15 }
 0x1a4   : > { %v705_v55 = vpop.f32.mrf.mxu0 }
 0x1a5   : > { %v706_v30 = vadd.f32 %v894_v12, %v705_v55 }
 0x1a7   : > { %753 = vst [vmem:[%s1624_s19] sm:$0xff] %v706_v30 }
 0x1ae   : > { %v729_v43 = vpop.f32.mrf.mxu2 }
 0x1af   : > { %v730_v2 = vadd.f32 %v894_v12, %v729_v43 }
 0x1b1   : > { %761 = vst [vmem:[%s1624_s19 + $0x40] sm:$0xff] %v730_v2 }
 0x1b3   : > { %v717_v25 = vpop.f32.mrf.mxu1 }
 0x1b4   : > { %v718_v31 = vadd.f32 %v894_v12, %v717_v25 }
 0x1b6   : > { %757 = vst [vmem:[%s1624_s19 + $0x20] sm:$0xff] %v718_v31 }
 0x1b7   : > { %v708_v23 = vpop.f32.mrf.mxu0 }
 0x1b8   : > { %v709_v26 = vadd.f32 %v894_v12, %v708_v23 }
 0x1ba   : > { %754 = vst [vmem:[%s1624_s19 + $0x8] sm:$0xff] %v709_v26 }
 0x1bc   : > { %v741_v18 = vpop.f32.mrf.mxu3 }
 0x1bd   : > { %v742_v61 = vadd.f32 %v894_v12, %v741_v18 }
 0x1bf   : > { %v720_v34 = vpop.f32.mrf.mxu1  ;;  %765 = vst [vmem:[%s1624_s19 + $0x60] sm:$0xff] %v742_v61 }
 0x1c0   : > { %v721_v3 = vadd.f32 %v894_v12, %v720_v34  ;;  %v732_v11 = vpop.f32.mrf.mxu2 }
 0x1c1   : > { %v733_v36 = vadd.f32 %v894_v12, %v732_v11 }
 0x1c2   : > { %758 = vst [vmem:[%s1624_s19 + $0x28] sm:$0xff] %v721_v3  ;;  %v711_v52 = vpop.f32.mrf.mxu0 }
 0x1c3   : > { %v712_v21 = vadd.f32 %v894_v12, %v711_v52  ;;  %762 = vst [vmem:[%s1624_s19 + $0x48] sm:$0xff] %v733_v36 }
 0x1c4   : > { %v744_v46 = vpop.f32.mrf.mxu3 }
 0x1c5   : > { %755 = vst [vmem:[%s1624_s19 + $0x10] sm:$0xff] %v712_v21  ;;  %v745_v0 = vadd.f32 %v894_v12, %v744_v46 }
 0x1c7   : > { %v723_v27 = vpop.f32.mrf.mxu1  ;;  %766 = vst [vmem:[%s1624_s19 + $0x68] sm:$0xff] %v745_v0 }
 0x1c8   : > { %v724_v44 = vadd.f32 %v894_v12, %v723_v27  ;;  %v735_v50 = vpop.f32.mrf.mxu2 }
 0x1c9   : > { %v736_v47 = vadd.f32 %v894_v12, %v735_v50 }
 0x1ca   : > { %759 = vst [vmem:[%s1624_s19 + $0x30] sm:$0xff] %v724_v44  ;;  %v714_v37 = vpop.f32.mrf.mxu0 }
 0x1cb   : > { %v715_v59 = vadd.f32 %v894_v12, %v714_v37  ;;  %763 = vst [vmem:[%s1624_s19 + $0x50] sm:$0xff] %v736_v47 }
 0x1cc   : > { %v747_v32 = vpop.f32.mrf.mxu3 }
 0x1cd   : > { %756 = vst [vmem:[%s1624_s19 + $0x18] sm:$0xff] %v715_v59  ;;  %v748_v14 = vadd.f32 %v894_v12, %v747_v32 }
 0x1cf   : > { %v726_v1 = vpop.f32.mrf.mxu1  ;;  %767 = vst [vmem:[%s1624_s19 + $0x70] sm:$0xff] %v748_v14 }
 0x1d0   : > { %v727_v45 = vadd.f32 %v894_v12, %v726_v1  ;;  %v738_v57 = vpop.f32.mrf.mxu2 }
 0x1d1   : > { %v739_v62 = vadd.f32 %v894_v12, %v738_v57 }
 0x1d2   : > { %760 = vst [vmem:[%s1624_s19 + $0x38] sm:$0xff] %v727_v45 }
 0x1d3   : > { %764 = vst [vmem:[%s1624_s19 + $0x58] sm:$0xff] %v739_v62 }
 0x1d4   : > { %v750_v28 = vpop.f32.mrf.mxu3 }
 0x1d5   : > { %v751_v9 = vadd.f32 %v894_v12, %v750_v28 }
 0x1d7   : > { %768 = vst [vmem:[%s1624_s19 + $0x78] sm:$0xff] %v751_v9 }
 0x1d8 PF: > { %s15_s18 = sadd.s32 1, %s933_s18  }
 0x1d9   : > { %p12_p4 = scmp.ge.s32.totalorder %s15_s18, 4  }
 0x1db   :  { %14 = sbr.rel (!%p12_p4) target bundleno = 1 (0x1), region = 70 }

// kernel: bytenet_structure_model.9
= control target key start
LH: loop header
LB: loop body
LE: loop exit
PB: predicated region body
PF: predicated region fallthrough
CT: control target
= control target key end

     0   :  { %s443_s12 = smov 0   ;;  %s556_s0 = inlined_call_operand.vmem [shape: f32[256,128], index: 0, kind: input, shape index: {}]   ;;  %s557_s1 = inlined_call_operand.vmem [shape: f32[128,128], index: 1, kind: input, shape index: {}]   ;;  %s558_s2 = inlined_call_operand.vmem [shape: f32[1,128], index: 2, kind: input, shape index: {}]   ;;  %s559_s3 = inlined_call_operand.vmem [shape: f32[256,128], index: 3, kind: output, shape index: {}]  }
   0x1 LB: > { %s347_s13 = sadd.s32 4294967295, %s421_s12   ;;  %p351_p0 = scmp.ge.s32.totalorder %s421_s12, 1  ;;  %s421_s12 = sphi %s443_s12, %s13_s12  }
   0x2   : > { %p138_p1 = scmp.lt.s32.totalorder %s421_s12, 3 }
   0x4   : > { %p139_p2 = pnand %p351_p0, %p138_p1 }
   0x5   : > { %s352_s30 = sshll.u32 (!%p139_p2), %s347_s13, 4 }
   0x6   : > { %142 = sbr.rel (%p139_p2) target bundleno = 203 (0xcb), region = 32  ;;  %p163_p3 = scmp.lt.s32.totalorder (!%p139_p2), %s352_s30, 31 }
   0xb   : > { %v205_v0 = vld [vmem:[%s557_s1 + $0x78] sm:$0xff]  ;;  %v204_v1 = vld [vmem:[%s557_s1 + $0x70] sm:$0xff]  ;;  %v203_v2 = vld [vmem:[%s557_s1 + $0x68] sm:$0xff]  ;;  %s561_s30 = smov (!%p163_p3, %s352_s30), 31 }
   0xc   : > { %359 = vmatpush.msra.mxu2 %v205_v0  ;;  %360 = vmatpush.msra.mxu3 %v205_v0  ;;  %v202_v3 = vld [vmem:[%s557_s1 + $0x60] sm:$0xff]  ;;  %v201_v4 = vld [vmem:[%s557_s1 + $0x58] sm:$0xff]  ;;  %v200_v5 = vld [vmem:[%s557_s1 + $0x50] sm:$0xff]  ;;  %s353_s15 = sshll.u32 %s561_s30, 3 }
   0xd   : > { %210 = vmatpush.msra.mxu0 %v205_v0  ;;  %358 = vmatpush.msra.mxu1 %v205_v0  ;;  %v199_v6 = vld [vmem:[%s557_s1 + $0x48] sm:$0xff]  ;;  %v198_v7 = vld [vmem:[%s557_s1 + $0x40] sm:$0xff]  ;;  %v197_v8 = vld [vmem:[%s557_s1 + $0x38] sm:$0xff]  ;;  %s506_s22 = scalar_lea.vmem %s556_s0, %s353_s15  ;;  %s535_s29 = scalar_lea.vmem %s559_s3, %s353_s15 }
   0xe   : > { %362 = vmatpush.msra.mxu2 %v204_v1  ;;  %363 = vmatpush.msra.mxu3 %v204_v1  ;;  %v196_v9 = vld [vmem:[%s557_s1 + $0x30] sm:$0xff]  ;;  %v195_v10 = vld [vmem:[%s557_s1 + $0x28] sm:$0xff]  ;;  %v194_v11 = vld [vmem:[%s557_s1 + $0x20] sm:$0xff] }
   0xf   : > { %211 = vmatpush.msra.mxu0 %v204_v1  ;;  %361 = vmatpush.msra.mxu1 %v204_v1  ;;  %v193_v12 = vld [vmem:[%s557_s1 + $0x18] sm:$0xff]  ;;  %v192_v13 = vld [vmem:[%s557_s1 + $0x10] sm:$0xff]  ;;  %v191_v14 = vld [vmem:[%s557_s1 + $0x8] sm:$0xff] }
  0x10   : > { %365 = vmatpush.msra.mxu2 %v203_v2  ;;  %366 = vmatpush.msra.mxu3 %v203_v2  ;;  %v190_v15 = vld [vmem:[%s557_s1] sm:$0xff]  ;;  %v183_v20 = vld [vmem:[%s506_s22 + $0x48] sm:$0xff]  ;;  %v184_v24 = vld [vmem:[%s506_s22 + $0x50] sm:$0xff] }
  0x11   : > { %212 = vmatpush.msra.mxu0 %v203_v2  ;;  %364 = vmatpush.msra.mxu1 %v203_v2  ;;  %v182_v16 = vld [vmem:[%s506_s22 + $0x40] sm:$0xff]  ;;  %v187_v21 = vld [vmem:[%s506_s22 + $0x68] sm:$0xff]  ;;  %v188_v25 = vld [vmem:[%s506_s22 + $0x70] sm:$0xff] }
  0x12   : > { %368 = vmatpush.msra.mxu2 %v202_v3  ;;  %369 = vmatpush.msra.mxu3 %v202_v3  ;;  %v186_v17 = vld [vmem:[%s506_s22 + $0x60] sm:$0xff]  ;;  %v175_v22 = vld [vmem:[%s506_s22 + $0x8] sm:$0xff]  ;;  %v176_v26 = vld [vmem:[%s506_s22 + $0x10] sm:$0xff] }
  0x13   : > { %213 = vmatpush.msra.mxu0 %v202_v3  ;;  %367 = vmatpush.msra.mxu1 %v202_v3  ;;  %v174_v18 = vld [vmem:[%s506_s22] sm:$0xff]  ;;  %v179_v23 = vld [vmem:[%s506_s22 + $0x28] sm:$0xff]  ;;  %v180_v27 = vld [vmem:[%s506_s22 + $0x30] sm:$0xff] }
  0x14   : > { %371 = vmatpush.msra.mxu2 %v201_v4  ;;  %372 = vmatpush.msra.mxu3 %v201_v4  ;;  %v178_v19 = vld [vmem:[%s506_s22 + $0x20] sm:$0xff]  ;;  %v185_v28 = vld [vmem:[%s506_s22 + $0x58] sm:$0xff] }
  0x15   : > { %214 = vmatpush.msra.mxu0 %v201_v4  ;;  %370 = vmatpush.msra.mxu1 %v201_v4  ;;  %v189_v29 = vld [vmem:[%s506_s22 + $0x78] sm:$0xff]  ;;  %v414_v32 = vld [vmem:[%s558_s2] ss:$0 sm:$0xff] }
  0x16   : > { %374 = vmatpush.msra.mxu2 %v200_v5  ;;  %375 = vmatpush.msra.mxu3 %v200_v5  ;;  %v177_v30 = vld [vmem:[%s506_s22 + $0x18] sm:$0xff] }
  0x17   : > { %215 = vmatpush.msra.mxu0 %v200_v5  ;;  %373 = vmatpush.msra.mxu1 %v200_v5  ;;  %v181_v31 = vld [vmem:[%s506_s22 + $0x38] sm:$0xff] }
  0x18   : > { %377 = vmatpush.msra.mxu2 %v199_v6  ;;  %378 = vmatpush.msra.mxu3 %v199_v6 }
  0x19   : > { %216 = vmatpush.msra.mxu0 %v199_v6  ;;  %376 = vmatpush.msra.mxu1 %v199_v6 }
  0x1a   : > { %380 = vmatpush.msra.mxu2 %v198_v7  ;;  %381 = vmatpush.msra.mxu3 %v198_v7 }
  0x1b   : > { %217 = vmatpush.msra.mxu0 %v198_v7  ;;  %379 = vmatpush.msra.mxu1 %v198_v7 }
  0x1c   : > { %383 = vmatpush.msra.mxu2 %v197_v8  ;;  %384 = vmatpush.msra.mxu3 %v197_v8 }
  0x1d   : > { %218 = vmatpush.msra.mxu0 %v197_v8  ;;  %382 = vmatpush.msra.mxu1 %v197_v8 }
  0x1e   : > { %386 = vmatpush.msra.mxu2 %v196_v9  ;;  %387 = vmatpush.msra.mxu3 %v196_v9 }
  0x1f   : > { %219 = vmatpush.msra.mxu0 %v196_v9  ;;  %385 = vmatpush.msra.mxu1 %v196_v9 }
  0x20   : > { %389 = vmatpush.msra.mxu2 %v195_v10  ;;  %390 = vmatpush.msra.mxu3 %v195_v10 }
  0x21   : > { %220 = vmatpush.msra.mxu0 %v195_v10  ;;  %388 = vmatpush.msra.mxu1 %v195_v10 }
  0x22   : > { %392 = vmatpush.msra.mxu2 %v194_v11  ;;  %393 = vmatpush.msra.mxu3 %v194_v11 }
  0x23   : > { %221 = vmatpush.msra.mxu0 %v194_v11  ;;  %391 = vmatpush.msra.mxu1 %v194_v11 }
  0x24   : > { %395 = vmatpush.msra.mxu2 %v193_v12  ;;  %396 = vmatpush.msra.mxu3 %v193_v12 }
  0x25   : > { %222 = vmatpush.msra.mxu0 %v193_v12  ;;  %394 = vmatpush.msra.mxu1 %v193_v12 }
  0x26   : > { %398 = vmatpush.msra.mxu2 %v192_v13  ;;  %399 = vmatpush.msra.mxu3 %v192_v13 }
  0x27   : > { %223 = vmatpush.msra.mxu0 %v192_v13  ;;  %397 = vmatpush.msra.mxu1 %v192_v13 }
  0x28   : > { %401 = vmatpush.msra.mxu2 %v191_v14  ;;  %402 = vmatpush.msra.mxu3 %v191_v14 }
  0x29   : > { %224 = vmatpush.msra.mxu0 %v191_v14  ;;  %400 = vmatpush.msra.mxu1 %v191_v14 }
  0x2a   : > { %404 = vmatpush.msra.mxu2 %v190_v15  ;;  %405 = vmatpush.msra.mxu3 %v190_v15 }
  0x2b   : > { %250 = vmatmul.f32.vlgmr.msra.gmra.mxu2 %v182_v16  ;;  %262 = vmatmul.f32.vlgmr.msra.gmra.mxu3 %v186_v17 }
  0x2c   : > { %225 = vmatpush.msra.mxu0 %v190_v15  ;;  %403 = vmatpush.msra.mxu1 %v190_v15 }
  0x2d   : > { %226 = vmatmul.f32.vlgmr.msra.gmra.mxu0 %v174_v18  ;;  %238 = vmatmul.f32.vlgmr.msra.gmra.mxu1 %v178_v19 }
  0x33   : > { %253 = vmatmul.f32.gmra.mxu2 %v183_v20  ;;  %265 = vmatmul.f32.gmra.mxu3 %v187_v21 }
  0x35   : > { %229 = vmatmul.f32.gmra.mxu0 %v175_v22  ;;  %241 = vmatmul.f32.gmra.mxu1 %v179_v23 }
  0x3b   : > { %256 = vmatmul.f32.gmra.mxu2 %v184_v24  ;;  %268 = vmatmul.f32.gmra.mxu3 %v188_v25 }
  0x3d   : > { %232 = vmatmul.f32.gmra.mxu0 %v176_v26  ;;  %244 = vmatmul.f32.gmra.mxu1 %v180_v27 }
  0x43   : > { %259 = vmatmul.f32.gmra.mxu2 %v185_v28  ;;  %271 = vmatmul.f32.gmra.mxu3 %v189_v29 }
  0x45   : > { %235 = vmatmul.f32.gmra.mxu0 %v177_v30  ;;  %247 = vmatmul.f32.gmra.mxu1 %v181_v31 }
  0xaa   : > { %v227_v33 = vpop.f32.mrf.mxu0  ;;  %v239_v34 = vpop.f32.mrf.mxu1 }
  0xab   : > { %v228_v35 = vadd.f32 %v414_v32, %v227_v33  ;;  %v240_v36 = vadd.f32 %v414_v32, %v239_v34 }
  0xad   : > { %275 = vst [vmem:[%s535_s29] sm:$0xff] %v228_v35 }
  0xae   : > { %279 = vst [vmem:[%s535_s29 + $0x20] sm:$0xff] %v240_v36  ;;  %v251_v37 = vpop.f32.mrf.mxu2  ;;  %v263_v38 = vpop.f32.mrf.mxu3 }
  0xaf   : > { %v252_v39 = vadd.f32 %v414_v32, %v251_v37  ;;  %v264_v40 = vadd.f32 %v414_v32, %v263_v38 }
  0xb1   : > { %283 = vst [vmem:[%s535_s29 + $0x40] sm:$0xff] %v252_v39 }
  0xb2   : > { %287 = vst [vmem:[%s535_s29 + $0x60] sm:$0xff] %v264_v40  ;;  %v230_v41 = vpop.f32.mrf.mxu0  ;;  %v242_v42 = vpop.f32.mrf.mxu1 }
  0xb3   : > { %v231_v43 = vadd.f32 %v414_v32, %v230_v41  ;;  %v243_v44 = vadd.f32 %v414_v32, %v242_v42 }
  0xb5   : > { %276 = vst [vmem:[%s535_s29 + $0x8] sm:$0xff] %v231_v43 }
  0xb6   : > { %280 = vst [vmem:[%s535_s29 + $0x28] sm:$0xff] %v243_v44  ;;  %v254_v45 = vpop.f32.mrf.mxu2  ;;  %v266_v46 = vpop.f32.mrf.mxu3 }
  0xb7   : > { %v255_v47 = vadd.f32 %v414_v32, %v254_v45  ;;  %v267_v48 = vadd.f32 %v414_v32, %v266_v46 }
  0xb9   : > { %284 = vst [vmem:[%s535_s29 + $0x48] sm:$0xff] %v255_v47 }
  0xba   : > { %288 = vst [vmem:[%s535_s29 + $0x68] sm:$0xff] %v267_v48  ;;  %v233_v49 = vpop.f32.mrf.mxu0  ;;  %v245_v50 = vpop.f32.mrf.mxu1 }
  0xbb   : > { %v234_v51 = vadd.f32 %v414_v32, %v233_v49  ;;  %v246_v52 = vadd.f32 %v414_v32, %v245_v50 }
  0xbd   : > { %277 = vst [vmem:[%s535_s29 + $0x10] sm:$0xff] %v234_v51 }
  0xbe   : > { %281 = vst [vmem:[%s535_s29 + $0x30] sm:$0xff] %v246_v52  ;;  %v257_v53 = vpop.f32.mrf.mxu2  ;;  %v269_v54 = vpop.f32.mrf.mxu3 }
  0xbf   : > { %v258_v55 = vadd.f32 %v414_v32, %v257_v53  ;;  %v270_v56 = vadd.f32 %v414_v32, %v269_v54 }
  0xc1   : > { %285 = vst [vmem:[%s535_s29 + $0x50] sm:$0xff] %v258_v55 }
  0xc2   : > { %289 = vst [vmem:[%s535_s29 + $0x70] sm:$0xff] %v270_v56  ;;  %v236_v57 = vpop.f32.mrf.mxu0  ;;  %v248_v58 = vpop.f32.mrf.mxu1 }
  0xc3   : > { %v237_v59 = vadd.f32 %v414_v32, %v236_v57  ;;  %v249_v60 = vadd.f32 %v414_v32, %v248_v58 }
  0xc5   : > { %278 = vst [vmem:[%s535_s29 + $0x18] sm:$0xff] %v237_v59 }
  0xc6   : > { %282 = vst [vmem:[%s535_s29 + $0x38] sm:$0xff] %v249_v60  ;;  %v260_v61 = vpop.f32.mrf.mxu2  ;;  %v272_v62 = vpop.f32.mrf.mxu3 }
  0xc7   : > { %v261_v63 = vadd.f32 %v414_v32, %v260_v61  ;;  %v273_v0 = vadd.f32 %v414_v32, %v272_v62 }
  0xc9   : > { %286 = vst [vmem:[%s535_s29 + $0x58] sm:$0xff] %v261_v63 }
  0xca   : > { %290 = vst [vmem:[%s535_s29 + $0x78] sm:$0xff] %v273_v0 }
  0xcb PF: > { %s13_s12 = sadd.s32 1, %s421_s12  }
  0xcc   : > { %p10_p4 = scmp.ge.s32.totalorder %s13_s12, 4  }
  0xce   :  { %12 = sbr.rel (!%p10_p4) target bundleno = 1 (0x1), region = 62 }

// kernel: bytenet_structure_model.11
= control target key start
LH: loop header
LB: loop body
LE: loop exit
PB: predicated region body
PF: predicated region fallthrough
CT: control target
= control target key end

     0   :  { %s1718_s21 = smov 0   ;;  %s2803_s0 = inlined_call_operand.vmem [shape: f32[2,128,128], index: 0, kind: input, shape index: {}]   ;;  %s2804_s1 = inlined_call_operand.vmem [shape: f32[2,128,1], index: 1, kind: input, shape index: {}]   ;;  %s2805_s2 = inlined_call_operand.vmem [shape: f32[1,128], index: 2, kind: input, shape index: {}]   ;;  %s2806_s3 = inlined_call_operand.vmem [shape: f32[1,128], index: 3, kind: input, shape index: {}]   ;;  %s2807_s4 = inlined_call_operand.vmem [shape: f32[5,128,128], index: 4, kind: input, shape index: {}]   ;;  %s2808_s5 = inlined_call_operand.vmem [shape: f32[1,128], index: 5, kind: input, shape index: {}]   ;;  %s2809_s6 = inlined_call_operand.vmem [shape: f32[2,128,128], index: 6, kind: output, shape index: {}]  }
   0x1 LB: > { %s1497_s22 = sadd.s32 4294967295, %s1679_s21   ;;  %p1501_p0 = scmp.ge.s32.totalorder %s1679_s21, 1  ;;  %s1679_s21 = sphi %s1718_s21, %s16_s21  }
   0x2   : > { %p222_p1 = scmp.lt.s32.totalorder %s1679_s21, 3 }
   0x4   : > { %p223_p2 = pnand %p1501_p0, %p222_p1 }
   0x5   : > { %p257_p3 = scmp.lt.s32.totalorder (!%p223_p2), %s1497_s22, 1 }
   0x6   : > { %226 = sbr.rel (%p223_p2) target bundleno = 621 (0x26d), region = 44 }
   0xb   : > { %s2831_s22 = smov (!%p257_p3, %s1497_s22), 1  ;;  %v1681_v6 = vmov 0  }
   0xc   : > { %s1726_s23 = sshll.u32 %s2831_s22, 7  ;;  %1637 = vset.pattern.permute.xlu1 %v1681_v6  ;;  %1635 = vset.pattern.permute.xlu2 %v1681_v6 }
   0xd   : > { %s1732_s26 = scalar_lea.vmem %s2803_s0, %s1726_s23  ;;  %1636 = vset.pattern.permute.xlu0 %v1681_v6  ;;  %s1802_s29 = scalar_lea.vmem %s2804_s1, %s1726_s23 }
   0xe   : > { %v1735_v0 = vld [vmem:[%s1732_s26 + $0x58] sm:$0xff]  ;;  %v1747_v3 = vld [vmem:[%s1732_s26 + $0x60] sm:$0xff]  ;;  %v1762_v8 = vld [vmem:[%s1732_s26 + $0x48] sm:$0xff]  ;;  %s2754_s20 = scalar_lea.vmem %s2809_s6, %s1726_s23 }
   0xf   : > { %v1738_v1 = vld [vmem:[%s1732_s26 + $0x38] sm:$0xff]  ;;  %310 = vadd.xlane.f32.xlu1 %v1735_v0  ;;  %v1750_v4 = vld [vmem:[%s1732_s26 + $0x40] sm:$0xff]  ;;  %v1765_v9 = vld [vmem:[%s1732_s26 + $0x68] sm:$0xff] }
  0x10   : > { %v1741_v2 = vld [vmem:[%s1732_s26 + $0x18] sm:$0xff]  ;;  %302 = vadd.xlane.f32.xlu0 %v1738_v1  ;;  %v1753_v5 = vld [vmem:[%s1732_s26 + $0x20] sm:$0xff]  ;;  %v1771_v10 = vld [vmem:[%s1732_s26 + $0x50] sm:$0xff] }
  0x11   : > { %294 = vadd.xlane.f32.xlu2 %v1741_v2  ;;  %v1759_v7 = vld [vmem:[%s1732_s26] sm:$0xff]  ;;  %v1774_v11 = vld [vmem:[%s1732_s26 + $0x28] sm:$0xff]  ;;  %v1783_v13 = vld [vmem:[%s1732_s26 + $0x30] sm:$0xff] }
  0x12   : > { %v1777_v12 = vld [vmem:[%s1732_s26 + $0x8] sm:$0xff]  ;;  %v1786_v14 = vld [vmem:[%s1732_s26 + $0x70] sm:$0xff]  ;;  %v1795_v16 = vld [vmem:[%s1732_s26 + $0x78] sm:$0xff] }
  0x13   : > { %v1789_v15 = vld [vmem:[%s1732_s26 + $0x10] sm:$0xff]  ;;  %v719_v17 = vld [vmem:[%s1802_s29 + $0x38] sm:$0xff]  ;;  %v720_v19 = vld [vmem:[%s1802_s29 + $0x40] sm:$0xff] }
  0x14   : > { %v723_v18 = vld [vmem:[%s1802_s29 + $0x58] sm:$0xff]  ;;  %v724_v20 = vld [vmem:[%s1802_s29 + $0x60] sm:$0xff]  ;;  %v725_v22 = vld [vmem:[%s1802_s29 + $0x68] sm:$0xff] }
  0x15   : > { %v716_v21 = vld [vmem:[%s1802_s29 + $0x20] sm:$0xff]  ;;  %v715_v23 = vld [vmem:[%s1802_s29 + $0x18] sm:$0xff]  ;;  %v721_v25 = vld [vmem:[%s1802_s29 + $0x48] sm:$0xff] }
  0x16   : > { %v712_v24 = vld [vmem:[%s1802_s29] sm:$0xff]  ;;  %v722_v26 = vld [vmem:[%s1802_s29 + $0x50] sm:$0xff]  ;;  %v717_v27 = vld [vmem:[%s1802_s29 + $0x28] sm:$0xff] }
  0x17   : > { %312 = vadd.xlane.f32.xlu1 %v1747_v3 }
  0x18   : > { %304 = vadd.xlane.f32.xlu0 %v1750_v4 }
  0x19   : > { %296 = vadd.xlane.f32.xlu2 %v1753_v5 }
  0x1f   : > { %288 = vadd.xlane.f32.xlu1 %v1759_v7 }
  0x20   : > { %306 = vadd.xlane.f32.xlu0 %v1762_v8 }
  0x21   : > { %314 = vadd.xlane.f32.xlu2 %v1765_v9 }
  0x27   : > { %308 = vadd.xlane.f32.xlu1 %v1771_v10 }
  0x28   : > { %298 = vadd.xlane.f32.xlu0 %v1774_v11 }
  0x29   : > { %290 = vadd.xlane.f32.xlu2 %v1777_v12 }
  0x2f   : > { %300 = vadd.xlane.f32.xlu1 %v1783_v13 }
  0x30   : > { %316 = vadd.xlane.f32.xlu0 %v1786_v14 }
  0x31   : > { %292 = vadd.xlane.f32.xlu2 %v1789_v15 }
  0x38   : > { %318 = vadd.xlane.f32.xlu0 %v1795_v16 }
  0x48   : > { %785 = vperm.xlu1 %1637, %v723_v18  }
  0x49   : > { %765 = vperm.xlu2 %1635, %v719_v17  }
  0x4c   : > { %770 = vperm.xlu0 %1636, %v720_v19  }
  0x50   : > { %750 = vperm.xlu1 %1637, %v716_v21  }
  0x51   : > { %790 = vperm.xlu2 %1635, %v724_v20  }
  0x54   : > { %795 = vperm.xlu0 %1636, %v725_v22  }
  0x58   : > { %730 = vperm.xlu1 %1637, %v712_v24  }
  0x59   : > { %745 = vperm.xlu2 %1635, %v715_v23  }
  0x60   : > { %780 = vperm.xlu1 %1637, %v722_v26  }
  0x61   : > { %775 = vperm.xlu2 %1635, %v721_v25  }
  0x69   : > { %755 = vperm.xlu2 %1635, %v717_v27  }
  0x82   : > { %v311_v28 = vpop.xlane.xlu1 %310 }
  0x83   : > { %v303_v29 = vpop.xlane.xlu0 %302  ;;  %v1815_v30 = vmul.f32 0.0625, %v311_v28 }
  0x84   : > { %v1817_v31 = vmul.f32 0.0625, %v303_v29  ;;  %v295_v32 = vpop.xlane.xlu2 %294 }
  0x85   : > { %v1821_v33 = vsub.f32 %v1735_v0, %v1815_v30  ;;  %v1849_v46 = vmul.f32 0.0625, %v295_v32  ;;  %v713_v32 = vld [vmem:[%s1802_s29 + $0x8] sm:$0xff] }
  0x86   : > { %v1825_v34 = vsub.f32 %v1738_v1, %v1817_v31 }
  0x87   : > { %v363_v35 = vmul.f32 %v1821_v33, %v1821_v33  ;;  %v1859_v52 = vsub.f32 %v1741_v2, %v1849_v46 }
  0x88   : > { %v359_v36 = vmul.f32 %v1825_v34, %v1825_v34 }
  0x89   : > { %390 = vadd.xlane.f32.xlu0 %v363_v35  ;;  %v355_v59 = vmul.f32 %v1859_v52, %v1859_v52  ;;  %v714_v35 = vld [vmem:[%s1802_s29 + $0x10] sm:$0xff] }
  0x8a   : > { %382 = vadd.xlane.f32.xlu1 %v359_v36  ;;  %v313_v38 = vpop.xlane.xlu1 %312  ;;  %v718_v36 = vld [vmem:[%s1802_s29 + $0x30] sm:$0xff] }
  0x8b   : > { %v305_v37 = vpop.xlane.xlu0 %304  ;;  %v1833_v41 = vmul.f32 0.0625, %v313_v38 }
  0x8c   : > { %v1831_v39 = vmul.f32 0.0625, %v305_v37  ;;  %v297_v40 = vpop.xlane.xlu2 %296  ;;  %v727_v37 = vld [vmem:[%s1802_s29 + $0x78] sm:$0xff] }
  0x8d   : > { %v1835_v42 = vmul.f32 0.0625, %v297_v40  ;;  %v1843_v44 = vsub.f32 %v1747_v3, %v1833_v41 }
  0x8e   : > { %v1839_v43 = vsub.f32 %v1750_v4, %v1831_v39 }
  0x8f   : > { %v1847_v45 = vsub.f32 %v1753_v5, %v1835_v42  ;;  %v364_v48 = vmul.f32 %v1843_v44, %v1843_v44 }
  0x90   : > { %v360_v47 = vmul.f32 %v1839_v43, %v1839_v43 }
  0x91   : > { %v356_v49 = vmul.f32 %v1847_v45, %v1847_v45 }
  0x92   : > { %384 = vadd.xlane.f32.xlu2 %v360_v47  ;;  %392 = vadd.xlane.f32.xlu1 %v364_v48  ;;  %v289_v51 = vpop.xlane.xlu1 %288 }
  0x93   : > { %376 = vadd.xlane.f32.xlu0 %v356_v49  ;;  %v307_v50 = vpop.xlane.xlu0 %306  ;;  %v1873_v58 = vmul.f32 0.0625, %v289_v51 }
  0x94   : > { %v315_v53 = vpop.xlane.xlu2 %314  ;;  %v1861_v54 = vmul.f32 0.0625, %v307_v50 }
  0x95   : > { %v1863_v55 = vmul.f32 0.0625, %v315_v53  ;;  %v1883_v0 = vsub.f32 %v1759_v7, %v1873_v58 }
  0x96   : > { %v1867_v56 = vsub.f32 %v1762_v8, %v1861_v54 }
  0x97   : > { %v1871_v57 = vsub.f32 %v1765_v9, %v1863_v55  ;;  %v352_v8 = vmul.f32 %v1883_v0, %v1883_v0 }
  0x98   : > { %v361_v60 = vmul.f32 %v1867_v56, %v1867_v56 }
  0x99   : > { %v365_v61 = vmul.f32 %v1871_v57, %v1871_v57 }
  0x9a   : > { %374 = vadd.xlane.f32.xlu2 %v355_v59  ;;  %386 = vadd.xlane.f32.xlu1 %v361_v60  ;;  %v309_v63 = vpop.xlane.xlu1 %308  ;;  %v1523_v59 = vld [vmem:[%s2807_s4 + $0xf8] sm:$0xff] }
  0x9b   : > { %394 = vadd.xlane.f32.xlu0 %v365_v61  ;;  %v299_v62 = vpop.xlane.xlu0 %298  ;;  %v1897_v6 = vmul.f32 0.0625, %v309_v63  ;;  %1578 = vmatpush.msra.mxu2 %v1523_v59  ;;  %v1522_v61 = vld [vmem:[%s2807_s4 + $0xf0] sm:$0xff]  ;;  %v407_v63 = vmul.f32 %v1817_v31, %v1817_v31 }
  0x9c   : > { %v291_v1 = vpop.xlane.xlu2 %290  ;;  %v1885_v2 = vmul.f32 0.0625, %v299_v62  ;;  %1579 = vmatpush.msra.mxu3 %v1523_v59  ;;  %1577 = vmatpush.msra.mxu1 %v1523_v59  ;;  %v411_v62 = vmul.f32 %v1815_v30, %v1815_v30 }
  0x9d   : > { %v1887_v3 = vmul.f32 0.0625, %v291_v1  ;;  %v1907_v17 = vsub.f32 %v1771_v10, %v1897_v6  ;;  %922 = vmatpush.msra.mxu0 %v1523_v59  ;;  %1581 = vmatpush.msra.mxu2 %v1522_v61  ;;  %v1521_v1 = vld [vmem:[%s2807_s4 + $0xe8] sm:$0xff]  ;;  %v423_v30 = vmul.f32 112.0, %v407_v63  ;;  %v400_v59 = vmul.f32 %v1873_v58, %v1873_v58 }
  0x9e   : > { %v1891_v4 = vsub.f32 %v1774_v11, %v1885_v2  ;;  %1582 = vmatpush.msra.mxu3 %v1522_v61  ;;  %1580 = vmatpush.msra.mxu1 %v1522_v61 }
  0x9f   : > { %v1895_v5 = vsub.f32 %v1777_v12, %v1887_v3  ;;  %v362_v10 = vmul.f32 %v1907_v17, %v1907_v17  ;;  %923 = vmatpush.msra.mxu0 %v1522_v61  ;;  %1584 = vmatpush.msra.mxu2 %v1521_v1 }
  0xa0   : > { %v357_v7 = vmul.f32 %v1891_v4, %v1891_v4  ;;  %1585 = vmatpush.msra.mxu3 %v1521_v1  ;;  %1583 = vmatpush.msra.mxu1 %v1521_v1 }
  0xa1   : > { %v353_v9 = vmul.f32 %v1895_v5, %v1895_v5  ;;  %924 = vmatpush.msra.mxu0 %v1521_v1 }
  0xa2   : > { %368 = vadd.xlane.f32.xlu2 %v352_v8  ;;  %378 = vadd.xlane.f32.xlu1 %v357_v7  ;;  %v301_v20 = vpop.xlane.xlu1 %300  ;;  %v427_v8 = vmul.f32 112.0, %v411_v62 }
  0xa3   : > { %370 = vadd.xlane.f32.xlu0 %v353_v9  ;;  %v317_v11 = vpop.xlane.xlu0 %316  ;;  %v1921_v23 = vmul.f32 0.0625, %v301_v20  ;;  %v1682_v20 = vmov 0.0  }
  0xa4   : > { %v293_v12 = vpop.xlane.xlu2 %292  ;;  %v1909_v18 = vmul.f32 0.0625, %v317_v11  ;;  %831 = vst [vmem:[#allocation2 + $0x38] sm:$0xff] %v1682_v20 }
  0xa5   : > { %v1911_v19 = vmul.f32 0.0625, %v293_v12  ;;  %832 = vst [vmem:[#allocation2 + $0x40] sm:$0xff] %v1682_v20 }
  0xa6   : > { %v1915_v21 = vsub.f32 %v1786_v14, %v1909_v18  ;;  %824 = vst [vmem:[#allocation2] sm:$0xff] %v1682_v20 }
  0xa7   : > { %v1919_v22 = vsub.f32 %v1789_v15, %v1911_v19  ;;  %v1931_v15 = vsub.f32 %v1783_v13, %v1921_v23  ;;  %v726_v13 = vld [vmem:[%s1802_s29 + $0x70] sm:$0xff]  ;;  %825 = vst [vmem:[#allocation2 + $0x8] sm:$0xff] %v1682_v20 }
  0xa8   : > { %v366_v24 = vmul.f32 %v1915_v21, %v1915_v21  ;;  %826 = vst [vmem:[#allocation2 + $0x10] sm:$0xff] %v1682_v20 }
  0xa9   : > { %v354_v25 = vmul.f32 %v1919_v22, %v1919_v22  ;;  %v358_v28 = vmul.f32 %v1931_v15, %v1931_v15  ;;  %827 = vst [vmem:[#allocation2 + $0x18] sm:$0xff] %v1682_v20 }
  0xaa   : > { %388 = vadd.xlane.f32.xlu2 %v362_v10  ;;  %396 = vadd.xlane.f32.xlu1 %v366_v24  ;;  %v408_v10 = vmul.f32 %v1831_v39, %v1831_v39  ;;  %828 = vst [vmem:[#allocation2 + $0x20] sm:$0xff] %v1682_v20 }
  0xab   : > { %372 = vadd.xlane.f32.xlu0 %v354_v25  ;;  %v319_v14 = vpop.xlane.xlu0 %318  ;;  %v404_v25 = vmul.f32 %v1835_v42, %v1835_v42  ;;  %v403_v42 = vmul.f32 %v1849_v46, %v1849_v46  ;;  %829 = vst [vmem:[#allocation2 + $0x28] sm:$0xff] %v1682_v20 }
  0xac   : > { %v1933_v26 = vmul.f32 0.0625, %v319_v14  ;;  %v412_v14 = vmul.f32 %v1833_v41, %v1833_v41  ;;  %v424_v39 = vmul.f32 112.0, %v408_v10  ;;  %830 = vst [vmem:[#allocation2 + $0x30] sm:$0xff] %v1682_v20 }
  0xad   : > { %v420_v41 = vmul.f32 112.0, %v404_v25  ;;  %833 = vst [vmem:[#allocation2 + $0x48] sm:$0xff] %v1682_v20 }
  0xae   : > { %v1937_v27 = vsub.f32 %v1795_v16, %v1933_v26  ;;  %v1948_v16 = vpop.permute.xlu2 %765  ;;  %834 = vst [vmem:[#allocation2 + $0x50] sm:$0xff] %v1682_v20 }
  0xaf   : > { %835 = vst [vmem:[#allocation2 + $0x58] sm:$0xff] %v1682_v20 }
  0xb0   : > { %v367_v29 = vmul.f32 %v1937_v27, %v1937_v27  ;;  %836 = vst [vmem:[#allocation2 + $0x60] sm:$0xff] %v1682_v20 }
  0xb1   : > { %837 = vst [vmem:[#allocation2 + $0x68] sm:$0xff] %v1682_v20 }
  0xb2   : > { %380 = vadd.xlane.f32.xlu2 %v358_v28  ;;  %398 = vadd.xlane.f32.xlu1 %v367_v29  ;;  %838 = vst [vmem:[#allocation2 + $0x70] sm:$0xff] %v1682_v20 }
  0xb3   : > { %839 = vst [vmem:[#allocation2 + $0x78] sm:$0xff] %v1682_v20 }
  0xb4   : > { %840 = vst [vmem:[#allocation2 + $0x80] sm:$0xff] %v1682_v20 }
  0xb6   : > { %v1952_v40 = vpop.permute.xlu2 %790 }
  0xba   : > { %v1950_v38 = vpop.permute.xlu1 %785 }
  0xbe   : > { %v1956_v48 = vpop.permute.xlu2 %745  ;;  %v1958_v49 = vpop.permute.xlu0 %770 }
  0xbf   : > { %735 = vperm.xlu0 %1636, %v713_v32  }
  0xc2   : > { %v1954_v47 = vpop.permute.xlu1 %750 }
  0xc6   : > { %v1962_v51 = vpop.permute.xlu2 %775  ;;  %v1964_v53 = vpop.permute.xlu0 %795 }
  0xc7   : > { %740 = vperm.xlu0 %1636, %v714_v35  }
  0xca   : > { %800 = vperm.xlu2 %1635, %v726_v13   ;;  %v1960_v50 = vpop.permute.xlu1 %730  ;;  %v428_v13 = vmul.f32 112.0, %v412_v14  ;;  %v401_v14 = vmul.f32 %v1887_v3, %v1887_v3 }
  0xcb   : > { %760 = vperm.xlu1 %1637, %v718_v36   ;;  %v1520_v36 = vld [vmem:[%s2807_s4 + $0xe0] sm:$0xff] }
  0xcc   : > { %1587 = vmatpush.msra.mxu2 %v1520_v36  ;;  %1588 = vmatpush.msra.mxu3 %v1520_v36 }
  0xcd   : > { %1586 = vmatpush.msra.mxu1 %v1520_v36  ;;  %925 = vmatpush.msra.mxu0 %v1520_v36 }
  0xce   : > { %v1981_v7 = vpop.permute.xlu2 %755 }
  0xd2   : > { %805 = vperm.xlu2 %1635, %v727_v37   ;;  %v1969_v60 = vpop.permute.xlu1 %780  ;;  %v409_v37 = vmul.f32 %v1861_v54, %v1861_v54  ;;  %v413_v54 = vmul.f32 %v1863_v55, %v1863_v55 }
  0xfc   : > { %v391_v9 = vpop.xlane.xlu0 %390 }
  0xfd   : > { %v443_v11 = vsub.f32 %v391_v9, %v427_v8  ;;  %v383_v12 = vpop.xlane.xlu1 %382  ;;  %v1519_v8 = vld [vmem:[%s2807_s4 + $0xd8] sm:$0xff]  ;;  %v405_v9 = vmul.f32 %v1885_v2, %v1885_v2  ;;  %v419_v2 = vmul.f32 112.0, %v403_v42  ;;  %v1517_v42 = vld [vmem:[%s2807_s4 + $0xc8] sm:$0xff] }
  0xfe   : > { %v439_v31 = vsub.f32 %v383_v12, %v423_v30  ;;  %1590 = vmatpush.msra.mxu2 %v1519_v8  ;;  %1591 = vmatpush.msra.mxu3 %v1519_v8  ;;  %v410_v30 = vmul.f32 %v1897_v6, %v1897_v6  ;;  %v2034_v6 = vmul.f32 112.0, %v400_v59 }
  0xff   : > { %v459_v24 = vmul.f32 0.0625, %v443_v11  ;;  %1589 = vmatpush.msra.mxu1 %v1519_v8  ;;  %926 = vmatpush.msra.mxu0 %v1519_v8  ;;  %v2059_v59 = vmul.f32 112.0, %v405_v9  ;;  %v1516_v8 = vld [vmem:[%s2807_s4 + $0xc0] sm:$0xff]  ;;  %v2078_v9 = vmul.f32 112.0, %v401_v14 }
 0x100   : > { %v455_v28 = vmul.f32 0.0625, %v439_v31  ;;  %v1518_v31 = vld [vmem:[%s2807_s4 + $0xd0] sm:$0xff] }
 0x101   : > { %v1992_v29 = vadd.f32 1e-05, %v459_v24  ;;  %v2032_v24 = vmul.f32 112.0, %v409_v37  ;;  %1593 = vmatpush.msra.mxu2 %v1518_v31  ;;  %1594 = vmatpush.msra.mxu3 %v1518_v31 }
 0x102   : > { %v1995_v32 = vadd.f32 1e-05, %v455_v28  ;;  %1592 = vmatpush.msra.mxu1 %v1518_v31  ;;  %927 = vmatpush.msra.mxu0 %v1518_v31 }
 0x103   : > { %1641 = vrsqrt.f32 %v1992_v29  ;;  %1596 = vmatpush.msra.mxu2 %v1517_v42  ;;  %1597 = vmatpush.msra.mxu3 %v1517_v42  ;;  %vm596_vm0 = vweird.f32 %v1992_v29 }
 0x104   : > { %1643 = vrsqrt.f32 %v1995_v32  ;;  %1595 = vmatpush.msra.mxu1 %v1517_v42  ;;  %928 = vmatpush.msra.mxu0 %v1517_v42  ;;  %vm556_vm2 = vweird.f32 %v1995_v32  ;;  %v1514_v42 = vld [vmem:[%s2807_s4 + $0xb0] sm:$0xff] }
 0x105   : > { %v385_v35 = vpop.xlane.xlu2 %384  ;;  %v393_v62 = vpop.xlane.xlu1 %392  ;;  %1599 = vmatpush.msra.mxu2 %v1516_v8  ;;  %1600 = vmatpush.msra.mxu3 %v1516_v8 }
 0x106   : > { %v377_v46 = vpop.xlane.xlu0 %376  ;;  %v440_v61 = vsub.f32 %v385_v35, %v424_v39  ;;  %v444_v1 = vsub.f32 %v393_v62, %v428_v13  ;;  %v402_v35 = vmul.f32 %v1911_v19, %v1911_v19  ;;  %v429_v13 = vmul.f32 112.0, %v413_v54  ;;  %1598 = vmatpush.msra.mxu1 %v1516_v8  ;;  %929 = vmatpush.msra.mxu0 %v1516_v8 }
 0x107   : > { %v436_v63 = vsub.f32 %v377_v46, %v420_v41  ;;  %v2061_v19 = vmul.f32 112.0, %v410_v30  ;;  %v2065_v46 = vmul.f32 %v1909_v18, %v1909_v18  ;;  %v2075_v54 = vmul.f32 %v1921_v23, %v1921_v23 }
 0x108   : > { %v456_v58 = vmul.f32 0.0625, %v440_v61  ;;  %v460_v12 = vmul.f32 0.0625, %v444_v1  ;;  %v2081_v31 = vmul.f32 112.0, %v402_v35 }
 0x109   : > { %v452_v11 = vmul.f32 0.0625, %v436_v63  ;;  %v2027_v55 = vpop.eup %1641 }
 0x10a   : > { %v2030_v10 = vadd.f32 1e-05, %v456_v58  ;;  %v2036_v25 = vpop.eup %1643  ;;  %v591_v28 = vmul.f32 %v2027_v55, %v1992_v29  ;;  %v2045_v41 = vadd.f32 1e-05, %v460_v12  ;;  %vm597_vm1 = vweird.f32 %v2027_v55 }
 0x10b   : > { %v2043_v39 = vadd.f32 1e-05, %v452_v11  ;;  %v551_v3 = vmul.f32 %v2036_v25, %v1995_v32  ;;  %vm557_vm3 = vweird.f32 %v2036_v25  ;;  %vm2116_vm5 = vmor %vm596_vm0, %vm597_vm1 }
 0x10c   : > { %1645 = vrsqrt.f32 %v2030_v10  ;;  %v592_v36 = vmul.f32 %v2027_v55, %v591_v28  ;;  %vm566_vm4 = vweird.f32 %v2030_v10  ;;  %vm558_vm6 = vmor %vm556_vm2, %vm557_vm3  ;;  %vm606_vm8 = vweird.f32 %v2045_v41 }
 0x10d   : > { %1647 = vrsqrt.f32 %v2043_v39  ;;  %v375_v37 = vpop.xlane.xlu2 %374  ;;  %v552_v61 = vmul.f32 %v2036_v25, %v551_v3  ;;  %v387_v1 = vpop.xlane.xlu1 %386  ;;  %vm526_vm7 = vweird.f32 %v2043_v39 }
 0x10e   : > { %1649 = vrsqrt.f32 %v2045_v41  ;;  %v395_v62 = vpop.xlane.xlu0 %394  ;;  %v435_v63 = vsub.f32 %v375_v37, %v419_v2  ;;  %v593_v58 = vmul.f32 0.5, %v592_v36  ;;  %v441_v12 = vsub.f32 %v387_v1, %v2032_v24  ;;  %v1515_v2 = vld [vmem:[%s2807_s4 + $0xb8] sm:$0xff] }
 0x10f   : > { %v445_v18 = vsub.f32 %v395_v62, %v429_v13  ;;  %v553_v30 = vmul.f32 0.5, %v552_v61  ;;  %1602 = vmatpush.msra.mxu2 %v1515_v2  ;;  %1603 = vmatpush.msra.mxu3 %v1515_v2  ;;  %v2110_v61 = vld [vmem:[%s2805_s2] ss:$0 sm:$0xff] }
 0x110   : > { %v451_v11 = vmul.f32 0.0625, %v435_v63  ;;  %v594_v23 = vsub.f32 1.5, %v593_v58  ;;  %1601 = vmatpush.msra.mxu1 %v1515_v2  ;;  %930 = vmatpush.msra.mxu0 %v1515_v2  ;;  %v457_v8 = vmul.f32 0.0625, %v441_v12  ;;  %v1513_v58 = vld [vmem:[%s2807_s4 + $0xa8] sm:$0xff] }
 0x111   : > { %v461_v20 = vmul.f32 0.0625, %v445_v18  ;;  %v554_v28 = vsub.f32 1.5, %v553_v30  ;;  %1605 = vmatpush.msra.mxu2 %v1514_v42  ;;  %1606 = vmatpush.msra.mxu3 %v1514_v42 }
 0x112   : > { %v2088_v14 = vpop.eup %1645  ;;  %v2092_v24 = vadd.f32 1e-05, %v451_v11  ;;  %v595_v3 = vmul.f32 %v2027_v55, %v594_v23  ;;  %1604 = vmatpush.msra.mxu1 %v1514_v42  ;;  %931 = vmatpush.msra.mxu0 %v1514_v42  ;;  %v2141_v11 = vld [vmem:[%s2806_s3] ss:$0 sm:$0xff] }
 0x113   : > { %v2097_v35 = vpop.eup %1647  ;;  %v561_v13 = vmul.f32 %v2088_v14, %v2030_v10  ;;  %v2103_v36 = vadd.f32 1e-05, %v461_v20  ;;  %v555_v63 = vmul.f32 %v2036_v25, %v554_v28  ;;  %1608 = vmatpush.msra.mxu2 %v1513_v58  ;;  %1609 = vmatpush.msra.mxu3 %v1513_v58  ;;  %v1512_v23 = vld [vmem:[%s2807_s4 + $0xa0] sm:$0xff]  ;;  %vm567_vm9 = vweird.f32 %v2088_v14 }
 0x114   : > { %v2105_v37 = vpop.eup %1649  ;;  %v521_v1 = vmul.f32 %v2097_v35, %v2043_v39  ;;  %1651 = vrsqrt.f32 %v2092_v24  ;;  %v599_v29 = vsel %vm2116_vm5, %v2027_v55, %v595_v3  ;;  %1607 = vmatpush.msra.mxu1 %v1513_v58  ;;  %932 = vmatpush.msra.mxu0 %v1513_v58  ;;  %vm527_vm10 = vweird.f32 %v2097_v35  ;;  %vm2184_vm12 = vmor %vm566_vm4, %vm567_vm9 }
 0x115   : > { %v562_v18 = vmul.f32 %v2088_v14, %v561_v13  ;;  %v601_v30 = vmul.f32 %v2105_v37, %v2045_v41  ;;  %v651_v55 = vmul.f32 %v599_v29, %v1821_v33  ;;  %v559_v12 = vsel %vm558_vm6, %v2036_v25, %v555_v63  ;;  %v2153_v33 = vpop.xlane.xlu2 %368  ;;  %1611 = vmatpush.msra.mxu2 %v1512_v23  ;;  %vm2197_vm13 = vmor %vm526_vm7, %vm527_vm10 }
 0x116   : > { %v522_v32 = vmul.f32 %v2097_v35, %v521_v1  ;;  %1653 = vrsqrt.f32 %v2103_v36  ;;  %v371_v2 = vpop.xlane.xlu0 %370  ;;  %v647_v20 = vmul.f32 %v559_v12, %v1825_v34  ;;  %1612 = vmatpush.msra.mxu3 %v1512_v23  ;;  %v2157_v13 = vadd.f32 1e-05, %v457_v8  ;;  %v1511_v34 = vld [vmem:[%s2807_s4 + $0x98] sm:$0xff]  ;;  %1610 = vmatpush.msra.mxu1 %v1512_v23 }
 0x117   : > { %v563_v28 = vmul.f32 0.5, %v562_v18  ;;  %v602_v42 = vmul.f32 %v2105_v37, %v601_v30  ;;  %v671_v25 = vmul.f32 %v2110_v61, %v651_v55  ;;  %933 = vmatpush.msra.mxu0 %v1512_v23  ;;  %v433_v58 = vsub.f32 %v371_v2, %v2078_v9  ;;  %1614 = vmatpush.msra.mxu2 %v1511_v34  ;;  %v2169_v30 = vpop.xlane.xlu1 %378  ;;  %v1510_v55 = vld [vmem:[%s2807_s4 + $0x90] sm:$0xff] }
 0x118   : > { %v523_v3 = vmul.f32 0.5, %v522_v32  ;;  %v667_v62 = vmul.f32 %v2110_v61, %v647_v20  ;;  %1615 = vmatpush.msra.mxu3 %v1511_v34  ;;  %1655 = vrsqrt.f32 %v2157_v13  ;;  %1613 = vmatpush.msra.mxu1 %v1511_v34  ;;  %vm607_vm11 = vweird.f32 %v2105_v37 }
 0x119   : > { %v564_v63 = vsub.f32 1.5, %v563_v28  ;;  %v603_v1 = vmul.f32 0.5, %v602_v42  ;;  %v691_v18 = vadd.f32 %v2141_v11, %v671_v25  ;;  %934 = vmatpush.msra.mxu0 %v1511_v34  ;;  %1617 = vmatpush.msra.mxu2 %v1510_v55  ;;  %v449_v25 = vmul.f32 0.0625, %v433_v58  ;;  %vm608_vm15 = vmor %vm606_vm8, %vm607_vm11 }
 0x11a   : > { %v2164_v29 = vpop.eup %1651  ;;  %v524_v8 = vsub.f32 1.5, %v523_v3  ;;  %v687_v9 = vadd.f32 %v2141_v11, %v667_v62  ;;  %1618 = vmatpush.msra.mxu3 %v1510_v55  ;;  %v1509_v3 = vld [vmem:[%s2807_s4 + $0x88] sm:$0xff]  ;;  %1616 = vmatpush.msra.mxu1 %v1510_v55  ;;  %vm616_vm14 = vweird.f32 %v2103_v36  ;;  %vm516_vm0 = vweird.f32 %v2092_v24 }
 0x11b   : > { %v565_v12 = vmul.f32 %v2088_v14, %v564_v63  ;;  %v604_v32 = vsub.f32 1.5, %v603_v1  ;;  %v707_v23 = vmax.f32 %v691_v18, 0.0  ;;  %v511_v42 = vmul.f32 %v2164_v29, %v2092_v24  ;;  %935 = vmatpush.msra.mxu0 %v1510_v55  ;;  %1620 = vmatpush.msra.mxu2 %v1509_v3 }
 0x11c   : > { %v2177_v2 = vpop.eup %1653  ;;  %v525_v20 = vmul.f32 %v2097_v35, %v524_v8  ;;  %v703_v34 = vmax.f32 %v687_v9, 0.0  ;;  %1621 = vmatpush.msra.mxu3 %v1509_v3  ;;  %vm517_vm1 = vweird.f32 %v2164_v29  ;;  %1619 = vmatpush.msra.mxu1 %v1509_v3  ;;  %vm576_vm6 = vweird.f32 %v2157_v13 }
 0x11d   : > { %v569_v62 = vsel %vm2184_vm12, %v2088_v14, %v565_v12  ;;  %v605_v63 = vmul.f32 %v2105_v37, %v604_v32  ;;  %v611_v1 = vmul.f32 %v2177_v2, %v2103_v36  ;;  %v819_v58 = vmul.f32 %v1950_v38, %v707_v23  ;;  %v1508_v14 = vld [vmem:[%s2807_s4 + $0x80] sm:$0xff]  ;;  %936 = vmatpush.msra.mxu0 %v1509_v3  ;;  %v2237_v23 = vpop.xlane.xlu2 %388  ;;  %vm518_vm5 = vmor %vm516_vm0, %vm517_vm1 }
 0x11e   : > { %v529_v39 = vsel %vm2197_vm13, %v2097_v35, %v525_v20  ;;  %v648_v18 = vmul.f32 %v569_v62, %v1839_v43  ;;  %v815_v38 = vmul.f32 %v1948_v16, %v703_v34  ;;  %1623 = vmatpush.msra.mxu2 %v1508_v14  ;;  %v2226_v41 = vpop.eup %1655  ;;  %v512_v12 = vmul.f32 %v2164_v29, %v511_v42 }
 0x11f   : > { %v644_v35 = vmul.f32 %v529_v39, %v1847_v45  ;;  %v609_v43 = vsel %vm608_vm15, %v2105_v37, %v605_v63  ;;  %v612_v8 = vmul.f32 %v2177_v2, %v611_v1  ;;  %852 = vst [vmem:[#allocation2 + $0x5a] sm:$0xff] %v819_v58  ;;  %v2231_v32 = vadd.f32 1e-05, %v449_v25  ;;  %1624 = vmatpush.msra.mxu3 %v1508_v14  ;;  %v2248_v1 = vpop.xlane.xlu1 %396 }
 0x120   : > { %v668_v55 = vmul.f32 %v2110_v61, %v648_v18  ;;  %v652_v9 = vmul.f32 %v609_v43, %v1843_v44  ;;  %848 = vst [vmem:[#allocation2 + $0x3a] sm:$0xff] %v815_v38  ;;  %vm617_vm2 = vweird.f32 %v2177_v2  ;;  %v571_v37 = vmul.f32 %v2226_v41, %v2157_v13  ;;  %1622 = vmatpush.msra.mxu1 %v1508_v14  ;;  %v1538_v13 = vld [vmem:[%s2807_s4 + $0x170] sm:$0xff] }
 0x121   : > { %v664_v45 = vmul.f32 %v2110_v61, %v644_v35  ;;  %v613_v16 = vmul.f32 0.5, %v612_v8  ;;  %937 = vmatpush.msra.mxu0 %v1508_v14  ;;  %v513_v28 = vmul.f32 0.5, %v512_v12  ;;  %1657 = vrsqrt.f32 %v2231_v32  ;;  %vm618_vm4 = vmor %vm616_vm14, %vm617_vm2 }
 0x122   : > { %v688_v44 = vadd.f32 %v2141_v11, %v668_v55  ;;  %v672_v20 = vmul.f32 %v2110_v61, %v652_v9  ;;  %v572_v3 = vmul.f32 %v2226_v41, %v571_v37  ;;  %vm577_vm3 = vweird.f32 %v2226_v41 }
 0x123   : > { %v684_v42 = vadd.f32 %v2141_v11, %v664_v45  ;;  %v614_v25 = vsub.f32 1.5, %v613_v16  ;;  %v514_v62 = vsub.f32 1.5, %v513_v28  ;;  %v432_v63 = vsub.f32 %v2153_v33, %v2034_v6  ;;  %vm578_vm7 = vmor %vm576_vm6, %vm577_vm3 }
 0x124   : > { %v704_v34 = vmax.f32 %v688_v44, 0.0  ;;  %v692_v10 = vadd.f32 %v2141_v11, %v672_v20  ;;  %v573_v18 = vmul.f32 0.5, %v572_v3  ;;  %v437_v14 = vsub.f32 %v2169_v30, %v2059_v59 }
 0x125   : > { %v700_v58 = vmax.f32 %v684_v42, 0.0  ;;  %v615_v39 = vmul.f32 %v2177_v2, %v614_v25  ;;  %v515_v43 = vmul.f32 %v2164_v29, %v514_v62  ;;  %v448_v6 = vmul.f32 0.0625, %v432_v63  ;;  %v381_v28 = vpop.xlane.xlu2 %380  ;;  %v1554_v42 = vld [vmem:[%s2807_s4 + $0x1f0] sm:$0xff] }
 0x126   : > { %v816_v38 = vmul.f32 %v1958_v49, %v704_v34  ;;  %v708_v35 = vmax.f32 %v692_v10, 0.0  ;;  %v574_v59 = vsub.f32 1.5, %v573_v18  ;;  %v453_v49 = vmul.f32 0.0625, %v437_v14  ;;  %v1536_v14 = vld [vmem:[%s2807_s4 + $0x160] sm:$0xff] }
 0x127   : > { %v812_v33 = vmul.f32 %v1954_v47, %v700_v58  ;;  %v619_v8 = vsel %vm618_vm4, %v2177_v2, %v615_v39  ;;  %v2265_v30 = vpop.eup %1657  ;;  %v519_v9 = vsel %vm518_vm5, %v2164_v29, %v515_v43  ;;  %v2270_v12 = vadd.f32 1e-05, %v448_v6  ;;  %v373_v47 = vpop.xlane.xlu0 %372  ;;  %v1539_v2 = vld [vmem:[%s2807_s4 + $0x178] sm:$0xff] }
 0x128   : > { %849 = vst [vmem:[#allocation2 + $0x42] sm:$0xff] %v816_v38  ;;  %v820_v36 = vmul.f32 %v1952_v40, %v708_v35  ;;  %v653_v55 = vmul.f32 %v619_v8, %v1871_v57  ;;  %v643_v24 = vmul.f32 %v519_v9, %v1859_v52  ;;  %v575_v45 = vmul.f32 %v2226_v41, %v574_v59  ;;  %v1555_v57 = vld [vmem:[%s2807_s4 + $0x1f8] sm:$0xff]  ;;  %v399_v18 = vpop.xlane.xlu1 %398 }
 0x129   : > { %845 = vst [vmem:[#allocation2 + $0x22] sm:$0xff] %v812_v33  ;;  %v491_v40 = vmul.f32 %v2265_v30, %v2231_v32  ;;  %1085 = vmatpush.msrb.mxu2 %v1539_v2  ;;  %v415_v29 = vmul.f32 %v1933_v26, %v1933_v26  ;;  %1659 = vrsqrt.f32 %v2270_v12  ;;  %v2289_v52 = vadd.f32 1e-05, %v453_v49  ;;  %1199 = vmatpush.msrb.mxu3 %v1555_v57  ;;  %v888_v59 = vld [vmem:[%s2807_s4 + $0x78] sm:$0xff]  ;;  %v1552_v49 = vld [vmem:[%s2807_s4 + $0x1e0] sm:$0xff] }
 0x12a   : > { %853 = vst [vmem:[#allocation2 + $0x62] sm:$0xff] %v820_v36  ;;  %v673_v16 = vmul.f32 %v2110_v61, %v653_v55  ;;  %v663_v37 = vmul.f32 %v2110_v61, %v643_v24  ;;  %v579_v44 = vsel %vm578_vm7, %v2226_v41, %v575_v45  ;;  %v434_v20 = vsub.f32 %v373_v47, %v2081_v31  ;;  %v1537_v41 = vld [vmem:[%s2807_s4 + $0x168] sm:$0xff]  ;;  %v1535_v36 = vld [vmem:[%s2807_s4 + $0x158] sm:$0xff] }
 0x12b   : > { %v492_v26 = vmul.f32 %v2265_v30, %v491_v40  ;;  %1086 = vmatpush.msrb.mxu2 %v1538_v13  ;;  %v649_v25 = vmul.f32 %v579_v44, %v1867_v56  ;;  %1661 = vrsqrt.f32 %v2289_v52  ;;  %v430_v3 = vmul.f32 112.0, %v2065_v46  ;;  %1200 = vmatpush.msrb.mxu3 %v1554_v42  ;;  %v1553_v56 = vld [vmem:[%s2807_s4 + $0x1e8] sm:$0xff]  ;;  %v1571_v24 = vld [vmem:[%s2807_s4 + $0x278] sm:$0xff]  ;;  %v1534_v42 = vld [vmem:[%s2807_s4 + $0x150] sm:$0xff] }
 0x12c   : > { %v422_v34 = vmul.f32 112.0, %v2075_v54  ;;  %v2309_v31 = vadd.f32 %v2141_v11, %v673_v16  ;;  %v450_v62 = vmul.f32 0.0625, %v434_v20  ;;  %v442_v63 = vsub.f32 %v2237_v23, %v2061_v19  ;;  %987 = vmatpush.msrb.mxu1 %v888_v59  ;;  %v1551_v45 = vld [vmem:[%s2807_s4 + $0x1d8] sm:$0xff]  ;;  %1313 = vmatpush.msrb.mxu0 %v1571_v24  ;;  %v1566_v24 = vld [vmem:[%s2807_s4 + $0x250] sm:$0xff] }
 0x12d   : > { %v493_v10 = vmul.f32 0.5, %v492_v26  ;;  %1087 = vmatpush.msrb.mxu2 %v1537_v41  ;;  %v669_v46 = vmul.f32 %v2110_v61, %v649_v25  ;;  %v446_v54 = vsub.f32 %v2248_v1, %v430_v3  ;;  %v2318_v39 = vmul.f32 112.0, %v415_v29  ;;  %1201 = vmatpush.msrb.mxu3 %v1553_v56  ;;  %v1570_v25 = vld [vmem:[%s2807_s4 + $0x270] sm:$0xff]  ;;  %v886_v41 = vld [vmem:[%s2807_s4 + $0x68] sm:$0xff] }
 0x12e   : > { %v438_v58 = vsub.f32 %v381_v28, %v422_v34  ;;  %v2324_v19 = vadd.f32 %v2141_v11, %v663_v37  ;;  %v2326_v38 = vadd.f32 1e-05, %v450_v62  ;;  %v458_v35 = vmul.f32 0.0625, %v442_v63  ;;  %v887_v37 = vld [vmem:[%s2807_s4 + $0x70] sm:$0xff]  ;;  %1314 = vmatpush.msrb.mxu0 %v1570_v25  ;;  %v1569_v62 = vld [vmem:[%s2807_s4 + $0x268] sm:$0xff] }
 0x12f   : > { %v494_v23 = vsub.f32 1.5, %v493_v10  ;;  %v897_v43 = vld [vmem:[#allocation2 + $0x41] sm:$0xff]  ;;  %1088 = vmatpush.msrb.mxu2 %v1536_v14  ;;  %v2328_v6 = vpop.eup %1659  ;;  %v689_v1 = vadd.f32 %v2141_v11, %v669_v46  ;;  %vm497_vm8 = vweird.f32 %v2265_v30  ;;  %v462_v33 = vmul.f32 0.0625, %v446_v54  ;;  %1202 = vmatpush.msrb.mxu3 %v1552_v49  ;;  %v1550_v3 = vld [vmem:[%s2807_s4 + $0x1d0] sm:$0xff] }
 0x130   : > { %v454_v8 = vmul.f32 0.0625, %v438_v58  ;;  %962 = vmatmul.f32.vlgmr.msra.gmra.mxu2 %v897_v43  ;;  %v709_v55 = vmax.f32 %v2309_v31, 0.0  ;;  %v481_v9 = vmul.f32 %v2328_v6, %v2270_v12  ;;  %1663 = vrsqrt.f32 %v2326_v38  ;;  %988 = vmatpush.msrb.mxu1 %v887_v37  ;;  %v1533_v31 = vld [vmem:[%s2807_s4 + $0x148] sm:$0xff]  ;;  %v885_v58 = vld [vmem:[%s2807_s4 + $0x60] sm:$0xff]  ;;  %v883_v49 = vld [vmem:[%s2807_s4 + $0x50] sm:$0xff] }
 0x131   : > { %v447_v47 = vsub.f32 %v399_v18, %v2318_v39  ;;  %v901_v2 = vld [vmem:[#allocation2 + $0x61] sm:$0xff]  ;;  %v2352_v40 = vpop.eup %1661  ;;  %v705_v57 = vmax.f32 %v689_v1, 0.0  ;;  %v495_v29 = vmul.f32 %v2265_v30, %v494_v23  ;;  %v2355_v16 = vadd.f32 1e-05, %v458_v35  ;;  %1089 = vmatpush.msrb.mxu2 %v1535_v36  ;;  %1203 = vmatpush.msrb.mxu3 %v1551_v45  ;;  %v1547_v36 = vld [vmem:[%s2807_s4 + $0x1b8] sm:$0xff] }
 0x132   : > { %v2357_v13 = vadd.f32 1e-05, %v462_v33  ;;  %974 = vmatmul.f32.vlgmr.msra.gmra.mxu3 %v901_v2  ;;  %v699_v44 = vmax.f32 %v2324_v19, 0.0  ;;  %v482_v26 = vmul.f32 %v2328_v6, %v481_v9  ;;  %v531_v20 = vmul.f32 %v2352_v40, %v2289_v52  ;;  %989 = vmatpush.msrb.mxu1 %v886_v41  ;;  %v1549_v63 = vld [vmem:[%s2807_s4 + $0x1c8] sm:$0xff]  ;;  %v1532_v39 = vld [vmem:[%s2807_s4 + $0x140] sm:$0xff]  ;;  %v1530_v2 = vld [vmem:[%s2807_s4 + $0x130] sm:$0xff] }
 0x133   : > { %v2366_v28 = vadd.f32 1e-05, %v454_v8  ;;  %v2378_v34 = vmul.f32 %v1962_v51, %v705_v57  ;;  %vm496_vm9 = vweird.f32 %v2231_v32  ;;  %1665 = vrsqrt.f32 %v2355_v16  ;;  %1090 = vmatpush.msrb.mxu2 %v1534_v42  ;;  %1204 = vmatpush.msrb.mxu3 %v1550_v3  ;;  %v1568_v18 = vld [vmem:[%s2807_s4 + $0x260] sm:$0xff]  ;;  %v882_v45 = vld [vmem:[%s2807_s4 + $0x48] sm:$0xff] }
 0x134   : > { %vm2390_vm10 = vmor %vm496_vm9, %vm497_vm8  ;;  %v483_v51 = vmul.f32 0.5, %v482_v26  ;;  %vm487_vm11 = vweird.f32 %v2328_v6  ;;  %v532_v32 = vmul.f32 %v2352_v40, %v531_v20  ;;  %1667 = vrsqrt.f32 %v2357_v13  ;;  %1315 = vmatpush.msrb.mxu0 %v1569_v62  ;;  %990 = vmatpush.msrb.mxu1 %v885_v58  ;;  %v1548_v35 = vld [vmem:[%s2807_s4 + $0x1c0] sm:$0xff]  ;;  %v1546_v26 = vld [vmem:[%s2807_s4 + $0x1b0] sm:$0xff] }
 0x135   : > { %850 = vst [vmem:[#allocation2 + $0x4a] sm:$0xff] %v2378_v34  ;;  %1669 = vrsqrt.f32 %v2366_v28  ;;  %v463_v56 = vmul.f32 0.0625, %v447_v47  ;;  %v2406_v46 = vmul.f32 %v1964_v53, %v709_v55  ;;  %v499_v54 = vsel %vm2390_vm10, %v2265_v30, %v495_v29  ;;  %1091 = vmatpush.msrb.mxu2 %v1533_v31  ;;  %1205 = vmatpush.msrb.mxu3 %v1549_v63  ;;  %v1544_v8 = vld [vmem:[%s2807_s4 + $0x1a0] sm:$0xff] }
 0x136   : > { %v2420_v53 = vpop.eup %1663  ;;  %v484_v14 = vsub.f32 1.5, %v483_v51  ;;  %v533_v19 = vmul.f32 0.5, %v532_v32  ;;  %v641_v30 = vmul.f32 %v499_v54, %v1895_v5  ;;  %v2424_v23 = vmul.f32 %v1956_v48, %v699_v44  ;;  %v884_v5 = vld [vmem:[%s2807_s4 + $0x58] sm:$0xff]  ;;  %1316 = vmatpush.msrb.mxu0 %v1568_v18  ;;  %v881_v32 = vld [vmem:[%s2807_s4 + $0x40] sm:$0xff]  ;;  %v1545_v54 = vld [vmem:[%s2807_s4 + $0x1a8] sm:$0xff] }
 0x137   : > { %vm486_vm12 = vweird.f32 %v2270_v12  ;;  %v501_v43 = vmul.f32 %v2420_v53, %v2326_v38  ;;  %v2432_v1 = vadd.f32 1e-05, %v463_v56  ;;  %854 = vst [vmem:[#allocation2 + $0x6a] sm:$0xff] %v2406_v46  ;;  %1092 = vmatpush.msrb.mxu2 %v1532_v39  ;;  %v1531_v48 = vld [vmem:[%s2807_s4 + $0x138] sm:$0xff]  ;;  %vm536_vm14 = vweird.f32 %v2289_v52  ;;  %991 = vmatpush.msrb.mxu1 %v884_v5  ;;  %v1565_v52 = vld [vmem:[%s2807_s4 + $0x248] sm:$0xff] }
 0x138   : > { %v1567_v12 = vld [vmem:[%s2807_s4 + $0x258] sm:$0xff]  ;;  %v485_v33 = vmul.f32 %v2328_v6, %v484_v14  ;;  %vm2447_vm13 = vmor %vm486_vm12, %vm487_vm11  ;;  %v534_v59 = vsub.f32 1.5, %v533_v19  ;;  %vm537_vm15 = vweird.f32 %v2352_v40  ;;  %844 = vst [vmem:[#allocation2 + $0x1a] sm:$0xff] %v2424_v23  ;;  %vm506_vm0 = vweird.f32 %v2326_v38  ;;  %1206 = vmatpush.msrb.mxu3 %v1548_v35  ;;  %v1564_v19 = vld [vmem:[%s2807_s4 + $0x240] sm:$0xff] }
 0x139   : > { %v2460_v55 = vpop.eup %1665  ;;  %v502_v9 = vmul.f32 %v2420_v53, %v501_v43  ;;  %1671 = vrsqrt.f32 %v2432_v1  ;;  %v661_v47 = vmul.f32 %v2110_v61, %v641_v30  ;;  %1093 = vmatpush.msrb.mxu2 %v1531_v48  ;;  %vm507_vm1 = vweird.f32 %v2420_v53  ;;  %1317 = vmatpush.msrb.mxu0 %v1567_v12  ;;  %vm2495_vm3 = vmor %vm536_vm14, %vm537_vm15 }
 0x13a   : > { %v2475_v57 = vpop.eup %1667  ;;  %v489_v29 = vsel %vm2447_vm13, %v2328_v6, %v485_v33  ;;  %v535_v37 = vmul.f32 %v2352_v40, %v534_v59  ;;  %v581_v44 = vmul.f32 %v2460_v55, %v2355_v16  ;;  %vm586_vm2 = vweird.f32 %v2355_v16  ;;  %992 = vmatpush.msrb.mxu1 %v883_v49  ;;  %1207 = vmatpush.msrb.mxu3 %v1547_v36  ;;  %v880_v33 = vld [vmem:[%s2807_s4 + $0x38] sm:$0xff]  ;;  %vm2560_vm10 = vmor %vm506_vm0, %vm507_vm1 }
 0x13b   : > { %v2488_v20 = vpop.eup %1669  ;;  %v640_v42 = vmul.f32 %v489_v29, %v1883_v0  ;;  %v503_v25 = vmul.f32 0.5, %v502_v9  ;;  %vm587_vm4 = vweird.f32 %v2460_v55  ;;  %v621_v3 = vmul.f32 %v2475_v57, %v2357_v13  ;;  %1094 = vmatpush.msrb.mxu2 %v1530_v2  ;;  %v1529_v0 = vld [vmem:[%s2807_s4 + $0x128] sm:$0xff]  ;;  %1318 = vmatpush.msrb.mxu0 %v1566_v24  ;;  %v1527_v9 = vld [vmem:[%s2807_s4 + $0x118] sm:$0xff] }
 0x13c   : > { %vm626_vm5 = vweird.f32 %v2357_v13  ;;  %v539_v41 = vsel %vm2495_vm3, %v2352_v40, %v535_v37  ;;  %v582_v31 = vmul.f32 %v2460_v55, %v581_v44  ;;  %vm627_vm6 = vweird.f32 %v2475_v57  ;;  %v898_v51 = vld [vmem:[#allocation2 + $0x49] sm:$0xff]  ;;  %993 = vmatpush.msrb.mxu1 %v882_v45  ;;  %1208 = vmatpush.msrb.mxu3 %v1546_v26  ;;  %v736_v44 = vpop.permute.xlu0 %735  ;;  %vm2585_vm11 = vmor %vm586_vm2, %vm587_vm4 }
 0x13d   : > { %v541_v10 = vmul.f32 %v2488_v20, %v2366_v28  ;;  %vm546_vm7 = vweird.f32 %v2366_v28  ;;  %v660_v62 = vmul.f32 %v2110_v61, %v640_v42  ;;  %v645_v40 = vmul.f32 %v539_v41, %v1891_v4  ;;  %965 = vmatmul.f32.gmra.mxu2 %v898_v51  ;;  %1319 = vmatpush.msrb.mxu0 %v1565_v52  ;;  %v1528_v4 = vld [vmem:[%s2807_s4 + $0x120] sm:$0xff]  ;;  %v879_v26 = vld [vmem:[%s2807_s4 + $0x30] sm:$0xff]  ;;  %v1543_v42 = vld [vmem:[%s2807_s4 + $0x198] sm:$0xff] }
 0x13e   : > { %v504_v63 = vsub.f32 1.5, %v503_v25  ;;  %v622_v56 = vmul.f32 %v2475_v57, %v621_v3  ;;  %v583_v58 = vmul.f32 0.5, %v582_v31  ;;  %vm547_vm8 = vweird.f32 %v2488_v20  ;;  %v902_v14 = vld [vmem:[#allocation2 + $0x69] sm:$0xff]  ;;  %1095 = vmatpush.msrb.mxu2 %v1529_v0  ;;  %994 = vmatpush.msrb.mxu1 %v881_v32  ;;  %vm2605_vm12 = vmor %vm626_vm5, %vm627_vm6  ;;  %v877_v28 = vld [vmem:[%s2807_s4 + $0x20] sm:$0xff] }
 0x13f   : > { %v542_v39 = vmul.f32 %v2488_v20, %v541_v10  ;;  %v681_v18 = vadd.f32 %v2141_v11, %v661_v47  ;;  %v2535_v30 = vpop.eup %1671  ;;  %v680_v35 = vadd.f32 %v2141_v11, %v660_v62  ;;  %v665_v43 = vmul.f32 %v2110_v61, %v645_v40  ;;  %v893_v12 = vld [vmem:[#allocation2 + $0x21] sm:$0xff]  ;;  %977 = vmatmul.f32.gmra.mxu3 %v902_v14  ;;  %v1563_v47 = vld [vmem:[%s2807_s4 + $0x238] sm:$0xff]  ;;  %v1526_v0 = vld [vmem:[%s2807_s4 + $0x110] sm:$0xff] }
 0x140   : > { %v505_v5 = vmul.f32 %v2420_v53, %v504_v63  ;;  %v623_v48 = vmul.f32 0.5, %v622_v56  ;;  %v584_v59 = vsub.f32 1.5, %v583_v58  ;;  %v631_v36 = vmul.f32 %v2535_v30, %v2432_v1  ;;  %950 = vmatmul.f32.vlgmr.msra.gmra.mxu1 %v893_v12  ;;  %1209 = vmatpush.msrb.mxu3 %v1545_v54  ;;  %v1562_v52 = vld [vmem:[%s2807_s4 + $0x230] sm:$0xff]  ;;  %v878_v32 = vld [vmem:[%s2807_s4 + $0x28] sm:$0xff]  ;;  %vm2622_vm13 = vmor %vm546_vm7, %vm547_vm8 }
 0x141   : > { %v543_v49 = vmul.f32 0.5, %v542_v39  ;;  %vm637_vm9 = vweird.f32 %v2535_v30  ;;  %v696_v2 = vmax.f32 %v680_v35, 0.0  ;;  %v685_v24 = vadd.f32 %v2141_v11, %v665_v43  ;;  %1096 = vmatpush.msrb.mxu2 %v1528_v4  ;;  %1320 = vmatpush.msrb.mxu0 %v1564_v19  ;;  %v1542_v56 = vld [vmem:[%s2807_s4 + $0x190] sm:$0xff]  ;;  %v1541_v14 = vld [vmem:[%s2807_s4 + $0x188] sm:$0xff]  ;;  %v1524_v4 = vld [vmem:[%s2807_s4 + $0x100] sm:$0xff] }
 0x142   : > { %v624_v29 = vsub.f32 1.5, %v623_v48  ;;  %v697_v37 = vmax.f32 %v681_v18, 0.0  ;;  %v585_v6 = vmul.f32 %v2460_v55, %v584_v59  ;;  %v632_v25 = vmul.f32 %v2535_v30, %v631_v36  ;;  %995 = vmatpush.msrb.mxu1 %v880_v33  ;;  %1210 = vmatpush.msrb.mxu3 %v1544_v8  ;;  %v876_v35 = vld [vmem:[%s2807_s4 + $0x18] sm:$0xff]  ;;  %v1540_v12 = vld [vmem:[%s2807_s4 + $0x180] sm:$0xff]  ;;  %v875_v59 = vld [vmem:[%s2807_s4 + $0x10] sm:$0xff] }
 0x143   : > { %v544_v38 = vsub.f32 1.5, %v543_v49  ;;  %v509_v3 = vsel %vm2560_vm10, %v2420_v53, %v505_v5  ;;  %v701_v41 = vmax.f32 %v685_v24, 0.0  ;;  %v2591_v10 = vmul.f32 %v1960_v50, %v696_v2  ;;  %1097 = vmatpush.msrb.mxu2 %v1527_v9  ;;  %1321 = vmatpush.msrb.mxu0 %v1563_v47  ;;  %v801_v5 = vpop.permute.xlu2 %800 }
 0x144   : > { %v625_v53 = vmul.f32 %v2475_v57, %v624_v29  ;;  %v2593_v51 = vmul.f32 %v736_v44, %v697_v37  ;;  %v589_v16 = vsel %vm2585_vm11, %v2460_v55, %v585_v6  ;;  %v633_v40 = vmul.f32 0.5, %v632_v25  ;;  %996 = vmatpush.msrb.mxu1 %v879_v26  ;;  %1211 = vmatpush.msrb.mxu3 %v1543_v42  ;;  %v1525_v55 = vld [vmem:[%s2807_s4 + $0x108] sm:$0xff]  ;;  %v741_v24 = vpop.permute.xlu0 %740  ;;  %v1558_v29 = vld [vmem:[%s2807_s4 + $0x210] sm:$0xff]  ;;  %v873_v25 = vld [vmem:[%s2807_s4] sm:$0xff] }
 0x145   : > { %v545_v50 = vmul.f32 %v2488_v20, %v544_v38  ;;  %v642_v63 = vmul.f32 %v509_v3, %v1919_v22  ;;  %v650_v13 = vmul.f32 %v589_v16, %v1907_v17  ;;  %841 = vst [vmem:[#allocation2 + $0x2] sm:$0xff] %v2591_v10  ;;  %v2631_v58 = vmul.f32 %v1981_v7, %v701_v41  ;;  %v1561_v17 = vld [vmem:[%s2807_s4 + $0x228] sm:$0xff]  ;;  %v1556_v41 = vld [vmem:[%s2807_s4 + $0x200] sm:$0xff] }
 0x146   : > { %v629_v22 = vsel %vm2605_vm12, %v2475_v57, %v625_v53  ;;  %1098 = vmatpush.msrb.mxu2 %v1526_v0  ;;  %1322 = vmatpush.msrb.mxu0 %v1562_v52  ;;  %v634_v39 = vsub.f32 1.5, %v633_v40  ;;  %842 = vst [vmem:[#allocation2 + $0xa] sm:$0xff] %v2593_v51  ;;  %vm636_vm14 = vweird.f32 %v2432_v1  ;;  %v1559_v1 = vld [vmem:[%s2807_s4 + $0x218] sm:$0xff]  ;;  %v874_v37 = vld [vmem:[%s2807_s4 + $0x8] sm:$0xff]  ;;  %v761_v0 = vpop.permute.xlu1 %760 }
 0x147   : > { %v654_v18 = vmul.f32 %v629_v22, %v1915_v21  ;;  %v662_v57 = vmul.f32 %v2110_v61, %v642_v63  ;;  %v549_v7 = vsel %vm2622_vm13, %v2488_v20, %v545_v50  ;;  %997 = vmatpush.msrb.mxu1 %v878_v32  ;;  %v670_v19 = vmul.f32 %v2110_v61, %v650_v13  ;;  %v1560_v20 = vld [vmem:[%s2807_s4 + $0x220] sm:$0xff]  ;;  %vm638_vm15 = vmor %vm636_vm14, %vm637_vm9  ;;  %v1557_v38 = vld [vmem:[%s2807_s4 + $0x208] sm:$0xff] }
 0x148   : > { %v646_v21 = vmul.f32 %v549_v7, %v1931_v15  ;;  %846 = vst [vmem:[#allocation2 + $0x2a] sm:$0xff] %v2631_v58  ;;  %1212 = vmatpush.msrb.mxu3 %v1542_v56  ;;  %1099 = vmatpush.msrb.mxu2 %v1525_v55  ;;  %v635_v43 = vmul.f32 %v2535_v30, %v634_v39 }
 0x149   : > { %v674_v48 = vmul.f32 %v2110_v61, %v654_v18  ;;  %v682_v15 = vadd.f32 %v2141_v11, %v662_v57  ;;  %1323 = vmatpush.msrb.mxu0 %v1561_v17  ;;  %998 = vmatpush.msrb.mxu1 %v877_v28  ;;  %v690_v33 = vadd.f32 %v2141_v11, %v670_v19  ;;  %v1056_v19 = vld [vmem:[#allocation2 + $0x22] sm:$0xff] }
 0x14a   : > { %v666_v8 = vmul.f32 %v2110_v61, %v646_v21  ;;  %1213 = vmatpush.msrb.mxu3 %v1541_v14  ;;  %1100 = vmatpush.msrb.mxu2 %v1524_v4  ;;  %v639_v36 = vsel %vm638_vm15, %v2535_v30, %v635_v43  ;;  %v1169_v14 = vld [vmem:[#allocation2 + $0x1b] sm:$0xff] }
 0x14b   : > { %v694_v49 = vadd.f32 %v2141_v11, %v674_v48  ;;  %v698_v9 = vmax.f32 %v682_v15, 0.0  ;;  %1324 = vmatpush.msrb.mxu0 %v1560_v20  ;;  %999 = vmatpush.msrb.mxu1 %v876_v35  ;;  %v706_v47 = vmax.f32 %v690_v33, 0.0  ;;  %v655_v2 = vmul.f32 %v639_v36, %v1937_v27  ;;  %v806_v53 = vpop.permute.xlu2 %805  ;;  %v861_v20 = vld [vmem:[#allocation2 + $0x20] sm:$0xff] }
 0x14c   : > { %v686_v45 = vadd.f32 %v2141_v11, %v666_v8  ;;  %1214 = vmatpush.msrb.mxu3 %v1540_v12  ;;  %v889_v26 = vld [vmem:[#allocation2 + $0x1] sm:$0xff] }
 0x14d   : > { %v710_v44 = vmax.f32 %v694_v49, 0.0  ;;  %v810_v30 = vmul.f32 %v741_v24, %v698_v9  ;;  %1325 = vmatpush.msrb.mxu0 %v1559_v1  ;;  %1000 = vmatpush.msrb.mxu1 %v875_v59  ;;  %v2688_v42 = vmul.f32 %v1969_v60, %v706_v47  ;;  %v675_v27 = vmul.f32 %v2110_v61, %v655_v2  ;;  %v890_v16 = vld [vmem:[#allocation2 + $0x9] sm:$0xff]  ;;  %v857_v22 = vld [vmem:[#allocation2] sm:$0xff] }
 0x14e   : > { %v702_v6 = vmax.f32 %v686_v45, 0.0  ;;  %938 = vmatmul.f32.vlgmr.msra.gmra.mxu0 %v889_v26  ;;  %v1166_v54 = vld [vmem:[#allocation2 + $0x3] sm:$0xff]  ;;  %v1059_v33 = vld [vmem:[#allocation2 + $0x3a] sm:$0xff] }
 0x14f   : > { %v2697_v3 = vmul.f32 %v801_v5, %v710_v44  ;;  %843 = vst [vmem:[#allocation2 + $0x12] sm:$0xff] %v810_v30  ;;  %v894_v52 = vld [vmem:[#allocation2 + $0x29] sm:$0xff]  ;;  %1326 = vmatpush.msrb.mxu0 %v1558_v29  ;;  %1001 = vmatpush.msrb.mxu1 %v874_v37  ;;  %v695_v60 = vadd.f32 %v2141_v11, %v675_v27  ;;  %v1173_v8 = vld [vmem:[#allocation2 + $0x3b] sm:$0xff] }
 0x150   : > { %851 = vst [vmem:[#allocation2 + $0x52] sm:$0xff] %v2688_v42  ;;  %v2701_v61 = vmul.f32 %v761_v0, %v702_v6  ;;  %953 = vmatmul.f32.gmra.mxu1 %v894_v52  ;;  %v1280_v17 = vld [vmem:[#allocation2 + $0x4] sm:$0xff]  ;;  %v1063_v44 = vld [vmem:[#allocation2 + $0x5a] sm:$0xff] }
 0x151   : > { %855 = vst [vmem:[#allocation2 + $0x72] sm:$0xff] %v2697_v3  ;;  %1327 = vmatpush.msrb.mxu0 %v1557_v38  ;;  %1002 = vmatpush.msrb.mxu1 %v873_v25  ;;  %v711_v31 = vmax.f32 %v695_v60, 0.0  ;;  %v858_v39 = vld [vmem:[#allocation2 + $0x8] sm:$0xff]  ;;  %v865_v36 = vld [vmem:[#allocation2 + $0x40] sm:$0xff] }
 0x152   : > { %847 = vst [vmem:[#allocation2 + $0x32] sm:$0xff] %v2701_v61  ;;  %v1170_v21 = vld [vmem:[#allocation2 + $0x23] sm:$0xff] }
 0x153   : > { %1328 = vmatpush.msrb.mxu0 %v1556_v41  ;;  %v2708_v32 = vmul.f32 %v806_v53, %v711_v31  ;;  %v1284_v35 = vld [vmem:[#allocation2 + $0x24] sm:$0xff]  ;;  %v1291_v27 = vld [vmem:[#allocation2 + $0x5c] sm:$0xff] }
 0x154   : > { %v862_v5 = vld [vmem:[#allocation2 + $0x28] sm:$0xff]  ;;  %v869_v25 = vld [vmem:[#allocation2 + $0x60] sm:$0xff] }
 0x155   : > { %856 = vst [vmem:[#allocation2 + $0x7a] sm:$0xff] %v2708_v32  ;;  %v1060_v59 = vld [vmem:[#allocation2 + $0x42] sm:$0xff] }
 0x156   : > { %941 = vmatmul.f32.gmra.mxu0 %v890_v16  ;;  %v891_v40 = vld [vmem:[#allocation2 + $0x11] sm:$0xff]  ;;  %v892_v13 = vld [vmem:[#allocation2 + $0x19] sm:$0xff]  ;;  %v1174_v49 = vld [vmem:[#allocation2 + $0x43] sm:$0xff] }
 0x157   : > { %v899_v11 = vld [vmem:[#allocation2 + $0x51] sm:$0xff]  ;;  %v900_v56 = vld [vmem:[#allocation2 + $0x59] sm:$0xff]  ;;  %v1288_v9 = vld [vmem:[#allocation2 + $0x44] sm:$0xff] }
 0x158   : > { %968 = vmatmul.f32.gmra.mxu2 %v899_v11  ;;  %v903_v62 = vld [vmem:[#allocation2 + $0x71] sm:$0xff]  ;;  %v866_v2 = vld [vmem:[#allocation2 + $0x48] sm:$0xff] }
 0x159   : > { %980 = vmatmul.f32.gmra.mxu3 %v903_v62  ;;  %v895_v50 = vld [vmem:[#allocation2 + $0x31] sm:$0xff]  ;;  %v896_v55 = vld [vmem:[#allocation2 + $0x39] sm:$0xff]  ;;  %v1064_v6 = vld [vmem:[#allocation2 + $0x62] sm:$0xff] }
 0x15a   : > { %956 = vmatmul.f32.gmra.mxu1 %v895_v50  ;;  %v1167_v28 = vld [vmem:[#allocation2 + $0xb] sm:$0xff]  ;;  %v1168_v57 = vld [vmem:[#allocation2 + $0x13] sm:$0xff]  ;;  %v1178_v38 = vld [vmem:[#allocation2 + $0x63] sm:$0xff] }
 0x15b   : > { %v1281_v18 = vld [vmem:[#allocation2 + $0xc] sm:$0xff]  ;;  %v860_v4 = vld [vmem:[#allocation2 + $0x18] sm:$0xff]  ;;  %v1292_v60 = vld [vmem:[#allocation2 + $0x64] sm:$0xff] }
 0x15c   : > { %v904_v63 = vld [vmem:[#allocation2 + $0x79] sm:$0xff]  ;;  %v859_v7 = vld [vmem:[#allocation2 + $0x10] sm:$0xff]  ;;  %v870_v31 = vld [vmem:[#allocation2 + $0x68] sm:$0xff] }
 0x15d   : > { %v1171_v43 = vld [vmem:[#allocation2 + $0x2b] sm:$0xff]  ;;  %v1172_v48 = vld [vmem:[#allocation2 + $0x33] sm:$0xff] }
 0x15e   : > { %944 = vmatmul.f32.gmra.mxu0 %v891_v40  ;;  %v863_v15 = vld [vmem:[#allocation2 + $0x30] sm:$0xff]  ;;  %v864_v1 = vld [vmem:[#allocation2 + $0x38] sm:$0xff] }
 0x15f   : > { %v1286_v12 = vld [vmem:[#allocation2 + $0x34] sm:$0xff]  ;;  %v1175_v47 = vld [vmem:[#allocation2 + $0x4b] sm:$0xff] }
 0x160   : > { %971 = vmatmul.f32.gmra.mxu2 %v900_v56  ;;  %v1289_v24 = vld [vmem:[#allocation2 + $0x4c] sm:$0xff]  ;;  %v1290_v37 = vld [vmem:[#allocation2 + $0x54] sm:$0xff] }
 0x161   : > { %983 = vmatmul.f32.gmra.mxu3 %v904_v63  ;;  %v1176_v45 = vld [vmem:[#allocation2 + $0x53] sm:$0xff]  ;;  %v1179_v41 = vld [vmem:[#allocation2 + $0x6b] sm:$0xff] }
 0x162   : > { %959 = vmatmul.f32.gmra.mxu1 %v896_v55  ;;  %v867_v29 = vld [vmem:[#allocation2 + $0x50] sm:$0xff]  ;;  %v868_v26 = vld [vmem:[#allocation2 + $0x58] sm:$0xff] }
 0x163   : > { %v1293_v62 = vld [vmem:[#allocation2 + $0x6c] sm:$0xff] }
 0x164   : > { %v1180_v40 = vld [vmem:[#allocation2 + $0x73] sm:$0xff] }
 0x165   : > { %v871_v63 = vld [vmem:[#allocation2 + $0x70] sm:$0xff] }
 0x166   : > { %947 = vmatmul.f32.gmra.mxu0 %v892_v13  ;;  %v1294_v13 = vld [vmem:[#allocation2 + $0x74] sm:$0xff] }
 0x168   : > { %1101 = vmatmul.f32.vlgmr.msrb.gmra.mxu2 %v2591_v10  ;;  %v1282_v10 = vld [vmem:[#allocation2 + $0x14] sm:$0xff] }
 0x169   : > { %1215 = vmatmul.f32.vlgmr.msrb.gmra.mxu3 %v1166_v54 }
 0x16a   : > { %1003 = vmatmul.f32.vlgmr.msrb.gmra.mxu1 %v857_v22  ;;  %v1181_v22 = vld [vmem:[#allocation2 + $0x7b] sm:$0xff] }
 0x16e   : > { %1329 = vmatmul.f32.vlgmr.msrb.gmra.mxu0 %v1280_v17  ;;  %v872_v17 = vld [vmem:[#allocation2 + $0x78] sm:$0xff] }
 0x170   : > { %1104 = vmatmul.f32.gmra.mxu2 %v2593_v51  ;;  %v1283_v51 = vld [vmem:[#allocation2 + $0x1c] sm:$0xff] }
 0x171   : > { %1218 = vmatmul.f32.gmra.mxu3 %v1167_v28 }
 0x172   : > { %1006 = vmatmul.f32.gmra.mxu1 %v858_v39 }
 0x176   : > { %1332 = vmatmul.f32.gmra.mxu0 %v1281_v18  ;;  %v1295_v18 = vld [vmem:[#allocation2 + $0x7c] sm:$0xff] }
 0x178   : > { %1107 = vmatmul.f32.gmra.mxu2 %v810_v30  ;;  %v1177_v30 = vld [vmem:[#allocation2 + $0x5b] sm:$0xff] }
 0x179   : > { %1221 = vmatmul.f32.gmra.mxu3 %v1168_v57 }
 0x17a   : > { %1009 = vmatmul.f32.gmra.mxu1 %v859_v7 }
 0x17e   : > { %1335 = vmatmul.f32.gmra.mxu0 %v1282_v10 }
 0x180   : > { %1110 = vmatmul.f32.gmra.mxu2 %v2424_v23  ;;  %v1285_v23 = vld [vmem:[#allocation2 + $0x2c] sm:$0xff] }
 0x181   : > { %1224 = vmatmul.f32.gmra.mxu3 %v1169_v14 }
 0x182   : > { %1012 = vmatmul.f32.gmra.mxu1 %v860_v4 }
 0x186   : > { %1338 = vmatmul.f32.gmra.mxu0 %v1283_v51 }
 0x188   : > { %1113 = vmatmul.f32.gmra.mxu2 %v1056_v19 }
 0x189   : > { %1227 = vmatmul.f32.gmra.mxu3 %v1170_v21 }
 0x18a   : > { %1015 = vmatmul.f32.gmra.mxu1 %v861_v20 }
 0x18e   : > { %1341 = vmatmul.f32.gmra.mxu0 %v1284_v35 }
 0x190   : > { %1116 = vmatmul.f32.gmra.mxu2 %v2631_v58  ;;  %v1287_v58 = vld [vmem:[#allocation2 + $0x3c] sm:$0xff] }
 0x191   : > { %1230 = vmatmul.f32.gmra.mxu3 %v1171_v43 }
 0x192   : > { %1018 = vmatmul.f32.gmra.mxu1 %v862_v5 }
 0x196   : > { %1344 = vmatmul.f32.gmra.mxu0 %v1285_v23 }
 0x198   : > { %1119 = vmatmul.f32.gmra.mxu2 %v2701_v61 }
 0x199   : > { %1233 = vmatmul.f32.gmra.mxu3 %v1172_v48 }
 0x19a   : > { %1021 = vmatmul.f32.gmra.mxu1 %v863_v15 }
 0x19e   : > { %1347 = vmatmul.f32.gmra.mxu0 %v1286_v12 }
 0x1a0   : > { %1122 = vmatmul.f32.gmra.mxu2 %v1059_v33 }
 0x1a1   : > { %1236 = vmatmul.f32.gmra.mxu3 %v1173_v8 }
 0x1a2   : > { %1024 = vmatmul.f32.gmra.mxu1 %v864_v1 }
 0x1a6   : > { %1350 = vmatmul.f32.gmra.mxu0 %v1287_v58 }
 0x1a8   : > { %1125 = vmatmul.f32.gmra.mxu2 %v1060_v59 }
 0x1a9   : > { %1239 = vmatmul.f32.gmra.mxu3 %v1174_v49 }
 0x1aa   : > { %1027 = vmatmul.f32.gmra.mxu1 %v865_v36 }
 0x1ae   : > { %1353 = vmatmul.f32.gmra.mxu0 %v1288_v9 }
 0x1b0   : > { %1128 = vmatmul.f32.gmra.mxu2 %v2378_v34 }
 0x1b1   : > { %1242 = vmatmul.f32.gmra.mxu3 %v1175_v47 }
 0x1b2   : > { %1030 = vmatmul.f32.gmra.mxu1 %v866_v2 }
 0x1b5   : > { %v2722_v0 = vpop.f32.mrf.mxu3 }
 0x1b6   : > { %1356 = vmatmul.f32.gmra.mxu0 %v1289_v24 }
 0x1b8   : > { %1131 = vmatmul.f32.gmra.mxu2 %v2688_v42  ;;  %v2720_v42 = vpop.f32.mrf.mxu2 }
 0x1b9   : > { %1245 = vmatmul.f32.gmra.mxu3 %v1176_v45 }
 0x1ba   : > { %1033 = vmatmul.f32.gmra.mxu1 %v867_v29 }
 0x1bd   : > { %v2718_v34 = vpop.f32.mrf.mxu1 }
 0x1be   : > { %1359 = vmatmul.f32.gmra.mxu0 %v1290_v37 }
 0x1c0   : > { %1134 = vmatmul.f32.gmra.mxu2 %v1063_v44  ;;  %v2727_v53 = vpop.f32.mrf.mxu2 }
 0x1c1   : > { %1248 = vmatmul.f32.gmra.mxu3 %v1177_v30 }
 0x1c2   : > { %1036 = vmatmul.f32.gmra.mxu1 %v868_v26  ;;  %v2729_v11 = vpop.f32.mrf.mxu3 }
 0x1c6   : > { %1362 = vmatmul.f32.gmra.mxu0 %v1291_v27 }
 0x1c8   : > { %1137 = vmatmul.f32.gmra.mxu2 %v1064_v6 }
 0x1c9   : > { %1251 = vmatmul.f32.gmra.mxu3 %v1178_v38 }
 0x1ca   : > { %1039 = vmatmul.f32.gmra.mxu1 %v869_v25 }
 0x1cb   : > { %v939_v52 = vpop.f32.mrf.mxu0 }
 0x1cd   : > { %v2724_v61 = vpop.f32.mrf.mxu1 }
 0x1ce   : > { %1365 = vmatmul.f32.gmra.mxu0 %v1292_v60 }
 0x1d0   : > { %1140 = vmatmul.f32.gmra.mxu2 %v2406_v46 }
 0x1d1   : > { %1254 = vmatmul.f32.gmra.mxu3 %v1179_v41 }
 0x1d2   : > { %1042 = vmatmul.f32.gmra.mxu1 %v870_v31 }
 0x1d3   : > { %v942_v16 = vpop.f32.mrf.mxu0 }
 0x1d6   : > { %1368 = vmatmul.f32.gmra.mxu0 %v1293_v62 }
 0x1d7   : > { %v2731_v50 = vpop.f32.mrf.mxu1 }
 0x1d8   : > { %1143 = vmatmul.f32.gmra.mxu2 %v2697_v3 }
 0x1d9   : > { %1257 = vmatmul.f32.gmra.mxu3 %v1180_v40 }
 0x1da   : > { %1045 = vmatmul.f32.gmra.mxu1 %v871_v63 }
 0x1db   : > { %v2734_v46 = vpop.f32.mrf.mxu2  ;;  %v945_v56 = vpop.f32.mrf.mxu0 }
 0x1dc   : > { %v2736_v55 = vpop.f32.mrf.mxu3 }
 0x1de   : > { %1371 = vmatmul.f32.gmra.mxu0 %v1294_v13 }
 0x1df   : > { %v2738_v54 = vpop.f32.mrf.mxu1 }
 0x1e0   : > { %1146 = vmatmul.f32.gmra.mxu2 %v2708_v32  ;;  %v2748_v32 = vld [vmem:[%s2808_s5] ss:$0 sm:$0xff] }
 0x1e1   : > { %1260 = vmatmul.f32.gmra.mxu3 %v1181_v22 }
 0x1e2   : > { %1048 = vmatmul.f32.gmra.mxu1 %v872_v17 }
 0x1e3   : > { %v2741_v3 = vpop.f32.mrf.mxu2  ;;  %v948_v28 = vpop.f32.mrf.mxu0 }
 0x1e4   : > { %v2743_v39 = vpop.f32.mrf.mxu3 }
 0x1e6   : > { %1374 = vmatmul.f32.gmra.mxu0 %v1295_v18 }
 0x1e7   : > { %v1004_v57 = vpop.f32.mrf.mxu1 }
 0x1e8   : > { %v1005_v7 = vadd.f32 %v1004_v57, %v939_v52 }
 0x1eb   : > { %v1102_v10 = vpop.f32.mrf.mxu2  ;;  %v1330_v14 = vpop.f32.mrf.mxu0 }
 0x1ec   : > { %v1216_v4 = vpop.f32.mrf.mxu3  ;;  %v1150_v51 = vadd.f32 %v1102_v10, %v1005_v7 }
 0x1ee   : > { %v1264_v19 = vadd.f32 %v1216_v4, %v1150_v51 }
 0x1ef   : > { %v1007_v21 = vpop.f32.mrf.mxu1 }
 0x1f0   : > { %v1378_v20 = vadd.f32 %v1330_v14, %v1264_v19  ;;  %v1008_v35 = vadd.f32 %v1007_v21, %v942_v16 }
 0x1f2   : > { %v1398_v43 = vadd.f32 %v2748_v32, %v1378_v20 }
 0x1f3   : > { %v1105_v5 = vpop.f32.mrf.mxu2  ;;  %v1333_v23 = vpop.f32.mrf.mxu0 }
 0x1f4   : > { %1414 = vst [vmem:[%s2754_s20] sm:$0xff] %v1398_v43  ;;  %v1219_v48 = vpop.f32.mrf.mxu3  ;;  %v1151_v15 = vadd.f32 %v1105_v5, %v1008_v35 }
 0x1f6   : > { %v1265_v12 = vadd.f32 %v1219_v48, %v1151_v15 }
 0x1f7   : > { %v1010_v33 = vpop.f32.mrf.mxu1 }
 0x1f8   : > { %v1379_v8 = vadd.f32 %v1333_v23, %v1265_v12  ;;  %v1011_v1 = vadd.f32 %v1010_v33, %v945_v56 }
 0x1fa   : > { %v1399_v58 = vadd.f32 %v2748_v32, %v1379_v8 }
 0x1fb   : > { %v1108_v59 = vpop.f32.mrf.mxu2  ;;  %v1336_v49 = vpop.f32.mrf.mxu0 }
 0x1fc   : > { %1415 = vst [vmem:[%s2754_s20 + $0x8] sm:$0xff] %v1399_v58  ;;  %v1222_v36 = vpop.f32.mrf.mxu3  ;;  %v1152_v9 = vadd.f32 %v1108_v59, %v1011_v1 }
 0x1fe   : > { %v1266_v47 = vadd.f32 %v1222_v36, %v1152_v9 }
 0x1ff   : > { %v1013_v2 = vpop.f32.mrf.mxu1 }
 0x200   : > { %v1380_v24 = vadd.f32 %v1336_v49, %v1266_v47  ;;  %v1014_v45 = vadd.f32 %v1013_v2, %v948_v28 }
 0x202   : > { %v1400_v29 = vadd.f32 %v2748_v32, %v1380_v24 }
 0x203   : > { %v1111_v37 = vpop.f32.mrf.mxu2  ;;  %v1339_v44 = vpop.f32.mrf.mxu0 }
 0x204   : > { %1416 = vst [vmem:[%s2754_s20 + $0x10] sm:$0xff] %v1400_v29  ;;  %v1225_v30 = vpop.f32.mrf.mxu3  ;;  %v1153_v26 = vadd.f32 %v1111_v37, %v1014_v45 }
 0x206   : > { %v1267_v27 = vadd.f32 %v1225_v30, %v1153_v26 }
 0x207   : > { %v1016_v6 = vpop.f32.mrf.mxu1 }
 0x208   : > { %v1381_v38 = vadd.f32 %v1339_v44, %v1267_v27  ;;  %v1017_v25 = vadd.f32 %v1016_v6, %v2718_v34 }
 0x20a   : > { %v1401_v52 = vadd.f32 %v2748_v32, %v1381_v38 }
 0x20b   : > { %v1114_v60 = vpop.f32.mrf.mxu2  ;;  %v1342_v41 = vpop.f32.mrf.mxu0 }
 0x20c   : > { %1417 = vst [vmem:[%s2754_s20 + $0x18] sm:$0xff] %v1401_v52  ;;  %v1228_v31 = vpop.f32.mrf.mxu3  ;;  %v1154_v16 = vadd.f32 %v1114_v60, %v1017_v25 }
 0x20e   : > { %v1268_v62 = vadd.f32 %v1228_v31, %v1154_v16 }
 0x20f   : > { %v1019_v40 = vpop.f32.mrf.mxu1 }
 0x210   : > { %v1382_v63 = vadd.f32 %v1342_v41, %v1268_v62  ;;  %v1020_v56 = vadd.f32 %v1019_v40, %v2724_v61 }
 0x212   : > { %v1402_v13 = vadd.f32 %v2748_v32, %v1382_v63 }
 0x213   : > { %v1117_v22 = vpop.f32.mrf.mxu2  ;;  %v1345_v17 = vpop.f32.mrf.mxu0 }
 0x214   : > { %1418 = vst [vmem:[%s2754_s20 + $0x20] sm:$0xff] %v1402_v13  ;;  %v1231_v28 = vpop.f32.mrf.mxu3  ;;  %v1155_v34 = vadd.f32 %v1117_v22, %v1020_v56 }
 0x216   : > { %v1269_v18 = vadd.f32 %v1231_v28, %v1155_v34 }
 0x217   : > { %v1022_v57 = vpop.f32.mrf.mxu1 }
 0x218   : > { %v1383_v7 = vadd.f32 %v1345_v17, %v1269_v18  ;;  %v1023_v10 = vadd.f32 %v1022_v57, %v2731_v50 }
 0x21a   : > { %v1403_v14 = vadd.f32 %v2748_v32, %v1383_v7 }
 0x21b   : > { %v1120_v4 = vpop.f32.mrf.mxu2  ;;  %v1348_v51 = vpop.f32.mrf.mxu0 }
 0x21c   : > { %1419 = vst [vmem:[%s2754_s20 + $0x28] sm:$0xff] %v1403_v14  ;;  %v1234_v19 = vpop.f32.mrf.mxu3  ;;  %v1156_v61 = vadd.f32 %v1120_v4, %v1023_v10 }
 0x21e   : > { %v1270_v21 = vadd.f32 %v1234_v19, %v1156_v61 }
 0x21f   : > { %v1025_v20 = vpop.f32.mrf.mxu1 }
 0x220   : > { %v1384_v35 = vadd.f32 %v1348_v51, %v1270_v21  ;;  %v1026_v43 = vadd.f32 %v1025_v20, %v2738_v54 }
 0x222   : > { %v1404_v5 = vadd.f32 %v2748_v32, %v1384_v35 }
 0x223   : > { %v1123_v23 = vpop.f32.mrf.mxu2  ;;  %v1351_v48 = vpop.f32.mrf.mxu0 }
 0x224   : > { %1420 = vst [vmem:[%s2754_s20 + $0x30] sm:$0xff] %v1404_v5  ;;  %v1237_v15 = vpop.f32.mrf.mxu3  ;;  %v1157_v50 = vadd.f32 %v1123_v23, %v1026_v43 }
 0x226   : > { %v1271_v12 = vadd.f32 %v1237_v15, %v1157_v50 }
 0x227   : > { %v1028_v33 = vpop.f32.mrf.mxu1 }
 0x228   : > { %v1385_v8 = vadd.f32 %v1351_v48, %v1271_v12  ;;  %v1029_v1 = vadd.f32 %v1028_v33, %v2720_v42 }
 0x22a   : > { %v1405_v58 = vadd.f32 %v2748_v32, %v1385_v8 }
 0x22b   : > { %v1126_v59 = vpop.f32.mrf.mxu2  ;;  %v1354_v49 = vpop.f32.mrf.mxu0 }
 0x22c   : > { %1421 = vst [vmem:[%s2754_s20 + $0x38] sm:$0xff] %v1405_v58  ;;  %v1240_v36 = vpop.f32.mrf.mxu3  ;;  %v1158_v54 = vadd.f32 %v1126_v59, %v1029_v1 }
 0x22e   : > { %v1272_v9 = vadd.f32 %v1240_v36, %v1158_v54 }
 0x22f   : > { %v1031_v47 = vpop.f32.mrf.mxu1 }
 0x230   : > { %v1386_v2 = vadd.f32 %v1354_v49, %v1272_v9  ;;  %v1032_v24 = vadd.f32 %v1031_v47, %v2727_v53 }
 0x232   : > { %v1406_v45 = vadd.f32 %v2748_v32, %v1386_v2 }
 0x233   : > { %v1129_v29 = vpop.f32.mrf.mxu2  ;;  %v1357_v37 = vpop.f32.mrf.mxu0 }
 0x234   : > { %1422 = vst [vmem:[%s2754_s20 + $0x40] sm:$0xff] %v1406_v45  ;;  %v1243_v44 = vpop.f32.mrf.mxu3  ;;  %v1159_v42 = vadd.f32 %v1129_v29, %v1032_v24 }
 0x236   : > { %v1273_v30 = vadd.f32 %v1243_v44, %v1159_v42 }
 0x237   : > { %v1034_v26 = vpop.f32.mrf.mxu1 }
 0x238   : > { %v1387_v27 = vadd.f32 %v1357_v37, %v1273_v30  ;;  %v1035_v6 = vadd.f32 %v1034_v26, %v2734_v46 }
 0x23a   : > { %v1407_v38 = vadd.f32 %v2748_v32, %v1387_v27 }
 0x23b   : > { %v1132_v25 = vpop.f32.mrf.mxu2  ;;  %v1360_v52 = vpop.f32.mrf.mxu0 }
 0x23c   : > { %1423 = vst [vmem:[%s2754_s20 + $0x48] sm:$0xff] %v1407_v38  ;;  %v1246_v60 = vpop.f32.mrf.mxu3  ;;  %v1160_v53 = vadd.f32 %v1132_v25, %v1035_v6 }
 0x23e   : > { %v1274_v41 = vadd.f32 %v1246_v60, %v1160_v53 }
 0x23f   : > { %v1037_v31 = vpop.f32.mrf.mxu1 }
 0x240   : > { %v1388_v16 = vadd.f32 %v1360_v52, %v1274_v41  ;;  %v1038_v62 = vadd.f32 %v1037_v31, %v2741_v3 }
 0x242   : > { %v1408_v40 = vadd.f32 %v2748_v32, %v1388_v16 }
 0x243   : > { %v1135_v63 = vpop.f32.mrf.mxu2  ;;  %v1363_v56 = vpop.f32.mrf.mxu0 }
 0x244   : > { %1424 = vst [vmem:[%s2754_s20 + $0x50] sm:$0xff] %v1408_v40  ;;  %v1249_v13 = vpop.f32.mrf.mxu3  ;;  %v1161_v46 = vadd.f32 %v1135_v63, %v1038_v62 }
 0x246   : > { %v1275_v22 = vadd.f32 %v1249_v13, %v1161_v46 }
 0x247   : > { %v1040_v17 = vpop.f32.mrf.mxu1 }
 0x248   : > { %v1389_v28 = vadd.f32 %v1363_v56, %v1275_v22  ;;  %v1041_v34 = vadd.f32 %v1040_v17, %v2722_v0 }
 0x24a   : > { %v1409_v18 = vadd.f32 %v2748_v32, %v1389_v28 }
 0x24b   : > { %v1138_v57 = vpop.f32.mrf.mxu2  ;;  %v1366_v7 = vpop.f32.mrf.mxu0 }
 0x24c   : > { %1425 = vst [vmem:[%s2754_s20 + $0x58] sm:$0xff] %v1409_v18  ;;  %v1252_v10 = vpop.f32.mrf.mxu3  ;;  %v1162_v3 = vadd.f32 %v1138_v57, %v1041_v34 }
 0x24e   : > { %v1276_v14 = vadd.f32 %v1252_v10, %v1162_v3 }
 0x24f   : > { %v1043_v4 = vpop.f32.mrf.mxu1 }
 0x250   : > { %v1390_v51 = vadd.f32 %v1366_v7, %v1276_v14  ;;  %v1044_v19 = vadd.f32 %v1043_v4, %v2729_v11 }
 0x252   : > { %v1410_v61 = vadd.f32 %v2748_v32, %v1390_v51 }
 0x253   : > { %v1141_v21 = vpop.f32.mrf.mxu2  ;;  %v1369_v20 = vpop.f32.mrf.mxu0 }
 0x254   : > { %1426 = vst [vmem:[%s2754_s20 + $0x60] sm:$0xff] %v1410_v61  ;;  %v1255_v35 = vpop.f32.mrf.mxu3  ;;  %v1163_v0 = vadd.f32 %v1141_v21, %v1044_v19 }
 0x256   : > { %v1277_v43 = vadd.f32 %v1255_v35, %v1163_v0 }
 0x257   : > { %v1046_v5 = vpop.f32.mrf.mxu1 }
 0x258   : > { %v1391_v23 = vadd.f32 %v1369_v20, %v1277_v43  ;;  %v1047_v48 = vadd.f32 %v1046_v5, %v2736_v55 }
 0x25a   : > { %v1411_v15 = vadd.f32 %v2748_v32, %v1391_v23 }
 0x25b   : > { %v1144_v50 = vpop.f32.mrf.mxu2  ;;  %v1372_v33 = vpop.f32.mrf.mxu0 }
 0x25c   : > { %1427 = vst [vmem:[%s2754_s20 + $0x68] sm:$0xff] %v1411_v15  ;;  %v1258_v12 = vpop.f32.mrf.mxu3  ;;  %v1164_v11 = vadd.f32 %v1144_v50, %v1047_v48 }
 0x25e   : > { %v1278_v8 = vadd.f32 %v1258_v12, %v1164_v11 }
 0x25f   : > { %v1049_v1 = vpop.f32.mrf.mxu1 }
 0x260   : > { %v1392_v58 = vadd.f32 %v1372_v33, %v1278_v8  ;;  %v1050_v59 = vadd.f32 %v1049_v1, %v2743_v39 }
 0x262   : > { %v1412_v49 = vadd.f32 %v2748_v32, %v1392_v58 }
 0x263   : > { %v1147_v36 = vpop.f32.mrf.mxu2  ;;  %v1375_v47 = vpop.f32.mrf.mxu0 }
 0x264   : > { %1428 = vst [vmem:[%s2754_s20 + $0x70] sm:$0xff] %v1412_v49  ;;  %v1165_v54 = vadd.f32 %v1147_v36, %v1050_v59  ;;  %v1261_v9 = vpop.f32.mrf.mxu3 }
 0x266   : > { %v1279_v55 = vadd.f32 %v1261_v9, %v1165_v54 }
 0x268   : > { %v1393_v2 = vadd.f32 %v1375_v47, %v1279_v55 }
 0x26a   : > { %v1413_v24 = vadd.f32 %v2748_v32, %v1393_v2 }
 0x26c   : > { %1429 = vst [vmem:[%s2754_s20 + $0x78] sm:$0xff] %v1413_v24 }
 0x26d PF: > { %s16_s21 = sadd.s32 1, %s1679_s21  }
 0x26e   : > { %p13_p4 = scmp.ge.s32.totalorder %s16_s21, 4  }
 0x270   :  { %15 = sbr.rel (!%p13_p4) target bundleno = 1 (0x1), region = 81 }

// kernel: bytenet_structure_model.12
= control target key start
LH: loop header
LB: loop body
LE: loop exit
PB: predicated region body
PF: predicated region fallthrough
CT: control target
= control target key end

     0   :  { %s1081_s21 = smov 0   ;;  %s1780_s0 = inlined_call_operand.vmem [shape: f32[256,128], index: 0, kind: input, shape index: {}]   ;;  %s1781_s1 = inlined_call_operand.vmem [shape: f32[256,128], index: 1, kind: input, shape index: {}, may-alias: {1,6}]   ;;  %s1782_s2 = inlined_call_operand.vmem [shape: f32[1,128], index: 2, kind: input, shape index: {}]   ;;  %s1783_s3 = inlined_call_operand.vmem [shape: f32[1,128], index: 3, kind: input, shape index: {}]   ;;  %s1784_s4 = inlined_call_operand.vmem [shape: f32[128,128], index: 4, kind: input, shape index: {}]   ;;  %s1785_s5 = inlined_call_operand.vmem [shape: f32[1,128], index: 5, kind: input, shape index: {}]   ;;  %s1786_s6 = inlined_call_operand.vmem [shape: f32[256,128], index: 6, kind: output, shape index: {}, may-alias: {1,6}]  }
   0x1 LB: > { %s934_s22 = sadd.s32 4294967295, %s1044_s21   ;;  %p938_p0 = scmp.ge.s32.totalorder %s1044_s21, 1  ;;  %s1044_s21 = sphi %s1081_s21, %s16_s21  }
   0x2   : > { %p224_p1 = scmp.lt.s32.totalorder %s1044_s21, 3 }
   0x4   : > { %p225_p2 = pnand %p938_p0, %p224_p1 }
   0x5   : > { %s939_s23 = sshll.u32 (!%p225_p2), %s934_s22, 4 }
   0x6   : > { %228 = sbr.rel (%p225_p2) target bundleno = 474 (0x1da), region = 44  ;;  %p260_p3 = scmp.lt.s32.totalorder (!%p225_p2), %s939_s23, 31 }
   0xb   : > { %s1815_s23 = smov (!%p260_p3, %s939_s23), 31 }
   0xc   : > { %s1089_s24 = sshll.u32 %s1815_s23, 3 }
   0xd   : > { %s1095_s27 = scalar_lea.vmem %s1780_s0, %s1089_s24  ;;  %s269_s20 = scalar_lea.vmem %s1781_s1, %s1089_s24 }
   0xe   : > { %v286_v0 = vld [vmem:[%s1095_s27 + $0x48] sm:$0xff]  ;;  %v285_v1 = vld [vmem:[%s1095_s27 + $0x40] sm:$0xff]  ;;  %v287_v6 = vld [vmem:[%s1095_s27 + $0x50] sm:$0xff] }
   0xf   : > { %v277_v2 = vld [vmem:[%s1095_s27] sm:$0xff]  ;;  %311 = vadd.xlane.f32.xlu2 %v286_v0  ;;  %309 = vadd.xlane.f32.xlu0 %v285_v1  ;;  %v290_v3 = vld [vmem:[%s1095_s27 + $0x68] sm:$0xff]  ;;  %v283_v9 = vld [vmem:[%s1095_s27 + $0x30] sm:$0xff] }
  0x10   : > { %293 = vadd.xlane.f32.xlu1 %v277_v2  ;;  %v289_v4 = vld [vmem:[%s1095_s27 + $0x60] sm:$0xff]  ;;  %v278_v7 = vld [vmem:[%s1095_s27 + $0x8] sm:$0xff]  ;;  %v291_v10 = vld [vmem:[%s1095_s27 + $0x70] sm:$0xff] }
  0x11   : > { %v281_v5 = vld [vmem:[%s1095_s27 + $0x20] sm:$0xff]  ;;  %v282_v8 = vld [vmem:[%s1095_s27 + $0x28] sm:$0xff]  ;;  %v1109_v11 = vld [vmem:[%s1095_s27 + $0x10] sm:$0xff] }
  0x12   : > { %v1113_v12 = vld [vmem:[%s1095_s27 + $0x18] sm:$0xff] }
  0x13   : > { %v1116_v13 = vld [vmem:[%s1095_s27 + $0x58] sm:$0xff] }
  0x14   : > { %v1119_v14 = vld [vmem:[%s1095_s27 + $0x78] sm:$0xff] }
  0x15   : > { %v1125_v15 = vld [vmem:[%s1095_s27 + $0x38] sm:$0xff]  ;;  %s1743_s27 = scalar_lea.vmem %s1786_s6, %s1089_s24 }
  0x17   : > { %319 = vadd.xlane.f32.xlu2 %v290_v3  ;;  %317 = vadd.xlane.f32.xlu0 %v289_v4 }
  0x18   : > { %301 = vadd.xlane.f32.xlu1 %v281_v5 }
  0x1f   : > { %313 = vadd.xlane.f32.xlu2 %v287_v6  ;;  %295 = vadd.xlane.f32.xlu0 %v278_v7 }
  0x20   : > { %303 = vadd.xlane.f32.xlu1 %v282_v8 }
  0x27   : > { %305 = vadd.xlane.f32.xlu2 %v283_v9  ;;  %321 = vadd.xlane.f32.xlu0 %v291_v10 }
  0x28   : > { %297 = vadd.xlane.f32.xlu1 %v1109_v11 }
  0x2f   : > { %299 = vadd.xlane.f32.xlu2 %v1113_v12  ;;  %315 = vadd.xlane.f32.xlu0 %v1116_v13 }
  0x30   : > { %323 = vadd.xlane.f32.xlu1 %v1119_v14 }
  0x37   : > { %307 = vadd.xlane.f32.xlu0 %v1125_v15 }
  0x82   : > { %v312_v16 = vpop.xlane.xlu2 %311  ;;  %v310_v17 = vpop.xlane.xlu0 %309 }
  0x83   : > { %v1128_v18 = vmul.f32 0.0625, %v310_v17  ;;  %v294_v19 = vpop.xlane.xlu1 %293  ;;  %v1157_v34 = vmul.f32 0.0625, %v312_v16 }
  0x84   : > { %v1130_v20 = vmul.f32 0.0625, %v294_v19  ;;  %v731_v19 = vld [vmem:[%s1784_s4 + $0x70] sm:$0xff] }
  0x85   : > { %v1133_v21 = vsub.f32 %v285_v1, %v1128_v18  ;;  %v1166_v40 = vsub.f32 %v286_v0, %v1157_v34 }
  0x86   : > { %v1136_v22 = vsub.f32 %v277_v2, %v1130_v20 }
  0x87   : > { %v365_v23 = vmul.f32 %v1133_v21, %v1133_v21  ;;  %v366_v47 = vmul.f32 %v1166_v40, %v1166_v40 }
  0x88   : > { %v357_v24 = vmul.f32 %v1136_v22, %v1136_v22 }
  0x89   : > { %389 = vadd.xlane.f32.xlu1 %v365_v23  ;;  %v729_v23 = vld [vmem:[%s1784_s4 + $0x60] sm:$0xff] }
  0x8a   : > { %373 = vadd.xlane.f32.xlu0 %v357_v24  ;;  %v320_v25 = vpop.xlane.xlu2 %319  ;;  %v318_v26 = vpop.xlane.xlu0 %317  ;;  %v728_v24 = vld [vmem:[%s1784_s4 + $0x58] sm:$0xff] }
  0x8b   : > { %v1142_v27 = vmul.f32 0.0625, %v320_v25  ;;  %v1144_v28 = vmul.f32 0.0625, %v318_v26  ;;  %v302_v29 = vpop.xlane.xlu1 %301  ;;  %v727_v25 = vld [vmem:[%s1784_s4 + $0x50] sm:$0xff]  ;;  %v726_v26 = vld [vmem:[%s1784_s4 + $0x48] sm:$0xff] }
  0x8c   : > { %v1146_v30 = vmul.f32 0.0625, %v302_v29  ;;  %v725_v29 = vld [vmem:[%s1784_s4 + $0x40] sm:$0xff] }
  0x8d   : > { %v1149_v31 = vsub.f32 %v290_v3, %v1142_v27  ;;  %v1152_v32 = vsub.f32 %v289_v4, %v1144_v28 }
  0x8e   : > { %v1155_v33 = vsub.f32 %v281_v5, %v1146_v30 }
  0x8f   : > { %v369_v35 = vmul.f32 %v1152_v32, %v1152_v32  ;;  %v370_v36 = vmul.f32 %v1149_v31, %v1149_v31 }
  0x90   : > { %v361_v37 = vmul.f32 %v1155_v33, %v1155_v33 }
  0x91   : > { %397 = vadd.xlane.f32.xlu2 %v369_v35  ;;  %v724_v35 = vld [vmem:[%s1784_s4 + $0x38] sm:$0xff] }
  0x92   : > { %399 = vadd.xlane.f32.xlu0 %v370_v36  ;;  %381 = vadd.xlane.f32.xlu1 %v361_v37  ;;  %v314_v38 = vpop.xlane.xlu2 %313  ;;  %v296_v39 = vpop.xlane.xlu0 %295  ;;  %v723_v36 = vld [vmem:[%s1784_s4 + $0x30] sm:$0xff]  ;;  %v722_v37 = vld [vmem:[%s1784_s4 + $0x28] sm:$0xff] }
  0x93   : > { %v1168_v41 = vmul.f32 0.0625, %v314_v38  ;;  %v1170_v42 = vmul.f32 0.0625, %v296_v39  ;;  %v304_v43 = vpop.xlane.xlu1 %303  ;;  %v413_v38 = vmul.f32 %v1128_v18, %v1128_v18  ;;  %v721_v39 = vld [vmem:[%s1784_s4 + $0x20] sm:$0xff] }
  0x94   : > { %v1178_v46 = vmul.f32 0.0625, %v304_v43  ;;  %v405_v43 = vmul.f32 %v1130_v20, %v1130_v20 }
  0x95   : > { %v1173_v44 = vsub.f32 %v287_v6, %v1168_v41  ;;  %v1176_v45 = vsub.f32 %v278_v7, %v1170_v42 }
  0x96   : > { %v1187_v50 = vsub.f32 %v282_v8, %v1178_v46  ;;  %v421_v18 = vmul.f32 112.0, %v405_v43 }
  0x97   : > { %v367_v48 = vmul.f32 %v1173_v44, %v1173_v44  ;;  %v358_v49 = vmul.f32 %v1176_v45, %v1176_v45 }
  0x98   : > { %v362_v58 = vmul.f32 %v1187_v50, %v1187_v50 }
  0x99   : > { %391 = vadd.xlane.f32.xlu2 %v366_v47  ;;  %v720_v47 = vld [vmem:[%s1784_s4 + $0x18] sm:$0xff] }
  0x9a   : > { %393 = vadd.xlane.f32.xlu0 %v367_v48  ;;  %375 = vadd.xlane.f32.xlu1 %v358_v49  ;;  %v306_v51 = vpop.xlane.xlu2 %305  ;;  %v322_v52 = vpop.xlane.xlu0 %321  ;;  %v429_v48 = vmul.f32 112.0, %v413_v38 }
  0x9b   : > { %v1189_v53 = vmul.f32 0.0625, %v306_v51  ;;  %v1191_v54 = vmul.f32 0.0625, %v322_v52  ;;  %v298_v55 = vpop.xlane.xlu1 %297  ;;  %v719_v51 = vld [vmem:[%s1784_s4 + $0x10] sm:$0xff] }
  0x9c   : > { %v1201_v59 = vmul.f32 0.0625, %v298_v55 }
  0x9d   : > { %v1194_v56 = vsub.f32 %v283_v9, %v1189_v53  ;;  %v1197_v57 = vsub.f32 %v291_v10, %v1191_v54 }
  0x9e   : > { %v1209_v62 = vsub.f32 %v1109_v11, %v1201_v59 }
  0x9f   : > { %v363_v60 = vmul.f32 %v1194_v56, %v1194_v56  ;;  %v371_v61 = vmul.f32 %v1197_v57, %v1197_v57 }
  0xa0   : > { %v359_v6 = vmul.f32 %v1209_v62, %v1209_v62 }
  0xa1   : > { %383 = vadd.xlane.f32.xlu2 %v362_v58  ;;  %v718_v58 = vld [vmem:[%s1784_s4 + $0x8] sm:$0xff] }
  0xa2   : > { %385 = vadd.xlane.f32.xlu0 %v363_v60  ;;  %401 = vadd.xlane.f32.xlu1 %v371_v61  ;;  %v300_v63 = vpop.xlane.xlu2 %299  ;;  %v316_v0 = vpop.xlane.xlu0 %315  ;;  %v417_v60 = vmul.f32 %v1144_v28, %v1144_v28 }
  0xa3   : > { %v1211_v1 = vmul.f32 0.0625, %v300_v63  ;;  %v1213_v2 = vmul.f32 0.0625, %v316_v0  ;;  %v324_v3 = vpop.xlane.xlu1 %323  ;;  %v418_v63 = vmul.f32 %v1142_v27, %v1142_v27  ;;  %v409_v0 = vmul.f32 %v1146_v30, %v1146_v30 }
  0xa4   : > { %v1225_v7 = vmul.f32 0.0625, %v324_v3  ;;  %v433_v27 = vmul.f32 112.0, %v417_v60 }
  0xa5   : > { %v1217_v4 = vsub.f32 %v1113_v12, %v1211_v1  ;;  %v1221_v5 = vsub.f32 %v1116_v13, %v1213_v2 }
  0xa6   : > { %v1233_v10 = vsub.f32 %v1119_v14, %v1225_v7  ;;  %v732_v14 = vld [vmem:[%s1784_s4 + $0x78] sm:$0xff] }
  0xa7   : > { %v360_v8 = vmul.f32 %v1217_v4, %v1217_v4  ;;  %v368_v9 = vmul.f32 %v1221_v5, %v1221_v5  ;;  %733 = vmatpush.msra.mxu0 %v732_v14  ;;  %948 = vmatpush.msra.mxu2 %v732_v14 }
  0xa8   : > { %v372_v16 = vmul.f32 %v1233_v10, %v1233_v10  ;;  %947 = vmatpush.msra.mxu1 %v732_v14  ;;  %949 = vmatpush.msra.mxu3 %v732_v14 }
  0xa9   : > { %377 = vadd.xlane.f32.xlu2 %v359_v6  ;;  %734 = vmatpush.msra.mxu0 %v731_v19  ;;  %v717_v6 = vld [vmem:[%s1784_s4] sm:$0xff] }
  0xaa   : > { %379 = vadd.xlane.f32.xlu0 %v360_v8  ;;  %395 = vadd.xlane.f32.xlu1 %v368_v9  ;;  %v308_v11 = vpop.xlane.xlu0 %307  ;;  %v434_v9 = vmul.f32 112.0, %v418_v63 }
  0xab   : > { %v1235_v12 = vmul.f32 0.0625, %v308_v11  ;;  %951 = vmatpush.msra.mxu2 %v731_v19  ;;  %950 = vmatpush.msra.mxu1 %v731_v19  ;;  %v425_v11 = vmul.f32 112.0, %v409_v0 }
  0xac   : > { %952 = vmatpush.msra.mxu3 %v731_v19 }
  0xad   : > { %v1239_v13 = vsub.f32 %v1125_v15, %v1235_v12  ;;  %v730_v15 = vld [vmem:[%s1784_s4 + $0x68] sm:$0xff] }
  0xae   : > { %735 = vmatpush.msra.mxu0 %v730_v15  ;;  %954 = vmatpush.msra.mxu2 %v730_v15 }
  0xaf   : > { %v364_v17 = vmul.f32 %v1239_v13, %v1239_v13  ;;  %953 = vmatpush.msra.mxu1 %v730_v15  ;;  %955 = vmatpush.msra.mxu3 %v730_v15 }
  0xb0   : > { %736 = vmatpush.msra.mxu0 %v729_v23  ;;  %957 = vmatpush.msra.mxu2 %v729_v23 }
  0xb1   : > { %403 = vadd.xlane.f32.xlu2 %v372_v16  ;;  %956 = vmatpush.msra.mxu1 %v729_v23 }
  0xb2   : > { %387 = vadd.xlane.f32.xlu1 %v364_v17  ;;  %958 = vmatpush.msra.mxu3 %v729_v23  ;;  %v414_v23 = vmul.f32 %v1157_v34, %v1157_v34 }
  0xb3   : > { %737 = vmatpush.msra.mxu0 %v728_v24  ;;  %960 = vmatpush.msra.mxu2 %v728_v24 }
  0xb4   : > { %959 = vmatpush.msra.mxu1 %v728_v24  ;;  %961 = vmatpush.msra.mxu3 %v728_v24 }
  0xb5   : > { %738 = vmatpush.msra.mxu0 %v727_v25  ;;  %963 = vmatpush.msra.mxu2 %v727_v25 }
  0xb6   : > { %962 = vmatpush.msra.mxu1 %v727_v25  ;;  %964 = vmatpush.msra.mxu3 %v727_v25  ;;  %v415_v25 = vmul.f32 %v1168_v41, %v1168_v41 }
  0xb7   : > { %739 = vmatpush.msra.mxu0 %v726_v26  ;;  %966 = vmatpush.msra.mxu2 %v726_v26 }
  0xb8   : > { %965 = vmatpush.msra.mxu1 %v726_v26  ;;  %967 = vmatpush.msra.mxu3 %v726_v26  ;;  %v406_v26 = vmul.f32 %v1170_v42, %v1170_v42  ;;  %v430_v42 = vmul.f32 112.0, %v414_v23 }
  0xb9   : > { %740 = vmatpush.msra.mxu0 %v725_v29  ;;  %969 = vmatpush.msra.mxu2 %v725_v29 }
  0xba   : > { %968 = vmatpush.msra.mxu1 %v725_v29  ;;  %970 = vmatpush.msra.mxu3 %v725_v29 }
  0xbb   : > { %741 = vmatpush.msra.mxu0 %v724_v35  ;;  %972 = vmatpush.msra.mxu2 %v724_v35 }
  0xbc   : > { %971 = vmatpush.msra.mxu1 %v724_v35  ;;  %973 = vmatpush.msra.mxu3 %v724_v35 }
  0xbd   : > { %742 = vmatpush.msra.mxu0 %v723_v36  ;;  %975 = vmatpush.msra.mxu2 %v723_v36 }
  0xbe   : > { %974 = vmatpush.msra.mxu1 %v723_v36  ;;  %976 = vmatpush.msra.mxu3 %v723_v36 }
  0xbf   : > { %743 = vmatpush.msra.mxu0 %v722_v37  ;;  %978 = vmatpush.msra.mxu2 %v722_v37 }
  0xc0   : > { %977 = vmatpush.msra.mxu1 %v722_v37  ;;  %979 = vmatpush.msra.mxu3 %v722_v37 }
  0xc1   : > { %744 = vmatpush.msra.mxu0 %v721_v39  ;;  %981 = vmatpush.msra.mxu2 %v721_v39 }
  0xc2   : > { %980 = vmatpush.msra.mxu1 %v721_v39  ;;  %982 = vmatpush.msra.mxu3 %v721_v39 }
  0xc3   : > { %745 = vmatpush.msra.mxu0 %v720_v47  ;;  %984 = vmatpush.msra.mxu2 %v720_v47 }
  0xc4   : > { %983 = vmatpush.msra.mxu1 %v720_v47  ;;  %985 = vmatpush.msra.mxu3 %v720_v47 }
  0xc5   : > { %746 = vmatpush.msra.mxu0 %v719_v51  ;;  %987 = vmatpush.msra.mxu2 %v719_v51 }
  0xc6   : > { %986 = vmatpush.msra.mxu1 %v719_v51  ;;  %988 = vmatpush.msra.mxu3 %v719_v51  ;;  %v410_v51 = vmul.f32 %v1178_v46, %v1178_v46 }
  0xc7   : > { %747 = vmatpush.msra.mxu0 %v718_v58  ;;  %990 = vmatpush.msra.mxu2 %v718_v58 }
  0xc8   : > { %989 = vmatpush.msra.mxu1 %v718_v58  ;;  %991 = vmatpush.msra.mxu3 %v718_v58 }
  0xc9   : > { %748 = vmatpush.msra.mxu0 %v717_v6  ;;  %993 = vmatpush.msra.mxu2 %v717_v6 }
  0xca   : > { %992 = vmatpush.msra.mxu1 %v717_v6  ;;  %994 = vmatpush.msra.mxu3 %v717_v6 }
  0xfc   : > { %v390_v49 = vpop.xlane.xlu1 %389 }
  0xfd   : > { %v374_v20 = vpop.xlane.xlu0 %373  ;;  %v445_v52 = vsub.f32 %v390_v49, %v429_v48  ;;  %v431_v48 = vmul.f32 112.0, %v415_v25  ;;  %v411_v49 = vmul.f32 %v1189_v53, %v1189_v53  ;;  %v407_v53 = vmul.f32 %v1201_v59, %v1201_v59 }
  0xfe   : > { %v437_v55 = vsub.f32 %v374_v20, %v421_v18  ;;  %v422_v18 = vmul.f32 112.0, %v406_v26 }
  0xff   : > { %v461_v61 = vmul.f32 0.0625, %v445_v52 }
 0x100   : > { %v453_v3 = vmul.f32 0.0625, %v437_v55 }
 0x101   : > { %v1303_v8 = vadd.f32 1e-05, %v461_v61 }
 0x102   : > { %v1305_v28 = vadd.f32 1e-05, %v453_v3  ;;  %v419_v3 = vmul.f32 %v1191_v54, %v1191_v54 }
 0x103   : > { %1006 = vrsqrt.f32 %v1303_v8  ;;  %vm571_vm4 = vweird.f32 %v1303_v8 }
 0x104   : > { %1008 = vrsqrt.f32 %v1305_v28  ;;  %v398_v30 = vpop.xlane.xlu2 %397  ;;  %vm491_vm0 = vweird.f32 %v1305_v28 }
 0x105   : > { %v449_v16 = vsub.f32 %v398_v30, %v433_v27  ;;  %v400_v17 = vpop.xlane.xlu0 %399  ;;  %v382_v14 = vpop.xlane.xlu1 %381 }
 0x106   : > { %v450_v19 = vsub.f32 %v400_v17, %v434_v9  ;;  %v441_v15 = vsub.f32 %v382_v14, %v425_v11  ;;  %v427_v9 = vmul.f32 112.0, %v411_v49  ;;  %v426_v11 = vmul.f32 112.0, %v410_v51 }
 0x107   : > { %v465_v24 = vmul.f32 0.0625, %v449_v16  ;;  %v408_v17 = vmul.f32 %v1211_v1, %v1211_v1  ;;  %v420_v1 = vmul.f32 %v1225_v7, %v1225_v7 }
 0x108   : > { %v466_v29 = vmul.f32 0.0625, %v450_v19  ;;  %v457_v35 = vmul.f32 0.0625, %v441_v15  ;;  %v416_v15 = vmul.f32 %v1213_v2, %v1213_v2 }
 0x109   : > { %v1315_v36 = vpop.eup %1006  ;;  %v1317_v37 = vadd.f32 1e-05, %v465_v24  ;;  %v424_v7 = vmul.f32 112.0, %v408_v17 }
 0x10a   : > { %v1319_v38 = vpop.eup %1008  ;;  %v1321_v39 = vadd.f32 1e-05, %v466_v29  ;;  %v1323_v43 = vadd.f32 1e-05, %v457_v35  ;;  %v566_v41 = vmul.f32 %v1315_v36, %v1303_v8  ;;  %v435_v29 = vmul.f32 112.0, %v419_v3 }
 0x10b   : > { %v486_v34 = vmul.f32 %v1319_v38, %v1305_v28  ;;  %1010 = vrsqrt.f32 %v1317_v37  ;;  %v423_v35 = vmul.f32 112.0, %v407_v53  ;;  %vm492_vm1 = vweird.f32 %v1319_v38 }
 0x10c   : > { %1012 = vrsqrt.f32 %v1321_v39  ;;  %v392_v47 = vpop.xlane.xlu2 %391  ;;  %v567_v63 = vmul.f32 %v1315_v36, %v566_v41  ;;  %vm572_vm2 = vweird.f32 %v1315_v36  ;;  %vm1398_vm3 = vmor %vm491_vm0, %vm492_vm1  ;;  %vm531_vm6 = vweird.f32 %v1323_v43 }
 0x10d   : > { %1014 = vrsqrt.f32 %v1323_v43  ;;  %v446_v20 = vsub.f32 %v392_v47, %v430_v42  ;;  %v394_v52 = vpop.xlane.xlu0 %393  ;;  %v376_v55 = vpop.xlane.xlu1 %375  ;;  %v487_v58 = vmul.f32 %v1319_v38, %v486_v34  ;;  %vm1412_vm5 = vmor %vm571_vm4, %vm572_vm2  ;;  %vm611_vm10 = vweird.f32 %v1317_v37 }
 0x10e   : > { %v447_v60 = vsub.f32 %v394_v52, %v431_v48  ;;  %v438_v61 = vsub.f32 %v376_v55, %v422_v18  ;;  %v568_v23 = vmul.f32 0.5, %v567_v63  ;;  %v432_v52 = vmul.f32 112.0, %v416_v15 }
 0x10f   : > { %v462_v0 = vmul.f32 0.0625, %v446_v20  ;;  %v488_v14 = vmul.f32 0.5, %v487_v58  ;;  %vm621_vm0 = vweird.f32 %v1321_v39 }
 0x110   : > { %v463_v6 = vmul.f32 0.0625, %v447_v60  ;;  %v454_v30 = vmul.f32 0.0625, %v438_v61  ;;  %v569_v51 = vsub.f32 1.5, %v568_v23  ;;  %v1372_v61 = vmul.f32 112.0, %v420_v1 }
 0x111   : > { %v1342_v46 = vpop.eup %1010  ;;  %v1344_v27 = vadd.f32 1e-05, %v462_v0  ;;  %v489_v48 = vsub.f32 1.5, %v488_v14  ;;  %v412_v0 = vmul.f32 %v1235_v12, %v1235_v12 }
 0x112   : > { %v1346_v16 = vpop.eup %1012  ;;  %v606_v54 = vmul.f32 %v1342_v46, %v1317_v37  ;;  %v1352_v19 = vadd.f32 1e-05, %v463_v6  ;;  %v1368_v2 = vadd.f32 1e-05, %v454_v30  ;;  %v570_v17 = vmul.f32 %v1315_v36, %v569_v51 }
 0x113   : > { %v1354_v59 = vpop.eup %1014  ;;  %v616_v24 = vmul.f32 %v1346_v16, %v1321_v39  ;;  %1016 = vrsqrt.f32 %v1344_v27  ;;  %v490_v30 = vmul.f32 %v1319_v38, %v489_v48  ;;  %vm612_vm8 = vweird.f32 %v1342_v46 }
 0x114   : > { %v526_v25 = vmul.f32 %v1354_v59, %v1323_v43  ;;  %v384_v26 = vpop.xlane.xlu2 %383  ;;  %v607_v34 = vmul.f32 %v1342_v46, %v606_v54  ;;  %1018 = vrsqrt.f32 %v1352_v19  ;;  %vm532_vm7 = vweird.f32 %v1354_v59 }
 0x115   : > { %v617_v41 = vmul.f32 %v1346_v16, %v616_v24  ;;  %v386_v42 = vpop.xlane.xlu0 %385  ;;  %v402_v47 = vpop.xlane.xlu1 %401  ;;  %v442_v49 = vsub.f32 %v384_v26, %v426_v11  ;;  %1020 = vrsqrt.f32 %v1368_v2  ;;  %vm501_vm12 = vweird.f32 %v1368_v2  ;;  %vm1482_vm14 = vmor %vm531_vm6, %vm532_vm7 }
 0x116   : > { %v443_v18 = vsub.f32 %v386_v42, %v427_v9  ;;  %v451_v20 = vsub.f32 %v402_v47, %v435_v29  ;;  %v527_v55 = vmul.f32 %v1354_v59, %v526_v25  ;;  %v608_v3 = vmul.f32 0.5, %v607_v34  ;;  %vm1532_vm6 = vmor %vm611_vm10, %vm612_vm8 }
 0x117   : > { %v458_v60 = vmul.f32 0.0625, %v442_v49  ;;  %v618_v53 = vmul.f32 0.5, %v617_v41  ;;  %vm622_vm13 = vweird.f32 %v1346_v16  ;;  %vm581_vm15 = vweird.f32 %v1344_v27 }
 0x118   : > { %v459_v58 = vmul.f32 0.0625, %v443_v18  ;;  %v467_v6 = vmul.f32 0.0625, %v451_v20  ;;  %v528_v54 = vmul.f32 0.5, %v527_v55  ;;  %v609_v26 = vsub.f32 1.5, %v608_v3  ;;  %v1420_v55 = vld [vmem:[%s1782_s2] ss:$0 sm:$0xff] }
 0x119   : > { %v1374_v63 = vpop.eup %1016  ;;  %v1389_v12 = vadd.f32 1e-05, %v458_v60  ;;  %v619_v29 = vsub.f32 1.5, %v618_v53  ;;  %v494_v18 = vsel %vm1398_vm3, %v1319_v38, %v490_v30  ;;  %v574_v38 = vsel %vm1412_vm5, %v1315_v36, %v570_v17  ;;  %v1432_v30 = vld [vmem:[%s1783_s3] ss:$0 sm:$0xff] }
 0x11a   : > { %v576_v9 = vmul.f32 %v1374_v63, %v1344_v27  ;;  %v1383_v11 = vpop.eup %1018  ;;  %v1387_v14 = vadd.f32 1e-05, %v459_v58  ;;  %v1394_v23 = vadd.f32 1e-05, %v467_v6  ;;  %v529_v58 = vsub.f32 1.5, %v528_v54 }
 0x11b   : > { %v586_v28 = vmul.f32 %v1383_v11, %v1352_v19  ;;  %v1396_v1 = vpop.eup %1020  ;;  %v653_v25 = vmul.f32 %v574_v38, %v1133_v21  ;;  %vm582_vm11 = vweird.f32 %v1374_v63  ;;  %vm592_vm1 = vweird.f32 %v1383_v11 }
 0x11c   : > { %v577_v15 = vmul.f32 %v1374_v63, %v576_v9  ;;  %v378_v24 = vpop.xlane.xlu2 %377  ;;  %1022 = vrsqrt.f32 %v1387_v14  ;;  %v496_v48 = vmul.f32 %v1396_v1, %v1368_v2  ;;  %v428_v9 = vmul.f32 112.0, %v412_v0  ;;  %vm1558_vm10 = vmor %vm581_vm15, %vm582_vm11 }
 0x11d   : > { %v380_v34 = vpop.xlane.xlu0 %379  ;;  %v396_v41 = vpop.xlane.xlu1 %395  ;;  %v587_v47 = vmul.f32 %v1383_v11, %v586_v28  ;;  %1024 = vrsqrt.f32 %v1389_v12  ;;  %v439_v51 = vsub.f32 %v378_v24, %v423_v35  ;;  %v645_v35 = vmul.f32 %v494_v18, %v1136_v22  ;;  %vm1576_vm11 = vmor %vm621_vm0, %vm622_vm13 }
 0x11e   : > { %v578_v42 = vmul.f32 0.5, %v577_v15  ;;  %v440_v49 = vsub.f32 %v380_v34, %v424_v7  ;;  %v448_v20 = vsub.f32 %v396_v41, %v432_v52  ;;  %v497_v60 = vmul.f32 %v1396_v1, %v496_v48 }
 0x11f   : > { %1026 = vrsqrt.f32 %v1394_v23  ;;  %v455_v53 = vmul.f32 0.0625, %v439_v51  ;;  %v588_v52 = vmul.f32 0.5, %v587_v47  ;;  %v665_v17 = vmul.f32 %v1420_v55, %v645_v35 }
 0x120   : > { %v456_v3 = vmul.f32 0.0625, %v440_v49  ;;  %v464_v6 = vmul.f32 0.0625, %v448_v20  ;;  %v579_v7 = vsub.f32 1.5, %v578_v42  ;;  %v498_v15 = vmul.f32 0.5, %v497_v60 }
 0x121   : > { %v1438_v36 = vadd.f32 1e-05, %v455_v53  ;;  %v1450_v0 = vmul.f32 %v1342_v46, %v609_v26  ;;  %v1454_v41 = vmul.f32 %v1346_v16, %v619_v29  ;;  %v530_v42 = vmul.f32 %v1354_v59, %v529_v58 }
 0x122   : > { %v1434_v54 = vpop.eup %1022  ;;  %v1436_v28 = vadd.f32 1e-05, %v456_v3  ;;  %v1444_v24 = vadd.f32 1e-05, %v464_v6  ;;  %v1461_v48 = vmul.f32 %v1374_v63, %v579_v7  ;;  %v589_v21 = vsub.f32 1.5, %v588_v52 }
 0x123   : > { %v546_v22 = vmul.f32 %v1434_v54, %v1387_v14  ;;  %v1447_v34 = vpop.eup %1024  ;;  %vm502_vm9 = vweird.f32 %v1396_v1  ;;  %v499_v49 = vsub.f32 1.5, %v498_v15  ;;  %v685_v20 = vadd.f32 %v1432_v30, %v665_v17 }
 0x124   : > { %1028 = vrsqrt.f32 %v1436_v28  ;;  %v536_v18 = vmul.f32 %v1447_v34, %v1389_v12  ;;  %v404_v8 = vpop.xlane.xlu2 %403  ;;  %v673_v38 = vmul.f32 %v1420_v55, %v653_v25  ;;  %v1490_v52 = vmul.f32 %v1383_v11, %v589_v21  ;;  %vm503_vm4 = vmor %vm501_vm12, %vm502_vm9 }
 0x125   : > { %v1458_v47 = vpop.eup %1026  ;;  %v547_v26 = vmul.f32 %v1434_v54, %v546_v22  ;;  %v388_v29 = vpop.xlane.xlu1 %387  ;;  %1030 = vrsqrt.f32 %v1438_v36  ;;  %v701_v6 = vmax.f32 %v685_v20, 0.0  ;;  %v452_v35 = vsub.f32 %v404_v8, %v1372_v61 }
 0x126   : > { %v626_v51 = vmul.f32 %v1458_v47, %v1394_v23  ;;  %v537_v60 = vmul.f32 %v1447_v34, %v536_v18  ;;  %1032 = vrsqrt.f32 %v1444_v24  ;;  %v444_v7 = vsub.f32 %v388_v29, %v428_v9 }
 0x127   : > { %v548_v58 = vmul.f32 0.5, %v547_v26  ;;  %v693_v17 = vadd.f32 %v1432_v30, %v673_v38  ;;  %v534_v43 = vsel %vm1482_vm14, %v1354_v59, %v530_v42  ;;  %749 = vmatmul.f32.vlgmr.msra.gmra.mxu0 %v701_v6  ;;  %v468_v18 = vmul.f32 0.0625, %v452_v35 }
 0x128   : > { %v627_v53 = vmul.f32 %v1458_v47, %v626_v51  ;;  %v538_v15 = vmul.f32 0.5, %v537_v60  ;;  %v460_v61 = vmul.f32 0.0625, %v444_v7  ;;  %v500_v9 = vmul.f32 %v1396_v1, %v499_v49 }
 0x129   : > { %v549_v25 = vsub.f32 1.5, %v548_v58  ;;  %v649_v29 = vmul.f32 %v534_v43, %v1155_v33  ;;  %v709_v51 = vmax.f32 %v693_v17, 0.0  ;;  %v1506_v20 = vadd.f32 1e-05, %v468_v18 }
 0x12a   : > { %v1496_v22 = vpop.eup %1028  ;;  %v628_v26 = vmul.f32 0.5, %v627_v53  ;;  %v539_v21 = vsub.f32 1.5, %v538_v15  ;;  %v1508_v58 = vadd.f32 1e-05, %v460_v61  ;;  %vm591_vm2 = vweird.f32 %v1352_v19 }
 0x12b   : > { %v516_v8 = vmul.f32 %v1496_v22, %v1436_v28  ;;  %v1504_v59 = vpop.eup %1030  ;;  %vm542_vm3 = vweird.f32 %v1447_v34  ;;  %v1519_v38 = vmul.f32 %v1434_v54, %v549_v25  ;;  %vm541_vm5 = vweird.f32 %v1389_v12  ;;  %773 = vmatmul.f32.vlgmr.msra.gmra.mxu2 %v709_v51  ;;  %vm1606_vm0 = vmor %vm591_vm2, %vm592_vm1  ;;  %v1737_v12 = vld [vmem:[%s1785_s5] ss:$0 sm:$0xff] }
 0x12c   : > { %v629_v42 = vsub.f32 1.5, %v628_v26  ;;  %v1510_v60 = vpop.eup %1032  ;;  %v506_v33 = vmul.f32 %v1504_v59, %v1438_v36  ;;  %v1522_v3 = vmul.f32 %v1447_v34, %v539_v21  ;;  %1034 = vrsqrt.f32 %v1506_v20 }
 0x12d   : > { %v517_v49 = vmul.f32 %v1496_v22, %v516_v8  ;;  %v596_v53 = vmul.f32 %v1510_v60, %v1444_v24  ;;  %vm631_vm7 = vweird.f32 %v1394_v23  ;;  %vm512_vm14 = vweird.f32 %v1504_v59  ;;  %v807_v23 = vld [vmem:[%s269_s20 + $0x48] sm:$0xff] }
 0x12e   : > { %v507_v7 = vmul.f32 %v1504_v59, %v506_v33  ;;  %1036 = vrsqrt.f32 %v1508_v58  ;;  %v1545_v37 = vmul.f32 %v1458_v47, %v629_v42  ;;  %vm511_vm8 = vweird.f32 %v1438_v36 }
 0x12f   : > { %v518_v35 = vmul.f32 0.5, %v517_v49  ;;  %v597_v15 = vmul.f32 %v1510_v60, %v596_v53  ;;  %v669_v17 = vmul.f32 %v1420_v55, %v649_v29  ;;  %v614_v43 = vsel %vm1532_vm6, %v1342_v46, %v1450_v0 }
 0x130   : > { %vm552_vm9 = vweird.f32 %v1434_v54  ;;  %v508_v26 = vmul.f32 0.5, %v507_v7  ;;  %v657_v18 = vmul.f32 %v614_v43, %v1152_v32  ;;  %v504_v61 = vsel %vm503_vm4, %v1396_v1, %v500_v9 }
 0x131   : > { %v519_v25 = vsub.f32 1.5, %v518_v35  ;;  %vm522_vm12 = vweird.f32 %v1496_v22  ;;  %v598_v21 = vmul.f32 0.5, %v597_v15  ;;  %v689_v46 = vadd.f32 %v1432_v30, %v669_v17 }
 0x132   : > { %v646_v0 = vmul.f32 %v504_v61, %v1176_v45  ;;  %v584_v27 = vsel %vm1558_vm10, %v1374_v63, %v1461_v48  ;;  %vm551_vm15 = vweird.f32 %v1387_v14  ;;  %v509_v1 = vsub.f32 1.5, %v508_v26  ;;  %v1584_v8 = vpop.eup %1034 }
 0x133   : > { %vm602_vm4 = vweird.f32 %v1510_v60  ;;  %v677_v45 = vmul.f32 %v1420_v55, %v657_v18  ;;  %v654_v9 = vmul.f32 %v584_v27, %v1166_v40  ;;  %vm521_vm6 = vweird.f32 %v1436_v28 }
 0x134   : > { %v599_v63 = vsub.f32 1.5, %v598_v21  ;;  %v705_v48 = vmax.f32 %v689_v46, 0.0  ;;  %v666_v39 = vmul.f32 %v1420_v55, %v646_v0  ;;  %v624_v29 = vsel %vm1576_vm11, %v1346_v16, %v1454_v41  ;;  %v1592_v42 = vpop.eup %1036  ;;  %vm1619_vm11 = vmor %vm541_vm5, %vm542_vm3 }
 0x135   : > { %v1595_v51 = vmul.f32 %v1496_v22, %v519_v25  ;;  %v510_v40 = vmul.f32 %v1504_v59, %v509_v1  ;;  %v636_v49 = vmul.f32 %v1584_v8, %v1506_v20  ;;  %v697_v33 = vadd.f32 %v1432_v30, %v677_v45  ;;  %vm1649_vm3 = vmor %vm511_vm8, %vm512_vm14 }
 0x136   : > { %v600_v41 = vmul.f32 %v1510_v60, %v599_v63  ;;  %v556_v53 = vmul.f32 %v1592_v42, %v1508_v58  ;;  %761 = vmatmul.f32.vlgmr.msra.gmra.mxu1 %v705_v48  ;;  %v686_v6 = vadd.f32 %v1432_v30, %v666_v39  ;;  %vm642_vm1 = vweird.f32 %v1584_v8  ;;  %vm1670_vm5 = vmor %vm551_vm15, %vm552_vm9 }
 0x137   : > { %v637_v35 = vmul.f32 %v1584_v8, %v636_v49  ;;  %vm561_vm2 = vweird.f32 %v1508_v58  ;;  %v713_v7 = vmax.f32 %v697_v33, 0.0  ;;  %v674_v15 = vmul.f32 %v1420_v55, %v654_v9 }
 0x138   : > { %v658_v17 = vmul.f32 %v624_v29, %v1149_v31  ;;  %vm1803_vm10 = vweird.f32 %v1458_v47  ;;  %v557_v43 = vmul.f32 %v1592_v42, %v556_v53  ;;  %v702_v2 = vmax.f32 %v686_v6, 0.0 }
 0x139   : > { %vm1632_vm13 = vmor %vm631_vm7, %vm1803_vm10  ;;  %v544_v25 = vsel %vm1619_vm11, %v1447_v34, %v1522_v3  ;;  %v594_v31 = vsel %vm1606_vm0, %v1383_v11, %v1490_v52  ;;  %v638_v26 = vmul.f32 0.5, %v637_v35  ;;  %785 = vmatmul.f32.vlgmr.msra.gmra.mxu3 %v713_v7  ;;  %v694_v18 = vadd.f32 %v1432_v30, %v674_v15 }
 0x13a   : > { %v678_v61 = vmul.f32 %v1420_v55, %v658_v17  ;;  %v650_v34 = vmul.f32 %v544_v25, %v1187_v50  ;;  %v558_v3 = vmul.f32 0.5, %v557_v43  ;;  %752 = vmatmul.f32.gmra.mxu0 %v702_v2  ;;  %v655_v11 = vmul.f32 %v594_v31, %v1173_v44  ;;  %vm1681_vm7 = vmor %vm521_vm6, %vm522_vm12  ;;  %v802_v2 = vld [vmem:[%s269_s20 + $0x20] sm:$0xff]  ;;  %v799_v31 = vld [vmem:[%s269_s20 + $0x8] sm:$0xff] }
 0x13b   : > { %v634_v36 = vsel %vm1632_vm13, %v1458_v47, %v1545_v37  ;;  %v514_v52 = vsel %vm1649_vm3, %v1504_v59, %v510_v40  ;;  %v639_v21 = vsub.f32 1.5, %v638_v26  ;;  %v710_v46 = vmax.f32 %v694_v18, 0.0  ;;  %v810_v25 = vld [vmem:[%s269_s20 + $0x60] sm:$0xff]  ;;  %v811_v26 = vld [vmem:[%s269_s20 + $0x68] sm:$0xff] }
 0x13c   : > { %v698_v0 = vadd.f32 %v1432_v30, %v678_v61  ;;  %v670_v27 = vmul.f32 %v1420_v55, %v650_v34  ;;  %v559_v50 = vsub.f32 1.5, %v558_v3  ;;  %v675_v47 = vmul.f32 %v1420_v55, %v655_v11  ;;  %v803_v18 = vld [vmem:[%s269_s20 + $0x28] sm:$0xff]  ;;  %v808_v61 = vld [vmem:[%s269_s20 + $0x50] sm:$0xff] }
 0x13d   : > { %v659_v37 = vmul.f32 %v634_v36, %v1197_v57  ;;  %v647_v59 = vmul.f32 %v514_v52, %v1209_v62  ;;  %v640_v14 = vmul.f32 %v1584_v8, %v639_v21  ;;  %776 = vmatmul.f32.gmra.mxu2 %v710_v46  ;;  %v554_v57 = vsel %vm1670_vm5, %v1434_v54, %v1519_v38  ;;  %v812_v34 = vld [vmem:[%s269_s20 + $0x70] sm:$0xff]  ;;  %v809_v52 = vld [vmem:[%s269_s20 + $0x58] sm:$0xff] }
 0x13e   : > { %v714_v1 = vmax.f32 %v698_v0, 0.0  ;;  %v690_v45 = vadd.f32 %v1432_v30, %v670_v27  ;;  %vm1812_vm14 = vweird.f32 %v1444_v24  ;;  %v560_v62 = vmul.f32 %v1592_v42, %v559_v50  ;;  %v800_v11 = vld [vmem:[%s269_s20 + $0x10] sm:$0xff]  ;;  %v801_v21 = vld [vmem:[%s269_s20 + $0x18] sm:$0xff] }
 0x13f   : > { %vm603_vm8 = vmor %vm1812_vm14, %vm602_vm4  ;;  %v695_v28 = vadd.f32 %v1432_v30, %v675_v47  ;;  %v679_v9 = vmul.f32 %v1420_v55, %v659_v37  ;;  %v667_v63 = vmul.f32 %v1420_v55, %v647_v59  ;;  %v651_v39 = vmul.f32 %v554_v57, %v1194_v56  ;;  %v804_v36 = vld [vmem:[%s269_s20 + $0x30] sm:$0xff]  ;;  %v805_v46 = vld [vmem:[%s269_s20 + $0x38] sm:$0xff] }
 0x140   : > { %v706_v48 = vmax.f32 %v690_v45, 0.0  ;;  %v604_v29 = vsel %vm603_vm8, %v1510_v60, %v600_v41  ;;  %v524_v54 = vsel %vm1681_vm7, %v1496_v22, %v1595_v51  ;;  %vm1813_vm9 = vweird.f32 %v1592_v42  ;;  %v813_v0 = vld [vmem:[%s269_s20 + $0x78] sm:$0xff] }
 0x141   : > { %vm563_vm12 = vmor %vm561_vm2, %vm1813_vm9  ;;  %v699_v24 = vadd.f32 %v1432_v30, %v679_v9  ;;  %v687_v38 = vadd.f32 %v1432_v30, %v667_v63  ;;  %v656_v40 = vmul.f32 %v604_v29, %v1221_v5  ;;  %vm641_vm15 = vweird.f32 %v1506_v20  ;;  %788 = vmatmul.f32.gmra.mxu3 %v714_v1 }
 0x142   : > { %764 = vmatmul.f32.gmra.mxu1 %v706_v48  ;;  %v671_v56 = vmul.f32 %v1420_v55, %v651_v39  ;;  %v648_v60 = vmul.f32 %v524_v54, %v1217_v4  ;;  %v564_v22 = vsel %vm563_vm12, %v1592_v42, %v560_v62  ;;  %vm643_vm4 = vmor %vm641_vm15, %vm642_vm1  ;;  %v711_v33 = vmax.f32 %v695_v28, 0.0 }
 0x143   : > { %v703_v58 = vmax.f32 %v687_v38, 0.0  ;;  %v676_v51 = vmul.f32 %v1420_v55, %v656_v40  ;;  %v652_v49 = vmul.f32 %v564_v22, %v1239_v13  ;;  %v644_v16 = vsel %vm643_vm4, %v1584_v8, %v640_v14 }
 0x144   : > { %v691_v5 = vadd.f32 %v1432_v30, %v671_v56  ;;  %v668_v20 = vmul.f32 %v1420_v55, %v648_v60  ;;  %v660_v4 = vmul.f32 %v644_v16, %v1233_v10  ;;  %v715_v42 = vmax.f32 %v699_v24, 0.0 }
 0x145   : > { %755 = vmatmul.f32.gmra.mxu0 %v703_v58  ;;  %779 = vmatmul.f32.gmra.mxu2 %v711_v33  ;;  %v696_v41 = vadd.f32 %v1432_v30, %v676_v51  ;;  %v672_v53 = vmul.f32 %v1420_v55, %v652_v49 }
 0x146   : > { %v688_v6 = vadd.f32 %v1432_v30, %v668_v20  ;;  %v680_v13 = vmul.f32 %v1420_v55, %v660_v4  ;;  %v707_v19 = vmax.f32 %v691_v5, 0.0  ;;  %v798_v55 = vld [vmem:[%s269_s20] sm:$0xff] }
 0x147   : > { %v712_v35 = vmax.f32 %v696_v41, 0.0  ;;  %v692_v8 = vadd.f32 %v1432_v30, %v672_v53 }
 0x148   : > { %v700_v7 = vadd.f32 %v1432_v30, %v680_v13  ;;  %v704_v10 = vmax.f32 %v688_v6, 0.0  ;;  %v806_v30 = vld [vmem:[%s269_s20 + $0x40] sm:$0xff] }
 0x149   : > { %791 = vmatmul.f32.gmra.mxu3 %v715_v42  ;;  %v708_v15 = vmax.f32 %v692_v8, 0.0 }
 0x14a   : > { %767 = vmatmul.f32.gmra.mxu1 %v707_v19  ;;  %v716_v17 = vmax.f32 %v700_v7, 0.0 }
 0x14d   : > { %758 = vmatmul.f32.gmra.mxu0 %v704_v10  ;;  %782 = vmatmul.f32.gmra.mxu2 %v712_v35 }
 0x151   : > { %794 = vmatmul.f32.gmra.mxu3 %v716_v17 }
 0x152   : > { %770 = vmatmul.f32.gmra.mxu1 %v708_v15 }
 0x1a4   : > { %v750_v43 = vpop.f32.mrf.mxu0 }
 0x1a5   : > { %v814_v3 = vadd.f32 %v798_v55, %v750_v43 }
 0x1a7   : > { %v834_v27 = vadd.f32 %v1737_v12, %v814_v3 }
 0x1a9   : > { %850 = vst [vmem:[%s1743_s27] sm:$0xff] %v834_v27 }
 0x1ae   : > { %v774_v44 = vpop.f32.mrf.mxu2 }
 0x1af   : > { %v822_v50 = vadd.f32 %v806_v30, %v774_v44 }
 0x1b1   : > { %v842_v37 = vadd.f32 %v1737_v12, %v822_v50 }
 0x1b3   : > { %v762_v47 = vpop.f32.mrf.mxu1  ;;  %858 = vst [vmem:[%s1743_s27 + $0x40] sm:$0xff] %v842_v37 }
 0x1b4   : > { %v818_v59 = vadd.f32 %v802_v2, %v762_v47 }
 0x1b6   : > { %v838_v32 = vadd.f32 %v1737_v12, %v818_v59 }
 0x1b7   : > { %v753_v14 = vpop.f32.mrf.mxu0 }
 0x1b8   : > { %v815_v1 = vadd.f32 %v799_v31, %v753_v14  ;;  %854 = vst [vmem:[%s1743_s27 + $0x20] sm:$0xff] %v838_v32 }
 0x1ba   : > { %v835_v45 = vadd.f32 %v1737_v12, %v815_v1 }
 0x1bc   : > { %v786_v57 = vpop.f32.mrf.mxu3  ;;  %851 = vst [vmem:[%s1743_s27 + $0x8] sm:$0xff] %v835_v45 }
 0x1bd   : > { %v826_v62 = vadd.f32 %v810_v25, %v786_v57 }
 0x1bf   : > { %v765_v28 = vpop.f32.mrf.mxu1  ;;  %v846_v9 = vadd.f32 %v1737_v12, %v826_v62 }
 0x1c0   : > { %v819_v63 = vadd.f32 %v803_v18, %v765_v28  ;;  %v777_v48 = vpop.f32.mrf.mxu2 }
 0x1c1   : > { %v823_v39 = vadd.f32 %v807_v23, %v777_v48  ;;  %862 = vst [vmem:[%s1743_s27 + $0x60] sm:$0xff] %v846_v9 }
 0x1c2   : > { %v839_v29 = vadd.f32 %v1737_v12, %v819_v63  ;;  %v756_v54 = vpop.f32.mrf.mxu0 }
 0x1c3   : > { %v816_v24 = vadd.f32 %v800_v11, %v756_v54  ;;  %v843_v38 = vadd.f32 %v1737_v12, %v823_v39 }
 0x1c4   : > { %855 = vst [vmem:[%s1743_s27 + $0x28] sm:$0xff] %v839_v29  ;;  %v789_v40 = vpop.f32.mrf.mxu3 }
 0x1c5   : > { %v836_v56 = vadd.f32 %v1737_v12, %v816_v24  ;;  %v827_v60 = vadd.f32 %v811_v26, %v789_v40  ;;  %859 = vst [vmem:[%s1743_s27 + $0x48] sm:$0xff] %v843_v38 }
 0x1c7   : > { %v768_v22 = vpop.f32.mrf.mxu1  ;;  %852 = vst [vmem:[%s1743_s27 + $0x10] sm:$0xff] %v836_v56  ;;  %v847_v58 = vadd.f32 %v1737_v12, %v827_v60 }
 0x1c8   : > { %v820_v51 = vadd.f32 %v804_v36, %v768_v22  ;;  %v780_v49 = vpop.f32.mrf.mxu2 }
 0x1c9   : > { %v824_v33 = vadd.f32 %v808_v61, %v780_v49  ;;  %863 = vst [vmem:[%s1743_s27 + $0x68] sm:$0xff] %v847_v58 }
 0x1ca   : > { %v840_v5 = vadd.f32 %v1737_v12, %v820_v51  ;;  %v759_v20 = vpop.f32.mrf.mxu0 }
 0x1cb   : > { %v817_v16 = vadd.f32 %v801_v21, %v759_v20  ;;  %v844_v4 = vadd.f32 %v1737_v12, %v824_v33 }
 0x1cc   : > { %856 = vst [vmem:[%s1743_s27 + $0x30] sm:$0xff] %v840_v5  ;;  %v792_v42 = vpop.f32.mrf.mxu3 }
 0x1cd   : > { %v837_v41 = vadd.f32 %v1737_v12, %v817_v16  ;;  %v828_v53 = vadd.f32 %v812_v34, %v792_v42  ;;  %860 = vst [vmem:[%s1743_s27 + $0x50] sm:$0xff] %v844_v4 }
 0x1cf   : > { %v771_v6 = vpop.f32.mrf.mxu1  ;;  %853 = vst [vmem:[%s1743_s27 + $0x18] sm:$0xff] %v837_v41  ;;  %v848_v13 = vadd.f32 %v1737_v12, %v828_v53 }
 0x1d0   : > { %v821_v19 = vadd.f32 %v805_v46, %v771_v6  ;;  %v783_v35 = vpop.f32.mrf.mxu2 }
 0x1d1   : > { %v825_v8 = vadd.f32 %v809_v52, %v783_v35  ;;  %864 = vst [vmem:[%s1743_s27 + $0x70] sm:$0xff] %v848_v13 }
 0x1d2   : > { %v841_v7 = vadd.f32 %v1737_v12, %v821_v19 }
 0x1d3   : > { %v845_v10 = vadd.f32 %v1737_v12, %v825_v8 }
 0x1d4   : > { %857 = vst [vmem:[%s1743_s27 + $0x38] sm:$0xff] %v841_v7  ;;  %v795_v15 = vpop.f32.mrf.mxu3 }
 0x1d5   : > { %v829_v17 = vadd.f32 %v813_v0, %v795_v15  ;;  %861 = vst [vmem:[%s1743_s27 + $0x58] sm:$0xff] %v845_v10 }
 0x1d7   : > { %v849_v55 = vadd.f32 %v1737_v12, %v829_v17 }
 0x1d9   : > { %865 = vst [vmem:[%s1743_s27 + $0x78] sm:$0xff] %v849_v55 }
 0x1da PF: > { %s16_s21 = sadd.s32 1, %s1044_s21  }
 0x1db   : > { %p13_p4 = scmp.ge.s32.totalorder %s16_s21, 4  }
 0x1dd   :  { %15 = sbr.rel (!%p13_p4) target bundleno = 1 (0x1), region = 77 }

// kernel: bytenet_structure_model.16
= control target key start
LH: loop header
LB: loop body
LE: loop exit
PB: predicated region body
PF: predicated region fallthrough
CT: control target
= control target key end

     0   :  { %s697_s12 = smov 0   ;;  %s1077_s0 = inlined_call_operand.vmem [shape: f32[256,128], index: 0, kind: input, shape index: {}]   ;;  %s1078_s1 = inlined_call_operand.vmem [shape: f32[128,512], index: 1, kind: input, shape index: {}]   ;;  %s1079_s2 = inlined_call_operand.vmem [shape: f32[1,512], index: 2, kind: input, shape index: {}]   ;;  %s1080_s3 = inlined_call_operand.vmem [shape: f32[256,512], index: 3, kind: output, shape index: {}]  }
   0x1 LB: > { %s648_s13 = sadd.s32 4294967295, %s675_s12   ;;  %p652_p0 = scmp.ge.s32.totalorder %s675_s12, 1  ;;  %s675_s12 = sphi %s697_s12, %s13_s12  }
   0x2   : > { %p138_p1 = scmp.lt.s32.totalorder %s675_s12, 3 }
   0x4   : > { %p139_p2 = pnand %p652_p0, %p138_p1 }
   0x5   : > { %s791_s20 = sshll.u32 (!%p139_p2), %s648_s13, 4 }
   0x6   : > { %142 = sbr.rel (%p139_p2) target bundleno = 299 (0x12b), region = 32  ;;  %p164_p3 = scmp.lt.s32.totalorder (!%p139_p2), %s791_s20, 31 }
   0xb   : > { %v254_v0 = vld [vmem:[%s1078_s1 + $0x1f0] sm:$0xff]  ;;  %v255_v1 = vld [vmem:[%s1078_s1 + $0x1f8] sm:$0xff]  ;;  %v252_v6 = vld [vmem:[%s1078_s1 + $0x1e0] sm:$0xff]  ;;  %s1082_s20 = smov (!%p164_p3, %s791_s20), 31 }
   0xc   : > { %v250_v2 = vld [vmem:[%s1078_s1 + $0x1d0] sm:$0xff]  ;;  %396 = vmatpush.msra.mxu2 %v254_v0  ;;  %461 = vmatpush.msra.mxu3 %v255_v1  ;;  %v251_v3 = vld [vmem:[%s1078_s1 + $0x1d8] sm:$0xff]  ;;  %v253_v7 = vld [vmem:[%s1078_s1 + $0x1e8] sm:$0xff]  ;;  %s654_s14 = sshll.u32 %s1082_s20, 3  ;;  %s660_s24 = sshll.u32 %s1082_s20, 5 }
   0xd   : > { %v246_v4 = vld [vmem:[%s1078_s1 + $0x1b0] sm:$0xff]  ;;  %v247_v5 = vld [vmem:[%s1078_s1 + $0x1b8] sm:$0xff]  ;;  %v248_v8 = vld [vmem:[%s1078_s1 + $0x1c0] sm:$0xff]  ;;  %266 = vmatpush.msra.mxu0 %v252_v6  ;;  %331 = vmatpush.msra.mxu1 %v253_v7  ;;  %s887_s29 = scalar_lea.vmem %s1077_s0, %s654_s14  ;;  %s944_s27 = scalar_lea.vmem %s1080_s3, %s660_s24 }
   0xe   : > { %397 = vmatpush.msra.mxu2 %v250_v2  ;;  %462 = vmatpush.msra.mxu3 %v251_v3  ;;  %v249_v9 = vld [vmem:[%s1078_s1 + $0x1c8] sm:$0xff]  ;;  %v242_v10 = vld [vmem:[%s1078_s1 + $0x190] sm:$0xff]  ;;  %v243_v11 = vld [vmem:[%s1078_s1 + $0x198] sm:$0xff] }
   0xf   : > { %v244_v12 = vld [vmem:[%s1078_s1 + $0x1a0] sm:$0xff]  ;;  %v245_v13 = vld [vmem:[%s1078_s1 + $0x1a8] sm:$0xff]  ;;  %267 = vmatpush.msra.mxu0 %v248_v8  ;;  %332 = vmatpush.msra.mxu1 %v249_v9  ;;  %v238_v14 = vld [vmem:[%s1078_s1 + $0x170] sm:$0xff] }
  0x10   : > { %398 = vmatpush.msra.mxu2 %v246_v4  ;;  %463 = vmatpush.msra.mxu3 %v247_v5  ;;  %v239_v15 = vld [vmem:[%s1078_s1 + $0x178] sm:$0xff]  ;;  %v240_v16 = vld [vmem:[%s1078_s1 + $0x180] sm:$0xff]  ;;  %v241_v17 = vld [vmem:[%s1078_s1 + $0x188] sm:$0xff] }
  0x11   : > { %268 = vmatpush.msra.mxu0 %v244_v12  ;;  %333 = vmatpush.msra.mxu1 %v245_v13  ;;  %v234_v18 = vld [vmem:[%s1078_s1 + $0x150] sm:$0xff]  ;;  %v235_v19 = vld [vmem:[%s1078_s1 + $0x158] sm:$0xff]  ;;  %v236_v20 = vld [vmem:[%s1078_s1 + $0x160] sm:$0xff] }
  0x12   : > { %399 = vmatpush.msra.mxu2 %v242_v10  ;;  %464 = vmatpush.msra.mxu3 %v243_v11  ;;  %v237_v21 = vld [vmem:[%s1078_s1 + $0x168] sm:$0xff]  ;;  %v230_v22 = vld [vmem:[%s1078_s1 + $0x130] sm:$0xff]  ;;  %v231_v23 = vld [vmem:[%s1078_s1 + $0x138] sm:$0xff] }
  0x13   : > { %269 = vmatpush.msra.mxu0 %v240_v16  ;;  %334 = vmatpush.msra.mxu1 %v241_v17  ;;  %v232_v24 = vld [vmem:[%s1078_s1 + $0x140] sm:$0xff]  ;;  %v233_v25 = vld [vmem:[%s1078_s1 + $0x148] sm:$0xff]  ;;  %v226_v26 = vld [vmem:[%s1078_s1 + $0x110] sm:$0xff] }
  0x14   : > { %400 = vmatpush.msra.mxu2 %v238_v14  ;;  %465 = vmatpush.msra.mxu3 %v239_v15  ;;  %v227_v27 = vld [vmem:[%s1078_s1 + $0x118] sm:$0xff]  ;;  %v228_v28 = vld [vmem:[%s1078_s1 + $0x120] sm:$0xff]  ;;  %v229_v29 = vld [vmem:[%s1078_s1 + $0x128] sm:$0xff] }
  0x15   : > { %270 = vmatpush.msra.mxu0 %v236_v20  ;;  %335 = vmatpush.msra.mxu1 %v237_v21  ;;  %v222_v30 = vld [vmem:[%s1078_s1 + $0xf0] sm:$0xff]  ;;  %v223_v31 = vld [vmem:[%s1078_s1 + $0xf8] sm:$0xff]  ;;  %v224_v32 = vld [vmem:[%s1078_s1 + $0x100] sm:$0xff] }
  0x16   : > { %401 = vmatpush.msra.mxu2 %v234_v18  ;;  %466 = vmatpush.msra.mxu3 %v235_v19  ;;  %v225_v33 = vld [vmem:[%s1078_s1 + $0x108] sm:$0xff]  ;;  %v218_v34 = vld [vmem:[%s1078_s1 + $0xd0] sm:$0xff]  ;;  %v219_v35 = vld [vmem:[%s1078_s1 + $0xd8] sm:$0xff] }
  0x17   : > { %271 = vmatpush.msra.mxu0 %v232_v24  ;;  %336 = vmatpush.msra.mxu1 %v233_v25  ;;  %v220_v36 = vld [vmem:[%s1078_s1 + $0xe0] sm:$0xff]  ;;  %v221_v37 = vld [vmem:[%s1078_s1 + $0xe8] sm:$0xff]  ;;  %v214_v38 = vld [vmem:[%s1078_s1 + $0xb0] sm:$0xff] }
  0x18   : > { %402 = vmatpush.msra.mxu2 %v230_v22  ;;  %467 = vmatpush.msra.mxu3 %v231_v23  ;;  %v215_v39 = vld [vmem:[%s1078_s1 + $0xb8] sm:$0xff]  ;;  %v216_v40 = vld [vmem:[%s1078_s1 + $0xc0] sm:$0xff]  ;;  %v217_v41 = vld [vmem:[%s1078_s1 + $0xc8] sm:$0xff] }
  0x19   : > { %272 = vmatpush.msra.mxu0 %v228_v28  ;;  %337 = vmatpush.msra.mxu1 %v229_v29  ;;  %v210_v42 = vld [vmem:[%s1078_s1 + $0x90] sm:$0xff]  ;;  %v211_v43 = vld [vmem:[%s1078_s1 + $0x98] sm:$0xff]  ;;  %v212_v44 = vld [vmem:[%s1078_s1 + $0xa0] sm:$0xff] }
  0x1a   : > { %403 = vmatpush.msra.mxu2 %v226_v26  ;;  %468 = vmatpush.msra.mxu3 %v227_v27  ;;  %v213_v45 = vld [vmem:[%s1078_s1 + $0xa8] sm:$0xff]  ;;  %v206_v46 = vld [vmem:[%s1078_s1 + $0x70] sm:$0xff]  ;;  %v207_v47 = vld [vmem:[%s1078_s1 + $0x78] sm:$0xff] }
  0x1b   : > { %273 = vmatpush.msra.mxu0 %v224_v32  ;;  %338 = vmatpush.msra.mxu1 %v225_v33  ;;  %v208_v48 = vld [vmem:[%s1078_s1 + $0x80] sm:$0xff]  ;;  %v209_v49 = vld [vmem:[%s1078_s1 + $0x88] sm:$0xff]  ;;  %v202_v50 = vld [vmem:[%s1078_s1 + $0x50] sm:$0xff] }
  0x1c   : > { %404 = vmatpush.msra.mxu2 %v222_v30  ;;  %469 = vmatpush.msra.mxu3 %v223_v31  ;;  %v203_v51 = vld [vmem:[%s1078_s1 + $0x58] sm:$0xff]  ;;  %v204_v52 = vld [vmem:[%s1078_s1 + $0x60] sm:$0xff]  ;;  %v205_v53 = vld [vmem:[%s1078_s1 + $0x68] sm:$0xff] }
  0x1d   : > { %274 = vmatpush.msra.mxu0 %v220_v36  ;;  %339 = vmatpush.msra.mxu1 %v221_v37  ;;  %v198_v54 = vld [vmem:[%s1078_s1 + $0x30] sm:$0xff]  ;;  %v199_v55 = vld [vmem:[%s1078_s1 + $0x38] sm:$0xff]  ;;  %v200_v56 = vld [vmem:[%s1078_s1 + $0x40] sm:$0xff] }
  0x1e   : > { %405 = vmatpush.msra.mxu2 %v218_v34  ;;  %470 = vmatpush.msra.mxu3 %v219_v35  ;;  %v201_v57 = vld [vmem:[%s1078_s1 + $0x48] sm:$0xff]  ;;  %v194_v58 = vld [vmem:[%s1078_s1 + $0x10] sm:$0xff]  ;;  %v195_v59 = vld [vmem:[%s1078_s1 + $0x18] sm:$0xff] }
  0x1f   : > { %275 = vmatpush.msra.mxu0 %v216_v40  ;;  %340 = vmatpush.msra.mxu1 %v217_v41  ;;  %v176_v60 = vld [vmem:[%s887_s29] sm:$0xff]  ;;  %v197_v62 = vld [vmem:[%s1078_s1 + $0x28] sm:$0xff]  ;;  %v178_v2 = vld [vmem:[%s887_s29 + $0x10] sm:$0xff] }
  0x20   : > { %406 = vmatpush.msra.mxu2 %v214_v38  ;;  %471 = vmatpush.msra.mxu3 %v215_v39  ;;  %v196_v61 = vld [vmem:[%s1078_s1 + $0x20] sm:$0xff]  ;;  %v193_v0 = vld [vmem:[%s1078_s1 + $0x8] sm:$0xff]  ;;  %v179_v3 = vld [vmem:[%s887_s29 + $0x18] sm:$0xff] }
  0x21   : > { %276 = vmatpush.msra.mxu0 %v212_v44  ;;  %341 = vmatpush.msra.mxu1 %v213_v45  ;;  %v192_v63 = vld [vmem:[%s1078_s1] sm:$0xff]  ;;  %v177_v1 = vld [vmem:[%s887_s29 + $0x8] sm:$0xff]  ;;  %v182_v6 = vld [vmem:[%s887_s29 + $0x30] sm:$0xff] }
  0x22   : > { %407 = vmatpush.msra.mxu2 %v210_v42  ;;  %472 = vmatpush.msra.mxu3 %v211_v43  ;;  %v180_v4 = vld [vmem:[%s887_s29 + $0x20] sm:$0xff]  ;;  %v181_v5 = vld [vmem:[%s887_s29 + $0x28] sm:$0xff]  ;;  %v183_v7 = vld [vmem:[%s887_s29 + $0x38] sm:$0xff] }
  0x23   : > { %277 = vmatpush.msra.mxu0 %v208_v48  ;;  %342 = vmatpush.msra.mxu1 %v209_v49  ;;  %v184_v8 = vld [vmem:[%s887_s29 + $0x40] sm:$0xff]  ;;  %v185_v9 = vld [vmem:[%s887_s29 + $0x48] sm:$0xff]  ;;  %v186_v10 = vld [vmem:[%s887_s29 + $0x50] sm:$0xff] }
  0x24   : > { %408 = vmatpush.msra.mxu2 %v206_v46  ;;  %473 = vmatpush.msra.mxu3 %v207_v47  ;;  %v187_v11 = vld [vmem:[%s887_s29 + $0x58] sm:$0xff]  ;;  %v188_v12 = vld [vmem:[%s887_s29 + $0x60] sm:$0xff]  ;;  %v189_v13 = vld [vmem:[%s887_s29 + $0x68] sm:$0xff] }
  0x25   : > { %278 = vmatpush.msra.mxu0 %v204_v52  ;;  %343 = vmatpush.msra.mxu1 %v205_v53  ;;  %v190_v14 = vld [vmem:[%s887_s29 + $0x70] sm:$0xff]  ;;  %v191_v15 = vld [vmem:[%s887_s29 + $0x78] sm:$0xff]  ;;  %v256_v16 = vld [vmem:[%s1079_s2] sm:$0xf] }
  0x26   : > { %409 = vmatpush.msra.mxu2 %v202_v50  ;;  %474 = vmatpush.msra.mxu3 %v203_v51  ;;  %v933_v17 = vperm.slane %v256_v16, 0  ;;  %v935_v18 = vperm.slane %v256_v16, 1  ;;  %v937_v19 = vperm.slane %v256_v16, 2  ;;  %v939_v20 = vperm.slane %v256_v16, 3 }
  0x27   : > { %279 = vmatpush.msra.mxu0 %v200_v56  ;;  %344 = vmatpush.msra.mxu1 %v201_v57 }
  0x28   : > { %410 = vmatpush.msra.mxu2 %v198_v54  ;;  %475 = vmatpush.msra.mxu3 %v199_v55 }
  0x29   : > { %280 = vmatpush.msra.mxu0 %v196_v61  ;;  %345 = vmatpush.msra.mxu1 %v197_v62 }
  0x2a   : > { %411 = vmatpush.msra.mxu2 %v194_v58  ;;  %476 = vmatpush.msra.mxu3 %v195_v59 }
  0x2b   : > { %412 = vmatmul.f32.vlgmr.msra.gmra.mxu2 %v176_v60  ;;  %477 = vmatmul.f32.vlgmr.msra.gmra.mxu3 %v176_v60 }
  0x2c   : > { %281 = vmatpush.msra.mxu0 %v192_v63  ;;  %346 = vmatpush.msra.mxu1 %v193_v0 }
  0x2d   : > { %282 = vmatmul.f32.vlgmr.msra.gmra.mxu0 %v176_v60  ;;  %347 = vmatmul.f32.vlgmr.msra.gmra.mxu1 %v176_v60 }
  0x33   : > { %415 = vmatmul.f32.gmra.mxu2 %v177_v1  ;;  %480 = vmatmul.f32.gmra.mxu3 %v177_v1 }
  0x35   : > { %285 = vmatmul.f32.gmra.mxu0 %v177_v1  ;;  %350 = vmatmul.f32.gmra.mxu1 %v177_v1 }
  0x3b   : > { %418 = vmatmul.f32.gmra.mxu2 %v178_v2  ;;  %483 = vmatmul.f32.gmra.mxu3 %v178_v2 }
  0x3d   : > { %288 = vmatmul.f32.gmra.mxu0 %v178_v2  ;;  %353 = vmatmul.f32.gmra.mxu1 %v178_v2 }
  0x43   : > { %421 = vmatmul.f32.gmra.mxu2 %v179_v3  ;;  %486 = vmatmul.f32.gmra.mxu3 %v179_v3 }
  0x45   : > { %291 = vmatmul.f32.gmra.mxu0 %v179_v3  ;;  %356 = vmatmul.f32.gmra.mxu1 %v179_v3 }
  0x4b   : > { %424 = vmatmul.f32.gmra.mxu2 %v180_v4  ;;  %489 = vmatmul.f32.gmra.mxu3 %v180_v4 }
  0x4d   : > { %294 = vmatmul.f32.gmra.mxu0 %v180_v4  ;;  %359 = vmatmul.f32.gmra.mxu1 %v180_v4 }
  0x53   : > { %427 = vmatmul.f32.gmra.mxu2 %v181_v5  ;;  %492 = vmatmul.f32.gmra.mxu3 %v181_v5 }
  0x55   : > { %297 = vmatmul.f32.gmra.mxu0 %v181_v5  ;;  %362 = vmatmul.f32.gmra.mxu1 %v181_v5 }
  0x5b   : > { %430 = vmatmul.f32.gmra.mxu2 %v182_v6  ;;  %495 = vmatmul.f32.gmra.mxu3 %v182_v6 }
  0x5d   : > { %300 = vmatmul.f32.gmra.mxu0 %v182_v6  ;;  %365 = vmatmul.f32.gmra.mxu1 %v182_v6 }
  0x63   : > { %433 = vmatmul.f32.gmra.mxu2 %v183_v7  ;;  %498 = vmatmul.f32.gmra.mxu3 %v183_v7 }
  0x65   : > { %303 = vmatmul.f32.gmra.mxu0 %v183_v7  ;;  %368 = vmatmul.f32.gmra.mxu1 %v183_v7 }
  0x6b   : > { %436 = vmatmul.f32.gmra.mxu2 %v184_v8  ;;  %501 = vmatmul.f32.gmra.mxu3 %v184_v8 }
  0x6d   : > { %306 = vmatmul.f32.gmra.mxu0 %v184_v8  ;;  %371 = vmatmul.f32.gmra.mxu1 %v184_v8 }
  0x73   : > { %439 = vmatmul.f32.gmra.mxu2 %v185_v9  ;;  %504 = vmatmul.f32.gmra.mxu3 %v185_v9 }
  0x75   : > { %309 = vmatmul.f32.gmra.mxu0 %v185_v9  ;;  %374 = vmatmul.f32.gmra.mxu1 %v185_v9 }
  0x7b   : > { %442 = vmatmul.f32.gmra.mxu2 %v186_v10  ;;  %507 = vmatmul.f32.gmra.mxu3 %v186_v10 }
  0x7d   : > { %312 = vmatmul.f32.gmra.mxu0 %v186_v10  ;;  %377 = vmatmul.f32.gmra.mxu1 %v186_v10 }
  0x83   : > { %445 = vmatmul.f32.gmra.mxu2 %v187_v11  ;;  %510 = vmatmul.f32.gmra.mxu3 %v187_v11 }
  0x85   : > { %315 = vmatmul.f32.gmra.mxu0 %v187_v11  ;;  %380 = vmatmul.f32.gmra.mxu1 %v187_v11 }
  0x8b   : > { %448 = vmatmul.f32.gmra.mxu2 %v188_v12  ;;  %513 = vmatmul.f32.gmra.mxu3 %v188_v12 }
  0x8d   : > { %318 = vmatmul.f32.gmra.mxu0 %v188_v12  ;;  %383 = vmatmul.f32.gmra.mxu1 %v188_v12 }
  0x93   : > { %451 = vmatmul.f32.gmra.mxu2 %v189_v13  ;;  %516 = vmatmul.f32.gmra.mxu3 %v189_v13 }
  0x95   : > { %321 = vmatmul.f32.gmra.mxu0 %v189_v13  ;;  %386 = vmatmul.f32.gmra.mxu1 %v189_v13 }
  0x9b   : > { %454 = vmatmul.f32.gmra.mxu2 %v190_v14  ;;  %519 = vmatmul.f32.gmra.mxu3 %v190_v14 }
  0x9d   : > { %324 = vmatmul.f32.gmra.mxu0 %v190_v14  ;;  %389 = vmatmul.f32.gmra.mxu1 %v190_v14 }
  0xa3   : > { %457 = vmatmul.f32.gmra.mxu2 %v191_v15  ;;  %522 = vmatmul.f32.gmra.mxu3 %v191_v15 }
  0xa5   : > { %327 = vmatmul.f32.gmra.mxu0 %v191_v15  ;;  %392 = vmatmul.f32.gmra.mxu1 %v191_v15 }
  0xaa   : > { %v283_v21 = vpop.f32.mrf.mxu0  ;;  %v348_v22 = vpop.f32.mrf.mxu1 }
  0xab   : > { %v284_v23 = vadd.f32 %v283_v21, %v933_v17  ;;  %v349_v24 = vadd.f32 %v348_v22, %v935_v18 }
  0xad   : > { %526 = vst [vmem:[%s944_s27] sm:$0xff] %v284_v23 }
  0xae   : > { %v413_v25 = vpop.f32.mrf.mxu2  ;;  %v478_v26 = vpop.f32.mrf.mxu3  ;;  %527 = vst [vmem:[%s944_s27 + $0x8] sm:$0xff] %v349_v24 }
  0xaf   : > { %v414_v27 = vadd.f32 %v413_v25, %v937_v19  ;;  %v479_v28 = vadd.f32 %v478_v26, %v939_v20 }
  0xb1   : > { %528 = vst [vmem:[%s944_s27 + $0x10] sm:$0xff] %v414_v27 }
  0xb2   : > { %529 = vst [vmem:[%s944_s27 + $0x18] sm:$0xff] %v479_v28  ;;  %v286_v29 = vpop.f32.mrf.mxu0  ;;  %v351_v30 = vpop.f32.mrf.mxu1 }
  0xb3   : > { %v287_v31 = vadd.f32 %v286_v29, %v933_v17  ;;  %v352_v32 = vadd.f32 %v351_v30, %v935_v18 }
  0xb5   : > { %530 = vst [vmem:[%s944_s27 + $0x20] sm:$0xff] %v287_v31 }
  0xb6   : > { %v416_v33 = vpop.f32.mrf.mxu2  ;;  %v481_v34 = vpop.f32.mrf.mxu3  ;;  %531 = vst [vmem:[%s944_s27 + $0x28] sm:$0xff] %v352_v32 }
  0xb7   : > { %v417_v35 = vadd.f32 %v416_v33, %v937_v19  ;;  %v482_v36 = vadd.f32 %v481_v34, %v939_v20 }
  0xb9   : > { %532 = vst [vmem:[%s944_s27 + $0x30] sm:$0xff] %v417_v35 }
  0xba   : > { %533 = vst [vmem:[%s944_s27 + $0x38] sm:$0xff] %v482_v36  ;;  %v289_v37 = vpop.f32.mrf.mxu0  ;;  %v354_v38 = vpop.f32.mrf.mxu1 }
  0xbb   : > { %v290_v39 = vadd.f32 %v289_v37, %v933_v17  ;;  %v355_v40 = vadd.f32 %v354_v38, %v935_v18 }
  0xbd   : > { %534 = vst [vmem:[%s944_s27 + $0x40] sm:$0xff] %v290_v39 }
  0xbe   : > { %v419_v41 = vpop.f32.mrf.mxu2  ;;  %v484_v42 = vpop.f32.mrf.mxu3  ;;  %535 = vst [vmem:[%s944_s27 + $0x48] sm:$0xff] %v355_v40 }
  0xbf   : > { %v420_v43 = vadd.f32 %v419_v41, %v937_v19  ;;  %v485_v44 = vadd.f32 %v484_v42, %v939_v20 }
  0xc1   : > { %536 = vst [vmem:[%s944_s27 + $0x50] sm:$0xff] %v420_v43 }
  0xc2   : > { %537 = vst [vmem:[%s944_s27 + $0x58] sm:$0xff] %v485_v44  ;;  %v292_v45 = vpop.f32.mrf.mxu0  ;;  %v357_v46 = vpop.f32.mrf.mxu1 }
  0xc3   : > { %v293_v47 = vadd.f32 %v292_v45, %v933_v17  ;;  %v358_v48 = vadd.f32 %v357_v46, %v935_v18 }
  0xc5   : > { %538 = vst [vmem:[%s944_s27 + $0x60] sm:$0xff] %v293_v47 }
  0xc6   : > { %v422_v49 = vpop.f32.mrf.mxu2  ;;  %v487_v50 = vpop.f32.mrf.mxu3  ;;  %539 = vst [vmem:[%s944_s27 + $0x68] sm:$0xff] %v358_v48 }
  0xc7   : > { %v423_v51 = vadd.f32 %v422_v49, %v937_v19  ;;  %v488_v52 = vadd.f32 %v487_v50, %v939_v20 }
  0xc9   : > { %540 = vst [vmem:[%s944_s27 + $0x70] sm:$0xff] %v423_v51 }
  0xca   : > { %541 = vst [vmem:[%s944_s27 + $0x78] sm:$0xff] %v488_v52  ;;  %v295_v53 = vpop.f32.mrf.mxu0  ;;  %v360_v54 = vpop.f32.mrf.mxu1 }
  0xcb   : > { %v296_v55 = vadd.f32 %v295_v53, %v933_v17  ;;  %v361_v56 = vadd.f32 %v360_v54, %v935_v18 }
  0xcd   : > { %542 = vst [vmem:[%s944_s27 + $0x80] sm:$0xff] %v296_v55 }
  0xce   : > { %v425_v57 = vpop.f32.mrf.mxu2  ;;  %v490_v58 = vpop.f32.mrf.mxu3  ;;  %543 = vst [vmem:[%s944_s27 + $0x88] sm:$0xff] %v361_v56 }
  0xcf   : > { %v426_v59 = vadd.f32 %v425_v57, %v937_v19  ;;  %v491_v60 = vadd.f32 %v490_v58, %v939_v20 }
  0xd1   : > { %544 = vst [vmem:[%s944_s27 + $0x90] sm:$0xff] %v426_v59 }
  0xd2   : > { %545 = vst [vmem:[%s944_s27 + $0x98] sm:$0xff] %v491_v60  ;;  %v298_v61 = vpop.f32.mrf.mxu0  ;;  %v363_v62 = vpop.f32.mrf.mxu1 }
  0xd3   : > { %v299_v63 = vadd.f32 %v298_v61, %v933_v17  ;;  %v364_v0 = vadd.f32 %v363_v62, %v935_v18 }
  0xd5   : > { %546 = vst [vmem:[%s944_s27 + $0xa0] sm:$0xff] %v299_v63 }
  0xd6   : > { %v428_v1 = vpop.f32.mrf.mxu2  ;;  %v493_v2 = vpop.f32.mrf.mxu3  ;;  %547 = vst [vmem:[%s944_s27 + $0xa8] sm:$0xff] %v364_v0 }
  0xd7   : > { %v429_v3 = vadd.f32 %v428_v1, %v937_v19  ;;  %v494_v4 = vadd.f32 %v493_v2, %v939_v20 }
  0xd9   : > { %548 = vst [vmem:[%s944_s27 + $0xb0] sm:$0xff] %v429_v3 }
  0xda   : > { %549 = vst [vmem:[%s944_s27 + $0xb8] sm:$0xff] %v494_v4  ;;  %v301_v5 = vpop.f32.mrf.mxu0  ;;  %v366_v6 = vpop.f32.mrf.mxu1 }
  0xdb   : > { %v302_v7 = vadd.f32 %v301_v5, %v933_v17  ;;  %v367_v8 = vadd.f32 %v366_v6, %v935_v18 }
  0xdd   : > { %550 = vst [vmem:[%s944_s27 + $0xc0] sm:$0xff] %v302_v7 }
  0xde   : > { %v431_v9 = vpop.f32.mrf.mxu2  ;;  %v496_v10 = vpop.f32.mrf.mxu3  ;;  %551 = vst [vmem:[%s944_s27 + $0xc8] sm:$0xff] %v367_v8 }
  0xdf   : > { %v432_v11 = vadd.f32 %v431_v9, %v937_v19  ;;  %v497_v12 = vadd.f32 %v496_v10, %v939_v20 }
  0xe1   : > { %552 = vst [vmem:[%s944_s27 + $0xd0] sm:$0xff] %v432_v11 }
  0xe2   : > { %553 = vst [vmem:[%s944_s27 + $0xd8] sm:$0xff] %v497_v12  ;;  %v304_v13 = vpop.f32.mrf.mxu0  ;;  %v369_v14 = vpop.f32.mrf.mxu1 }
  0xe3   : > { %v305_v15 = vadd.f32 %v304_v13, %v933_v17  ;;  %v370_v16 = vadd.f32 %v369_v14, %v935_v18 }
  0xe5   : > { %554 = vst [vmem:[%s944_s27 + $0xe0] sm:$0xff] %v305_v15 }
  0xe6   : > { %v434_v21 = vpop.f32.mrf.mxu2  ;;  %v499_v22 = vpop.f32.mrf.mxu3  ;;  %555 = vst [vmem:[%s944_s27 + $0xe8] sm:$0xff] %v370_v16 }
  0xe7   : > { %v435_v23 = vadd.f32 %v434_v21, %v937_v19  ;;  %v500_v24 = vadd.f32 %v499_v22, %v939_v20 }
  0xe9   : > { %556 = vst [vmem:[%s944_s27 + $0xf0] sm:$0xff] %v435_v23 }
  0xea   : > { %557 = vst [vmem:[%s944_s27 + $0xf8] sm:$0xff] %v500_v24  ;;  %v307_v25 = vpop.f32.mrf.mxu0  ;;  %v372_v26 = vpop.f32.mrf.mxu1 }
  0xeb   : > { %v308_v27 = vadd.f32 %v307_v25, %v933_v17  ;;  %v373_v28 = vadd.f32 %v372_v26, %v935_v18 }
  0xed   : > { %558 = vst [vmem:[%s944_s27 + $0x100] sm:$0xff] %v308_v27 }
  0xee   : > { %v437_v29 = vpop.f32.mrf.mxu2  ;;  %v502_v30 = vpop.f32.mrf.mxu3  ;;  %559 = vst [vmem:[%s944_s27 + $0x108] sm:$0xff] %v373_v28 }
  0xef   : > { %v438_v31 = vadd.f32 %v437_v29, %v937_v19  ;;  %v503_v32 = vadd.f32 %v502_v30, %v939_v20 }
  0xf1   : > { %560 = vst [vmem:[%s944_s27 + $0x110] sm:$0xff] %v438_v31 }
  0xf2   : > { %561 = vst [vmem:[%s944_s27 + $0x118] sm:$0xff] %v503_v32  ;;  %v310_v33 = vpop.f32.mrf.mxu0  ;;  %v375_v34 = vpop.f32.mrf.mxu1 }
  0xf3   : > { %v311_v35 = vadd.f32 %v310_v33, %v933_v17  ;;  %v376_v36 = vadd.f32 %v375_v34, %v935_v18 }
  0xf5   : > { %562 = vst [vmem:[%s944_s27 + $0x120] sm:$0xff] %v311_v35 }
  0xf6   : > { %v440_v37 = vpop.f32.mrf.mxu2  ;;  %v505_v38 = vpop.f32.mrf.mxu3  ;;  %563 = vst [vmem:[%s944_s27 + $0x128] sm:$0xff] %v376_v36 }
  0xf7   : > { %v441_v39 = vadd.f32 %v440_v37, %v937_v19  ;;  %v506_v40 = vadd.f32 %v505_v38, %v939_v20 }
  0xf9   : > { %564 = vst [vmem:[%s944_s27 + $0x130] sm:$0xff] %v441_v39 }
  0xfa   : > { %565 = vst [vmem:[%s944_s27 + $0x138] sm:$0xff] %v506_v40  ;;  %v313_v41 = vpop.f32.mrf.mxu0  ;;  %v378_v42 = vpop.f32.mrf.mxu1 }
  0xfb   : > { %v314_v43 = vadd.f32 %v313_v41, %v933_v17  ;;  %v379_v44 = vadd.f32 %v378_v42, %v935_v18 }
  0xfd   : > { %566 = vst [vmem:[%s944_s27 + $0x140] sm:$0xff] %v314_v43 }
  0xfe   : > { %v443_v45 = vpop.f32.mrf.mxu2  ;;  %v508_v46 = vpop.f32.mrf.mxu3  ;;  %567 = vst [vmem:[%s944_s27 + $0x148] sm:$0xff] %v379_v44 }
  0xff   : > { %v444_v47 = vadd.f32 %v443_v45, %v937_v19  ;;  %v509_v48 = vadd.f32 %v508_v46, %v939_v20 }
 0x101   : > { %568 = vst [vmem:[%s944_s27 + $0x150] sm:$0xff] %v444_v47 }
 0x102   : > { %569 = vst [vmem:[%s944_s27 + $0x158] sm:$0xff] %v509_v48  ;;  %v316_v49 = vpop.f32.mrf.mxu0  ;;  %v381_v50 = vpop.f32.mrf.mxu1 }
 0x103   : > { %v317_v51 = vadd.f32 %v316_v49, %v933_v17  ;;  %v382_v52 = vadd.f32 %v381_v50, %v935_v18 }
 0x105   : > { %570 = vst [vmem:[%s944_s27 + $0x160] sm:$0xff] %v317_v51 }
 0x106   : > { %v446_v53 = vpop.f32.mrf.mxu2  ;;  %v511_v54 = vpop.f32.mrf.mxu3  ;;  %571 = vst [vmem:[%s944_s27 + $0x168] sm:$0xff] %v382_v52 }
 0x107   : > { %v447_v55 = vadd.f32 %v446_v53, %v937_v19  ;;  %v512_v56 = vadd.f32 %v511_v54, %v939_v20 }
 0x109   : > { %572 = vst [vmem:[%s944_s27 + $0x170] sm:$0xff] %v447_v55 }
 0x10a   : > { %573 = vst [vmem:[%s944_s27 + $0x178] sm:$0xff] %v512_v56  ;;  %v319_v57 = vpop.f32.mrf.mxu0  ;;  %v384_v58 = vpop.f32.mrf.mxu1 }
 0x10b   : > { %v320_v59 = vadd.f32 %v319_v57, %v933_v17  ;;  %v385_v60 = vadd.f32 %v384_v58, %v935_v18 }
 0x10d   : > { %574 = vst [vmem:[%s944_s27 + $0x180] sm:$0xff] %v320_v59 }
 0x10e   : > { %v449_v61 = vpop.f32.mrf.mxu2  ;;  %v514_v62 = vpop.f32.mrf.mxu3  ;;  %575 = vst [vmem:[%s944_s27 + $0x188] sm:$0xff] %v385_v60 }
 0x10f   : > { %v450_v63 = vadd.f32 %v449_v61, %v937_v19  ;;  %v515_v0 = vadd.f32 %v514_v62, %v939_v20 }
 0x111   : > { %576 = vst [vmem:[%s944_s27 + $0x190] sm:$0xff] %v450_v63 }
 0x112   : > { %577 = vst [vmem:[%s944_s27 + $0x198] sm:$0xff] %v515_v0  ;;  %v322_v1 = vpop.f32.mrf.mxu0  ;;  %v387_v2 = vpop.f32.mrf.mxu1 }
 0x113   : > { %v323_v3 = vadd.f32 %v322_v1, %v933_v17  ;;  %v388_v4 = vadd.f32 %v387_v2, %v935_v18 }
 0x115   : > { %578 = vst [vmem:[%s944_s27 + $0x1a0] sm:$0xff] %v323_v3 }
 0x116   : > { %v452_v5 = vpop.f32.mrf.mxu2  ;;  %v517_v6 = vpop.f32.mrf.mxu3  ;;  %579 = vst [vmem:[%s944_s27 + $0x1a8] sm:$0xff] %v388_v4 }
 0x117   : > { %v453_v7 = vadd.f32 %v452_v5, %v937_v19  ;;  %v518_v8 = vadd.f32 %v517_v6, %v939_v20 }
 0x119   : > { %580 = vst [vmem:[%s944_s27 + $0x1b0] sm:$0xff] %v453_v7 }
 0x11a   : > { %581 = vst [vmem:[%s944_s27 + $0x1b8] sm:$0xff] %v518_v8  ;;  %v325_v9 = vpop.f32.mrf.mxu0  ;;  %v390_v10 = vpop.f32.mrf.mxu1 }
 0x11b   : > { %v326_v11 = vadd.f32 %v325_v9, %v933_v17  ;;  %v391_v12 = vadd.f32 %v390_v10, %v935_v18 }
 0x11d   : > { %582 = vst [vmem:[%s944_s27 + $0x1c0] sm:$0xff] %v326_v11 }
 0x11e   : > { %v455_v13 = vpop.f32.mrf.mxu2  ;;  %v520_v14 = vpop.f32.mrf.mxu3  ;;  %583 = vst [vmem:[%s944_s27 + $0x1c8] sm:$0xff] %v391_v12 }
 0x11f   : > { %v456_v15 = vadd.f32 %v455_v13, %v937_v19  ;;  %v521_v16 = vadd.f32 %v520_v14, %v939_v20 }
 0x121   : > { %584 = vst [vmem:[%s944_s27 + $0x1d0] sm:$0xff] %v456_v15 }
 0x122   : > { %585 = vst [vmem:[%s944_s27 + $0x1d8] sm:$0xff] %v521_v16  ;;  %v328_v21 = vpop.f32.mrf.mxu0  ;;  %v393_v22 = vpop.f32.mrf.mxu1 }
 0x123   : > { %v329_v23 = vadd.f32 %v328_v21, %v933_v17  ;;  %v394_v24 = vadd.f32 %v393_v22, %v935_v18 }
 0x125   : > { %586 = vst [vmem:[%s944_s27 + $0x1e0] sm:$0xff] %v329_v23 }
 0x126   : > { %v458_v25 = vpop.f32.mrf.mxu2  ;;  %v523_v26 = vpop.f32.mrf.mxu3  ;;  %587 = vst [vmem:[%s944_s27 + $0x1e8] sm:$0xff] %v394_v24 }
 0x127   : > { %v459_v27 = vadd.f32 %v458_v25, %v937_v19  ;;  %v524_v28 = vadd.f32 %v523_v26, %v939_v20 }
 0x129   : > { %588 = vst [vmem:[%s944_s27 + $0x1f0] sm:$0xff] %v459_v27 }
 0x12a   : > { %589 = vst [vmem:[%s944_s27 + $0x1f8] sm:$0xff] %v524_v28 }
 0x12b PF: > { %s13_s12 = sadd.s32 1, %s675_s12  }
 0x12c   : > { %p10_p4 = scmp.ge.s32.totalorder %s13_s12, 4  }
 0x12e   :  { %12 = sbr.rel (!%p10_p4) target bundleno = 1 (0x1), region = 62 }

// kernel: bytenet_structure_model.17
= control target key start
LH: loop header
LB: loop body
LE: loop exit
PB: predicated region body
PF: predicated region fallthrough
CT: control target
= control target key end

     0   :  { %s893_s9 = smov 0   ;;  %s895_s10 = smov 0   ;;  %s1198_s0 = inlined_call_operand.vmem [shape: f32[2,128,512], index: 0, kind: input, shape index: {}, may-alias: {0,1}]   ;;  %s1199_s1 = inlined_call_operand.vmem [shape: f32[2,128,512], index: 1, kind: input, shape index: {}, may-alias: {0,1}]   ;;  %s1200_s2 = inlined_call_operand.vmem [shape: f32[2,128,128], index: 2, kind: output, shape index: {}]  }
   0x1   :  { %s897_s11 = smov 0   ;;  %s899_s12 = smov 0  }
   0x2   :  { %s901_s13 = smov 0  }
   0x3 LB: > { %s31_s14 = sadd.s32 1, %s872_s12  ;;  %p47_p1 = scmp.ne.s32.totalorder %s864_s10, %s860_s9  ;;  %s876_s13 = sphi %s901_s13, %s12_s13   ;;  %s872_s12 = sphi %s899_s12, %s1205_s12   ;;  %s868_s11 = sphi %s897_s11, %s1204_s11   ;;  %s864_s10 = sphi %s895_s10, %s1203_s10   ;;  %s860_s9 = sphi %s893_s9, %s1202_s9  }
   0x4   : > { %p33_p0 = scmp.ge.s32.totalorder %s31_s14, 2  ;;  %p48_p2 = scmp.eq.s32.totalorder %s876_s13, 0 }
   0x5   : > { %s40_s17 = sadd.s32 1, %s864_s10  ;;  %p717_p5 = scmp.ge.s32.totalorder %s876_s13, 2 }
   0x6   : > { %s1207_s14 = smov (%p33_p0, %s31_s14), 0  ;;  %p924_p3 = por %p48_p2, %p47_p1 }
   0x7   : > { %s35_s16 = ssub.s32 %s872_s12, %s1207_s14  ;;  %131 = sbr.rel (%p717_p5) target bundleno = 84 (0x54), region = 16 }
   0x8   : > { %p38_p4 = scmp.eq.s32.totalorder %s35_s16, 0 }
   0xa   : > { %s932_s18 = scalar_select %p38_p4, %s864_s10, %s40_s17  }
   0xc   : > { %134 = sbr.rel (!%p924_p3) target bundleno = 48 (0x30), region = 20  ;;  %s136_s19 = sand.u32 (%p924_p3), 1, %s864_s10  }
   0xd   : > { %s763_s20 = sshll.u32 (%p924_p3), %s872_s12, 9  ;;  %s718_s21 = sshll.u32 (%p924_p3), %s136_s19, 8 }
   0xe   : > { %s942_s24 = scalar_lea.vmem (%p924_p3), %s1198_s0, %s763_s20  ;;  %s947_s25 = scalar_lea.vmem (%p924_p3), [#allocation2], %s718_s21 }
   0xf   : > { %v157_v0 = vld [vmem:[%s942_s24] sm:$0xff] (%p924_p3)  ;;  %v159_v1 = vld [vmem:[%s942_s24 + $0x8] sm:$0xff] (%p924_p3) }
  0x10   : > { %v161_v2 = vld [vmem:[%s942_s24 + $0x20] sm:$0xff] (%p924_p3)  ;;  %158 = vst [vmem:[%s947_s25] sm:$0xff] (%p924_p3), %v157_v0  ;;  %v163_v3 = vld [vmem:[%s942_s24 + $0x28] sm:$0xff] (%p924_p3) }
  0x11   : > { %160 = vst [vmem:[%s947_s25 + $0x8] sm:$0xff] %v159_v1  ;;  %v165_v4 = vld [vmem:[%s942_s24 + $0x40] sm:$0xff]  ;;  %v167_v5 = vld [vmem:[%s942_s24 + $0x48] sm:$0xff] }
  0x12   : > { %162 = vst [vmem:[%s947_s25 + $0x10] sm:$0xff] %v161_v2  ;;  %v169_v6 = vld [vmem:[%s942_s24 + $0x60] sm:$0xff]  ;;  %v171_v7 = vld [vmem:[%s942_s24 + $0x68] sm:$0xff] }
  0x13   : > { %164 = vst [vmem:[%s947_s25 + $0x18] sm:$0xff] %v163_v3  ;;  %v173_v8 = vld [vmem:[%s942_s24 + $0x80] sm:$0xff]  ;;  %v175_v9 = vld [vmem:[%s942_s24 + $0x88] sm:$0xff] }
  0x14   : > { %166 = vst [vmem:[%s947_s25 + $0x20] sm:$0xff] %v165_v4  ;;  %v177_v10 = vld [vmem:[%s942_s24 + $0xa0] sm:$0xff]  ;;  %v179_v11 = vld [vmem:[%s942_s24 + $0xa8] sm:$0xff] }
  0x15   : > { %168 = vst [vmem:[%s947_s25 + $0x28] sm:$0xff] %v167_v5  ;;  %v181_v12 = vld [vmem:[%s942_s24 + $0xc0] sm:$0xff]  ;;  %v183_v13 = vld [vmem:[%s942_s24 + $0xc8] sm:$0xff] }
  0x16   : > { %170 = vst [vmem:[%s947_s25 + $0x30] sm:$0xff] %v169_v6  ;;  %v185_v14 = vld [vmem:[%s942_s24 + $0xe0] sm:$0xff]  ;;  %v187_v15 = vld [vmem:[%s942_s24 + $0xe8] sm:$0xff] }
  0x17   : > { %172 = vst [vmem:[%s947_s25 + $0x38] sm:$0xff] %v171_v7  ;;  %v189_v16 = vld [vmem:[%s942_s24 + $0x100] sm:$0xff]  ;;  %v191_v17 = vld [vmem:[%s942_s24 + $0x108] sm:$0xff] }
  0x18   : > { %174 = vst [vmem:[%s947_s25 + $0x40] sm:$0xff] %v173_v8  ;;  %v193_v18 = vld [vmem:[%s942_s24 + $0x120] sm:$0xff]  ;;  %v195_v19 = vld [vmem:[%s942_s24 + $0x128] sm:$0xff] }
  0x19   : > { %176 = vst [vmem:[%s947_s25 + $0x48] sm:$0xff] %v175_v9  ;;  %v197_v20 = vld [vmem:[%s942_s24 + $0x140] sm:$0xff]  ;;  %v199_v21 = vld [vmem:[%s942_s24 + $0x148] sm:$0xff] }
  0x1a   : > { %178 = vst [vmem:[%s947_s25 + $0x50] sm:$0xff] %v177_v10  ;;  %v201_v22 = vld [vmem:[%s942_s24 + $0x160] sm:$0xff]  ;;  %v203_v23 = vld [vmem:[%s942_s24 + $0x168] sm:$0xff] }
  0x1b   : > { %180 = vst [vmem:[%s947_s25 + $0x58] sm:$0xff] %v179_v11  ;;  %v205_v24 = vld [vmem:[%s942_s24 + $0x180] sm:$0xff]  ;;  %v207_v25 = vld [vmem:[%s942_s24 + $0x188] sm:$0xff] }
  0x1c   : > { %182 = vst [vmem:[%s947_s25 + $0x60] sm:$0xff] %v181_v12  ;;  %v209_v26 = vld [vmem:[%s942_s24 + $0x1a0] sm:$0xff]  ;;  %v211_v27 = vld [vmem:[%s942_s24 + $0x1a8] sm:$0xff] }
  0x1d   : > { %184 = vst [vmem:[%s947_s25 + $0x68] sm:$0xff] %v183_v13  ;;  %v213_v28 = vld [vmem:[%s942_s24 + $0x1c0] sm:$0xff]  ;;  %v215_v29 = vld [vmem:[%s942_s24 + $0x1c8] sm:$0xff] }
  0x1e   : > { %186 = vst [vmem:[%s947_s25 + $0x70] sm:$0xff] %v185_v14  ;;  %v217_v30 = vld [vmem:[%s942_s24 + $0x1e0] sm:$0xff]  ;;  %v219_v31 = vld [vmem:[%s942_s24 + $0x1e8] sm:$0xff] }
  0x1f   : > { %188 = vst [vmem:[%s947_s25 + $0x78] sm:$0xff] %v187_v15 }
  0x20   : > { %190 = vst [vmem:[%s947_s25 + $0x80] sm:$0xff] %v189_v16 }
  0x21   : > { %192 = vst [vmem:[%s947_s25 + $0x88] sm:$0xff] %v191_v17 }
  0x22   : > { %194 = vst [vmem:[%s947_s25 + $0x90] sm:$0xff] %v193_v18 }
  0x23   : > { %196 = vst [vmem:[%s947_s25 + $0x98] sm:$0xff] %v195_v19 }
  0x24   : > { %198 = vst [vmem:[%s947_s25 + $0xa0] sm:$0xff] %v197_v20 }
  0x25   : > { %200 = vst [vmem:[%s947_s25 + $0xa8] sm:$0xff] %v199_v21 }
  0x26   : > { %202 = vst [vmem:[%s947_s25 + $0xb0] sm:$0xff] %v201_v22 }
  0x27   : > { %204 = vst [vmem:[%s947_s25 + $0xb8] sm:$0xff] %v203_v23 }
  0x28   : > { %206 = vst [vmem:[%s947_s25 + $0xc0] sm:$0xff] %v205_v24 }
  0x29   : > { %208 = vst [vmem:[%s947_s25 + $0xc8] sm:$0xff] %v207_v25 }
  0x2a   : > { %210 = vst [vmem:[%s947_s25 + $0xd0] sm:$0xff] %v209_v26 }
  0x2b   : > { %212 = vst [vmem:[%s947_s25 + $0xd8] sm:$0xff] %v211_v27 }
  0x2c   : > { %214 = vst [vmem:[%s947_s25 + $0xe0] sm:$0xff] %v213_v28 }
  0x2d   : > { %216 = vst [vmem:[%s947_s25 + $0xe8] sm:$0xff] %v215_v29 }
  0x2e   : > { %218 = vst [vmem:[%s947_s25 + $0xf0] sm:$0xff] %v217_v30 }
  0x2f   : > { %220 = vst [vmem:[%s947_s25 + $0xf8] sm:$0xff] %v219_v31 }
  0x30 PF: > { %226 = sbr.rel (!%p924_p3) target bundleno = 84 (0x54), region = 43  ;;  %s228_s26 = sand.u32 (%p924_p3), 1, %s864_s10  }
  0x31   : > { %s764_s27 = sshll.u32 (%p924_p3), %s872_s12, 9  ;;  %s721_s28 = sshll.u32 (%p924_p3), %s228_s26, 8 }
  0x32   : > { %s1017_s3 = scalar_lea.vmem (%p924_p3), %s1199_s1, %s764_s27  ;;  %s1022_s4 = scalar_lea.vmem (%p924_p3), [#allocation3], %s721_s28 }
  0x33   : > { %v724_v32 = vld [vmem:[%s1017_s3 + $0x10] sm:$0xff] (%p924_p3)  ;;  %v725_v33 = vld [vmem:[%s1017_s3 + $0x18] sm:$0xff] (%p924_p3) }
  0x34   : > { %v726_v34 = vld [vmem:[%s1017_s3 + $0x30] sm:$0xff] (%p924_p3)  ;;  %251 = vst [vmem:[%s1022_s4] sm:$0xff] (%p924_p3), %v724_v32  ;;  %v727_v35 = vld [vmem:[%s1017_s3 + $0x38] sm:$0xff] (%p924_p3) }
  0x35   : > { %253 = vst [vmem:[%s1022_s4 + $0x8] sm:$0xff] %v725_v33  ;;  %v728_v36 = vld [vmem:[%s1017_s3 + $0x50] sm:$0xff]  ;;  %v729_v37 = vld [vmem:[%s1017_s3 + $0x58] sm:$0xff] }
  0x36   : > { %255 = vst [vmem:[%s1022_s4 + $0x10] sm:$0xff] %v726_v34  ;;  %v730_v38 = vld [vmem:[%s1017_s3 + $0x70] sm:$0xff]  ;;  %v731_v39 = vld [vmem:[%s1017_s3 + $0x78] sm:$0xff] }
  0x37   : > { %257 = vst [vmem:[%s1022_s4 + $0x18] sm:$0xff] %v727_v35  ;;  %v732_v40 = vld [vmem:[%s1017_s3 + $0x90] sm:$0xff]  ;;  %v733_v41 = vld [vmem:[%s1017_s3 + $0x98] sm:$0xff] }
  0x38   : > { %259 = vst [vmem:[%s1022_s4 + $0x20] sm:$0xff] %v728_v36  ;;  %v734_v42 = vld [vmem:[%s1017_s3 + $0xb0] sm:$0xff]  ;;  %v735_v43 = vld [vmem:[%s1017_s3 + $0xb8] sm:$0xff] }
  0x39   : > { %261 = vst [vmem:[%s1022_s4 + $0x28] sm:$0xff] %v729_v37  ;;  %v736_v44 = vld [vmem:[%s1017_s3 + $0xd0] sm:$0xff]  ;;  %v737_v45 = vld [vmem:[%s1017_s3 + $0xd8] sm:$0xff] }
  0x3a   : > { %263 = vst [vmem:[%s1022_s4 + $0x30] sm:$0xff] %v730_v38  ;;  %v738_v46 = vld [vmem:[%s1017_s3 + $0xf0] sm:$0xff]  ;;  %v739_v47 = vld [vmem:[%s1017_s3 + $0xf8] sm:$0xff] }
  0x3b   : > { %265 = vst [vmem:[%s1022_s4 + $0x38] sm:$0xff] %v731_v39  ;;  %v740_v48 = vld [vmem:[%s1017_s3 + $0x110] sm:$0xff]  ;;  %v741_v49 = vld [vmem:[%s1017_s3 + $0x118] sm:$0xff] }
  0x3c   : > { %267 = vst [vmem:[%s1022_s4 + $0x40] sm:$0xff] %v732_v40  ;;  %v742_v50 = vld [vmem:[%s1017_s3 + $0x130] sm:$0xff]  ;;  %v743_v51 = vld [vmem:[%s1017_s3 + $0x138] sm:$0xff] }
  0x3d   : > { %269 = vst [vmem:[%s1022_s4 + $0x48] sm:$0xff] %v733_v41  ;;  %v744_v52 = vld [vmem:[%s1017_s3 + $0x150] sm:$0xff]  ;;  %v745_v53 = vld [vmem:[%s1017_s3 + $0x158] sm:$0xff] }
  0x3e   : > { %271 = vst [vmem:[%s1022_s4 + $0x50] sm:$0xff] %v734_v42  ;;  %v746_v54 = vld [vmem:[%s1017_s3 + $0x170] sm:$0xff]  ;;  %v747_v55 = vld [vmem:[%s1017_s3 + $0x178] sm:$0xff] }
  0x3f   : > { %273 = vst [vmem:[%s1022_s4 + $0x58] sm:$0xff] %v735_v43  ;;  %v748_v56 = vld [vmem:[%s1017_s3 + $0x190] sm:$0xff]  ;;  %v749_v57 = vld [vmem:[%s1017_s3 + $0x198] sm:$0xff] }
  0x40   : > { %275 = vst [vmem:[%s1022_s4 + $0x60] sm:$0xff] %v736_v44  ;;  %v750_v58 = vld [vmem:[%s1017_s3 + $0x1b0] sm:$0xff]  ;;  %v751_v59 = vld [vmem:[%s1017_s3 + $0x1b8] sm:$0xff] }
  0x41   : > { %277 = vst [vmem:[%s1022_s4 + $0x68] sm:$0xff] %v737_v45  ;;  %v752_v60 = vld [vmem:[%s1017_s3 + $0x1d0] sm:$0xff]  ;;  %v753_v61 = vld [vmem:[%s1017_s3 + $0x1d8] sm:$0xff] }
  0x42   : > { %279 = vst [vmem:[%s1022_s4 + $0x70] sm:$0xff] %v738_v46  ;;  %v754_v62 = vld [vmem:[%s1017_s3 + $0x1f0] sm:$0xff]  ;;  %v755_v63 = vld [vmem:[%s1017_s3 + $0x1f8] sm:$0xff] }
  0x43   : > { %281 = vst [vmem:[%s1022_s4 + $0x78] sm:$0xff] %v739_v47 }
  0x44   : > { %283 = vst [vmem:[%s1022_s4 + $0x80] sm:$0xff] %v740_v48 }
  0x45   : > { %285 = vst [vmem:[%s1022_s4 + $0x88] sm:$0xff] %v741_v49 }
  0x46   : > { %287 = vst [vmem:[%s1022_s4 + $0x90] sm:$0xff] %v742_v50 }
  0x47   : > { %289 = vst [vmem:[%s1022_s4 + $0x98] sm:$0xff] %v743_v51 }
  0x48   : > { %291 = vst [vmem:[%s1022_s4 + $0xa0] sm:$0xff] %v744_v52 }
  0x49   : > { %293 = vst [vmem:[%s1022_s4 + $0xa8] sm:$0xff] %v745_v53 }
  0x4a   : > { %295 = vst [vmem:[%s1022_s4 + $0xb0] sm:$0xff] %v746_v54 }
  0x4b   : > { %297 = vst [vmem:[%s1022_s4 + $0xb8] sm:$0xff] %v747_v55 }
  0x4c   : > { %299 = vst [vmem:[%s1022_s4 + $0xc0] sm:$0xff] %v748_v56 }
  0x4d   : > { %301 = vst [vmem:[%s1022_s4 + $0xc8] sm:$0xff] %v749_v57 }
  0x4e   : > { %303 = vst [vmem:[%s1022_s4 + $0xd0] sm:$0xff] %v750_v58 }
  0x4f   : > { %305 = vst [vmem:[%s1022_s4 + $0xd8] sm:$0xff] %v751_v59 }
  0x50   : > { %307 = vst [vmem:[%s1022_s4 + $0xe0] sm:$0xff] %v752_v60 }
  0x51   : > { %309 = vst [vmem:[%s1022_s4 + $0xe8] sm:$0xff] %v753_v61 }
  0x52   : > { %311 = vst [vmem:[%s1022_s4 + $0xf0] sm:$0xff] %v754_v62 }
  0x53   : > { %313 = vst [vmem:[%s1022_s4 + $0xf8] sm:$0xff] %v755_v63 }
  0x54 PF: > { %p756_p6 = scmp.ge.s32.totalorder %s876_s13, 1  ;;  %p318_p7 = scmp.lt.s32.totalorder %s876_s13, 3 }
  0x56   : > { %p319_p8 = pnand %p756_p6, %p318_p7 }
  0x57   : > { %s325_s5 = sand.u32 (!%p319_p8), 1, %s860_s9   ;;  %p367_p9 = scmp.lt.s32.totalorder (!%p319_p8), %s868_s11, 1 }
  0x58   : > { %322 = sbr.rel (%p319_p8) target bundleno = 348 (0x15c), region = 66  ;;  %s1088_s6 = sshll.u32 (!%p319_p8), %s325_s5, 8 }
  0x59   : > { %s1091_s7 = scalar_lea.vmem (!%p319_p8), [#allocation3], %s1088_s6  ;;  %s1126_s8 = scalar_lea.vmem (!%p319_p8), [#allocation2], %s1088_s6 }
  0x5d   : > { %v441_v0 = vld [vmem:[%s1091_s7 + $0xf0] sm:$0xff]  ;;  %v442_v1 = vld [vmem:[%s1091_s7 + $0xf8] sm:$0xff]  ;;  %v439_v2 = vld [vmem:[%s1091_s7 + $0xe0] sm:$0xff]  ;;  %s1209_s11 = smov (!%p367_p9, %s868_s11), 1 }
  0x5e   : > { %766 = vmatpush.xpose.msra.mxu2 %v441_v0  ;;  %782 = vmatpush.xpose.msra.mxu3 %v442_v1  ;;  %v440_v3 = vld [vmem:[%s1091_s7 + $0xe8] sm:$0xff]  ;;  %v437_v4 = vld [vmem:[%s1091_s7 + $0xd0] sm:$0xff]  ;;  %v438_v5 = vld [vmem:[%s1091_s7 + $0xd8] sm:$0xff]  ;;  %s765_s9 = sshll.u32 %s1209_s11, 7 }
  0x5f   : > { %443 = vmatpush.xpose.msra.mxu0 %v441_v0  ;;  %508 = vmatpush.xpose.msra.mxu1 %v442_v1  ;;  %v435_v6 = vld [vmem:[%s1091_s7 + $0xc0] sm:$0xff]  ;;  %v436_v7 = vld [vmem:[%s1091_s7 + $0xc8] sm:$0xff]  ;;  %v433_v8 = vld [vmem:[%s1091_s7 + $0xb0] sm:$0xff]  ;;  %s1165_s17 = scalar_lea.vmem %s1200_s2, %s765_s9 }
  0x60   : > { %v434_v9 = vld [vmem:[%s1091_s7 + $0xb8] sm:$0xff]  ;;  %v431_v10 = vld [vmem:[%s1091_s7 + $0xa0] sm:$0xff]  ;;  %v432_v11 = vld [vmem:[%s1091_s7 + $0xa8] sm:$0xff] }
  0x61   : > { %v429_v12 = vld [vmem:[%s1091_s7 + $0x90] sm:$0xff]  ;;  %v430_v13 = vld [vmem:[%s1091_s7 + $0x98] sm:$0xff]  ;;  %v427_v14 = vld [vmem:[%s1091_s7 + $0x80] sm:$0xff] }
  0x62   : > { %767 = vmatpush.xpose.msra.mxu2 %v439_v2  ;;  %783 = vmatpush.xpose.msra.mxu3 %v440_v3  ;;  %v428_v15 = vld [vmem:[%s1091_s7 + $0x88] sm:$0xff]  ;;  %v425_v16 = vld [vmem:[%s1091_s7 + $0x70] sm:$0xff]  ;;  %v426_v17 = vld [vmem:[%s1091_s7 + $0x78] sm:$0xff] }
  0x63   : > { %444 = vmatpush.xpose.msra.mxu0 %v439_v2  ;;  %509 = vmatpush.xpose.msra.mxu1 %v440_v3  ;;  %v423_v18 = vld [vmem:[%s1091_s7 + $0x60] sm:$0xff]  ;;  %v424_v19 = vld [vmem:[%s1091_s7 + $0x68] sm:$0xff]  ;;  %v421_v20 = vld [vmem:[%s1091_s7 + $0x50] sm:$0xff] }
  0x64   : > { %v422_v21 = vld [vmem:[%s1091_s7 + $0x58] sm:$0xff]  ;;  %v419_v22 = vld [vmem:[%s1091_s7 + $0x40] sm:$0xff]  ;;  %v420_v23 = vld [vmem:[%s1091_s7 + $0x48] sm:$0xff] }
  0x65   : > { %v417_v24 = vld [vmem:[%s1091_s7 + $0x30] sm:$0xff]  ;;  %v418_v25 = vld [vmem:[%s1091_s7 + $0x38] sm:$0xff]  ;;  %v415_v26 = vld [vmem:[%s1091_s7 + $0x20] sm:$0xff] }
  0x66   : > { %768 = vmatpush.xpose.msra.mxu2 %v437_v4  ;;  %784 = vmatpush.xpose.msra.mxu3 %v438_v5  ;;  %v416_v27 = vld [vmem:[%s1091_s7 + $0x28] sm:$0xff]  ;;  %v413_v28 = vld [vmem:[%s1091_s7 + $0x10] sm:$0xff]  ;;  %v414_v29 = vld [vmem:[%s1091_s7 + $0x18] sm:$0xff] }
  0x67   : > { %445 = vmatpush.xpose.msra.mxu0 %v437_v4  ;;  %510 = vmatpush.xpose.msra.mxu1 %v438_v5  ;;  %v411_v30 = vld [vmem:[%s1091_s7] sm:$0xff]  ;;  %v412_v31 = vld [vmem:[%s1091_s7 + $0x8] sm:$0xff]  ;;  %v397_v36 = vld [vmem:[%s1126_s8 + $0x90] sm:$0xff] }
  0x68   : > { %v395_v32 = vld [vmem:[%s1126_s8 + $0x80] sm:$0xff]  ;;  %v396_v33 = vld [vmem:[%s1126_s8 + $0x88] sm:$0xff]  ;;  %v398_v37 = vld [vmem:[%s1126_s8 + $0x98] sm:$0xff] }
  0x69   : > { %v379_v34 = vld [vmem:[%s1126_s8] sm:$0xff]  ;;  %v380_v35 = vld [vmem:[%s1126_s8 + $0x8] sm:$0xff]  ;;  %v381_v38 = vld [vmem:[%s1126_s8 + $0x10] sm:$0xff] }
  0x6a   : > { %769 = vmatpush.xpose.msra.mxu2 %v435_v6  ;;  %785 = vmatpush.xpose.msra.mxu3 %v436_v7  ;;  %v382_v39 = vld [vmem:[%s1126_s8 + $0x18] sm:$0xff]  ;;  %v399_v40 = vld [vmem:[%s1126_s8 + $0xa0] sm:$0xff]  ;;  %v400_v41 = vld [vmem:[%s1126_s8 + $0xa8] sm:$0xff] }
  0x6b   : > { %446 = vmatpush.xpose.msra.mxu0 %v435_v6  ;;  %511 = vmatpush.xpose.msra.mxu1 %v436_v7  ;;  %v383_v42 = vld [vmem:[%s1126_s8 + $0x20] sm:$0xff]  ;;  %v384_v43 = vld [vmem:[%s1126_s8 + $0x28] sm:$0xff]  ;;  %v401_v44 = vld [vmem:[%s1126_s8 + $0xb0] sm:$0xff] }
  0x6c   : > { %v402_v45 = vld [vmem:[%s1126_s8 + $0xb8] sm:$0xff]  ;;  %v385_v46 = vld [vmem:[%s1126_s8 + $0x30] sm:$0xff]  ;;  %v403_v48 = vld [vmem:[%s1126_s8 + $0xc0] sm:$0xff] }
  0x6d   : > { %v386_v47 = vld [vmem:[%s1126_s8 + $0x38] sm:$0xff]  ;;  %v404_v49 = vld [vmem:[%s1126_s8 + $0xc8] sm:$0xff]  ;;  %v387_v50 = vld [vmem:[%s1126_s8 + $0x40] sm:$0xff] }
  0x6e   : > { %770 = vmatpush.xpose.msra.mxu2 %v433_v8  ;;  %786 = vmatpush.xpose.msra.mxu3 %v434_v9  ;;  %v388_v51 = vld [vmem:[%s1126_s8 + $0x48] sm:$0xff]  ;;  %v405_v52 = vld [vmem:[%s1126_s8 + $0xd0] sm:$0xff]  ;;  %v406_v53 = vld [vmem:[%s1126_s8 + $0xd8] sm:$0xff] }
  0x6f   : > { %447 = vmatpush.xpose.msra.mxu0 %v433_v8  ;;  %512 = vmatpush.xpose.msra.mxu1 %v434_v9  ;;  %v389_v54 = vld [vmem:[%s1126_s8 + $0x50] sm:$0xff]  ;;  %v390_v55 = vld [vmem:[%s1126_s8 + $0x58] sm:$0xff]  ;;  %v407_v56 = vld [vmem:[%s1126_s8 + $0xe0] sm:$0xff] }
  0x70   : > { %v408_v57 = vld [vmem:[%s1126_s8 + $0xe8] sm:$0xff]  ;;  %v391_v58 = vld [vmem:[%s1126_s8 + $0x60] sm:$0xff]  ;;  %v409_v60 = vld [vmem:[%s1126_s8 + $0xf0] sm:$0xff] }
  0x71   : > { %v392_v59 = vld [vmem:[%s1126_s8 + $0x68] sm:$0xff]  ;;  %v410_v61 = vld [vmem:[%s1126_s8 + $0xf8] sm:$0xff]  ;;  %v393_v62 = vld [vmem:[%s1126_s8 + $0x70] sm:$0xff] }
  0x72   : > { %771 = vmatpush.xpose.msra.mxu2 %v431_v10  ;;  %787 = vmatpush.xpose.msra.mxu3 %v432_v11  ;;  %v394_v63 = vld [vmem:[%s1126_s8 + $0x78] sm:$0xff] }
  0x73   : > { %448 = vmatpush.xpose.msra.mxu0 %v431_v10  ;;  %513 = vmatpush.xpose.msra.mxu1 %v432_v11 }
  0x76   : > { %772 = vmatpush.xpose.msra.mxu2 %v429_v12  ;;  %788 = vmatpush.xpose.msra.mxu3 %v430_v13 }
  0x77   : > { %449 = vmatpush.xpose.msra.mxu0 %v429_v12  ;;  %514 = vmatpush.xpose.msra.mxu1 %v430_v13 }
  0x7a   : > { %773 = vmatpush.xpose.msra.mxu2 %v427_v14  ;;  %789 = vmatpush.xpose.msra.mxu3 %v428_v15 }
  0x7b   : > { %450 = vmatpush.xpose.msra.mxu0 %v427_v14  ;;  %515 = vmatpush.xpose.msra.mxu1 %v428_v15 }
  0x7e   : > { %774 = vmatpush.xpose.msra.mxu2 %v425_v16  ;;  %790 = vmatpush.xpose.msra.mxu3 %v426_v17 }
  0x7f   : > { %451 = vmatpush.xpose.msra.mxu0 %v425_v16  ;;  %516 = vmatpush.xpose.msra.mxu1 %v426_v17 }
  0x82   : > { %775 = vmatpush.xpose.msra.mxu2 %v423_v18  ;;  %791 = vmatpush.xpose.msra.mxu3 %v424_v19 }
  0x83   : > { %452 = vmatpush.xpose.msra.mxu0 %v423_v18  ;;  %517 = vmatpush.xpose.msra.mxu1 %v424_v19 }
  0x86   : > { %776 = vmatpush.xpose.msra.mxu2 %v421_v20  ;;  %792 = vmatpush.xpose.msra.mxu3 %v422_v21 }
  0x87   : > { %453 = vmatpush.xpose.msra.mxu0 %v421_v20  ;;  %518 = vmatpush.xpose.msra.mxu1 %v422_v21 }
  0x8a   : > { %777 = vmatpush.xpose.msra.mxu2 %v419_v22  ;;  %793 = vmatpush.xpose.msra.mxu3 %v420_v23 }
  0x8b   : > { %454 = vmatpush.xpose.msra.mxu0 %v419_v22  ;;  %519 = vmatpush.xpose.msra.mxu1 %v420_v23 }
  0x8e   : > { %778 = vmatpush.xpose.msra.mxu2 %v417_v24  ;;  %794 = vmatpush.xpose.msra.mxu3 %v418_v25 }
  0x8f   : > { %455 = vmatpush.xpose.msra.mxu0 %v417_v24  ;;  %520 = vmatpush.xpose.msra.mxu1 %v418_v25 }
  0x92   : > { %779 = vmatpush.xpose.msra.mxu2 %v415_v26  ;;  %795 = vmatpush.xpose.msra.mxu3 %v416_v27 }
  0x93   : > { %456 = vmatpush.xpose.msra.mxu0 %v415_v26  ;;  %521 = vmatpush.xpose.msra.mxu1 %v416_v27 }
  0x96   : > { %780 = vmatpush.xpose.msra.mxu2 %v413_v28  ;;  %796 = vmatpush.xpose.msra.mxu3 %v414_v29 }
  0x97   : > { %457 = vmatpush.xpose.msra.mxu0 %v413_v28  ;;  %522 = vmatpush.xpose.msra.mxu1 %v414_v29 }
  0x9a   : > { %781 = vmatpush.xpose.msra.mxu2 %v411_v30  ;;  %797 = vmatpush.xpose.msra.mxu3 %v412_v31 }
  0x9b   : > { %458 = vmatpush.xpose.msra.mxu0 %v411_v30  ;;  %523 = vmatpush.xpose.msra.mxu1 %v412_v31 }
  0x9d   : > { %483 = vmatmul.f32.vlgmr.msra.gmra.mxu2 %v395_v32  ;;  %548 = vmatmul.f32.vlgmr.msra.gmra.mxu3 %v396_v33 }
  0x9e   : > { %459 = vmatmul.f32.vlgmr.msra.gmra.mxu0 %v379_v34  ;;  %524 = vmatmul.f32.vlgmr.msra.gmra.mxu1 %v380_v35 }
  0xa5   : > { %486 = vmatmul.f32.gmra.mxu2 %v397_v36  ;;  %551 = vmatmul.f32.gmra.mxu3 %v398_v37 }
  0xa6   : > { %462 = vmatmul.f32.gmra.mxu0 %v381_v38  ;;  %527 = vmatmul.f32.gmra.mxu1 %v382_v39 }
  0xad   : > { %489 = vmatmul.f32.gmra.mxu2 %v399_v40  ;;  %554 = vmatmul.f32.gmra.mxu3 %v400_v41 }
  0xae   : > { %465 = vmatmul.f32.gmra.mxu0 %v383_v42  ;;  %530 = vmatmul.f32.gmra.mxu1 %v384_v43 }
  0xb5   : > { %492 = vmatmul.f32.gmra.mxu2 %v401_v44  ;;  %557 = vmatmul.f32.gmra.mxu3 %v402_v45 }
  0xb6   : > { %468 = vmatmul.f32.gmra.mxu0 %v385_v46  ;;  %533 = vmatmul.f32.gmra.mxu1 %v386_v47 }
  0xbd   : > { %495 = vmatmul.f32.gmra.mxu2 %v403_v48  ;;  %560 = vmatmul.f32.gmra.mxu3 %v404_v49 }
  0xbe   : > { %471 = vmatmul.f32.gmra.mxu0 %v387_v50  ;;  %536 = vmatmul.f32.gmra.mxu1 %v388_v51 }
  0xc5   : > { %498 = vmatmul.f32.gmra.mxu2 %v405_v52  ;;  %563 = vmatmul.f32.gmra.mxu3 %v406_v53 }
  0xc6   : > { %474 = vmatmul.f32.gmra.mxu0 %v389_v54  ;;  %539 = vmatmul.f32.gmra.mxu1 %v390_v55 }
  0xcd   : > { %501 = vmatmul.f32.gmra.mxu2 %v407_v56  ;;  %566 = vmatmul.f32.gmra.mxu3 %v408_v57 }
  0xce   : > { %477 = vmatmul.f32.gmra.mxu0 %v391_v58  ;;  %542 = vmatmul.f32.gmra.mxu1 %v392_v59 }
  0xd5   : > { %504 = vmatmul.f32.gmra.mxu2 %v409_v60  ;;  %569 = vmatmul.f32.gmra.mxu3 %v410_v61 }
  0xd6   : > { %480 = vmatmul.f32.gmra.mxu0 %v393_v62  ;;  %545 = vmatmul.f32.gmra.mxu1 %v394_v63 }
 0x11b   : > { %v460_v0 = vpop.f32.mrf.mxu0  ;;  %v525_v1 = vpop.f32.mrf.mxu1 }
 0x11c   : > { %v526_v2 = vadd.f32 %v525_v1, %v460_v0 }
 0x11e   : > { %573 = vst [vmem:[%s1165_s17] sm:$0xff] %v526_v2 }
 0x120   : > { %v484_v3 = vpop.f32.mrf.mxu2  ;;  %v549_v4 = vpop.f32.mrf.mxu3 }
 0x121   : > { %v550_v5 = vadd.f32 %v549_v4, %v484_v3 }
 0x123   : > { %581 = vst [vmem:[%s1165_s17 + $0x40] sm:$0xff] %v550_v5  ;;  %v463_v6 = vpop.f32.mrf.mxu0  ;;  %v528_v7 = vpop.f32.mrf.mxu1 }
 0x124   : > { %v529_v8 = vadd.f32 %v528_v7, %v463_v6 }
 0x126   : > { %574 = vst [vmem:[%s1165_s17 + $0x8] sm:$0xff] %v529_v8 }
 0x128   : > { %v487_v9 = vpop.f32.mrf.mxu2  ;;  %v552_v10 = vpop.f32.mrf.mxu3 }
 0x129   : > { %v553_v11 = vadd.f32 %v552_v10, %v487_v9 }
 0x12b   : > { %582 = vst [vmem:[%s1165_s17 + $0x48] sm:$0xff] %v553_v11  ;;  %v466_v12 = vpop.f32.mrf.mxu0  ;;  %v531_v13 = vpop.f32.mrf.mxu1 }
 0x12c   : > { %v532_v14 = vadd.f32 %v531_v13, %v466_v12 }
 0x12e   : > { %575 = vst [vmem:[%s1165_s17 + $0x10] sm:$0xff] %v532_v14 }
 0x130   : > { %v490_v15 = vpop.f32.mrf.mxu2  ;;  %v555_v16 = vpop.f32.mrf.mxu3 }
 0x131   : > { %v556_v17 = vadd.f32 %v555_v16, %v490_v15 }
 0x133   : > { %583 = vst [vmem:[%s1165_s17 + $0x50] sm:$0xff] %v556_v17  ;;  %v469_v18 = vpop.f32.mrf.mxu0  ;;  %v534_v19 = vpop.f32.mrf.mxu1 }
 0x134   : > { %v535_v20 = vadd.f32 %v534_v19, %v469_v18 }
 0x136   : > { %576 = vst [vmem:[%s1165_s17 + $0x18] sm:$0xff] %v535_v20 }
 0x138   : > { %v493_v21 = vpop.f32.mrf.mxu2  ;;  %v558_v22 = vpop.f32.mrf.mxu3 }
 0x139   : > { %v559_v23 = vadd.f32 %v558_v22, %v493_v21 }
 0x13b   : > { %584 = vst [vmem:[%s1165_s17 + $0x58] sm:$0xff] %v559_v23  ;;  %v472_v24 = vpop.f32.mrf.mxu0  ;;  %v537_v25 = vpop.f32.mrf.mxu1 }
 0x13c   : > { %v538_v26 = vadd.f32 %v537_v25, %v472_v24 }
 0x13e   : > { %577 = vst [vmem:[%s1165_s17 + $0x20] sm:$0xff] %v538_v26 }
 0x140   : > { %v496_v27 = vpop.f32.mrf.mxu2  ;;  %v561_v28 = vpop.f32.mrf.mxu3 }
 0x141   : > { %v562_v29 = vadd.f32 %v561_v28, %v496_v27 }
 0x143   : > { %585 = vst [vmem:[%s1165_s17 + $0x60] sm:$0xff] %v562_v29  ;;  %v475_v30 = vpop.f32.mrf.mxu0  ;;  %v540_v31 = vpop.f32.mrf.mxu1 }
 0x144   : > { %v541_v32 = vadd.f32 %v540_v31, %v475_v30 }
 0x146   : > { %578 = vst [vmem:[%s1165_s17 + $0x28] sm:$0xff] %v541_v32 }
 0x148   : > { %v499_v33 = vpop.f32.mrf.mxu2  ;;  %v564_v34 = vpop.f32.mrf.mxu3 }
 0x149   : > { %v565_v35 = vadd.f32 %v564_v34, %v499_v33 }
 0x14b   : > { %586 = vst [vmem:[%s1165_s17 + $0x68] sm:$0xff] %v565_v35  ;;  %v478_v36 = vpop.f32.mrf.mxu0  ;;  %v543_v37 = vpop.f32.mrf.mxu1 }
 0x14c   : > { %v544_v38 = vadd.f32 %v543_v37, %v478_v36 }
 0x14e   : > { %579 = vst [vmem:[%s1165_s17 + $0x30] sm:$0xff] %v544_v38 }
 0x150   : > { %v502_v39 = vpop.f32.mrf.mxu2  ;;  %v567_v40 = vpop.f32.mrf.mxu3 }
 0x151   : > { %v568_v41 = vadd.f32 %v567_v40, %v502_v39 }
 0x153   : > { %587 = vst [vmem:[%s1165_s17 + $0x70] sm:$0xff] %v568_v41  ;;  %v481_v42 = vpop.f32.mrf.mxu0  ;;  %v546_v43 = vpop.f32.mrf.mxu1 }
 0x154   : > { %v547_v44 = vadd.f32 %v546_v43, %v481_v42 }
 0x156   : > { %580 = vst [vmem:[%s1165_s17 + $0x38] sm:$0xff] %v547_v44 }
 0x158   : > { %v505_v45 = vpop.f32.mrf.mxu2  ;;  %v570_v46 = vpop.f32.mrf.mxu3 }
 0x159   : > { %v571_v47 = vadd.f32 %v570_v46, %v505_v45 }
 0x15b   : > { %588 = vst [vmem:[%s1165_s17 + $0x78] sm:$0xff] %v571_v47 }
 0x15c PF: > { %s12_s13 = sadd.s32 1, %s876_s13   ;;  %s1202_s9 = smov %s864_s10 }
 0x15d   : > { %p9_p10 = scmp.ge.s32.totalorder %s12_s13, 4   ;;  %s1203_s10 = smov %s932_s18 }
 0x15e   : > { %s1204_s11 = smov %s872_s12  ;;  %s1205_s12 = smov %s1207_s14 }
 0x15f   :  { %11 = sbr.rel (!%p9_p10) target bundleno = 3 (0x3), region = 117 }

// kernel: bytenet_structure_model.14
= control target key start
LH: loop header
LB: loop body
LE: loop exit
PB: predicated region body
PF: predicated region fallthrough
CT: control target
= control target key end

     0   :  { %s1718_s21 = smov 0   ;;  %s2803_s0 = inlined_call_operand.vmem [shape: f32[2,128,128], index: 0, kind: input, shape index: {}]   ;;  %s2804_s1 = inlined_call_operand.vmem [shape: f32[2,128,1], index: 1, kind: input, shape index: {}]   ;;  %s2805_s2 = inlined_call_operand.vmem [shape: f32[1,128], index: 2, kind: input, shape index: {}]   ;;  %s2806_s3 = inlined_call_operand.vmem [shape: f32[1,128], index: 3, kind: input, shape index: {}]   ;;  %s2807_s4 = inlined_call_operand.vmem [shape: f32[5,128,128], index: 4, kind: input, shape index: {}]   ;;  %s2808_s5 = inlined_call_operand.vmem [shape: f32[1,128], index: 5, kind: input, shape index: {}]   ;;  %s2809_s6 = inlined_call_operand.vmem [shape: f32[2,128,128], index: 6, kind: output, shape index: {}]  }
   0x1 LB: > { %s1497_s22 = sadd.s32 4294967295, %s1679_s21   ;;  %p1501_p0 = scmp.ge.s32.totalorder %s1679_s21, 1  ;;  %s1679_s21 = sphi %s1718_s21, %s16_s21  }
   0x2   : > { %p222_p1 = scmp.lt.s32.totalorder %s1679_s21, 3 }
   0x4   : > { %p223_p2 = pnand %p1501_p0, %p222_p1 }
   0x5   : > { %p257_p3 = scmp.lt.s32.totalorder (!%p223_p2), %s1497_s22, 1 }
   0x6   : > { %226 = sbr.rel (%p223_p2) target bundleno = 621 (0x26d), region = 44 }
   0xb   : > { %s2831_s22 = smov (!%p257_p3, %s1497_s22), 1  ;;  %v1681_v6 = vmov 0  }
   0xc   : > { %s1726_s23 = sshll.u32 %s2831_s22, 7  ;;  %1637 = vset.pattern.permute.xlu1 %v1681_v6  ;;  %1635 = vset.pattern.permute.xlu2 %v1681_v6 }
   0xd   : > { %s1732_s26 = scalar_lea.vmem %s2803_s0, %s1726_s23  ;;  %1636 = vset.pattern.permute.xlu0 %v1681_v6  ;;  %s1802_s29 = scalar_lea.vmem %s2804_s1, %s1726_s23 }
   0xe   : > { %v1735_v0 = vld [vmem:[%s1732_s26 + $0x58] sm:$0xff]  ;;  %v1747_v3 = vld [vmem:[%s1732_s26 + $0x60] sm:$0xff]  ;;  %v1762_v8 = vld [vmem:[%s1732_s26 + $0x48] sm:$0xff]  ;;  %s2754_s20 = scalar_lea.vmem %s2809_s6, %s1726_s23 }
   0xf   : > { %v1738_v1 = vld [vmem:[%s1732_s26 + $0x38] sm:$0xff]  ;;  %310 = vadd.xlane.f32.xlu1 %v1735_v0  ;;  %v1750_v4 = vld [vmem:[%s1732_s26 + $0x40] sm:$0xff]  ;;  %v1765_v9 = vld [vmem:[%s1732_s26 + $0x68] sm:$0xff] }
  0x10   : > { %v1741_v2 = vld [vmem:[%s1732_s26 + $0x18] sm:$0xff]  ;;  %302 = vadd.xlane.f32.xlu0 %v1738_v1  ;;  %v1753_v5 = vld [vmem:[%s1732_s26 + $0x20] sm:$0xff]  ;;  %v1771_v10 = vld [vmem:[%s1732_s26 + $0x50] sm:$0xff] }
  0x11   : > { %294 = vadd.xlane.f32.xlu2 %v1741_v2  ;;  %v1759_v7 = vld [vmem:[%s1732_s26] sm:$0xff]  ;;  %v1774_v11 = vld [vmem:[%s1732_s26 + $0x28] sm:$0xff]  ;;  %v1783_v13 = vld [vmem:[%s1732_s26 + $0x30] sm:$0xff] }
  0x12   : > { %v1777_v12 = vld [vmem:[%s1732_s26 + $0x8] sm:$0xff]  ;;  %v1786_v14 = vld [vmem:[%s1732_s26 + $0x70] sm:$0xff]  ;;  %v1795_v16 = vld [vmem:[%s1732_s26 + $0x78] sm:$0xff] }
  0x13   : > { %v1789_v15 = vld [vmem:[%s1732_s26 + $0x10] sm:$0xff]  ;;  %v719_v17 = vld [vmem:[%s1802_s29 + $0x38] sm:$0xff]  ;;  %v720_v19 = vld [vmem:[%s1802_s29 + $0x40] sm:$0xff] }
  0x14   : > { %v723_v18 = vld [vmem:[%s1802_s29 + $0x58] sm:$0xff]  ;;  %v724_v20 = vld [vmem:[%s1802_s29 + $0x60] sm:$0xff]  ;;  %v725_v22 = vld [vmem:[%s1802_s29 + $0x68] sm:$0xff] }
  0x15   : > { %v716_v21 = vld [vmem:[%s1802_s29 + $0x20] sm:$0xff]  ;;  %v715_v23 = vld [vmem:[%s1802_s29 + $0x18] sm:$0xff]  ;;  %v721_v25 = vld [vmem:[%s1802_s29 + $0x48] sm:$0xff] }
  0x16   : > { %v712_v24 = vld [vmem:[%s1802_s29] sm:$0xff]  ;;  %v722_v26 = vld [vmem:[%s1802_s29 + $0x50] sm:$0xff]  ;;  %v717_v27 = vld [vmem:[%s1802_s29 + $0x28] sm:$0xff] }
  0x17   : > { %312 = vadd.xlane.f32.xlu1 %v1747_v3 }
  0x18   : > { %304 = vadd.xlane.f32.xlu0 %v1750_v4 }
  0x19   : > { %296 = vadd.xlane.f32.xlu2 %v1753_v5 }
  0x1f   : > { %288 = vadd.xlane.f32.xlu1 %v1759_v7 }
  0x20   : > { %306 = vadd.xlane.f32.xlu0 %v1762_v8 }
  0x21   : > { %314 = vadd.xlane.f32.xlu2 %v1765_v9 }
  0x27   : > { %308 = vadd.xlane.f32.xlu1 %v1771_v10 }
  0x28   : > { %298 = vadd.xlane.f32.xlu0 %v1774_v11 }
  0x29   : > { %290 = vadd.xlane.f32.xlu2 %v1777_v12 }
  0x2f   : > { %300 = vadd.xlane.f32.xlu1 %v1783_v13 }
  0x30   : > { %316 = vadd.xlane.f32.xlu0 %v1786_v14 }
  0x31   : > { %292 = vadd.xlane.f32.xlu2 %v1789_v15 }
  0x38   : > { %318 = vadd.xlane.f32.xlu0 %v1795_v16 }
  0x48   : > { %785 = vperm.xlu1 %1637, %v723_v18  }
  0x49   : > { %765 = vperm.xlu2 %1635, %v719_v17  }
  0x4c   : > { %770 = vperm.xlu0 %1636, %v720_v19  }
  0x50   : > { %750 = vperm.xlu1 %1637, %v716_v21  }
  0x51   : > { %790 = vperm.xlu2 %1635, %v724_v20  }
  0x54   : > { %795 = vperm.xlu0 %1636, %v725_v22  }
  0x58   : > { %730 = vperm.xlu1 %1637, %v712_v24  }
  0x59   : > { %745 = vperm.xlu2 %1635, %v715_v23  }
  0x60   : > { %780 = vperm.xlu1 %1637, %v722_v26  }
  0x61   : > { %775 = vperm.xlu2 %1635, %v721_v25  }
  0x69   : > { %755 = vperm.xlu2 %1635, %v717_v27  }
  0x82   : > { %v311_v28 = vpop.xlane.xlu1 %310 }
  0x83   : > { %v303_v29 = vpop.xlane.xlu0 %302  ;;  %v1815_v30 = vmul.f32 0.0625, %v311_v28 }
  0x84   : > { %v1817_v31 = vmul.f32 0.0625, %v303_v29  ;;  %v295_v32 = vpop.xlane.xlu2 %294 }
  0x85   : > { %v1821_v33 = vsub.f32 %v1735_v0, %v1815_v30  ;;  %v1849_v46 = vmul.f32 0.0625, %v295_v32  ;;  %v713_v32 = vld [vmem:[%s1802_s29 + $0x8] sm:$0xff] }
  0x86   : > { %v1825_v34 = vsub.f32 %v1738_v1, %v1817_v31 }
  0x87   : > { %v363_v35 = vmul.f32 %v1821_v33, %v1821_v33  ;;  %v1859_v52 = vsub.f32 %v1741_v2, %v1849_v46 }
  0x88   : > { %v359_v36 = vmul.f32 %v1825_v34, %v1825_v34 }
  0x89   : > { %390 = vadd.xlane.f32.xlu0 %v363_v35  ;;  %v355_v59 = vmul.f32 %v1859_v52, %v1859_v52  ;;  %v714_v35 = vld [vmem:[%s1802_s29 + $0x10] sm:$0xff] }
  0x8a   : > { %382 = vadd.xlane.f32.xlu1 %v359_v36  ;;  %v313_v38 = vpop.xlane.xlu1 %312  ;;  %v718_v36 = vld [vmem:[%s1802_s29 + $0x30] sm:$0xff] }
  0x8b   : > { %v305_v37 = vpop.xlane.xlu0 %304  ;;  %v1833_v41 = vmul.f32 0.0625, %v313_v38 }
  0x8c   : > { %v1831_v39 = vmul.f32 0.0625, %v305_v37  ;;  %v297_v40 = vpop.xlane.xlu2 %296  ;;  %v727_v37 = vld [vmem:[%s1802_s29 + $0x78] sm:$0xff] }
  0x8d   : > { %v1835_v42 = vmul.f32 0.0625, %v297_v40  ;;  %v1843_v44 = vsub.f32 %v1747_v3, %v1833_v41 }
  0x8e   : > { %v1839_v43 = vsub.f32 %v1750_v4, %v1831_v39 }
  0x8f   : > { %v1847_v45 = vsub.f32 %v1753_v5, %v1835_v42  ;;  %v364_v48 = vmul.f32 %v1843_v44, %v1843_v44 }
  0x90   : > { %v360_v47 = vmul.f32 %v1839_v43, %v1839_v43 }
  0x91   : > { %v356_v49 = vmul.f32 %v1847_v45, %v1847_v45 }
  0x92   : > { %384 = vadd.xlane.f32.xlu2 %v360_v47  ;;  %392 = vadd.xlane.f32.xlu1 %v364_v48  ;;  %v289_v51 = vpop.xlane.xlu1 %288 }
  0x93   : > { %376 = vadd.xlane.f32.xlu0 %v356_v49  ;;  %v307_v50 = vpop.xlane.xlu0 %306  ;;  %v1873_v58 = vmul.f32 0.0625, %v289_v51 }
  0x94   : > { %v315_v53 = vpop.xlane.xlu2 %314  ;;  %v1861_v54 = vmul.f32 0.0625, %v307_v50 }
  0x95   : > { %v1863_v55 = vmul.f32 0.0625, %v315_v53  ;;  %v1883_v0 = vsub.f32 %v1759_v7, %v1873_v58 }
  0x96   : > { %v1867_v56 = vsub.f32 %v1762_v8, %v1861_v54 }
  0x97   : > { %v1871_v57 = vsub.f32 %v1765_v9, %v1863_v55  ;;  %v352_v8 = vmul.f32 %v1883_v0, %v1883_v0 }
  0x98   : > { %v361_v60 = vmul.f32 %v1867_v56, %v1867_v56 }
  0x99   : > { %v365_v61 = vmul.f32 %v1871_v57, %v1871_v57 }
  0x9a   : > { %374 = vadd.xlane.f32.xlu2 %v355_v59  ;;  %386 = vadd.xlane.f32.xlu1 %v361_v60  ;;  %v309_v63 = vpop.xlane.xlu1 %308  ;;  %v1523_v59 = vld [vmem:[%s2807_s4 + $0xf8] sm:$0xff] }
  0x9b   : > { %394 = vadd.xlane.f32.xlu0 %v365_v61  ;;  %v299_v62 = vpop.xlane.xlu0 %298  ;;  %v1897_v6 = vmul.f32 0.0625, %v309_v63  ;;  %1578 = vmatpush.msra.mxu2 %v1523_v59  ;;  %v1522_v61 = vld [vmem:[%s2807_s4 + $0xf0] sm:$0xff]  ;;  %v407_v63 = vmul.f32 %v1817_v31, %v1817_v31 }
  0x9c   : > { %v291_v1 = vpop.xlane.xlu2 %290  ;;  %v1885_v2 = vmul.f32 0.0625, %v299_v62  ;;  %1579 = vmatpush.msra.mxu3 %v1523_v59  ;;  %1577 = vmatpush.msra.mxu1 %v1523_v59  ;;  %v411_v62 = vmul.f32 %v1815_v30, %v1815_v30 }
  0x9d   : > { %v1887_v3 = vmul.f32 0.0625, %v291_v1  ;;  %v1907_v17 = vsub.f32 %v1771_v10, %v1897_v6  ;;  %922 = vmatpush.msra.mxu0 %v1523_v59  ;;  %1581 = vmatpush.msra.mxu2 %v1522_v61  ;;  %v1521_v1 = vld [vmem:[%s2807_s4 + $0xe8] sm:$0xff]  ;;  %v423_v30 = vmul.f32 112.0, %v407_v63  ;;  %v400_v59 = vmul.f32 %v1873_v58, %v1873_v58 }
  0x9e   : > { %v1891_v4 = vsub.f32 %v1774_v11, %v1885_v2  ;;  %1582 = vmatpush.msra.mxu3 %v1522_v61  ;;  %1580 = vmatpush.msra.mxu1 %v1522_v61 }
  0x9f   : > { %v1895_v5 = vsub.f32 %v1777_v12, %v1887_v3  ;;  %v362_v10 = vmul.f32 %v1907_v17, %v1907_v17  ;;  %923 = vmatpush.msra.mxu0 %v1522_v61  ;;  %1584 = vmatpush.msra.mxu2 %v1521_v1 }
  0xa0   : > { %v357_v7 = vmul.f32 %v1891_v4, %v1891_v4  ;;  %1585 = vmatpush.msra.mxu3 %v1521_v1  ;;  %1583 = vmatpush.msra.mxu1 %v1521_v1 }
  0xa1   : > { %v353_v9 = vmul.f32 %v1895_v5, %v1895_v5  ;;  %924 = vmatpush.msra.mxu0 %v1521_v1 }
  0xa2   : > { %368 = vadd.xlane.f32.xlu2 %v352_v8  ;;  %378 = vadd.xlane.f32.xlu1 %v357_v7  ;;  %v301_v20 = vpop.xlane.xlu1 %300  ;;  %v427_v8 = vmul.f32 112.0, %v411_v62 }
  0xa3   : > { %370 = vadd.xlane.f32.xlu0 %v353_v9  ;;  %v317_v11 = vpop.xlane.xlu0 %316  ;;  %v1921_v23 = vmul.f32 0.0625, %v301_v20  ;;  %v1682_v20 = vmov 0.0  }
  0xa4   : > { %v293_v12 = vpop.xlane.xlu2 %292  ;;  %v1909_v18 = vmul.f32 0.0625, %v317_v11  ;;  %831 = vst [vmem:[#allocation2 + $0x38] sm:$0xff] %v1682_v20 }
  0xa5   : > { %v1911_v19 = vmul.f32 0.0625, %v293_v12  ;;  %832 = vst [vmem:[#allocation2 + $0x40] sm:$0xff] %v1682_v20 }
  0xa6   : > { %v1915_v21 = vsub.f32 %v1786_v14, %v1909_v18  ;;  %824 = vst [vmem:[#allocation2] sm:$0xff] %v1682_v20 }
  0xa7   : > { %v1919_v22 = vsub.f32 %v1789_v15, %v1911_v19  ;;  %v1931_v15 = vsub.f32 %v1783_v13, %v1921_v23  ;;  %v726_v13 = vld [vmem:[%s1802_s29 + $0x70] sm:$0xff]  ;;  %825 = vst [vmem:[#allocation2 + $0x8] sm:$0xff] %v1682_v20 }
  0xa8   : > { %v366_v24 = vmul.f32 %v1915_v21, %v1915_v21  ;;  %826 = vst [vmem:[#allocation2 + $0x10] sm:$0xff] %v1682_v20 }
  0xa9   : > { %v354_v25 = vmul.f32 %v1919_v22, %v1919_v22  ;;  %v358_v28 = vmul.f32 %v1931_v15, %v1931_v15  ;;  %827 = vst [vmem:[#allocation2 + $0x18] sm:$0xff] %v1682_v20 }
  0xaa   : > { %388 = vadd.xlane.f32.xlu2 %v362_v10  ;;  %396 = vadd.xlane.f32.xlu1 %v366_v24  ;;  %v408_v10 = vmul.f32 %v1831_v39, %v1831_v39  ;;  %828 = vst [vmem:[#allocation2 + $0x20] sm:$0xff] %v1682_v20 }
  0xab   : > { %372 = vadd.xlane.f32.xlu0 %v354_v25  ;;  %v319_v14 = vpop.xlane.xlu0 %318  ;;  %v404_v25 = vmul.f32 %v1835_v42, %v1835_v42  ;;  %v403_v42 = vmul.f32 %v1849_v46, %v1849_v46  ;;  %829 = vst [vmem:[#allocation2 + $0x28] sm:$0xff] %v1682_v20 }
  0xac   : > { %v1933_v26 = vmul.f32 0.0625, %v319_v14  ;;  %v412_v14 = vmul.f32 %v1833_v41, %v1833_v41  ;;  %v424_v39 = vmul.f32 112.0, %v408_v10  ;;  %830 = vst [vmem:[#allocation2 + $0x30] sm:$0xff] %v1682_v20 }
  0xad   : > { %v420_v41 = vmul.f32 112.0, %v404_v25  ;;  %833 = vst [vmem:[#allocation2 + $0x48] sm:$0xff] %v1682_v20 }
  0xae   : > { %v1937_v27 = vsub.f32 %v1795_v16, %v1933_v26  ;;  %v1948_v16 = vpop.permute.xlu2 %765  ;;  %834 = vst [vmem:[#allocation2 + $0x50] sm:$0xff] %v1682_v20 }
  0xaf   : > { %835 = vst [vmem:[#allocation2 + $0x58] sm:$0xff] %v1682_v20 }
  0xb0   : > { %v367_v29 = vmul.f32 %v1937_v27, %v1937_v27  ;;  %836 = vst [vmem:[#allocation2 + $0x60] sm:$0xff] %v1682_v20 }
  0xb1   : > { %837 = vst [vmem:[#allocation2 + $0x68] sm:$0xff] %v1682_v20 }
  0xb2   : > { %380 = vadd.xlane.f32.xlu2 %v358_v28  ;;  %398 = vadd.xlane.f32.xlu1 %v367_v29  ;;  %838 = vst [vmem:[#allocation2 + $0x70] sm:$0xff] %v1682_v20 }
  0xb3   : > { %839 = vst [vmem:[#allocation2 + $0x78] sm:$0xff] %v1682_v20 }
  0xb4   : > { %840 = vst [vmem:[#allocation2 + $0x80] sm:$0xff] %v1682_v20 }
  0xb6   : > { %v1952_v40 = vpop.permute.xlu2 %790 }
  0xba   : > { %v1950_v38 = vpop.permute.xlu1 %785 }
  0xbe   : > { %v1956_v48 = vpop.permute.xlu2 %745  ;;  %v1958_v49 = vpop.permute.xlu0 %770 }
  0xbf   : > { %735 = vperm.xlu0 %1636, %v713_v32  }
  0xc2   : > { %v1954_v47 = vpop.permute.xlu1 %750 }
  0xc6   : > { %v1962_v51 = vpop.permute.xlu2 %775  ;;  %v1964_v53 = vpop.permute.xlu0 %795 }
  0xc7   : > { %740 = vperm.xlu0 %1636, %v714_v35  }
  0xca   : > { %800 = vperm.xlu2 %1635, %v726_v13   ;;  %v1960_v50 = vpop.permute.xlu1 %730  ;;  %v428_v13 = vmul.f32 112.0, %v412_v14  ;;  %v401_v14 = vmul.f32 %v1887_v3, %v1887_v3 }
  0xcb   : > { %760 = vperm.xlu1 %1637, %v718_v36   ;;  %v1520_v36 = vld [vmem:[%s2807_s4 + $0xe0] sm:$0xff] }
  0xcc   : > { %1587 = vmatpush.msra.mxu2 %v1520_v36  ;;  %1588 = vmatpush.msra.mxu3 %v1520_v36 }
  0xcd   : > { %1586 = vmatpush.msra.mxu1 %v1520_v36  ;;  %925 = vmatpush.msra.mxu0 %v1520_v36 }
  0xce   : > { %v1981_v7 = vpop.permute.xlu2 %755 }
  0xd2   : > { %805 = vperm.xlu2 %1635, %v727_v37   ;;  %v1969_v60 = vpop.permute.xlu1 %780  ;;  %v409_v37 = vmul.f32 %v1861_v54, %v1861_v54  ;;  %v413_v54 = vmul.f32 %v1863_v55, %v1863_v55 }
  0xfc   : > { %v391_v9 = vpop.xlane.xlu0 %390 }
  0xfd   : > { %v443_v11 = vsub.f32 %v391_v9, %v427_v8  ;;  %v383_v12 = vpop.xlane.xlu1 %382  ;;  %v1519_v8 = vld [vmem:[%s2807_s4 + $0xd8] sm:$0xff]  ;;  %v405_v9 = vmul.f32 %v1885_v2, %v1885_v2  ;;  %v419_v2 = vmul.f32 112.0, %v403_v42  ;;  %v1517_v42 = vld [vmem:[%s2807_s4 + $0xc8] sm:$0xff] }
  0xfe   : > { %v439_v31 = vsub.f32 %v383_v12, %v423_v30  ;;  %1590 = vmatpush.msra.mxu2 %v1519_v8  ;;  %1591 = vmatpush.msra.mxu3 %v1519_v8  ;;  %v410_v30 = vmul.f32 %v1897_v6, %v1897_v6  ;;  %v2034_v6 = vmul.f32 112.0, %v400_v59 }
  0xff   : > { %v459_v24 = vmul.f32 0.0625, %v443_v11  ;;  %1589 = vmatpush.msra.mxu1 %v1519_v8  ;;  %926 = vmatpush.msra.mxu0 %v1519_v8  ;;  %v2059_v59 = vmul.f32 112.0, %v405_v9  ;;  %v1516_v8 = vld [vmem:[%s2807_s4 + $0xc0] sm:$0xff]  ;;  %v2078_v9 = vmul.f32 112.0, %v401_v14 }
 0x100   : > { %v455_v28 = vmul.f32 0.0625, %v439_v31  ;;  %v1518_v31 = vld [vmem:[%s2807_s4 + $0xd0] sm:$0xff] }
 0x101   : > { %v1992_v29 = vadd.f32 1e-05, %v459_v24  ;;  %v2032_v24 = vmul.f32 112.0, %v409_v37  ;;  %1593 = vmatpush.msra.mxu2 %v1518_v31  ;;  %1594 = vmatpush.msra.mxu3 %v1518_v31 }
 0x102   : > { %v1995_v32 = vadd.f32 1e-05, %v455_v28  ;;  %1592 = vmatpush.msra.mxu1 %v1518_v31  ;;  %927 = vmatpush.msra.mxu0 %v1518_v31 }
 0x103   : > { %1641 = vrsqrt.f32 %v1992_v29  ;;  %1596 = vmatpush.msra.mxu2 %v1517_v42  ;;  %1597 = vmatpush.msra.mxu3 %v1517_v42  ;;  %vm596_vm0 = vweird.f32 %v1992_v29 }
 0x104   : > { %1643 = vrsqrt.f32 %v1995_v32  ;;  %1595 = vmatpush.msra.mxu1 %v1517_v42  ;;  %928 = vmatpush.msra.mxu0 %v1517_v42  ;;  %vm556_vm2 = vweird.f32 %v1995_v32  ;;  %v1514_v42 = vld [vmem:[%s2807_s4 + $0xb0] sm:$0xff] }
 0x105   : > { %v385_v35 = vpop.xlane.xlu2 %384  ;;  %v393_v62 = vpop.xlane.xlu1 %392  ;;  %1599 = vmatpush.msra.mxu2 %v1516_v8  ;;  %1600 = vmatpush.msra.mxu3 %v1516_v8 }
 0x106   : > { %v377_v46 = vpop.xlane.xlu0 %376  ;;  %v440_v61 = vsub.f32 %v385_v35, %v424_v39  ;;  %v444_v1 = vsub.f32 %v393_v62, %v428_v13  ;;  %v402_v35 = vmul.f32 %v1911_v19, %v1911_v19  ;;  %v429_v13 = vmul.f32 112.0, %v413_v54  ;;  %1598 = vmatpush.msra.mxu1 %v1516_v8  ;;  %929 = vmatpush.msra.mxu0 %v1516_v8 }
 0x107   : > { %v436_v63 = vsub.f32 %v377_v46, %v420_v41  ;;  %v2061_v19 = vmul.f32 112.0, %v410_v30  ;;  %v2065_v46 = vmul.f32 %v1909_v18, %v1909_v18  ;;  %v2075_v54 = vmul.f32 %v1921_v23, %v1921_v23 }
 0x108   : > { %v456_v58 = vmul.f32 0.0625, %v440_v61  ;;  %v460_v12 = vmul.f32 0.0625, %v444_v1  ;;  %v2081_v31 = vmul.f32 112.0, %v402_v35 }
 0x109   : > { %v452_v11 = vmul.f32 0.0625, %v436_v63  ;;  %v2027_v55 = vpop.eup %1641 }
 0x10a   : > { %v2030_v10 = vadd.f32 1e-05, %v456_v58  ;;  %v2036_v25 = vpop.eup %1643  ;;  %v591_v28 = vmul.f32 %v2027_v55, %v1992_v29  ;;  %v2045_v41 = vadd.f32 1e-05, %v460_v12  ;;  %vm597_vm1 = vweird.f32 %v2027_v55 }
 0x10b   : > { %v2043_v39 = vadd.f32 1e-05, %v452_v11  ;;  %v551_v3 = vmul.f32 %v2036_v25, %v1995_v32  ;;  %vm557_vm3 = vweird.f32 %v2036_v25  ;;  %vm2116_vm5 = vmor %vm596_vm0, %vm597_vm1 }
 0x10c   : > { %1645 = vrsqrt.f32 %v2030_v10  ;;  %v592_v36 = vmul.f32 %v2027_v55, %v591_v28  ;;  %vm566_vm4 = vweird.f32 %v2030_v10  ;;  %vm558_vm6 = vmor %vm556_vm2, %vm557_vm3  ;;  %vm606_vm8 = vweird.f32 %v2045_v41 }
 0x10d   : > { %1647 = vrsqrt.f32 %v2043_v39  ;;  %v375_v37 = vpop.xlane.xlu2 %374  ;;  %v552_v61 = vmul.f32 %v2036_v25, %v551_v3  ;;  %v387_v1 = vpop.xlane.xlu1 %386  ;;  %vm526_vm7 = vweird.f32 %v2043_v39 }
 0x10e   : > { %1649 = vrsqrt.f32 %v2045_v41  ;;  %v395_v62 = vpop.xlane.xlu0 %394  ;;  %v435_v63 = vsub.f32 %v375_v37, %v419_v2  ;;  %v593_v58 = vmul.f32 0.5, %v592_v36  ;;  %v441_v12 = vsub.f32 %v387_v1, %v2032_v24  ;;  %v1515_v2 = vld [vmem:[%s2807_s4 + $0xb8] sm:$0xff] }
 0x10f   : > { %v445_v18 = vsub.f32 %v395_v62, %v429_v13  ;;  %v553_v30 = vmul.f32 0.5, %v552_v61  ;;  %1602 = vmatpush.msra.mxu2 %v1515_v2  ;;  %1603 = vmatpush.msra.mxu3 %v1515_v2  ;;  %v2110_v61 = vld [vmem:[%s2805_s2] ss:$0 sm:$0xff] }
 0x110   : > { %v451_v11 = vmul.f32 0.0625, %v435_v63  ;;  %v594_v23 = vsub.f32 1.5, %v593_v58  ;;  %1601 = vmatpush.msra.mxu1 %v1515_v2  ;;  %930 = vmatpush.msra.mxu0 %v1515_v2  ;;  %v457_v8 = vmul.f32 0.0625, %v441_v12  ;;  %v1513_v58 = vld [vmem:[%s2807_s4 + $0xa8] sm:$0xff] }
 0x111   : > { %v461_v20 = vmul.f32 0.0625, %v445_v18  ;;  %v554_v28 = vsub.f32 1.5, %v553_v30  ;;  %1605 = vmatpush.msra.mxu2 %v1514_v42  ;;  %1606 = vmatpush.msra.mxu3 %v1514_v42 }
 0x112   : > { %v2088_v14 = vpop.eup %1645  ;;  %v2092_v24 = vadd.f32 1e-05, %v451_v11  ;;  %v595_v3 = vmul.f32 %v2027_v55, %v594_v23  ;;  %1604 = vmatpush.msra.mxu1 %v1514_v42  ;;  %931 = vmatpush.msra.mxu0 %v1514_v42  ;;  %v2141_v11 = vld [vmem:[%s2806_s3] ss:$0 sm:$0xff] }
 0x113   : > { %v2097_v35 = vpop.eup %1647  ;;  %v561_v13 = vmul.f32 %v2088_v14, %v2030_v10  ;;  %v2103_v36 = vadd.f32 1e-05, %v461_v20  ;;  %v555_v63 = vmul.f32 %v2036_v25, %v554_v28  ;;  %1608 = vmatpush.msra.mxu2 %v1513_v58  ;;  %1609 = vmatpush.msra.mxu3 %v1513_v58  ;;  %v1512_v23 = vld [vmem:[%s2807_s4 + $0xa0] sm:$0xff]  ;;  %vm567_vm9 = vweird.f32 %v2088_v14 }
 0x114   : > { %v2105_v37 = vpop.eup %1649  ;;  %v521_v1 = vmul.f32 %v2097_v35, %v2043_v39  ;;  %1651 = vrsqrt.f32 %v2092_v24  ;;  %v599_v29 = vsel %vm2116_vm5, %v2027_v55, %v595_v3  ;;  %1607 = vmatpush.msra.mxu1 %v1513_v58  ;;  %932 = vmatpush.msra.mxu0 %v1513_v58  ;;  %vm527_vm10 = vweird.f32 %v2097_v35  ;;  %vm2184_vm12 = vmor %vm566_vm4, %vm567_vm9 }
 0x115   : > { %v562_v18 = vmul.f32 %v2088_v14, %v561_v13  ;;  %v601_v30 = vmul.f32 %v2105_v37, %v2045_v41  ;;  %v651_v55 = vmul.f32 %v599_v29, %v1821_v33  ;;  %v559_v12 = vsel %vm558_vm6, %v2036_v25, %v555_v63  ;;  %v2153_v33 = vpop.xlane.xlu2 %368  ;;  %1611 = vmatpush.msra.mxu2 %v1512_v23  ;;  %vm2197_vm13 = vmor %vm526_vm7, %vm527_vm10 }
 0x116   : > { %v522_v32 = vmul.f32 %v2097_v35, %v521_v1  ;;  %1653 = vrsqrt.f32 %v2103_v36  ;;  %v371_v2 = vpop.xlane.xlu0 %370  ;;  %v647_v20 = vmul.f32 %v559_v12, %v1825_v34  ;;  %1612 = vmatpush.msra.mxu3 %v1512_v23  ;;  %v2157_v13 = vadd.f32 1e-05, %v457_v8  ;;  %v1511_v34 = vld [vmem:[%s2807_s4 + $0x98] sm:$0xff]  ;;  %1610 = vmatpush.msra.mxu1 %v1512_v23 }
 0x117   : > { %v563_v28 = vmul.f32 0.5, %v562_v18  ;;  %v602_v42 = vmul.f32 %v2105_v37, %v601_v30  ;;  %v671_v25 = vmul.f32 %v2110_v61, %v651_v55  ;;  %933 = vmatpush.msra.mxu0 %v1512_v23  ;;  %v433_v58 = vsub.f32 %v371_v2, %v2078_v9  ;;  %1614 = vmatpush.msra.mxu2 %v1511_v34  ;;  %v2169_v30 = vpop.xlane.xlu1 %378  ;;  %v1510_v55 = vld [vmem:[%s2807_s4 + $0x90] sm:$0xff] }
 0x118   : > { %v523_v3 = vmul.f32 0.5, %v522_v32  ;;  %v667_v62 = vmul.f32 %v2110_v61, %v647_v20  ;;  %1615 = vmatpush.msra.mxu3 %v1511_v34  ;;  %1655 = vrsqrt.f32 %v2157_v13  ;;  %1613 = vmatpush.msra.mxu1 %v1511_v34  ;;  %vm607_vm11 = vweird.f32 %v2105_v37 }
 0x119   : > { %v564_v63 = vsub.f32 1.5, %v563_v28  ;;  %v603_v1 = vmul.f32 0.5, %v602_v42  ;;  %v691_v18 = vadd.f32 %v2141_v11, %v671_v25  ;;  %934 = vmatpush.msra.mxu0 %v1511_v34  ;;  %1617 = vmatpush.msra.mxu2 %v1510_v55  ;;  %v449_v25 = vmul.f32 0.0625, %v433_v58  ;;  %vm608_vm15 = vmor %vm606_vm8, %vm607_vm11 }
 0x11a   : > { %v2164_v29 = vpop.eup %1651  ;;  %v524_v8 = vsub.f32 1.5, %v523_v3  ;;  %v687_v9 = vadd.f32 %v2141_v11, %v667_v62  ;;  %1618 = vmatpush.msra.mxu3 %v1510_v55  ;;  %v1509_v3 = vld [vmem:[%s2807_s4 + $0x88] sm:$0xff]  ;;  %1616 = vmatpush.msra.mxu1 %v1510_v55  ;;  %vm616_vm14 = vweird.f32 %v2103_v36  ;;  %vm516_vm0 = vweird.f32 %v2092_v24 }
 0x11b   : > { %v565_v12 = vmul.f32 %v2088_v14, %v564_v63  ;;  %v604_v32 = vsub.f32 1.5, %v603_v1  ;;  %v707_v23 = vmax.f32 %v691_v18, 0.0  ;;  %v511_v42 = vmul.f32 %v2164_v29, %v2092_v24  ;;  %935 = vmatpush.msra.mxu0 %v1510_v55  ;;  %1620 = vmatpush.msra.mxu2 %v1509_v3 }
 0x11c   : > { %v2177_v2 = vpop.eup %1653  ;;  %v525_v20 = vmul.f32 %v2097_v35, %v524_v8  ;;  %v703_v34 = vmax.f32 %v687_v9, 0.0  ;;  %1621 = vmatpush.msra.mxu3 %v1509_v3  ;;  %vm517_vm1 = vweird.f32 %v2164_v29  ;;  %1619 = vmatpush.msra.mxu1 %v1509_v3  ;;  %vm576_vm6 = vweird.f32 %v2157_v13 }
 0x11d   : > { %v569_v62 = vsel %vm2184_vm12, %v2088_v14, %v565_v12  ;;  %v605_v63 = vmul.f32 %v2105_v37, %v604_v32  ;;  %v611_v1 = vmul.f32 %v2177_v2, %v2103_v36  ;;  %v819_v58 = vmul.f32 %v1950_v38, %v707_v23  ;;  %v1508_v14 = vld [vmem:[%s2807_s4 + $0x80] sm:$0xff]  ;;  %936 = vmatpush.msra.mxu0 %v1509_v3  ;;  %v2237_v23 = vpop.xlane.xlu2 %388  ;;  %vm518_vm5 = vmor %vm516_vm0, %vm517_vm1 }
 0x11e   : > { %v529_v39 = vsel %vm2197_vm13, %v2097_v35, %v525_v20  ;;  %v648_v18 = vmul.f32 %v569_v62, %v1839_v43  ;;  %v815_v38 = vmul.f32 %v1948_v16, %v703_v34  ;;  %1623 = vmatpush.msra.mxu2 %v1508_v14  ;;  %v2226_v41 = vpop.eup %1655  ;;  %v512_v12 = vmul.f32 %v2164_v29, %v511_v42 }
 0x11f   : > { %v644_v35 = vmul.f32 %v529_v39, %v1847_v45  ;;  %v609_v43 = vsel %vm608_vm15, %v2105_v37, %v605_v63  ;;  %v612_v8 = vmul.f32 %v2177_v2, %v611_v1  ;;  %852 = vst [vmem:[#allocation2 + $0x5c] sm:$0xff] %v819_v58  ;;  %v2231_v32 = vadd.f32 1e-05, %v449_v25  ;;  %1624 = vmatpush.msra.mxu3 %v1508_v14  ;;  %v2248_v1 = vpop.xlane.xlu1 %396 }
 0x120   : > { %v668_v55 = vmul.f32 %v2110_v61, %v648_v18  ;;  %v652_v9 = vmul.f32 %v609_v43, %v1843_v44  ;;  %848 = vst [vmem:[#allocation2 + $0x3c] sm:$0xff] %v815_v38  ;;  %vm617_vm2 = vweird.f32 %v2177_v2  ;;  %v571_v37 = vmul.f32 %v2226_v41, %v2157_v13  ;;  %1622 = vmatpush.msra.mxu1 %v1508_v14  ;;  %v1538_v13 = vld [vmem:[%s2807_s4 + $0x170] sm:$0xff] }
 0x121   : > { %v664_v45 = vmul.f32 %v2110_v61, %v644_v35  ;;  %v613_v16 = vmul.f32 0.5, %v612_v8  ;;  %937 = vmatpush.msra.mxu0 %v1508_v14  ;;  %v513_v28 = vmul.f32 0.5, %v512_v12  ;;  %1657 = vrsqrt.f32 %v2231_v32  ;;  %vm618_vm4 = vmor %vm616_vm14, %vm617_vm2 }
 0x122   : > { %v688_v44 = vadd.f32 %v2141_v11, %v668_v55  ;;  %v672_v20 = vmul.f32 %v2110_v61, %v652_v9  ;;  %v572_v3 = vmul.f32 %v2226_v41, %v571_v37  ;;  %vm577_vm3 = vweird.f32 %v2226_v41 }
 0x123   : > { %v684_v42 = vadd.f32 %v2141_v11, %v664_v45  ;;  %v614_v25 = vsub.f32 1.5, %v613_v16  ;;  %v514_v62 = vsub.f32 1.5, %v513_v28  ;;  %v432_v63 = vsub.f32 %v2153_v33, %v2034_v6  ;;  %vm578_vm7 = vmor %vm576_vm6, %vm577_vm3 }
 0x124   : > { %v704_v34 = vmax.f32 %v688_v44, 0.0  ;;  %v692_v10 = vadd.f32 %v2141_v11, %v672_v20  ;;  %v573_v18 = vmul.f32 0.5, %v572_v3  ;;  %v437_v14 = vsub.f32 %v2169_v30, %v2059_v59 }
 0x125   : > { %v700_v58 = vmax.f32 %v684_v42, 0.0  ;;  %v615_v39 = vmul.f32 %v2177_v2, %v614_v25  ;;  %v515_v43 = vmul.f32 %v2164_v29, %v514_v62  ;;  %v448_v6 = vmul.f32 0.0625, %v432_v63  ;;  %v381_v28 = vpop.xlane.xlu2 %380  ;;  %v1554_v42 = vld [vmem:[%s2807_s4 + $0x1f0] sm:$0xff] }
 0x126   : > { %v816_v38 = vmul.f32 %v1958_v49, %v704_v34  ;;  %v708_v35 = vmax.f32 %v692_v10, 0.0  ;;  %v574_v59 = vsub.f32 1.5, %v573_v18  ;;  %v453_v49 = vmul.f32 0.0625, %v437_v14  ;;  %v1536_v14 = vld [vmem:[%s2807_s4 + $0x160] sm:$0xff] }
 0x127   : > { %v812_v33 = vmul.f32 %v1954_v47, %v700_v58  ;;  %v619_v8 = vsel %vm618_vm4, %v2177_v2, %v615_v39  ;;  %v2265_v30 = vpop.eup %1657  ;;  %v519_v9 = vsel %vm518_vm5, %v2164_v29, %v515_v43  ;;  %v2270_v12 = vadd.f32 1e-05, %v448_v6  ;;  %v373_v47 = vpop.xlane.xlu0 %372  ;;  %v1539_v2 = vld [vmem:[%s2807_s4 + $0x178] sm:$0xff] }
 0x128   : > { %849 = vst [vmem:[#allocation2 + $0x44] sm:$0xff] %v816_v38  ;;  %v820_v36 = vmul.f32 %v1952_v40, %v708_v35  ;;  %v653_v55 = vmul.f32 %v619_v8, %v1871_v57  ;;  %v643_v24 = vmul.f32 %v519_v9, %v1859_v52  ;;  %v575_v45 = vmul.f32 %v2226_v41, %v574_v59  ;;  %v1555_v57 = vld [vmem:[%s2807_s4 + $0x1f8] sm:$0xff]  ;;  %v399_v18 = vpop.xlane.xlu1 %398 }
 0x129   : > { %845 = vst [vmem:[#allocation2 + $0x24] sm:$0xff] %v812_v33  ;;  %v491_v40 = vmul.f32 %v2265_v30, %v2231_v32  ;;  %1085 = vmatpush.msrb.mxu2 %v1539_v2  ;;  %v415_v29 = vmul.f32 %v1933_v26, %v1933_v26  ;;  %1659 = vrsqrt.f32 %v2270_v12  ;;  %v2289_v52 = vadd.f32 1e-05, %v453_v49  ;;  %1199 = vmatpush.msrb.mxu3 %v1555_v57  ;;  %v888_v59 = vld [vmem:[%s2807_s4 + $0x78] sm:$0xff]  ;;  %v1552_v49 = vld [vmem:[%s2807_s4 + $0x1e0] sm:$0xff] }
 0x12a   : > { %853 = vst [vmem:[#allocation2 + $0x64] sm:$0xff] %v820_v36  ;;  %v673_v16 = vmul.f32 %v2110_v61, %v653_v55  ;;  %v663_v37 = vmul.f32 %v2110_v61, %v643_v24  ;;  %v579_v44 = vsel %vm578_vm7, %v2226_v41, %v575_v45  ;;  %v434_v20 = vsub.f32 %v373_v47, %v2081_v31  ;;  %v1537_v41 = vld [vmem:[%s2807_s4 + $0x168] sm:$0xff]  ;;  %v1535_v36 = vld [vmem:[%s2807_s4 + $0x158] sm:$0xff] }
 0x12b   : > { %v492_v26 = vmul.f32 %v2265_v30, %v491_v40  ;;  %1086 = vmatpush.msrb.mxu2 %v1538_v13  ;;  %v649_v25 = vmul.f32 %v579_v44, %v1867_v56  ;;  %1661 = vrsqrt.f32 %v2289_v52  ;;  %v430_v3 = vmul.f32 112.0, %v2065_v46  ;;  %1200 = vmatpush.msrb.mxu3 %v1554_v42  ;;  %v1553_v56 = vld [vmem:[%s2807_s4 + $0x1e8] sm:$0xff]  ;;  %v1571_v24 = vld [vmem:[%s2807_s4 + $0x278] sm:$0xff]  ;;  %v1534_v42 = vld [vmem:[%s2807_s4 + $0x150] sm:$0xff] }
 0x12c   : > { %v422_v34 = vmul.f32 112.0, %v2075_v54  ;;  %v2309_v31 = vadd.f32 %v2141_v11, %v673_v16  ;;  %v450_v62 = vmul.f32 0.0625, %v434_v20  ;;  %v442_v63 = vsub.f32 %v2237_v23, %v2061_v19  ;;  %987 = vmatpush.msrb.mxu1 %v888_v59  ;;  %v1551_v45 = vld [vmem:[%s2807_s4 + $0x1d8] sm:$0xff]  ;;  %1313 = vmatpush.msrb.mxu0 %v1571_v24  ;;  %v1566_v24 = vld [vmem:[%s2807_s4 + $0x250] sm:$0xff] }
 0x12d   : > { %v493_v10 = vmul.f32 0.5, %v492_v26  ;;  %1087 = vmatpush.msrb.mxu2 %v1537_v41  ;;  %v669_v46 = vmul.f32 %v2110_v61, %v649_v25  ;;  %v446_v54 = vsub.f32 %v2248_v1, %v430_v3  ;;  %v2318_v39 = vmul.f32 112.0, %v415_v29  ;;  %1201 = vmatpush.msrb.mxu3 %v1553_v56  ;;  %v1570_v25 = vld [vmem:[%s2807_s4 + $0x270] sm:$0xff]  ;;  %v886_v41 = vld [vmem:[%s2807_s4 + $0x68] sm:$0xff] }
 0x12e   : > { %v438_v58 = vsub.f32 %v381_v28, %v422_v34  ;;  %v2324_v19 = vadd.f32 %v2141_v11, %v663_v37  ;;  %v2326_v38 = vadd.f32 1e-05, %v450_v62  ;;  %v458_v35 = vmul.f32 0.0625, %v442_v63  ;;  %v887_v37 = vld [vmem:[%s2807_s4 + $0x70] sm:$0xff]  ;;  %1314 = vmatpush.msrb.mxu0 %v1570_v25  ;;  %v1569_v62 = vld [vmem:[%s2807_s4 + $0x268] sm:$0xff] }
 0x12f   : > { %v494_v23 = vsub.f32 1.5, %v493_v10  ;;  %v897_v43 = vld [vmem:[#allocation2 + $0x42] sm:$0xff]  ;;  %1088 = vmatpush.msrb.mxu2 %v1536_v14  ;;  %v2328_v6 = vpop.eup %1659  ;;  %v689_v1 = vadd.f32 %v2141_v11, %v669_v46  ;;  %vm497_vm8 = vweird.f32 %v2265_v30  ;;  %v462_v33 = vmul.f32 0.0625, %v446_v54  ;;  %1202 = vmatpush.msrb.mxu3 %v1552_v49  ;;  %v1550_v3 = vld [vmem:[%s2807_s4 + $0x1d0] sm:$0xff] }
 0x130   : > { %v454_v8 = vmul.f32 0.0625, %v438_v58  ;;  %962 = vmatmul.f32.vlgmr.msra.gmra.mxu2 %v897_v43  ;;  %v709_v55 = vmax.f32 %v2309_v31, 0.0  ;;  %v481_v9 = vmul.f32 %v2328_v6, %v2270_v12  ;;  %1663 = vrsqrt.f32 %v2326_v38  ;;  %988 = vmatpush.msrb.mxu1 %v887_v37  ;;  %v1533_v31 = vld [vmem:[%s2807_s4 + $0x148] sm:$0xff]  ;;  %v885_v58 = vld [vmem:[%s2807_s4 + $0x60] sm:$0xff]  ;;  %v883_v49 = vld [vmem:[%s2807_s4 + $0x50] sm:$0xff] }
 0x131   : > { %v447_v47 = vsub.f32 %v399_v18, %v2318_v39  ;;  %v901_v2 = vld [vmem:[#allocation2 + $0x62] sm:$0xff]  ;;  %v2352_v40 = vpop.eup %1661  ;;  %v705_v57 = vmax.f32 %v689_v1, 0.0  ;;  %v495_v29 = vmul.f32 %v2265_v30, %v494_v23  ;;  %v2355_v16 = vadd.f32 1e-05, %v458_v35  ;;  %1089 = vmatpush.msrb.mxu2 %v1535_v36  ;;  %1203 = vmatpush.msrb.mxu3 %v1551_v45  ;;  %v1547_v36 = vld [vmem:[%s2807_s4 + $0x1b8] sm:$0xff] }
 0x132   : > { %v2357_v13 = vadd.f32 1e-05, %v462_v33  ;;  %974 = vmatmul.f32.vlgmr.msra.gmra.mxu3 %v901_v2  ;;  %v699_v44 = vmax.f32 %v2324_v19, 0.0  ;;  %v482_v26 = vmul.f32 %v2328_v6, %v481_v9  ;;  %v531_v20 = vmul.f32 %v2352_v40, %v2289_v52  ;;  %989 = vmatpush.msrb.mxu1 %v886_v41  ;;  %v1549_v63 = vld [vmem:[%s2807_s4 + $0x1c8] sm:$0xff]  ;;  %v1532_v39 = vld [vmem:[%s2807_s4 + $0x140] sm:$0xff]  ;;  %v1530_v2 = vld [vmem:[%s2807_s4 + $0x130] sm:$0xff] }
 0x133   : > { %v2366_v28 = vadd.f32 1e-05, %v454_v8  ;;  %v2378_v34 = vmul.f32 %v1962_v51, %v705_v57  ;;  %vm496_vm9 = vweird.f32 %v2231_v32  ;;  %1665 = vrsqrt.f32 %v2355_v16  ;;  %1090 = vmatpush.msrb.mxu2 %v1534_v42  ;;  %1204 = vmatpush.msrb.mxu3 %v1550_v3  ;;  %v1568_v18 = vld [vmem:[%s2807_s4 + $0x260] sm:$0xff]  ;;  %v882_v45 = vld [vmem:[%s2807_s4 + $0x48] sm:$0xff] }
 0x134   : > { %vm2390_vm10 = vmor %vm496_vm9, %vm497_vm8  ;;  %v483_v51 = vmul.f32 0.5, %v482_v26  ;;  %vm487_vm11 = vweird.f32 %v2328_v6  ;;  %v532_v32 = vmul.f32 %v2352_v40, %v531_v20  ;;  %1667 = vrsqrt.f32 %v2357_v13  ;;  %1315 = vmatpush.msrb.mxu0 %v1569_v62  ;;  %990 = vmatpush.msrb.mxu1 %v885_v58  ;;  %v1548_v35 = vld [vmem:[%s2807_s4 + $0x1c0] sm:$0xff]  ;;  %v1546_v26 = vld [vmem:[%s2807_s4 + $0x1b0] sm:$0xff] }
 0x135   : > { %850 = vst [vmem:[#allocation2 + $0x4c] sm:$0xff] %v2378_v34  ;;  %1669 = vrsqrt.f32 %v2366_v28  ;;  %v463_v56 = vmul.f32 0.0625, %v447_v47  ;;  %v2406_v46 = vmul.f32 %v1964_v53, %v709_v55  ;;  %v499_v54 = vsel %vm2390_vm10, %v2265_v30, %v495_v29  ;;  %1091 = vmatpush.msrb.mxu2 %v1533_v31  ;;  %1205 = vmatpush.msrb.mxu3 %v1549_v63  ;;  %v1544_v8 = vld [vmem:[%s2807_s4 + $0x1a0] sm:$0xff] }
 0x136   : > { %v2420_v53 = vpop.eup %1663  ;;  %v484_v14 = vsub.f32 1.5, %v483_v51  ;;  %v533_v19 = vmul.f32 0.5, %v532_v32  ;;  %v641_v30 = vmul.f32 %v499_v54, %v1895_v5  ;;  %v2424_v23 = vmul.f32 %v1956_v48, %v699_v44  ;;  %v884_v5 = vld [vmem:[%s2807_s4 + $0x58] sm:$0xff]  ;;  %1316 = vmatpush.msrb.mxu0 %v1568_v18  ;;  %v881_v32 = vld [vmem:[%s2807_s4 + $0x40] sm:$0xff]  ;;  %v1545_v54 = vld [vmem:[%s2807_s4 + $0x1a8] sm:$0xff] }
 0x137   : > { %vm486_vm12 = vweird.f32 %v2270_v12  ;;  %v501_v43 = vmul.f32 %v2420_v53, %v2326_v38  ;;  %v2432_v1 = vadd.f32 1e-05, %v463_v56  ;;  %854 = vst [vmem:[#allocation2 + $0x6c] sm:$0xff] %v2406_v46  ;;  %1092 = vmatpush.msrb.mxu2 %v1532_v39  ;;  %v1531_v48 = vld [vmem:[%s2807_s4 + $0x138] sm:$0xff]  ;;  %vm536_vm14 = vweird.f32 %v2289_v52  ;;  %991 = vmatpush.msrb.mxu1 %v884_v5  ;;  %v1565_v52 = vld [vmem:[%s2807_s4 + $0x248] sm:$0xff] }
 0x138   : > { %v1567_v12 = vld [vmem:[%s2807_s4 + $0x258] sm:$0xff]  ;;  %v485_v33 = vmul.f32 %v2328_v6, %v484_v14  ;;  %vm2447_vm13 = vmor %vm486_vm12, %vm487_vm11  ;;  %v534_v59 = vsub.f32 1.5, %v533_v19  ;;  %vm537_vm15 = vweird.f32 %v2352_v40  ;;  %844 = vst [vmem:[#allocation2 + $0x1c] sm:$0xff] %v2424_v23  ;;  %vm506_vm0 = vweird.f32 %v2326_v38  ;;  %1206 = vmatpush.msrb.mxu3 %v1548_v35  ;;  %v1564_v19 = vld [vmem:[%s2807_s4 + $0x240] sm:$0xff] }
 0x139   : > { %v2460_v55 = vpop.eup %1665  ;;  %v502_v9 = vmul.f32 %v2420_v53, %v501_v43  ;;  %1671 = vrsqrt.f32 %v2432_v1  ;;  %v661_v47 = vmul.f32 %v2110_v61, %v641_v30  ;;  %1093 = vmatpush.msrb.mxu2 %v1531_v48  ;;  %vm507_vm1 = vweird.f32 %v2420_v53  ;;  %1317 = vmatpush.msrb.mxu0 %v1567_v12  ;;  %vm2495_vm3 = vmor %vm536_vm14, %vm537_vm15 }
 0x13a   : > { %v2475_v57 = vpop.eup %1667  ;;  %v489_v29 = vsel %vm2447_vm13, %v2328_v6, %v485_v33  ;;  %v535_v37 = vmul.f32 %v2352_v40, %v534_v59  ;;  %v581_v44 = vmul.f32 %v2460_v55, %v2355_v16  ;;  %vm586_vm2 = vweird.f32 %v2355_v16  ;;  %992 = vmatpush.msrb.mxu1 %v883_v49  ;;  %1207 = vmatpush.msrb.mxu3 %v1547_v36  ;;  %v880_v33 = vld [vmem:[%s2807_s4 + $0x38] sm:$0xff]  ;;  %vm2560_vm10 = vmor %vm506_vm0, %vm507_vm1 }
 0x13b   : > { %v2488_v20 = vpop.eup %1669  ;;  %v640_v42 = vmul.f32 %v489_v29, %v1883_v0  ;;  %v503_v25 = vmul.f32 0.5, %v502_v9  ;;  %vm587_vm4 = vweird.f32 %v2460_v55  ;;  %v621_v3 = vmul.f32 %v2475_v57, %v2357_v13  ;;  %1094 = vmatpush.msrb.mxu2 %v1530_v2  ;;  %v1529_v0 = vld [vmem:[%s2807_s4 + $0x128] sm:$0xff]  ;;  %1318 = vmatpush.msrb.mxu0 %v1566_v24  ;;  %v1527_v9 = vld [vmem:[%s2807_s4 + $0x118] sm:$0xff] }
 0x13c   : > { %vm626_vm5 = vweird.f32 %v2357_v13  ;;  %v539_v41 = vsel %vm2495_vm3, %v2352_v40, %v535_v37  ;;  %v582_v31 = vmul.f32 %v2460_v55, %v581_v44  ;;  %vm627_vm6 = vweird.f32 %v2475_v57  ;;  %v898_v51 = vld [vmem:[#allocation2 + $0x4a] sm:$0xff]  ;;  %993 = vmatpush.msrb.mxu1 %v882_v45  ;;  %1208 = vmatpush.msrb.mxu3 %v1546_v26  ;;  %v736_v44 = vpop.permute.xlu0 %735  ;;  %vm2585_vm11 = vmor %vm586_vm2, %vm587_vm4 }
 0x13d   : > { %v541_v10 = vmul.f32 %v2488_v20, %v2366_v28  ;;  %vm546_vm7 = vweird.f32 %v2366_v28  ;;  %v660_v62 = vmul.f32 %v2110_v61, %v640_v42  ;;  %v645_v40 = vmul.f32 %v539_v41, %v1891_v4  ;;  %965 = vmatmul.f32.gmra.mxu2 %v898_v51  ;;  %1319 = vmatpush.msrb.mxu0 %v1565_v52  ;;  %v1528_v4 = vld [vmem:[%s2807_s4 + $0x120] sm:$0xff]  ;;  %v879_v26 = vld [vmem:[%s2807_s4 + $0x30] sm:$0xff]  ;;  %v1543_v42 = vld [vmem:[%s2807_s4 + $0x198] sm:$0xff] }
 0x13e   : > { %v504_v63 = vsub.f32 1.5, %v503_v25  ;;  %v622_v56 = vmul.f32 %v2475_v57, %v621_v3  ;;  %v583_v58 = vmul.f32 0.5, %v582_v31  ;;  %vm547_vm8 = vweird.f32 %v2488_v20  ;;  %v902_v14 = vld [vmem:[#allocation2 + $0x6a] sm:$0xff]  ;;  %1095 = vmatpush.msrb.mxu2 %v1529_v0  ;;  %994 = vmatpush.msrb.mxu1 %v881_v32  ;;  %vm2605_vm12 = vmor %vm626_vm5, %vm627_vm6  ;;  %v877_v28 = vld [vmem:[%s2807_s4 + $0x20] sm:$0xff] }
 0x13f   : > { %v542_v39 = vmul.f32 %v2488_v20, %v541_v10  ;;  %v681_v18 = vadd.f32 %v2141_v11, %v661_v47  ;;  %v2535_v30 = vpop.eup %1671  ;;  %v680_v35 = vadd.f32 %v2141_v11, %v660_v62  ;;  %v665_v43 = vmul.f32 %v2110_v61, %v645_v40  ;;  %v893_v12 = vld [vmem:[#allocation2 + $0x22] sm:$0xff]  ;;  %977 = vmatmul.f32.gmra.mxu3 %v902_v14  ;;  %v1563_v47 = vld [vmem:[%s2807_s4 + $0x238] sm:$0xff]  ;;  %v1526_v0 = vld [vmem:[%s2807_s4 + $0x110] sm:$0xff] }
 0x140   : > { %v505_v5 = vmul.f32 %v2420_v53, %v504_v63  ;;  %v623_v48 = vmul.f32 0.5, %v622_v56  ;;  %v584_v59 = vsub.f32 1.5, %v583_v58  ;;  %v631_v36 = vmul.f32 %v2535_v30, %v2432_v1  ;;  %950 = vmatmul.f32.vlgmr.msra.gmra.mxu1 %v893_v12  ;;  %1209 = vmatpush.msrb.mxu3 %v1545_v54  ;;  %v1562_v52 = vld [vmem:[%s2807_s4 + $0x230] sm:$0xff]  ;;  %v878_v32 = vld [vmem:[%s2807_s4 + $0x28] sm:$0xff]  ;;  %vm2622_vm13 = vmor %vm546_vm7, %vm547_vm8 }
 0x141   : > { %v543_v49 = vmul.f32 0.5, %v542_v39  ;;  %vm637_vm9 = vweird.f32 %v2535_v30  ;;  %v696_v2 = vmax.f32 %v680_v35, 0.0  ;;  %v685_v24 = vadd.f32 %v2141_v11, %v665_v43  ;;  %1096 = vmatpush.msrb.mxu2 %v1528_v4  ;;  %1320 = vmatpush.msrb.mxu0 %v1564_v19  ;;  %v1542_v56 = vld [vmem:[%s2807_s4 + $0x190] sm:$0xff]  ;;  %v1541_v14 = vld [vmem:[%s2807_s4 + $0x188] sm:$0xff]  ;;  %v1524_v4 = vld [vmem:[%s2807_s4 + $0x100] sm:$0xff] }
 0x142   : > { %v624_v29 = vsub.f32 1.5, %v623_v48  ;;  %v697_v37 = vmax.f32 %v681_v18, 0.0  ;;  %v585_v6 = vmul.f32 %v2460_v55, %v584_v59  ;;  %v632_v25 = vmul.f32 %v2535_v30, %v631_v36  ;;  %995 = vmatpush.msrb.mxu1 %v880_v33  ;;  %1210 = vmatpush.msrb.mxu3 %v1544_v8  ;;  %v876_v35 = vld [vmem:[%s2807_s4 + $0x18] sm:$0xff]  ;;  %v1540_v12 = vld [vmem:[%s2807_s4 + $0x180] sm:$0xff]  ;;  %v875_v59 = vld [vmem:[%s2807_s4 + $0x10] sm:$0xff] }
 0x143   : > { %v544_v38 = vsub.f32 1.5, %v543_v49  ;;  %v509_v3 = vsel %vm2560_vm10, %v2420_v53, %v505_v5  ;;  %v701_v41 = vmax.f32 %v685_v24, 0.0  ;;  %v2591_v10 = vmul.f32 %v1960_v50, %v696_v2  ;;  %1097 = vmatpush.msrb.mxu2 %v1527_v9  ;;  %1321 = vmatpush.msrb.mxu0 %v1563_v47  ;;  %v801_v5 = vpop.permute.xlu2 %800 }
 0x144   : > { %v625_v53 = vmul.f32 %v2475_v57, %v624_v29  ;;  %v2593_v51 = vmul.f32 %v736_v44, %v697_v37  ;;  %v589_v16 = vsel %vm2585_vm11, %v2460_v55, %v585_v6  ;;  %v633_v40 = vmul.f32 0.5, %v632_v25  ;;  %996 = vmatpush.msrb.mxu1 %v879_v26  ;;  %1211 = vmatpush.msrb.mxu3 %v1543_v42  ;;  %v1525_v55 = vld [vmem:[%s2807_s4 + $0x108] sm:$0xff]  ;;  %v741_v24 = vpop.permute.xlu0 %740  ;;  %v1558_v29 = vld [vmem:[%s2807_s4 + $0x210] sm:$0xff]  ;;  %v873_v25 = vld [vmem:[%s2807_s4] sm:$0xff] }
 0x145   : > { %v545_v50 = vmul.f32 %v2488_v20, %v544_v38  ;;  %v642_v63 = vmul.f32 %v509_v3, %v1919_v22  ;;  %v650_v13 = vmul.f32 %v589_v16, %v1907_v17  ;;  %841 = vst [vmem:[#allocation2 + $0x4] sm:$0xff] %v2591_v10  ;;  %v2631_v58 = vmul.f32 %v1981_v7, %v701_v41  ;;  %v1561_v17 = vld [vmem:[%s2807_s4 + $0x228] sm:$0xff]  ;;  %v1556_v41 = vld [vmem:[%s2807_s4 + $0x200] sm:$0xff] }
 0x146   : > { %v629_v22 = vsel %vm2605_vm12, %v2475_v57, %v625_v53  ;;  %1098 = vmatpush.msrb.mxu2 %v1526_v0  ;;  %1322 = vmatpush.msrb.mxu0 %v1562_v52  ;;  %v634_v39 = vsub.f32 1.5, %v633_v40  ;;  %842 = vst [vmem:[#allocation2 + $0xc] sm:$0xff] %v2593_v51  ;;  %vm636_vm14 = vweird.f32 %v2432_v1  ;;  %v1559_v1 = vld [vmem:[%s2807_s4 + $0x218] sm:$0xff]  ;;  %v874_v37 = vld [vmem:[%s2807_s4 + $0x8] sm:$0xff]  ;;  %v761_v0 = vpop.permute.xlu1 %760 }
 0x147   : > { %v654_v18 = vmul.f32 %v629_v22, %v1915_v21  ;;  %v662_v57 = vmul.f32 %v2110_v61, %v642_v63  ;;  %v549_v7 = vsel %vm2622_vm13, %v2488_v20, %v545_v50  ;;  %997 = vmatpush.msrb.mxu1 %v878_v32  ;;  %v670_v19 = vmul.f32 %v2110_v61, %v650_v13  ;;  %v1560_v20 = vld [vmem:[%s2807_s4 + $0x220] sm:$0xff]  ;;  %vm638_vm15 = vmor %vm636_vm14, %vm637_vm9  ;;  %v1557_v38 = vld [vmem:[%s2807_s4 + $0x208] sm:$0xff] }
 0x148   : > { %v646_v21 = vmul.f32 %v549_v7, %v1931_v15  ;;  %846 = vst [vmem:[#allocation2 + $0x2c] sm:$0xff] %v2631_v58  ;;  %1212 = vmatpush.msrb.mxu3 %v1542_v56  ;;  %1099 = vmatpush.msrb.mxu2 %v1525_v55  ;;  %v635_v43 = vmul.f32 %v2535_v30, %v634_v39  ;;  %v1283_v7 = vld [vmem:[#allocation2 + $0x20] sm:$0xff] }
 0x149   : > { %v674_v48 = vmul.f32 %v2110_v61, %v654_v18  ;;  %v682_v15 = vadd.f32 %v2141_v11, %v662_v57  ;;  %1323 = vmatpush.msrb.mxu0 %v1561_v17  ;;  %998 = vmatpush.msrb.mxu1 %v877_v28  ;;  %v690_v33 = vadd.f32 %v2141_v11, %v670_v19 }
 0x14a   : > { %v666_v8 = vmul.f32 %v2110_v61, %v646_v21  ;;  %1213 = vmatpush.msrb.mxu3 %v1541_v14  ;;  %1100 = vmatpush.msrb.mxu2 %v1524_v4  ;;  %v639_v36 = vsel %vm638_vm15, %v2535_v30, %v635_v43  ;;  %v1056_v14 = vld [vmem:[#allocation2 + $0x24] sm:$0xff] }
 0x14b   : > { %v694_v49 = vadd.f32 %v2141_v11, %v674_v48  ;;  %v698_v9 = vmax.f32 %v682_v15, 0.0  ;;  %1324 = vmatpush.msrb.mxu0 %v1560_v20  ;;  %999 = vmatpush.msrb.mxu1 %v876_v35  ;;  %v706_v47 = vmax.f32 %v690_v33, 0.0  ;;  %v655_v2 = vmul.f32 %v639_v36, %v1937_v27  ;;  %v806_v53 = vpop.permute.xlu2 %805  ;;  %v1059_v35 = vld [vmem:[#allocation2 + $0x3c] sm:$0xff]  ;;  %v1174_v48 = vld [vmem:[#allocation2 + $0x46] sm:$0xff] }
 0x14c   : > { %v686_v45 = vadd.f32 %v2141_v11, %v666_v8  ;;  %1214 = vmatpush.msrb.mxu3 %v1540_v12  ;;  %v889_v26 = vld [vmem:[#allocation2 + $0x2] sm:$0xff] }
 0x14d   : > { %v710_v44 = vmax.f32 %v694_v49, 0.0  ;;  %v810_v30 = vmul.f32 %v741_v24, %v698_v9  ;;  %1325 = vmatpush.msrb.mxu0 %v1559_v1  ;;  %1000 = vmatpush.msrb.mxu1 %v875_v59  ;;  %v2688_v42 = vmul.f32 %v1969_v60, %v706_v47  ;;  %v675_v27 = vmul.f32 %v2110_v61, %v655_v2  ;;  %v890_v16 = vld [vmem:[#allocation2 + $0xa] sm:$0xff]  ;;  %v857_v22 = vld [vmem:[#allocation2] sm:$0xff] }
 0x14e   : > { %v702_v6 = vmax.f32 %v686_v45, 0.0  ;;  %938 = vmatmul.f32.vlgmr.msra.gmra.mxu0 %v889_v26  ;;  %v1166_v54 = vld [vmem:[#allocation2 + $0x6] sm:$0xff]  ;;  %v1173_v43 = vld [vmem:[#allocation2 + $0x3e] sm:$0xff] }
 0x14f   : > { %v2697_v3 = vmul.f32 %v801_v5, %v710_v44  ;;  %843 = vst [vmem:[#allocation2 + $0x14] sm:$0xff] %v810_v30  ;;  %v894_v52 = vld [vmem:[#allocation2 + $0x2a] sm:$0xff]  ;;  %1326 = vmatpush.msrb.mxu0 %v1558_v29  ;;  %1001 = vmatpush.msrb.mxu1 %v874_v37  ;;  %v695_v60 = vadd.f32 %v2141_v11, %v675_v27  ;;  %v1287_v5 = vld [vmem:[#allocation2 + $0x40] sm:$0xff] }
 0x150   : > { %851 = vst [vmem:[#allocation2 + $0x54] sm:$0xff] %v2688_v42  ;;  %v2701_v61 = vmul.f32 %v761_v0, %v702_v6  ;;  %953 = vmatmul.f32.gmra.mxu1 %v894_v52  ;;  %v1280_v17 = vld [vmem:[#allocation2 + $0x8] sm:$0xff]  ;;  %v1063_v59 = vld [vmem:[#allocation2 + $0x5c] sm:$0xff] }
 0x151   : > { %855 = vst [vmem:[#allocation2 + $0x74] sm:$0xff] %v2697_v3  ;;  %1327 = vmatpush.msrb.mxu0 %v1557_v38  ;;  %1002 = vmatpush.msrb.mxu1 %v873_v25  ;;  %v711_v31 = vmax.f32 %v695_v60, 0.0  ;;  %v1284_v4 = vld [vmem:[#allocation2 + $0x28] sm:$0xff]  ;;  %v1177_v49 = vld [vmem:[#allocation2 + $0x5e] sm:$0xff] }
 0x152   : > { %847 = vst [vmem:[#allocation2 + $0x34] sm:$0xff] %v2701_v61  ;;  %v1288_v15 = vld [vmem:[#allocation2 + $0x48] sm:$0xff] }
 0x153   : > { %1328 = vmatpush.msrb.mxu0 %v1556_v41  ;;  %v2708_v32 = vmul.f32 %v806_v53, %v711_v31  ;;  %v1064_v9 = vld [vmem:[#allocation2 + $0x64] sm:$0xff] }
 0x154   : > { %v1178_v47 = vld [vmem:[#allocation2 + $0x66] sm:$0xff] }
 0x155   : > { %856 = vst [vmem:[#allocation2 + $0x7c] sm:$0xff] %v2708_v32  ;;  %v1292_v29 = vld [vmem:[#allocation2 + $0x68] sm:$0xff] }
 0x156   : > { %941 = vmatmul.f32.gmra.mxu0 %v890_v16  ;;  %v891_v40 = vld [vmem:[#allocation2 + $0x12] sm:$0xff]  ;;  %v892_v13 = vld [vmem:[#allocation2 + $0x1a] sm:$0xff] }
 0x157   : > { %v899_v11 = vld [vmem:[#allocation2 + $0x52] sm:$0xff]  ;;  %v900_v56 = vld [vmem:[#allocation2 + $0x5a] sm:$0xff] }
 0x158   : > { %968 = vmatmul.f32.gmra.mxu2 %v899_v11  ;;  %v903_v62 = vld [vmem:[#allocation2 + $0x72] sm:$0xff] }
 0x159   : > { %980 = vmatmul.f32.gmra.mxu3 %v903_v62  ;;  %v895_v50 = vld [vmem:[#allocation2 + $0x32] sm:$0xff]  ;;  %v896_v55 = vld [vmem:[#allocation2 + $0x3a] sm:$0xff] }
 0x15a   : > { %956 = vmatmul.f32.gmra.mxu1 %v895_v50  ;;  %v1167_v28 = vld [vmem:[#allocation2 + $0xe] sm:$0xff]  ;;  %v1168_v18 = vld [vmem:[#allocation2 + $0x16] sm:$0xff] }
 0x15b   : > { %v1281_v39 = vld [vmem:[#allocation2 + $0x10] sm:$0xff]  ;;  %v1282_v57 = vld [vmem:[#allocation2 + $0x18] sm:$0xff] }
 0x15c   : > { %v904_v63 = vld [vmem:[#allocation2 + $0x7a] sm:$0xff]  ;;  %v1171_v19 = vld [vmem:[#allocation2 + $0x2e] sm:$0xff] }
 0x15d   : > { %v1285_v21 = vld [vmem:[#allocation2 + $0x30] sm:$0xff]  ;;  %v1286_v20 = vld [vmem:[#allocation2 + $0x38] sm:$0xff]  ;;  %v1295_v53 = vld [vmem:[#allocation2 + $0x80] sm:$0xff] }
 0x15e   : > { %944 = vmatmul.f32.gmra.mxu0 %v891_v40  ;;  %v1175_v12 = vld [vmem:[#allocation2 + $0x4e] sm:$0xff]  ;;  %v1176_v8 = vld [vmem:[#allocation2 + $0x56] sm:$0xff] }
 0x15f   : > { %v1289_v33 = vld [vmem:[#allocation2 + $0x50] sm:$0xff]  ;;  %v1290_v1 = vld [vmem:[#allocation2 + $0x58] sm:$0xff] }
 0x160   : > { %971 = vmatmul.f32.gmra.mxu2 %v900_v56  ;;  %v1179_v44 = vld [vmem:[#allocation2 + $0x6e] sm:$0xff]  ;;  %v1180_v38 = vld [vmem:[#allocation2 + $0x76] sm:$0xff] }
 0x161   : > { %983 = vmatmul.f32.gmra.mxu3 %v904_v63  ;;  %v1293_v27 = vld [vmem:[#allocation2 + $0x70] sm:$0xff]  ;;  %v1294_v52 = vld [vmem:[#allocation2 + $0x78] sm:$0xff] }
 0x162   : > { %959 = vmatmul.f32.gmra.mxu1 %v896_v55 }
 0x166   : > { %947 = vmatmul.f32.gmra.mxu0 %v892_v13 }
 0x168   : > { %1101 = vmatmul.f32.vlgmr.msrb.gmra.mxu2 %v2591_v10  ;;  %v1169_v10 = vld [vmem:[#allocation2 + $0x1e] sm:$0xff] }
 0x169   : > { %1215 = vmatmul.f32.vlgmr.msrb.gmra.mxu3 %v1166_v54 }
 0x16a   : > { %1003 = vmatmul.f32.vlgmr.msrb.gmra.mxu1 %v857_v22 }
 0x16e   : > { %1329 = vmatmul.f32.vlgmr.msrb.gmra.mxu0 %v1280_v17 }
 0x170   : > { %1104 = vmatmul.f32.gmra.mxu2 %v2593_v51  ;;  %v1170_v51 = vld [vmem:[#allocation2 + $0x26] sm:$0xff] }
 0x171   : > { %1218 = vmatmul.f32.gmra.mxu3 %v1167_v28 }
 0x172   : > { %1006 = vmatmul.f32.gmra.mxu1 %v1280_v17 }
 0x176   : > { %1332 = vmatmul.f32.gmra.mxu0 %v1281_v39 }
 0x178   : > { %1107 = vmatmul.f32.gmra.mxu2 %v810_v30 }
 0x179   : > { %1221 = vmatmul.f32.gmra.mxu3 %v1168_v18 }
 0x17a   : > { %1009 = vmatmul.f32.gmra.mxu1 %v1281_v39 }
 0x17e   : > { %1335 = vmatmul.f32.gmra.mxu0 %v1282_v57 }
 0x180   : > { %1110 = vmatmul.f32.gmra.mxu2 %v2424_v23  ;;  %v1172_v23 = vld [vmem:[#allocation2 + $0x36] sm:$0xff] }
 0x181   : > { %1224 = vmatmul.f32.gmra.mxu3 %v1169_v10 }
 0x182   : > { %1012 = vmatmul.f32.gmra.mxu1 %v1282_v57 }
 0x186   : > { %1338 = vmatmul.f32.gmra.mxu0 %v1283_v7 }
 0x188   : > { %1113 = vmatmul.f32.gmra.mxu2 %v1056_v14 }
 0x189   : > { %1227 = vmatmul.f32.gmra.mxu3 %v1170_v51 }
 0x18a   : > { %1015 = vmatmul.f32.gmra.mxu1 %v1283_v7 }
 0x18e   : > { %1341 = vmatmul.f32.gmra.mxu0 %v1284_v4 }
 0x190   : > { %1116 = vmatmul.f32.gmra.mxu2 %v2631_v58  ;;  %v1060_v58 = vld [vmem:[#allocation2 + $0x44] sm:$0xff] }
 0x191   : > { %1230 = vmatmul.f32.gmra.mxu3 %v1171_v19 }
 0x192   : > { %1018 = vmatmul.f32.gmra.mxu1 %v1284_v4 }
 0x196   : > { %1344 = vmatmul.f32.gmra.mxu0 %v1285_v21 }
 0x198   : > { %1119 = vmatmul.f32.gmra.mxu2 %v2701_v61  ;;  %v1181_v61 = vld [vmem:[#allocation2 + $0x7e] sm:$0xff] }
 0x199   : > { %1233 = vmatmul.f32.gmra.mxu3 %v1172_v23 }
 0x19a   : > { %1021 = vmatmul.f32.gmra.mxu1 %v1285_v21 }
 0x19e   : > { %1347 = vmatmul.f32.gmra.mxu0 %v1286_v20 }
 0x1a0   : > { %1122 = vmatmul.f32.gmra.mxu2 %v1059_v35 }
 0x1a1   : > { %1236 = vmatmul.f32.gmra.mxu3 %v1173_v43 }
 0x1a2   : > { %1024 = vmatmul.f32.gmra.mxu1 %v1286_v20 }
 0x1a6   : > { %1350 = vmatmul.f32.gmra.mxu0 %v1287_v5 }
 0x1a8   : > { %1125 = vmatmul.f32.gmra.mxu2 %v1060_v58 }
 0x1a9   : > { %1239 = vmatmul.f32.gmra.mxu3 %v1174_v48 }
 0x1aa   : > { %1027 = vmatmul.f32.gmra.mxu1 %v1287_v5 }
 0x1ae   : > { %1353 = vmatmul.f32.gmra.mxu0 %v1288_v15 }
 0x1b0   : > { %1128 = vmatmul.f32.gmra.mxu2 %v2378_v34  ;;  %v1291_v34 = vld [vmem:[#allocation2 + $0x60] sm:$0xff] }
 0x1b1   : > { %1242 = vmatmul.f32.gmra.mxu3 %v1175_v12 }
 0x1b2   : > { %1030 = vmatmul.f32.gmra.mxu1 %v1288_v15 }
 0x1b3   : > { %v2720_v2 = vpop.f32.mrf.mxu2 }
 0x1b5   : > { %v2722_v24 = vpop.f32.mrf.mxu3 }
 0x1b6   : > { %1356 = vmatmul.f32.gmra.mxu0 %v1289_v33 }
 0x1b8   : > { %1131 = vmatmul.f32.gmra.mxu2 %v2688_v42 }
 0x1b9   : > { %1245 = vmatmul.f32.gmra.mxu3 %v1176_v8 }
 0x1ba   : > { %1033 = vmatmul.f32.gmra.mxu1 %v1289_v33 }
 0x1bd   : > { %v2718_v36 = vpop.f32.mrf.mxu1 }
 0x1be   : > { %1359 = vmatmul.f32.gmra.mxu0 %v1290_v1 }
 0x1c0   : > { %1134 = vmatmul.f32.gmra.mxu2 %v1063_v59  ;;  %v2727_v30 = vpop.f32.mrf.mxu2 }
 0x1c1   : > { %1248 = vmatmul.f32.gmra.mxu3 %v1177_v49 }
 0x1c2   : > { %1036 = vmatmul.f32.gmra.mxu1 %v1290_v1  ;;  %v2729_v42 = vpop.f32.mrf.mxu3 }
 0x1c6   : > { %1362 = vmatmul.f32.gmra.mxu0 %v1291_v34 }
 0x1c8   : > { %1137 = vmatmul.f32.gmra.mxu2 %v1064_v9 }
 0x1c9   : > { %1251 = vmatmul.f32.gmra.mxu3 %v1178_v47 }
 0x1ca   : > { %1039 = vmatmul.f32.gmra.mxu1 %v1291_v34 }
 0x1cb   : > { %v939_v45 = vpop.f32.mrf.mxu0 }
 0x1cd   : > { %v2724_v37 = vpop.f32.mrf.mxu1 }
 0x1ce   : > { %1365 = vmatmul.f32.gmra.mxu0 %v1292_v29 }
 0x1d0   : > { %1140 = vmatmul.f32.gmra.mxu2 %v2406_v46 }
 0x1d1   : > { %1254 = vmatmul.f32.gmra.mxu3 %v1179_v44 }
 0x1d2   : > { %1042 = vmatmul.f32.gmra.mxu1 %v1292_v29 }
 0x1d3   : > { %v942_v26 = vpop.f32.mrf.mxu0 }
 0x1d6   : > { %1368 = vmatmul.f32.gmra.mxu0 %v1293_v27 }
 0x1d7   : > { %v2731_v6 = vpop.f32.mrf.mxu1 }
 0x1d8   : > { %1143 = vmatmul.f32.gmra.mxu2 %v2697_v3 }
 0x1d9   : > { %1257 = vmatmul.f32.gmra.mxu3 %v1180_v38 }
 0x1da   : > { %1045 = vmatmul.f32.gmra.mxu1 %v1293_v27 }
 0x1db   : > { %v2734_v25 = vpop.f32.mrf.mxu2  ;;  %v945_v46 = vpop.f32.mrf.mxu0 }
 0x1dc   : > { %v2736_v0 = vpop.f32.mrf.mxu3 }
 0x1de   : > { %1371 = vmatmul.f32.gmra.mxu0 %v1294_v52 }
 0x1df   : > { %v2738_v60 = vpop.f32.mrf.mxu1 }
 0x1e0   : > { %1146 = vmatmul.f32.gmra.mxu2 %v2708_v32  ;;  %v2748_v32 = vld [vmem:[%s2808_s5] ss:$0 sm:$0xff] }
 0x1e1   : > { %1260 = vmatmul.f32.gmra.mxu3 %v1181_v61 }
 0x1e2   : > { %1048 = vmatmul.f32.gmra.mxu1 %v1294_v52 }
 0x1e3   : > { %v2741_v41 = vpop.f32.mrf.mxu2  ;;  %v948_v3 = vpop.f32.mrf.mxu0 }
 0x1e4   : > { %v2743_v31 = vpop.f32.mrf.mxu3 }
 0x1e6   : > { %1374 = vmatmul.f32.gmra.mxu0 %v1295_v53 }
 0x1e7   : > { %v1004_v16 = vpop.f32.mrf.mxu1 }
 0x1e8   : > { %v1005_v11 = vadd.f32 %v1004_v16, %v939_v45 }
 0x1eb   : > { %v1102_v62 = vpop.f32.mrf.mxu2  ;;  %v1330_v50 = vpop.f32.mrf.mxu0 }
 0x1ec   : > { %v1216_v40 = vpop.f32.mrf.mxu3  ;;  %v1150_v63 = vadd.f32 %v1102_v62, %v1005_v11 }
 0x1ee   : > { %v1264_v56 = vadd.f32 %v1216_v40, %v1150_v63 }
 0x1ef   : > { %v1007_v55 = vpop.f32.mrf.mxu1 }
 0x1f0   : > { %v1378_v13 = vadd.f32 %v1330_v50, %v1264_v56  ;;  %v1008_v54 = vadd.f32 %v1007_v55, %v942_v26 }
 0x1f2   : > { %v1398_v22 = vadd.f32 %v2748_v32, %v1378_v13 }
 0x1f3   : > { %v1105_v17 = vpop.f32.mrf.mxu2  ;;  %v1333_v28 = vpop.f32.mrf.mxu0 }
 0x1f4   : > { %1414 = vst [vmem:[%s2754_s20] sm:$0xff] %v1398_v22  ;;  %v1219_v39 = vpop.f32.mrf.mxu3  ;;  %v1151_v18 = vadd.f32 %v1105_v17, %v1008_v54 }
 0x1f6   : > { %v1265_v57 = vadd.f32 %v1219_v39, %v1151_v18 }
 0x1f7   : > { %v1010_v10 = vpop.f32.mrf.mxu1 }
 0x1f8   : > { %v1379_v7 = vadd.f32 %v1333_v28, %v1265_v57  ;;  %v1011_v14 = vadd.f32 %v1010_v10, %v945_v46 }
 0x1fa   : > { %v1399_v51 = vadd.f32 %v2748_v32, %v1379_v7 }
 0x1fb   : > { %v1108_v4 = vpop.f32.mrf.mxu2  ;;  %v1336_v19 = vpop.f32.mrf.mxu0 }
 0x1fc   : > { %1415 = vst [vmem:[%s2754_s20 + $0x8] sm:$0xff] %v1399_v51  ;;  %v1222_v21 = vpop.f32.mrf.mxu3  ;;  %v1152_v23 = vadd.f32 %v1108_v4, %v1011_v14 }
 0x1fe   : > { %v1266_v20 = vadd.f32 %v1222_v21, %v1152_v23 }
 0x1ff   : > { %v1013_v35 = vpop.f32.mrf.mxu1 }
 0x200   : > { %v1380_v43 = vadd.f32 %v1336_v19, %v1266_v20  ;;  %v1014_v5 = vadd.f32 %v1013_v35, %v948_v3 }
 0x202   : > { %v1400_v58 = vadd.f32 %v2748_v32, %v1380_v43 }
 0x203   : > { %v1111_v48 = vpop.f32.mrf.mxu2  ;;  %v1339_v15 = vpop.f32.mrf.mxu0 }
 0x204   : > { %1416 = vst [vmem:[%s2754_s20 + $0x10] sm:$0xff] %v1400_v58  ;;  %v1225_v12 = vpop.f32.mrf.mxu3  ;;  %v1153_v33 = vadd.f32 %v1111_v48, %v1014_v5 }
 0x206   : > { %v1267_v8 = vadd.f32 %v1225_v12, %v1153_v33 }
 0x207   : > { %v1016_v1 = vpop.f32.mrf.mxu1 }
 0x208   : > { %v1381_v59 = vadd.f32 %v1339_v15, %v1267_v8  ;;  %v1017_v49 = vadd.f32 %v1016_v1, %v2718_v36 }
 0x20a   : > { %v1401_v34 = vadd.f32 %v2748_v32, %v1381_v59 }
 0x20b   : > { %v1114_v9 = vpop.f32.mrf.mxu2  ;;  %v1342_v47 = vpop.f32.mrf.mxu0 }
 0x20c   : > { %1417 = vst [vmem:[%s2754_s20 + $0x18] sm:$0xff] %v1401_v34  ;;  %v1228_v45 = vpop.f32.mrf.mxu3  ;;  %v1154_v29 = vadd.f32 %v1114_v9, %v1017_v49 }
 0x20e   : > { %v1268_v44 = vadd.f32 %v1228_v45, %v1154_v29 }
 0x20f   : > { %v1019_v26 = vpop.f32.mrf.mxu1 }
 0x210   : > { %v1382_v27 = vadd.f32 %v1342_v47, %v1268_v44  ;;  %v1020_v38 = vadd.f32 %v1019_v26, %v2724_v37 }
 0x212   : > { %v1402_v46 = vadd.f32 %v2748_v32, %v1382_v27 }
 0x213   : > { %v1117_v52 = vpop.f32.mrf.mxu2  ;;  %v1345_v61 = vpop.f32.mrf.mxu0 }
 0x214   : > { %1418 = vst [vmem:[%s2754_s20 + $0x20] sm:$0xff] %v1402_v46  ;;  %v1231_v3 = vpop.f32.mrf.mxu3  ;;  %v1155_v36 = vadd.f32 %v1117_v52, %v1020_v38 }
 0x216   : > { %v1269_v53 = vadd.f32 %v1231_v3, %v1155_v36 }
 0x217   : > { %v1022_v16 = vpop.f32.mrf.mxu1 }
 0x218   : > { %v1383_v11 = vadd.f32 %v1345_v61, %v1269_v53  ;;  %v1023_v62 = vadd.f32 %v1022_v16, %v2731_v6 }
 0x21a   : > { %v1403_v50 = vadd.f32 %v2748_v32, %v1383_v11 }
 0x21b   : > { %v1120_v40 = vpop.f32.mrf.mxu2  ;;  %v1348_v63 = vpop.f32.mrf.mxu0 }
 0x21c   : > { %1419 = vst [vmem:[%s2754_s20 + $0x28] sm:$0xff] %v1403_v50  ;;  %v1234_v56 = vpop.f32.mrf.mxu3  ;;  %v1156_v37 = vadd.f32 %v1120_v40, %v1023_v62 }
 0x21e   : > { %v1270_v55 = vadd.f32 %v1234_v56, %v1156_v37 }
 0x21f   : > { %v1025_v13 = vpop.f32.mrf.mxu1 }
 0x220   : > { %v1384_v54 = vadd.f32 %v1348_v63, %v1270_v55  ;;  %v1026_v22 = vadd.f32 %v1025_v13, %v2738_v60 }
 0x222   : > { %v1404_v17 = vadd.f32 %v2748_v32, %v1384_v54 }
 0x223   : > { %v1123_v28 = vpop.f32.mrf.mxu2  ;;  %v1351_v39 = vpop.f32.mrf.mxu0 }
 0x224   : > { %1420 = vst [vmem:[%s2754_s20 + $0x30] sm:$0xff] %v1404_v17  ;;  %v1237_v18 = vpop.f32.mrf.mxu3  ;;  %v1157_v6 = vadd.f32 %v1123_v28, %v1026_v22 }
 0x226   : > { %v1271_v57 = vadd.f32 %v1237_v18, %v1157_v6 }
 0x227   : > { %v1028_v10 = vpop.f32.mrf.mxu1 }
 0x228   : > { %v1385_v7 = vadd.f32 %v1351_v39, %v1271_v57  ;;  %v1029_v14 = vadd.f32 %v1028_v10, %v2720_v2 }
 0x22a   : > { %v1405_v51 = vadd.f32 %v2748_v32, %v1385_v7 }
 0x22b   : > { %v1126_v4 = vpop.f32.mrf.mxu2  ;;  %v1354_v19 = vpop.f32.mrf.mxu0 }
 0x22c   : > { %1421 = vst [vmem:[%s2754_s20 + $0x38] sm:$0xff] %v1405_v51  ;;  %v1240_v21 = vpop.f32.mrf.mxu3  ;;  %v1158_v60 = vadd.f32 %v1126_v4, %v1029_v14 }
 0x22e   : > { %v1272_v23 = vadd.f32 %v1240_v21, %v1158_v60 }
 0x22f   : > { %v1031_v20 = vpop.f32.mrf.mxu1 }
 0x230   : > { %v1386_v35 = vadd.f32 %v1354_v19, %v1272_v23  ;;  %v1032_v43 = vadd.f32 %v1031_v20, %v2727_v30 }
 0x232   : > { %v1406_v5 = vadd.f32 %v2748_v32, %v1386_v35 }
 0x233   : > { %v1129_v58 = vpop.f32.mrf.mxu2  ;;  %v1357_v48 = vpop.f32.mrf.mxu0 }
 0x234   : > { %1422 = vst [vmem:[%s2754_s20 + $0x40] sm:$0xff] %v1406_v5  ;;  %v1243_v15 = vpop.f32.mrf.mxu3  ;;  %v1159_v2 = vadd.f32 %v1129_v58, %v1032_v43 }
 0x236   : > { %v1273_v12 = vadd.f32 %v1243_v15, %v1159_v2 }
 0x237   : > { %v1034_v33 = vpop.f32.mrf.mxu1 }
 0x238   : > { %v1387_v8 = vadd.f32 %v1357_v48, %v1273_v12  ;;  %v1035_v1 = vadd.f32 %v1034_v33, %v2734_v25 }
 0x23a   : > { %v1407_v59 = vadd.f32 %v2748_v32, %v1387_v8 }
 0x23b   : > { %v1132_v49 = vpop.f32.mrf.mxu2  ;;  %v1360_v34 = vpop.f32.mrf.mxu0 }
 0x23c   : > { %1423 = vst [vmem:[%s2754_s20 + $0x48] sm:$0xff] %v1407_v59  ;;  %v1246_v9 = vpop.f32.mrf.mxu3  ;;  %v1160_v30 = vadd.f32 %v1132_v49, %v1035_v1 }
 0x23e   : > { %v1274_v47 = vadd.f32 %v1246_v9, %v1160_v30 }
 0x23f   : > { %v1037_v45 = vpop.f32.mrf.mxu1 }
 0x240   : > { %v1388_v29 = vadd.f32 %v1360_v34, %v1274_v47  ;;  %v1038_v44 = vadd.f32 %v1037_v45, %v2741_v41 }
 0x242   : > { %v1408_v26 = vadd.f32 %v2748_v32, %v1388_v29 }
 0x243   : > { %v1135_v27 = vpop.f32.mrf.mxu2  ;;  %v1363_v38 = vpop.f32.mrf.mxu0 }
 0x244   : > { %1424 = vst [vmem:[%s2754_s20 + $0x50] sm:$0xff] %v1408_v26  ;;  %v1249_v46 = vpop.f32.mrf.mxu3  ;;  %v1161_v25 = vadd.f32 %v1135_v27, %v1038_v44 }
 0x246   : > { %v1275_v52 = vadd.f32 %v1249_v46, %v1161_v25 }
 0x247   : > { %v1040_v61 = vpop.f32.mrf.mxu1 }
 0x248   : > { %v1389_v3 = vadd.f32 %v1363_v38, %v1275_v52  ;;  %v1041_v36 = vadd.f32 %v1040_v61, %v2722_v24 }
 0x24a   : > { %v1409_v53 = vadd.f32 %v2748_v32, %v1389_v3 }
 0x24b   : > { %v1138_v16 = vpop.f32.mrf.mxu2  ;;  %v1366_v11 = vpop.f32.mrf.mxu0 }
 0x24c   : > { %1425 = vst [vmem:[%s2754_s20 + $0x58] sm:$0xff] %v1409_v53  ;;  %v1252_v62 = vpop.f32.mrf.mxu3  ;;  %v1162_v41 = vadd.f32 %v1138_v16, %v1041_v36 }
 0x24e   : > { %v1276_v50 = vadd.f32 %v1252_v62, %v1162_v41 }
 0x24f   : > { %v1043_v40 = vpop.f32.mrf.mxu1 }
 0x250   : > { %v1390_v63 = vadd.f32 %v1366_v11, %v1276_v50  ;;  %v1044_v56 = vadd.f32 %v1043_v40, %v2729_v42 }
 0x252   : > { %v1410_v37 = vadd.f32 %v2748_v32, %v1390_v63 }
 0x253   : > { %v1141_v55 = vpop.f32.mrf.mxu2  ;;  %v1369_v13 = vpop.f32.mrf.mxu0 }
 0x254   : > { %1426 = vst [vmem:[%s2754_s20 + $0x60] sm:$0xff] %v1410_v37  ;;  %v1255_v54 = vpop.f32.mrf.mxu3  ;;  %v1163_v24 = vadd.f32 %v1141_v55, %v1044_v56 }
 0x256   : > { %v1277_v22 = vadd.f32 %v1255_v54, %v1163_v24 }
 0x257   : > { %v1046_v17 = vpop.f32.mrf.mxu1 }
 0x258   : > { %v1391_v28 = vadd.f32 %v1369_v13, %v1277_v22  ;;  %v1047_v39 = vadd.f32 %v1046_v17, %v2736_v0 }
 0x25a   : > { %v1411_v18 = vadd.f32 %v2748_v32, %v1391_v28 }
 0x25b   : > { %v1144_v6 = vpop.f32.mrf.mxu2  ;;  %v1372_v10 = vpop.f32.mrf.mxu0 }
 0x25c   : > { %1427 = vst [vmem:[%s2754_s20 + $0x68] sm:$0xff] %v1411_v18  ;;  %v1258_v57 = vpop.f32.mrf.mxu3  ;;  %v1164_v42 = vadd.f32 %v1144_v6, %v1047_v39 }
 0x25e   : > { %v1278_v7 = vadd.f32 %v1258_v57, %v1164_v42 }
 0x25f   : > { %v1049_v14 = vpop.f32.mrf.mxu1 }
 0x260   : > { %v1392_v51 = vadd.f32 %v1372_v10, %v1278_v7  ;;  %v1050_v4 = vadd.f32 %v1049_v14, %v2743_v31 }
 0x262   : > { %v1412_v19 = vadd.f32 %v2748_v32, %v1392_v51 }
 0x263   : > { %v1147_v21 = vpop.f32.mrf.mxu2  ;;  %v1375_v20 = vpop.f32.mrf.mxu0 }
 0x264   : > { %1428 = vst [vmem:[%s2754_s20 + $0x70] sm:$0xff] %v1412_v19  ;;  %v1165_v60 = vadd.f32 %v1147_v21, %v1050_v4  ;;  %v1261_v23 = vpop.f32.mrf.mxu3 }
 0x266   : > { %v1279_v0 = vadd.f32 %v1261_v23, %v1165_v60 }
 0x268   : > { %v1393_v35 = vadd.f32 %v1375_v20, %v1279_v0 }
 0x26a   : > { %v1413_v43 = vadd.f32 %v2748_v32, %v1393_v35 }
 0x26c   : > { %1429 = vst [vmem:[%s2754_s20 + $0x78] sm:$0xff] %v1413_v43 }
 0x26d PF: > { %s16_s21 = sadd.s32 1, %s1679_s21  }
 0x26e   : > { %p13_p4 = scmp.ge.s32.totalorder %s16_s21, 4  }
 0x270   :  { %15 = sbr.rel (!%p13_p4) target bundleno = 1 (0x1), region = 81 }

</bundles_post_ra>
